<compile_context>
chip_gen: v6e
topology: v6e:2x2x1
jax: 0.10.0
libtpu: 0.0.40
codegen_flags: <defaults>
</compile_context>

<pallas_src>
import functools
import math

import numpy as np

import jax
import jax.numpy as jnp
from jax.experimental import pallas as pl
from jax.experimental.pallas import tpu as pltpu


def _pick_chunk(n, target):
    """Largest chunk <= target that divides n and is a multiple of 128 (else full n)."""
    if n <= target:
        return n
    for c in range(target, 127, -128):
        if n % c == 0:
            return c
    return n


# ----------------------------------------------------------------------------
# Fused decoder-layer kernel (streamed masked cross-attn + q2q + self-attn + FFN)
# ----------------------------------------------------------------------------
def _decoder_layer_kernel(
        x_ref, feat_ref, qpos_ref, mask_ref,
        wq_x_ref, wk_x_ref, wv_x_ref, wo_x_ref,
        wg_ref, wl_ref,
        wq_s_ref, wk_s_ref, wv_s_ref, wo_s_ref,
        w1_ref, b1_ref, w2_ref, vec_ref,
        o_ref,
        qh_sc, m_sc, l_sc, acc_sc,
        *, num_heads, head_dim):
    H, Dh = num_heads, head_dim
    bf16 = jnp.bfloat16
    f32 = jnp.float32
    eps = 1e-5
    neg = jnp.float32(-1e30)

    k_idx = pl.program_id(1)
    nk = pl.num_programs(1)
    vecs = vec_ref[...]                          # [16, C] f32 packed biases / LN params

    # [H,M,D] x [H,N,D] -> [H,M,N]  (scores)
    dn_qk = (((2,), (2,)), ((0,), (0,)))
    # [H,M,N] x [H,N,D] -> [H,M,D]  (prob @ value)
    dn_pv = (((2,), (1,)), ((0,), (0,)))

    def to_heads(t):                             # [N, H*Dh] -> [H, N, Dh] (static lane slices)
        return jnp.stack([t[:, h * Dh:(h + 1) * Dh] for h in range(H)], axis=0)

    def merge_heads(t):                          # [H, N, Dh] -> [N, H*Dh]
        return jnp.concatenate([t[h] for h in range(H)], axis=-1)

    def ln(v, g, b):
        mu = jnp.mean(v, axis=-1, keepdims=True)
        var = jnp.mean((v - mu) ** 2, axis=-1, keepdims=True)
        return (v - mu) * jax.lax.rsqrt(var + eps) * g + b

    def mm(a, w_ref):                            # lane-dense bf16 MXU matmul, f32 accumulate
        return jnp.dot(a, w_ref[...], preferred_element_type=f32)

    # ---- per-batch init: query projection (1/sqrt(Dh) folded into Wq/bq) + softmax state ----
    @pl.when(k_idx == 0)
    def _():
        x_b = x_ref[0].astype(bf16)                                          # [Q, C]
        qh_sc[...] = to_heads((mm(x_b, wq_x_ref) + vecs[0:1]).astype(bf16))  # [H, Q, Dh]
        m_sc[...] = jnp.full_like(m_sc, neg)
        l_sc[...] = jnp.zeros_like(l_sc)
        acc_sc[...] = jnp.zeros_like(acc_sc)

    # ---- streamed masked cross-attention over this Lk chunk (Dwpart stand-in) ----
    feat = feat_ref[0]                                                       # [kc, C] bf16
    kh = to_heads((mm(feat, wk_x_ref) + vecs[1:2]).astype(bf16))             # [H, kc, Dh]
    vh = to_heads((mm(feat, wv_x_ref) + vecs[2:3]).astype(bf16))             # [H, kc, Dh]
    s = jax.lax.dot_general(qh_sc[...], kh, dn_qk,
                            preferred_element_type=f32)                      # [H, Q, kc]
    s = jnp.where((mask_ref[0] != 0)[None], neg, s)                          # broadcast over H
    m_prev = m_sc[...]
    m_new = jnp.maximum(m_prev, jnp.max(s, axis=-1, keepdims=True))
    alpha = jnp.exp(m_prev - m_new)
    p = jnp.exp(s - m_new)
    l_sc[...] = alpha * l_sc[...] + jnp.sum(p, axis=-1, keepdims=True)
    acc_sc[...] = alpha * acc_sc[...] + jax.lax.dot_general(
        p.astype(bf16), vh, dn_pv, preferred_element_type=f32)
    m_sc[...] = m_new

    # ---- finalize: out-proj, q2q, LN, self-attention, LN, FFN, LN ----
    @pl.when(k_idx == nk - 1)
    def _():
        x = x_ref[0]                                                         # [Q, C] f32
        x_b = x.astype(bf16)
        qpos = qpos_ref[...]                                                 # [Q, C] f32

        ctx = acc_sc[...] * pl.reciprocal(l_sc[...], approx=True)           # [H, Q, Dh]
        output_g = mm(merge_heads(ctx).astype(bf16), wo_x_ref) + vecs[3:4]  # [Q, C]

        # q2q on concat(output_g, output_l == init_query) + residual + LayerNorm
        out2 = mm(output_g.astype(bf16), wg_ref) + mm(x_b, wl_ref) + vecs[4:5]
        y = ln(x + out2, vecs[5:6], vecs[6:7])

        # self-attention: q = k = y + query_pos, v = y  (scale folded into Wq_s/bq_s)
        qk_in = (y + qpos).astype(bf16)
        qh = to_heads((mm(qk_in, wq_s_ref) + vecs[7:8]).astype(bf16))
        kh2 = to_heads((mm(qk_in, wk_s_ref) + vecs[8:9]).astype(bf16))
        vh2 = to_heads((mm(y.astype(bf16), wv_s_ref) + vecs[9:10]).astype(bf16))
        s2 = jax.lax.dot_general(qh, kh2, dn_qk, preferred_element_type=f32)   # [H, Q, Q]
        s2 = s2 - jnp.max(s2, axis=-1, keepdims=True)
        p2 = jnp.exp(s2)
        p2 = p2 * pl.reciprocal(jnp.sum(p2, axis=-1, keepdims=True), approx=True)
        ctx_s = jax.lax.dot_general(p2.astype(bf16), vh2, dn_pv,
                                    preferred_element_type=f32)
        sa_out = mm(merge_heads(ctx_s).astype(bf16), wo_s_ref) + vecs[10:11]
        y2 = ln(y + sa_out, vecs[11:12], vecs[12:13])

        # FFN
        t = jnp.maximum(mm(y2.astype(bf16), w1_ref) + b1_ref[...], 0.0)
        t2 = mm(t.astype(bf16), w2_ref) + vecs[13:14]
        y3 = ln(y2 + t2, vecs[14:15], vecs[15:16])

        o_ref[0] = y3


def decoder_layer(output, feat_nc_bf16, qpos, mask_i8, lp, num_heads, lk_target):
    """output [B,Q,C] f32; feat_nc_bf16 [B,Lk,C] bf16; mask_i8 [B,Q,Lk] int8 (1=masked)."""
    B, Q, C = output.shape
    Lk = feat_nc_bf16.shape[1]
    H = num_heads
    Dh = C // H
    dff = lp["w1"].shape[1]
    kc = _pick_chunk(Lk, lk_target)
    nk = Lk // kc
    kernel = functools.partial(_decoder_layer_kernel, num_heads=H, head_dim=Dh)
    wspec = pl.BlockSpec((C, C), lambda b, k: (0, 0))
    return pl.pallas_call(
        kernel,
        out_shape=jax.ShapeDtypeStruct((B, Q, C), jnp.float32),
        grid=(B, nk),
        in_specs=[
            pl.BlockSpec((1, Q, C), lambda b, k: (b, 0, 0)),      # x (queries)
            pl.BlockSpec((1, kc, C), lambda b, k: (b, k, 0)),     # feature chunk (bf16)
            pl.BlockSpec((Q, C), lambda b, k: (0, 0)),            # query_pos
            pl.BlockSpec((1, Q, kc), lambda b, k: (b, 0, k)),     # mask chunk (int8)
            wspec,                                                # wq_x (scale folded)
            wspec,                                                # wk_x
            wspec,                                                # wv_x
            wspec,                                                # wo_x
            wspec,                                                # q2q (output_g half)
            wspec,                                                # q2q (output_l half)
            wspec,                                                # wq_s (scale folded)
            wspec,                                                # wk_s
            wspec,                                                # wv_s
            wspec,                                                # wo_s
            pl.BlockSpec((C, dff), lambda b, k: (0, 0)),          # w1
            pl.BlockSpec((1, dff), lambda b, k: (0, 0)),          # b1
            pl.BlockSpec((dff, C), lambda b, k: (0, 0)),          # w2
            pl.BlockSpec((16, C), lambda b, k: (0, 0)),           # packed bias/LN vectors
        ],
        out_specs=pl.BlockSpec((1, Q, C), lambda b, k: (b, 0, 0)),
        scratch_shapes=[
            pltpu.VMEM((H, Q, Dh), jnp.bfloat16),                 # projected queries
            pltpu.VMEM((H, Q, 1), jnp.float32),                   # running max
            pltpu.VMEM((H, Q, 1), jnp.float32),                   # running denom
            pltpu.VMEM((H, Q, Dh), jnp.float32),                  # running accumulator
        ],
        compiler_params=pltpu.CompilerParams(
            dimension_semantics=("parallel", "arbitrary")),
    )(output, feat_nc_bf16, qpos, mask_i8,
      lp["wq_x"], lp["wk_x"], lp["wv_x"], lp["wo_x"],
      lp["wg"], lp["wl"],
      lp["wq_s"], lp["wk_s"], lp["wv_s"], lp["wo_s"],
      lp["w1"], lp["b1"], lp["w2"], lp["vecs"])


# ----------------------------------------------------------------------------
# Prediction head: (a) embed kernel (decoder LN + MLPs), (b) HW-tiled projection
# ----------------------------------------------------------------------------
def _mlp3(xb, w0_ref, w1_ref, w2_ref, b0, b1, b2):
    bf16 = jnp.bfloat16
    a = jnp.maximum(jnp.dot(xb, w0_ref[...], preferred_element_type=jnp.float32) + b0, 0.0)
    a = jnp.maximum(jnp.dot(a.astype(bf16), w1_ref[...],
                            preferred_element_type=jnp.float32) + b1, 0.0)
    return jnp.dot(a.astype(bf16), w2_ref[...], preferred_element_type=jnp.float32) + b2


def _decoder_ln(x, g, b):
    mu = jnp.mean(x, axis=-1, keepdims=True)
    var = jnp.mean((x - mu) ** 2, axis=-1, keepdims=True)
    return (x - mu) * jax.lax.rsqrt(var + 1e-5) * g + b


def _embed_mask_kernel(out_ref, mw0_ref, mw1_ref, mw2_ref, vec_ref, me_ref):
    v = vec_ref[...]
    xn = _decoder_ln(out_ref[0], v[0:1], v[1:2]).astype(jnp.bfloat16)
    me_ref[0] = _mlp3(xn, mw0_ref, mw1_ref, mw2_ref, v[5:6], v[6:7], v[7:8]).astype(jnp.bfloat16)


def _embed_both_kernel(out_ref, ow0_ref, ow1_ref, ow2_ref, mw0_ref, mw1_ref, mw2_ref,
                       vec_ref, oe_ref, me_ref):
    v = vec_ref[...]
    xn = _decoder_ln(out_ref[0], v[0:1], v[1:2]).astype(jnp.bfloat16)
    oe_ref[0] = _mlp3(xn, ow0_ref, ow1_ref, ow2_ref, v[2:3], v[3:4], v[4:5]).astype(jnp.bfloat16)
    me_ref[0] = _mlp3(xn, mw0_ref, mw1_ref, mw2_ref, v[5:6], v[6:7], v[7:8]).astype(jnp.bfloat16)


def embed_call(output, hp, with_class):
    """output [B,Q,C] f32 -> (out_embed|None, mask_embed) as [B,Q,Dm] bf16."""
    B, Q, C = output.shape
    Dm = hp["mw2"].shape[1]
    x_spec = pl.BlockSpec((1, Q, C), lambda b: (b, 0, 0))
    w_cc = pl.BlockSpec((C, C), lambda b: (0, 0))
    w_cd = pl.BlockSpec((C, Dm), lambda b: (0, 0))
    v_spec = pl.BlockSpec((8, C), lambda b: (0, 0))
    e_spec = pl.BlockSpec((1, Q, Dm), lambda b: (b, 0, 0))
    cparams = pltpu.CompilerParams(dimension_semantics=("parallel",))
    if with_class:
        oe, me = pl.pallas_call(
            _embed_both_kernel,
            out_shape=(jax.ShapeDtypeStruct((B, Q, Dm), jnp.bfloat16),
                       jax.ShapeDtypeStruct((B, Q, Dm), jnp.bfloat16)),
            grid=(B,),
            in_specs=[x_spec, w_cc, w_cc, w_cd, w_cc, w_cc, w_cd, v_spec],
            out_specs=(e_spec, e_spec),
            compiler_params=cparams,
        )(output, hp["ow0"], hp["ow1"], hp["ow2"], hp["mw0"], hp["mw1"], hp["mw2"], hp["vecs"])
        return oe, me
    me = pl.pallas_call(
        _embed_mask_kernel,
        out_shape=jax.ShapeDtypeStruct((B, Q, Dm), jnp.bfloat16),
        grid=(B,),
        in_specs=[x_spec, w_cc, w_cc, w_cd, v_spec],
        out_specs=e_spec,
        compiler_params=cparams,
    )(output, hp["mw0"], hp["mw1"], hp["mw2"], hp["vecs"])
    return None, me


def _project_kernel(emb_ref, feat_ref, o_ref):
    o_ref[0] = jnp.dot(emb_ref[0], feat_ref[0], preferred_element_type=jnp.float32)


def project_call(emb_bf, feat_bf, hw_chunk):
    """einsum('bqc,bc(hw)->bq(hw)'), tiled over the spatial dim."""
    B, Q, C = emb_bf.shape
    HW = feat_bf.shape[2]
    return pl.pallas_call(
        _project_kernel,
        out_shape=jax.ShapeDtypeStruct((B, Q, HW), jnp.float32),
        grid=(B, HW // hw_chunk),
        in_specs=[pl.BlockSpec((1, Q, C), lambda b, h: (b, 0, 0)),
                  pl.BlockSpec((1, C, hw_chunk), lambda b, h: (b, 0, h))],
        out_specs=pl.BlockSpec((1, Q, hw_chunk), lambda b, h: (b, 0, h)),
        compiler_params=pltpu.CompilerParams(dimension_semantics=("parallel", "parallel")),
    )(emb_bf, feat_bf)


# ----------------------------------------------------------------------------
# Plain-JAX glue: region statistics / attention-mask generation (tiny tensors)
# ----------------------------------------------------------------------------
def region_stats(outputs_mask, tgt_size):
    """outputs_mask [B,Q,Hm,Wm] f32 -> (attn_bool [B,Q,ht*wt], hard_mask [B,Q,3,3])."""
    B, Q, Hm, Wm = outputs_mask.shape
    rh, rw = Hm // 3, Wm // 3
    # TODO(synk): general ceil_mode / count_include_pad=False avg_pool2d not implemented;
    #             mask_features spatial size assumed divisible by 3 (true for shapes here).
    assert Hm == 3 * rh and Wm == 3 * rw
    blocks = outputs_mask.reshape(B, Q, 3, rh, 3, rw)
    reg_mask = blocks.mean(axis=(3, 5))                          # 3x3 avg pool
    pooled_cube = jnp.sum(blocks ** 3, axis=(3, 5))              # block sums of mask^3
    sq = outputs_mask ** 2
    outputs_length = jnp.sqrt(jnp.sum(sq, axis=(2, 3)) + 1e-10)
    outputs_cub_length = jnp.sqrt(jnp.sum(sq ** 3, axis=(2, 3)) + 1e-10)
    reg_up_length = jnp.sqrt(rh * rw * jnp.sum(reg_mask ** 2, axis=(2, 3)) + 1e-10)
    nei_multi = jnp.sum(reg_mask * pooled_cube, axis=(2, 3))
    cosine = nei_multi / (reg_up_length * outputs_cub_length)
    factor = (outputs_length * cosine / reg_up_length)[:, :, None, None]
    # reg_mask_proj (full res) == factor * nearest_up(reg_mask); nearest-resizing it to the
    # target size equals factor * nearest(reg_mask 3x3 -> target) (floor-composition identity).
    proj_small = factor * reg_mask                               # [B, Q, 3, 3]
    ht, wt = tgt_size
    ri = np.floor(np.arange(ht) * 3.0 / ht).astype(np.int32)
    ci = np.floor(np.arange(wt) * 3.0 / wt).astype(np.int32)
    attn_small = proj_small[:, :, ri, :][:, :, :, ci]            # [B, Q, ht, wt]
    attn_bool = (attn_small > 0.5).reshape(B, Q, ht * wt)
    hard_mask = (jax.nn.sigmoid(reg_mask) > 0.5).astype(jnp.float32)   # GCBlock8 stand-in ignores
    return attn_bool, hard_mask


# ----------------------------------------------------------------------------
# Parameter preparation (bf16 lane-dense weights, packed bias/LN vectors)
# ----------------------------------------------------------------------------
def prepare_layer_params(params, i, cfg):
    C = cfg["hidden_dim"]
    H = cfg["nheads"]
    Dh = C // H
    scale = 1.0 / math.sqrt(Dh)
    bf = jnp.bfloat16
    dw = params["dwpart"][i]
    sa = params["self_attn"][i]
    ffn = params["ffn"][i]
    q2q = params["q2q"][i]
    vecs = jnp.stack([
        dw["bq"] * scale, dw["bk"], dw["bv"], dw["bo"],
        q2q["b"], params["norm_g"], params["norm_b"],
        sa["bq"] * scale, sa["bk"], sa["bv"], sa["bo"],
        sa["norm_g"], sa["norm_b"],
        ffn["b2"], ffn["norm_g"], ffn["norm_b"],
    ], axis=0).astype(jnp.float32)
    return dict(
        wq_x=(dw["wq"] * scale).astype(bf), wk_x=dw["wk"].astype(bf),
        wv_x=dw["wv"].astype(bf), wo_x=dw["wo"].astype(bf),
        wg=q2q["w"][:C].astype(bf), wl=q2q["w"][C:].astype(bf),
        wq_s=(sa["wq"] * scale).astype(bf), wk_s=sa["wk"].astype(bf),
        wv_s=sa["wv"].astype(bf), wo_s=sa["wo"].astype(bf),
        w1=ffn["w1"].astype(bf), b1=ffn["b1"].reshape(1, -1).astype(jnp.float32),
        w2=ffn["w2"].astype(bf),
        vecs=vecs)


def prepare_head_params(params):
    oe = params["out_embed"]
    me = params["mask_embed"]
    bf = jnp.bfloat16
    vecs = jnp.stack([params["decoder_norm_g"], params["decoder_norm_b"],
                      oe["b0"], oe["b1"], oe["b2"],
                      me["b0"], me["b1"], me["b2"]], axis=0).astype(jnp.float32)
    return dict(ow0=oe["w0"].astype(bf), ow1=oe["w1"].astype(bf), ow2=oe["w2"].astype(bf),
                mw0=me["w0"].astype(bf), mw1=me["w1"].astype(bf), mw2=me["w2"].astype(bf),
                vecs=vecs)


# ----------------------------------------------------------------------------
# Decoder forward
# ----------------------------------------------------------------------------
def decoder_forward(params, x_list, mask_features, cfg):
    nl = cfg["num_feature_levels"]
    C = cfg["hidden_dim"]
    H = cfg["nheads"]
    Q = cfg["num_queries"]
    L = cfg["dec_layers"]
    lk_target = cfg.get("lk_chunk", 1024)
    hw_target = cfg.get("hw_chunk", 4096)
    assert len(x_list) == nl
    assert cfg["mask_dim"] == C
    B = x_list[0].shape[0]

    # NOTE: the reference forward also builds `src` (input_proj + level_embed) and the sine
    # positional encodings `pos`, but neither is consumed downstream (input_proj is identity
    # and the Fpath layers are never called), so that dead work is omitted here.
    size_list, feat_cn, feat_nc = [], [], []
    for i in range(nl):
        h_i, w_i = x_list[i].shape[-2:]
        size_list.append((h_i, w_i))
        f = x_list[i].reshape(B, C, h_i * w_i)
        feat_cn.append(f.astype(jnp.bfloat16))                            # [B, C, HW]
        feat_nc.append(jnp.transpose(f, (0, 2, 1)).astype(jnp.bfloat16))  # [B, HW, C]

    Hm, Wm = mask_features.shape[-2:]
    mfeat_bf = mask_features.reshape(B, C, Hm * Wm).astype(jnp.bfloat16)
    mask_chunk = _pick_chunk(Hm * Wm, hw_target)
    cls_chunk = [_pick_chunk(h * w, hw_target) for (h, w) in size_list]

    qpos = params["query_embed"].astype(jnp.float32)                      # [Q, C]
    output = jnp.broadcast_to(params["query_feat"][None], (B, Q, C)).astype(jnp.float32)

    layer_prep = [prepare_layer_params(params, i, cfg) for i in range(L)]
    head_prep = prepare_head_params(params)

    def pred_heads(out, lvl, tgt_size, need_class):
        oe, me = embed_call(out, head_prep, with_class=need_class)
        msk_flat = project_call(me, mfeat_bf, mask_chunk)
        cls_flat = project_call(oe, feat_cn[lvl], cls_chunk[lvl]) if need_class else None
        attn_bool, hard_mask = region_stats(msk_flat.reshape(B, Q, Hm, Wm), tgt_size)
        return cls_flat, msk_flat, attn_bool, hard_mask

    predictions_class, predictions_mask = [], []
    # Initial prediction-head call: outputs_class is never used -> mask-only path.
    _, _, attn_bool, hard_mask = pred_heads(output, 0, size_list[0], need_class=False)

    for i in range(L):
        lvl = i % nl
        # rows that are fully masked -> unmask (same fix as the PyTorch reference)
        full = jnp.all(attn_bool, axis=-1, keepdims=True)
        mask_i8 = jnp.logical_and(attn_bool, jnp.logical_not(full)).astype(jnp.int8)

        # fused decoder layer (Dwpart stand-in = masked cross-attn; GCBlock8 stand-in = identity)
        output = decoder_layer(output, feat_nc[lvl], qpos, mask_i8, layer_prep[i], H, lk_target)

        need_class = i >= L - 4
        outputs_class, outputs_mask, attn_bool, hard_mask = pred_heads(
            output, lvl, size_list[(i + 1) % nl], need_class)

        if need_class:
            h_l, w_l = size_list[lvl]
            predictions_class.append(outputs_class.reshape(B, Q, h_l, w_l))
        if i == L - 1:
            predictions_mask.append(outputs_mask.reshape(B, Q, Hm, Wm))

    assert len(predictions_class) == nl
    return {"pred_logits": predictions_class, "pred_masks": predictions_mask[-1]}


# ----------------------------------------------------------------------------
# Deterministic parameter initialization (synthetic, no checkpoints)
# ----------------------------------------------------------------------------
def init_params(key, cfg):
    C = cfg["hidden_dim"]
    dff = cfg["dim_feedforward"]
    Q = cfg["num_queries"]
    L = cfg["dec_layers"]
    mask_dim = cfg["mask_dim"]
    nlvl = cfg["num_feature_levels"]

    keys = list(jax.random.split(key, 256))
    idx = [0]

    def nk():
        k = keys[idx[0]]
        idx[0] += 1
        return k

    def xavier(fan_in, fan_out):
        a = math.sqrt(6.0 / (fan_in + fan_out))
        return jax.random.uniform(nk(), (fan_in, fan_out), jnp.float32, -a, a)

    def linear_p(fan_in, fan_out):
        return xavier(fan_in, fan_out), jnp.zeros((fan_out,), jnp.float32)

    def mha_p():
        wq, bq = linear_p(C, C)
        wk, bk = linear_p(C, C)
        wv, bv = linear_p(C, C)
        wo, bo = linear_p(C, C)
        return dict(wq=wq, bq=bq, wk=wk, bk=bk, wv=wv, bv=bv, wo=wo, bo=bo)

    def ln_p():
        return jnp.ones((C,), jnp.float32), jnp.zeros((C,), jnp.float32)

    params = {}
    params["dwpart"] = [mha_p() for _ in range(L)]

    sa_list = []
    for _ in range(L):
        p = mha_p()
        p["norm_g"], p["norm_b"] = ln_p()
        sa_list.append(p)
    params["self_attn"] = sa_list

    ffn_list = []
    for _ in range(L):
        w1, b1 = linear_p(C, dff)
        w2, b2 = linear_p(dff, C)
        g, bb = ln_p()
        ffn_list.append(dict(w1=w1, b1=b1, w2=w2, b2=b2, norm_g=g, norm_b=bb))
    params["ffn"] = ffn_list

    params["q2q"] = []
    for _ in range(L):
        w, b = linear_p(2 * C, C)
        params["q2q"].append(dict(w=w, b=b))

    params["decoder_norm_g"], params["decoder_norm_b"] = ln_p()
    params["norm_g"], params["norm_b"] = ln_p()

    def mlp_p(out_dim):
        w0, b0 = linear_p(C, C)
        w1, b1 = linear_p(C, C)
        w2, b2 = linear_p(C, out_dim)
        return dict(w0=w0, b0=b0, w1=w1, b1=b1, w2=w2, b2=b2)

    params["mask_embed"] = mlp_p(mask_dim)
    params["out_embed"] = mlp_p(mask_dim)

    params["query_feat"] = jax.random.normal(nk(), (Q, C), jnp.float32)
    params["query_embed"] = jax.random.normal(nk(), (Q, C), jnp.float32)
    params["query_embed_2"] = jax.random.normal(nk(), (Q, C), jnp.float32)   # unused in forward
    params["pos2"] = jax.random.normal(nk(), (100, 18), jnp.float32)         # GCBlock8-only
    params["pos3"] = jax.random.normal(nk(), (100, 18), jnp.float32)         # GCBlock8-only
    params["level_embed"] = jax.random.normal(nk(), (nlvl, C), jnp.float32)  # feeds dead `src`
    return params


# ----------------------------------------------------------------------------
# Main
# ----------------------------------------------------------------------------
if __name__ == "__main__":
    cfg = dict(hidden_dim=32, nheads=4, num_queries=8, dim_feedforward=64,
               dec_layers=4, mask_dim=32, num_feature_levels=4,
               lk_chunk=128, hw_chunk=4096)

    key = jax.random.PRNGKey(0)
    k_params, k_x = jax.random.split(key)
    params = init_params(k_params, cfg)

    B, C = 2, cfg["hidden_dim"]
    level_sizes = [(4, 4), (8, 8), (8, 8), (16, 16)]
    xk = jax.random.split(k_x, len(level_sizes) + 1)
    xs = tuple(jax.random.normal(xk[i], (B, C, h, w), jnp.float32)
               for i, (h, w) in enumerate(level_sizes))
    mask_features = jax.random.normal(xk[-1], (B, C, 12, 12), jnp.float32)

    fwd = jax.jit(functools.partial(decoder_forward, cfg=cfg))
    out = fwd(params, xs, mask_features)
    jax.block_until_ready(out)

    assert out["pred_masks"].shape == (B, cfg["num_queries"], 12, 12)
    assert len(out["pred_logits"]) == cfg["num_feature_levels"]
    for lvl, (h, w) in enumerate(level_sizes):
        assert out["pred_logits"][lvl].shape == (B, cfg["num_queries"], h, w)
    assert bool(jnp.isfinite(out["pred_masks"]).all())
    assert bool(jnp.isfinite(out["pred_logits"][-1]).all())
    print("KERNEL_OK")
</pallas_src>

<mosaic_0001>
module attributes {stable_mosaic.version = 11 : i64} {
  func.func @_embed_mask_kernel(%arg0: i32, %arg1: memref<1x8x32xf32, #tpu.memory_space<vmem>>, %arg2: memref<32x32xbf16, #tpu.memory_space<vmem>>, %arg3: memref<32x32xbf16, #tpu.memory_space<vmem>>, %arg4: memref<32x32xbf16, #tpu.memory_space<vmem>>, %arg5: memref<8x32xf32, #tpu.memory_space<vmem>>, %arg6: memref<1x8x32xbf16, #tpu.memory_space<vmem>>) attributes {dimension_semantics = [#tpu.dimension_semantics<parallel>], iteration_bounds = array<i64: 2>, scalar_prefetch = 0 : i64, scratch_operands = 0 : i64, tpu.core_type = #tpu.core_type<tc>, window_params = [{transform_indices = @transform_0, window_bounds = array<i64: 1, 8, 32>}, {pipeline_mode = #tpu.pipeline_mode<synchronous>, transform_indices = @transform_1, window_bounds = array<i64: 32, 32>}, {pipeline_mode = #tpu.pipeline_mode<synchronous>, transform_indices = @transform_2, window_bounds = array<i64: 32, 32>}, {pipeline_mode = #tpu.pipeline_mode<synchronous>, transform_indices = @transform_3, window_bounds = array<i64: 32, 32>}, {pipeline_mode = #tpu.pipeline_mode<synchronous>, transform_indices = @transform_4, window_bounds = array<i64: 8, 32>}, {transform_indices = @transform_5, window_bounds = array<i64: 1, 8, 32>}]} {
    %c0 = arith.constant 0 : index
    %c0_0 = arith.constant 0 : index
    %0 = vector.load %arg5[%c0, %c0_0] : memref<8x32xf32, #tpu.memory_space<vmem>>, vector<8x32xf32>
    %c0_1 = arith.constant 0 : index
    %c0_2 = arith.constant 0 : index
    %c0_3 = arith.constant 0 : index
    %1 = vector.load %arg1[%c0_1, %c0_2, %c0_3] : memref<1x8x32xf32, #tpu.memory_space<vmem>>, vector<1x8x32xf32>
    %2 = vector.shape_cast %1 : vector<1x8x32xf32> to vector<8x32xf32>
    %3 = vector.extract_strided_slice %0 {offsets = [0, 0], sizes = [1, 32], strides = [1, 1]} : vector<8x32xf32> to vector<1x32xf32>
    %4 = vector.extract_strided_slice %0 {offsets = [1, 0], sizes = [1, 32], strides = [1, 1]} : vector<8x32xf32> to vector<1x32xf32>
    %cst = arith.constant dense<0.000000e+00> : vector<8xf32>
    %5 = vector.multi_reduction <add>, %2, %cst [1] : vector<8x32xf32> to vector<8xf32>
    %6 = vector.shape_cast %5 : vector<8xf32> to vector<8x1xf32>
    %cst_4 = arith.constant 3.200000e+01 : f32
    %7 = vector.broadcast %cst_4 : f32 to vector<8x1xf32>
    %8 = arith.divf %6, %7 : vector<8x1xf32>
    %9 = vector.broadcast %8 : vector<8x1xf32> to vector<8x32xf32>
    %10 = arith.subf %2, %9 : vector<8x32xf32>
    %11 = arith.mulf %10, %10 : vector<8x32xf32>
    %cst_5 = arith.constant dense<0.000000e+00> : vector<8xf32>
    %12 = vector.multi_reduction <add>, %11, %cst_5 [1] : vector<8x32xf32> to vector<8xf32>
    %13 = vector.shape_cast %12 : vector<8xf32> to vector<8x1xf32>
    %cst_6 = arith.constant 3.200000e+01 : f32
    %14 = vector.broadcast %cst_6 : f32 to vector<8x1xf32>
    %15 = arith.divf %13, %14 : vector<8x1xf32>
    %16 = vector.broadcast %8 : vector<8x1xf32> to vector<8x32xf32>
    %17 = arith.subf %2, %16 : vector<8x32xf32>
    %cst_7 = arith.constant 9.99999974E-6 : f32
    %18 = vector.broadcast %cst_7 : f32 to vector<8x1xf32>
    %19 = arith.addf %15, %18 : vector<8x1xf32>
    %20 = math.rsqrt %19 : vector<8x1xf32>
    %21 = vector.broadcast %20 : vector<8x1xf32> to vector<8x32xf32>
    %22 = arith.mulf %17, %21 : vector<8x32xf32>
    %23 = vector.broadcast %3 : vector<1x32xf32> to vector<8x32xf32>
    %24 = arith.mulf %22, %23 : vector<8x32xf32>
    %25 = vector.broadcast %4 : vector<1x32xf32> to vector<8x32xf32>
    %26 = arith.addf %24, %25 : vector<8x32xf32>
    %27 = arith.truncf %26 : vector<8x32xf32> to vector<8x32xbf16>
    %28 = vector.extract_strided_slice %0 {offsets = [5, 0], sizes = [1, 32], strides = [1, 1]} : vector<8x32xf32> to vector<1x32xf32>
    %29 = vector.extract_strided_slice %0 {offsets = [6, 0], sizes = [1, 32], strides = [1, 1]} : vector<8x32xf32> to vector<1x32xf32>
    %30 = vector.extract_strided_slice %0 {offsets = [7, 0], sizes = [1, 32], strides = [1, 1]} : vector<8x32xf32> to vector<1x32xf32>
    %c0_8 = arith.constant 0 : index
    %c0_9 = arith.constant 0 : index
    %31 = vector.load %arg2[%c0_8, %c0_9] : memref<32x32xbf16, #tpu.memory_space<vmem>>, vector<32x32xbf16>
    %cst_10 = arith.constant dense<0.000000e+00> : vector<8x32xf32>
    %32 = tpu.matmul %27, %31, %cst_10 {dimension_numbers = #tpu.dot_dimension_numbers<[1], [0], [0], [1], [0, 0, 1, 1], [], []>} : vector<8x32xbf16>, vector<32x32xbf16>, vector<8x32xf32> -> vector<8x32xf32>
    %33 = vector.broadcast %28 : vector<1x32xf32> to vector<8x32xf32>
    %34 = arith.addf %32, %33 : vector<8x32xf32>
    %cst_11 = arith.constant 0.000000e+00 : f32
    %35 = vector.broadcast %cst_11 : f32 to vector<8x32xf32>
    %36 = arith.maximumf %34, %35 : vector<8x32xf32>
    %37 = arith.truncf %36 : vector<8x32xf32> to vector<8x32xbf16>
    %c0_12 = arith.constant 0 : index
    %c0_13 = arith.constant 0 : index
    %38 = vector.load %arg3[%c0_12, %c0_13] : memref<32x32xbf16, #tpu.memory_space<vmem>>, vector<32x32xbf16>
    %cst_14 = arith.constant dense<0.000000e+00> : vector<8x32xf32>
    %39 = tpu.matmul %37, %38, %cst_14 {dimension_numbers = #tpu.dot_dimension_numbers<[1], [0], [0], [1], [0, 0, 1, 1], [], []>} : vector<8x32xbf16>, vector<32x32xbf16>, vector<8x32xf32> -> vector<8x32xf32>
    %40 = vector.broadcast %29 : vector<1x32xf32> to vector<8x32xf32>
    %41 = arith.addf %39, %40 : vector<8x32xf32>
    %cst_15 = arith.constant 0.000000e+00 : f32
    %42 = vector.broadcast %cst_15 : f32 to vector<8x32xf32>
    %43 = arith.maximumf %41, %42 : vector<8x32xf32>
    %44 = arith.truncf %43 : vector<8x32xf32> to vector<8x32xbf16>
    %c0_16 = arith.constant 0 : index
    %c0_17 = arith.constant 0 : index
    %45 = vector.load %arg4[%c0_16, %c0_17] : memref<32x32xbf16, #tpu.memory_space<vmem>>, vector<32x32xbf16>
    %cst_18 = arith.constant dense<0.000000e+00> : vector<8x32xf32>
    %46 = tpu.matmul %44, %45, %cst_18 {dimension_numbers = #tpu.dot_dimension_numbers<[1], [0], [0], [1], [0, 0, 1, 1], [], []>} : vector<8x32xbf16>, vector<32x32xbf16>, vector<8x32xf32> -> vector<8x32xf32>
    %47 = vector.broadcast %30 : vector<1x32xf32> to vector<8x32xf32>
    %48 = arith.addf %46, %47 : vector<8x32xf32>
    %49 = arith.truncf %48 : vector<8x32xf32> to vector<8x32xbf16>
    %c0_19 = arith.constant 0 : index
    %c0_20 = arith.constant 0 : index
    %c0_21 = arith.constant 0 : index
    %50 = vector.load %arg6[%c0_19, %c0_20, %c0_21] : memref<1x8x32xbf16, #tpu.memory_space<vmem>>, vector<1x8x32xbf16>
    %51 = vector.shape_cast %50 : vector<1x8x32xbf16> to vector<8x32xbf16>
    %52 = vector.shape_cast %49 : vector<8x32xbf16> to vector<1x8x32xbf16>
    tpu.vector_store %arg6[%c0_19, %c0_20, %c0_21], %52 {strides = array<i32>} : memref<1x8x32xbf16, #tpu.memory_space<vmem>>, vector<1x8x32xbf16>,
    return
  }
  func.func @transform_0(%arg0: i32) -> (i32, i32, i32) {
    %c0_i32 = arith.constant 0 : i32
    %c0_i32_0 = arith.constant 0 : i32
    %c0_i32_1 = arith.constant 0 : i32
    return %arg0, %c0_i32, %c0_i32_0 : i32, i32, i32
  }
  func.func @transform_1(%arg0: i32) -> (i32, i32) {
    %c0_i32 = arith.constant 0 : i32
    %c0_i32_0 = arith.constant 0 : i32
    %c0_i32_1 = arith.constant 0 : i32
    return %c0_i32, %c0_i32_0 : i32, i32
  }
  func.func @transform_2(%arg0: i32) -> (i32, i32) {
    %c0_i32 = arith.constant 0 : i32
    %c0_i32_0 = arith.constant 0 : i32
    %c0_i32_1 = arith.constant 0 : i32
    return %c0_i32, %c0_i32_0 : i32, i32
  }
  func.func @transform_3(%arg0: i32) -> (i32, i32) {
    %c0_i32 = arith.constant 0 : i32
    %c0_i32_0 = arith.constant 0 : i32
    %c0_i32_1 = arith.constant 0 : i32
    return %c0_i32, %c0_i32_0 : i32, i32
  }
  func.func @transform_4(%arg0: i32) -> (i32, i32) {
    %c0_i32 = arith.constant 0 : i32
    %c0_i32_0 = arith.constant 0 : i32
    %c0_i32_1 = arith.constant 0 : i32
    return %c0_i32, %c0_i32_0 : i32, i32
  }
  func.func @transform_5(%arg0: i32) -> (i32, i32, i32) {
    %c0_i32 = arith.constant 0 : i32
    %c0_i32_0 = arith.constant 0 : i32
    %c0_i32_1 = arith.constant 0 : i32
    return %arg0, %c0_i32, %c0_i32_0 : i32, i32, i32
  }
}

module attributes {stable_mosaic.version = 11 : i64} {
  func.func @_project_kernel(%arg0: i32, %arg1: i32, %arg2: memref<1x8x32xbf16, #tpu.memory_space<vmem>>, %arg3: memref<1x32x144xbf16, #tpu.memory_space<vmem>>, %arg4: memref<1x8x144xf32, #tpu.memory_space<vmem>>) attributes {dimension_semantics = [#tpu.dimension_semantics<parallel>, #tpu.dimension_semantics<parallel>], iteration_bounds = array<i64: 2, 1>, scalar_prefetch = 0 : i64, scratch_operands = 0 : i64, tpu.core_type = #tpu.core_type<tc>, window_params = [{transform_indices = @transform_0, window_bounds = array<i64: 1, 8, 32>}, {transform_indices = @transform_1, window_bounds = array<i64: 1, 32, 144>}, {transform_indices = @transform_2, window_bounds = array<i64: 1, 8, 144>}]} {
    %c0 = arith.constant 0 : index
    %c0_0 = arith.constant 0 : index
    %c0_1 = arith.constant 0 : index
    %0 = vector.load %arg2[%c0, %c0_0, %c0_1] : memref<1x8x32xbf16, #tpu.memory_space<vmem>>, vector<1x8x32xbf16>
    %1 = vector.shape_cast %0 : vector<1x8x32xbf16> to vector<8x32xbf16>
    %c0_2 = arith.constant 0 : index
    %c0_3 = arith.constant 0 : index
    %c0_4 = arith.constant 0 : index
    %2 = vector.load %arg3[%c0_2, %c0_3, %c0_4] : memref<1x32x144xbf16, #tpu.memory_space<vmem>>, vector<1x32x144xbf16>
    %3 = vector.shape_cast %2 : vector<1x32x144xbf16> to vector<32x144xbf16>
    %cst = arith.constant dense<0.000000e+00> : vector<8x144xf32>
    %4 = tpu.matmul %1, %3, %cst {dimension_numbers = #tpu.dot_dimension_numbers<[1], [0], [0], [1], [0, 0, 1, 1], [], []>} : vector<8x32xbf16>, vector<32x144xbf16>, vector<8x144xf32> -> vector<8x144xf32>
    %c0_5 = arith.constant 0 : index
    %c0_6 = arith.constant 0 : index
    %c0_7 = arith.constant 0 : index
    %5 = vector.load %arg4[%c0_5, %c0_6, %c0_7] : memref<1x8x144xf32, #tpu.memory_space<vmem>>, vector<1x8x144xf32>
    %6 = vector.shape_cast %5 : vector<1x8x144xf32> to vector<8x144xf32>
    %7 = vector.shape_cast %4 : vector<8x144xf32> to vector<1x8x144xf32>
    tpu.vector_store %arg4[%c0_5, %c0_6, %c0_7], %7 {strides = array<i32>} : memref<1x8x144xf32, #tpu.memory_space<vmem>>, vector<1x8x144xf32>,
    return
  }
  func.func @transform_0(%arg0: i32, %arg1: i32) -> (i32, i32, i32) {
    %c0_i32 = arith.constant 0 : i32
    %c0_i32_0 = arith.constant 0 : i32
    %c0_i32_1 = arith.constant 0 : i32
    return %arg0, %c0_i32, %c0_i32_0 : i32, i32, i32
  }
  func.func @transform_1(%arg0: i32, %arg1: i32) -> (i32, i32, i32) {
    %c0_i32 = arith.constant 0 : i32
    %c0_i32_0 = arith.constant 0 : i32
    return %arg0, %c0_i32, %arg1 : i32, i32, i32
  }
  func.func @transform_2(%arg0: i32, %arg1: i32) -> (i32, i32, i32) {
    %c0_i32 = arith.constant 0 : i32
    %c0_i32_0 = arith.constant 0 : i32
    return %arg0, %c0_i32, %arg1 : i32, i32, i32
  }
}

module attributes {stable_mosaic.version = 11 : i64} {
  func.func @_embed_both_kernel(%arg0: i32, %arg1: memref<1x8x32xf32, #tpu.memory_space<vmem>>, %arg2: memref<32x32xbf16, #tpu.memory_space<vmem>>, %arg3: memref<32x32xbf16, #tpu.memory_space<vmem>>, %arg4: memref<32x32xbf16, #tpu.memory_space<vmem>>, %arg5: memref<32x32xbf16, #tpu.memory_space<vmem>>, %arg6: memref<32x32xbf16, #tpu.memory_space<vmem>>, %arg7: memref<32x32xbf16, #tpu.memory_space<vmem>>, %arg8: memref<8x32xf32, #tpu.memory_space<vmem>>, %arg9: memref<1x8x32xbf16, #tpu.memory_space<vmem>>, %arg10: memref<1x8x32xbf16, #tpu.memory_space<vmem>>) attributes {dimension_semantics = [#tpu.dimension_semantics<parallel>], iteration_bounds = array<i64: 2>, scalar_prefetch = 0 : i64, scratch_operands = 0 : i64, tpu.core_type = #tpu.core_type<tc>, window_params = [{transform_indices = @transform_0, window_bounds = array<i64: 1, 8, 32>}, {pipeline_mode = #tpu.pipeline_mode<synchronous>, transform_indices = @transform_1, window_bounds = array<i64: 32, 32>}, {pipeline_mode = #tpu.pipeline_mode<synchronous>, transform_indices = @transform_2, window_bounds = array<i64: 32, 32>}, {pipeline_mode = #tpu.pipeline_mode<synchronous>, transform_indices = @transform_3, window_bounds = array<i64: 32, 32>}, {pipeline_mode = #tpu.pipeline_mode<synchronous>, transform_indices = @transform_4, window_bounds = array<i64: 32, 32>}, {pipeline_mode = #tpu.pipeline_mode<synchronous>, transform_indices = @transform_5, window_bounds = array<i64: 32, 32>}, {pipeline_mode = #tpu.pipeline_mode<synchronous>, transform_indices = @transform_6, window_bounds = array<i64: 32, 32>}, {pipeline_mode = #tpu.pipeline_mode<synchronous>, transform_indices = @transform_7, window_bounds = array<i64: 8, 32>}, {transform_indices = @transform_8, window_bounds = array<i64: 1, 8, 32>}, {transform_indices = @transform_9, window_bounds = array<i64: 1, 8, 32>}]} {
    %c0 = arith.constant 0 : index
    %c0_0 = arith.constant 0 : index
    %0 = vector.load %arg8[%c0, %c0_0] : memref<8x32xf32, #tpu.memory_space<vmem>>, vector<8x32xf32>
    %c0_1 = arith.constant 0 : index
    %c0_2 = arith.constant 0 : index
    %c0_3 = arith.constant 0 : index
    %1 = vector.load %arg1[%c0_1, %c0_2, %c0_3] : memref<1x8x32xf32, #tpu.memory_space<vmem>>, vector<1x8x32xf32>
    %2 = vector.shape_cast %1 : vector<1x8x32xf32> to vector<8x32xf32>
    %3 = vector.extract_strided_slice %0 {offsets = [0, 0], sizes = [1, 32], strides = [1, 1]} : vector<8x32xf32> to vector<1x32xf32>
    %4 = vector.extract_strided_slice %0 {offsets = [1, 0], sizes = [1, 32], strides = [1, 1]} : vector<8x32xf32> to vector<1x32xf32>
    %cst = arith.constant dense<0.000000e+00> : vector<8xf32>
    %5 = vector.multi_reduction <add>, %2, %cst [1] : vector<8x32xf32> to vector<8xf32>
    %6 = vector.shape_cast %5 : vector<8xf32> to vector<8x1xf32>
    %cst_4 = arith.constant 3.200000e+01 : f32
    %7 = vector.broadcast %cst_4 : f32 to vector<8x1xf32>
    %8 = arith.divf %6, %7 : vector<8x1xf32>
    %9 = vector.broadcast %8 : vector<8x1xf32> to vector<8x32xf32>
    %10 = arith.subf %2, %9 : vector<8x32xf32>
    %11 = arith.mulf %10, %10 : vector<8x32xf32>
    %cst_5 = arith.constant dense<0.000000e+00> : vector<8xf32>
    %12 = vector.multi_reduction <add>, %11, %cst_5 [1] : vector<8x32xf32> to vector<8xf32>
    %13 = vector.shape_cast %12 : vector<8xf32> to vector<8x1xf32>
    %cst_6 = arith.constant 3.200000e+01 : f32
    %14 = vector.broadcast %cst_6 : f32 to vector<8x1xf32>
    %15 = arith.divf %13, %14 : vector<8x1xf32>
    %16 = vector.broadcast %8 : vector<8x1xf32> to vector<8x32xf32>
    %17 = arith.subf %2, %16 : vector<8x32xf32>
    %cst_7 = arith.constant 9.99999974E-6 : f32
    %18 = vector.broadcast %cst_7 : f32 to vector<8x1xf32>
    %19 = arith.addf %15, %18 : vector<8x1xf32>
    %20 = math.rsqrt %19 : vector<8x1xf32>
    %21 = vector.broadcast %20 : vector<8x1xf32> to vector<8x32xf32>
    %22 = arith.mulf %17, %21 : vector<8x32xf32>
    %23 = vector.broadcast %3 : vector<1x32xf32> to vector<8x32xf32>
    %24 = arith.mulf %22, %23 : vector<8x32xf32>
    %25 = vector.broadcast %4 : vector<1x32xf32> to vector<8x32xf32>
    %26 = arith.addf %24, %25 : vector<8x32xf32>
    %27 = arith.truncf %26 : vector<8x32xf32> to vector<8x32xbf16>
    %28 = vector.extract_strided_slice %0 {offsets = [2, 0], sizes = [1, 32], strides = [1, 1]} : vector<8x32xf32> to vector<1x32xf32>
    %29 = vector.extract_strided_slice %0 {offsets = [3, 0], sizes = [1, 32], strides = [1, 1]} : vector<8x32xf32> to vector<1x32xf32>
    %30 = vector.extract_strided_slice %0 {offsets = [4, 0], sizes = [1, 32], strides = [1, 1]} : vector<8x32xf32> to vector<1x32xf32>
    %c0_8 = arith.constant 0 : index
    %c0_9 = arith.constant 0 : index
    %31 = vector.load %arg2[%c0_8, %c0_9] : memref<32x32xbf16, #tpu.memory_space<vmem>>, vector<32x32xbf16>
    %cst_10 = arith.constant dense<0.000000e+00> : vector<8x32xf32>
    %32 = tpu.matmul %27, %31, %cst_10 {dimension_numbers = #tpu.dot_dimension_numbers<[1], [0], [0], [1], [0, 0, 1, 1], [], []>} : vector<8x32xbf16>, vector<32x32xbf16>, vector<8x32xf32> -> vector<8x32xf32>
    %33 = vector.broadcast %28 : vector<1x32xf32> to vector<8x32xf32>
    %34 = arith.addf %32, %33 : vector<8x32xf32>
    %cst_11 = arith.constant 0.000000e+00 : f32
    %35 = vector.broadcast %cst_11 : f32 to vector<8x32xf32>
    %36 = arith.maximumf %34, %35 : vector<8x32xf32>
    %37 = arith.truncf %36 : vector<8x32xf32> to vector<8x32xbf16>
    %c0_12 = arith.constant 0 : index
    %c0_13 = arith.constant 0 : index
    %38 = vector.load %arg3[%c0_12, %c0_13] : memref<32x32xbf16, #tpu.memory_space<vmem>>, vector<32x32xbf16>
    %cst_14 = arith.constant dense<0.000000e+00> : vector<8x32xf32>
    %39 = tpu.matmul %37, %38, %cst_14 {dimension_numbers = #tpu.dot_dimension_numbers<[1], [0], [0], [1], [0, 0, 1, 1], [], []>} : vector<8x32xbf16>, vector<32x32xbf16>, vector<8x32xf32> -> vector<8x32xf32>
    %40 = vector.broadcast %29 : vector<1x32xf32> to vector<8x32xf32>
    %41 = arith.addf %39, %40 : vector<8x32xf32>
    %cst_15 = arith.constant 0.000000e+00 : f32
    %42 = vector.broadcast %cst_15 : f32 to vector<8x32xf32>
    %43 = arith.maximumf %41, %42 : vector<8x32xf32>
    %44 = arith.truncf %43 : vector<8x32xf32> to vector<8x32xbf16>
    %c0_16 = arith.constant 0 : index
    %c0_17 = arith.constant 0 : index
    %45 = vector.load %arg4[%c0_16, %c0_17] : memref<32x32xbf16, #tpu.memory_space<vmem>>, vector<32x32xbf16>
    %cst_18 = arith.constant dense<0.000000e+00> : vector<8x32xf32>
    %46 = tpu.matmul %44, %45, %cst_18 {dimension_numbers = #tpu.dot_dimension_numbers<[1], [0], [0], [1], [0, 0, 1, 1], [], []>} : vector<8x32xbf16>, vector<32x32xbf16>, vector<8x32xf32> -> vector<8x32xf32>
    %47 = vector.broadcast %30 : vector<1x32xf32> to vector<8x32xf32>
    %48 = arith.addf %46, %47 : vector<8x32xf32>
    %49 = arith.truncf %48 : vector<8x32xf32> to vector<8x32xbf16>
    %c0_19 = arith.constant 0 : index
    %c0_20 = arith.constant 0 : index
    %c0_21 = arith.constant 0 : index
    %50 = vector.load %arg9[%c0_19, %c0_20, %c0_21] : memref<1x8x32xbf16, #tpu.memory_space<vmem>>, vector<1x8x32xbf16>
    %51 = vector.shape_cast %50 : vector<1x8x32xbf16> to vector<8x32xbf16>
    %52 = vector.shape_cast %49 : vector<8x32xbf16> to vector<1x8x32xbf16>
    tpu.vector_store %arg9[%c0_19, %c0_20, %c0_21], %52 {strides = array<i32>} : memref<1x8x32xbf16, #tpu.memory_space<vmem>>, vector<1x8x32xbf16>,
    %53 = vector.extract_strided_slice %0 {offsets = [5, 0], sizes = [1, 32], strides = [1, 1]} : vector<8x32xf32> to vector<1x32xf32>
    %54 = vector.extract_strided_slice %0 {offsets = [6, 0], sizes = [1, 32], strides = [1, 1]} : vector<8x32xf32> to vector<1x32xf32>
    %55 = vector.extract_strided_slice %0 {offsets = [7, 0], sizes = [1, 32], strides = [1, 1]} : vector<8x32xf32> to vector<1x32xf32>
    %c0_22 = arith.constant 0 : index
    %c0_23 = arith.constant 0 : index
    %56 = vector.load %arg5[%c0_22, %c0_23] : memref<32x32xbf16, #tpu.memory_space<vmem>>, vector<32x32xbf16>
    %cst_24 = arith.constant dense<0.000000e+00> : vector<8x32xf32>
    %57 = tpu.matmul %27, %56, %cst_24 {dimension_numbers = #tpu.dot_dimension_numbers<[1], [0], [0], [1], [0, 0, 1, 1], [], []>} : vector<8x32xbf16>, vector<32x32xbf16>, vector<8x32xf32> -> vector<8x32xf32>
    %58 = vector.broadcast %53 : vector<1x32xf32> to vector<8x32xf32>
    %59 = arith.addf %57, %58 : vector<8x32xf32>
    %cst_25 = arith.constant 0.000000e+00 : f32
    %60 = vector.broadcast %cst_25 : f32 to vector<8x32xf32>
    %61 = arith.maximumf %59, %60 : vector<8x32xf32>
    %62 = arith.truncf %61 : vector<8x32xf32> to vector<8x32xbf16>
    %c0_26 = arith.constant 0 : index
    %c0_27 = arith.constant 0 : index
    %63 = vector.load %arg6[%c0_26, %c0_27] : memref<32x32xbf16, #tpu.memory_space<vmem>>, vector<32x32xbf16>
    %cst_28 = arith.constant dense<0.000000e+00> : vector<8x32xf32>
    %64 = tpu.matmul %62, %63, %cst_28 {dimension_numbers = #tpu.dot_dimension_numbers<[1], [0], [0], [1], [0, 0, 1, 1], [], []>} : vector<8x32xbf16>, vector<32x32xbf16>, vector<8x32xf32> -> vector<8x32xf32>
    %65 = vector.broadcast %54 : vector<1x32xf32> to vector<8x32xf32>
    %66 = arith.addf %64, %65 : vector<8x32xf32>
    %cst_29 = arith.constant 0.000000e+00 : f32
    %67 = vector.broadcast %cst_29 : f32 to vector<8x32xf32>
    %68 = arith.maximumf %66, %67 : vector<8x32xf32>
    %69 = arith.truncf %68 : vector<8x32xf32> to vector<8x32xbf16>
    %c0_30 = arith.constant 0 : index
    %c0_31 = arith.constant 0 : index
    %70 = vector.load %arg7[%c0_30, %c0_31] : memref<32x32xbf16, #tpu.memory_space<vmem>>, vector<32x32xbf16>
    %cst_32 = arith.constant dense<0.000000e+00> : vector<8x32xf32>
    %71 = tpu.matmul %69, %70, %cst_32 {dimension_numbers = #tpu.dot_dimension_numbers<[1], [0], [0], [1], [0, 0, 1, 1], [], []>} : vector<8x32xbf16>, vector<32x32xbf16>, vector<8x32xf32> -> vector<8x32xf32>
    %72 = vector.broadcast %55 : vector<1x32xf32> to vector<8x32xf32>
    %73 = arith.addf %71, %72 : vector<8x32xf32>
    %74 = arith.truncf %73 : vector<8x32xf32> to vector<8x32xbf16>
    %c0_33 = arith.constant 0 : index
    %c0_34 = arith.constant 0 : index
    %c0_35 = arith.constant 0 : index
    %75 = vector.load %arg10[%c0_33, %c0_34, %c0_35] : memref<1x8x32xbf16, #tpu.memory_space<vmem>>, vector<1x8x32xbf16>
    %76 = vector.shape_cast %75 : vector<1x8x32xbf16> to vector<8x32xbf16>
    %77 = vector.shape_cast %74 : vector<8x32xbf16> to vector<1x8x32xbf16>
    tpu.vector_store %arg10[%c0_33, %c0_34, %c0_35], %77 {strides = array<i32>} : memref<1x8x32xbf16, #tpu.memory_space<vmem>>, vector<1x8x32xbf16>,
    return
  }
  func.func @transform_0(%arg0: i32) -> (i32, i32, i32) {
    %c0_i32 = arith.constant 0 : i32
    %c0_i32_0 = arith.constant 0 : i32
    %c0_i32_1 = arith.constant 0 : i32
    return %arg0, %c0_i32, %c0_i32_0 : i32, i32, i32
  }
  func.func @transform_1(%arg0: i32) -> (i32, i32) {
    %c0_i32 = arith.constant 0 : i32
    %c0_i32_0 = arith.constant 0 : i32
    %c0_i32_1 = arith.constant 0 : i32
    return %c0_i32, %c0_i32_0 : i32, i32
  }
  func.func @transform_2(%arg0: i32) -> (i32, i32) {
    %c0_i32 = arith.constant 0 : i32
    %c0_i32_0 = arith.constant 0 : i32
    %c0_i32_1 = arith.constant 0 : i32
    return %c0_i32, %c0_i32_0 : i32, i32
  }
  func.func @transform_3(%arg0: i32) -> (i32, i32) {
    %c0_i32 = arith.constant 0 : i32
    %c0_i32_0 = arith.constant 0 : i32
    %c0_i32_1 = arith.constant 0 : i32
    return %c0_i32, %c0_i32_0 : i32, i32
  }
  func.func @transform_4(%arg0: i32) -> (i32, i32) {
    %c0_i32 = arith.constant 0 : i32
    %c0_i32_0 = arith.constant 0 : i32
    %c0_i32_1 = arith.constant 0 : i32
    return %c0_i32, %c0_i32_0 : i32, i32
  }
  func.func @transform_5(%arg0: i32) -> (i32, i32) {
    %c0_i32 = arith.constant 0 : i32
    %c0_i32_0 = arith.constant 0 : i32
    %c0_i32_1 = arith.constant 0 : i32
    return %c0_i32, %c0_i32_0 : i32, i32
  }
  func.func @transform_6(%arg0: i32) -> (i32, i32) {
    %c0_i32 = arith.constant 0 : i32
    %c0_i32_0 = arith.constant 0 : i32
    %c0_i32_1 = arith.constant 0 : i32
    return %c0_i32, %c0_i32_0 : i32, i32
  }
  func.func @transform_7(%arg0: i32) -> (i32, i32) {
    %c0_i32 = arith.constant 0 : i32
    %c0_i32_0 = arith.constant 0 : i32
    %c0_i32_1 = arith.constant 0 : i32
    return %c0_i32, %c0_i32_0 : i32, i32
  }
  func.func @transform_8(%arg0: i32) -> (i32, i32, i32) {
    %c0_i32 = arith.constant 0 : i32
    %c0_i32_0 = arith.constant 0 : i32
    %c0_i32_1 = arith.constant 0 : i32
    return %arg0, %c0_i32, %c0_i32_0 : i32, i32, i32
  }
  func.func @transform_9(%arg0: i32) -> (i32, i32, i32) {
    %c0_i32 = arith.constant 0 : i32
    %c0_i32_0 = arith.constant 0 : i32
    %c0_i32_1 = arith.constant 0 : i32
    return %arg0, %c0_i32, %c0_i32_0 : i32, i32, i32
  }
}

module attributes {stable_mosaic.version = 11 : i64} {
  func.func @_decoder_layer_kernel(%arg0: i32, %arg1: i32, %arg2: memref<1x8x32xf32, #tpu.memory_space<vmem>>, %arg3: memref<1x16x32xbf16, #tpu.memory_space<vmem>>, %arg4: memref<8x32xf32, #tpu.memory_space<vmem>>, %arg5: memref<1x8x16xi8, #tpu.memory_space<vmem>>, %arg6: memref<32x32xbf16, #tpu.memory_space<vmem>>, %arg7: memref<32x32xbf16, #tpu.memory_space<vmem>>, %arg8: memref<32x32xbf16, #tpu.memory_space<vmem>>, %arg9: memref<32x32xbf16, #tpu.memory_space<vmem>>, %arg10: memref<32x32xbf16, #tpu.memory_space<vmem>>, %arg11: memref<32x32xbf16, #tpu.memory_space<vmem>>, %arg12: memref<32x32xbf16, #tpu.memory_space<vmem>>, %arg13: memref<32x32xbf16, #tpu.memory_space<vmem>>, %arg14: memref<32x32xbf16, #tpu.memory_space<vmem>>, %arg15: memref<32x32xbf16, #tpu.memory_space<vmem>>, %arg16: memref<32x64xbf16, #tpu.memory_space<vmem>>, %arg17: memref<1x64xf32, #tpu.memory_space<vmem>>, %arg18: memref<64x32xbf16, #tpu.memory_space<vmem>>, %arg19: memref<16x32xf32, #tpu.memory_space<vmem>>, %arg20: memref<1x8x32xf32, #tpu.memory_space<vmem>>, %arg21: memref<4x8x8xbf16, #tpu.memory_space<vmem>>, %arg22: memref<4x8x1xf32, #tpu.memory_space<vmem>>, %arg23: memref<4x8x1xf32, #tpu.memory_space<vmem>>, %arg24: memref<4x8x8xf32, #tpu.memory_space<vmem>>) attributes {dimension_semantics = [#tpu.dimension_semantics<parallel>, #tpu.dimension_semantics<arbitrary>], iteration_bounds = array<i64: 2, 1>, scalar_prefetch = 0 : i64, scratch_operands = 4 : i64, tpu.core_type = #tpu.core_type<tc>, window_params = [{transform_indices = @transform_0, window_bounds = array<i64: 1, 8, 32>}, {transform_indices = @transform_1, window_bounds = array<i64: 1, 16, 32>}, {pipeline_mode = #tpu.pipeline_mode<synchronous>, transform_indices = @transform_2, window_bounds = array<i64: 8, 32>}, {transform_indices = @transform_3, window_bounds = array<i64: 1, 8, 16>}, {pipeline_mode = #tpu.pipeline_mode<synchronous>, transform_indices = @transform_4, window_bounds = array<i64: 32, 32>}, {pipeline_mode = #tpu.pipeline_mode<synchronous>, transform_indices = @transform_5, window_bounds = array<i64: 32, 32>}, {pipeline_mode = #tpu.pipeline_mode<synchronous>, transform_indices = @transform_6, window_bounds = array<i64: 32, 32>}, {pipeline_mode = #tpu.pipeline_mode<synchronous>, transform_indices = @transform_7, window_bounds = array<i64: 32, 32>}, {pipeline_mode = #tpu.pipeline_mode<synchronous>, transform_indices = @transform_8, window_bounds = array<i64: 32, 32>}, {pipeline_mode = #tpu.pipeline_mode<synchronous>, transform_indices = @transform_9, window_bounds = array<i64: 32, 32>}, {pipeline_mode = #tpu.pipeline_mode<synchronous>, transform_indices = @transform_10, window_bounds = array<i64: 32, 32>}, {pipeline_mode = #tpu.pipeline_mode<synchronous>, transform_indices = @transform_11, window_bounds = array<i64: 32, 32>}, {pipeline_mode = #tpu.pipeline_mode<synchronous>, transform_indices = @transform_12, window_bounds = array<i64: 32, 32>}, {pipeline_mode = #tpu.pipeline_mode<synchronous>, transform_indices = @transform_13, window_bounds = array<i64: 32, 32>}, {pipeline_mode = #tpu.pipeline_mode<synchronous>, transform_indices = @transform_14, window_bounds = array<i64: 32, 64>}, {pipeline_mode = #tpu.pipeline_mode<synchronous>, transform_indices = @transform_15, window_bounds = array<i64: 1, 64>}, {pipeline_mode = #tpu.pipeline_mode<synchronous>, transform_indices = @transform_16, window_bounds = array<i64: 64, 32>}, {pipeline_mode = #tpu.pipeline_mode<synchronous>, transform_indices = @transform_17, window_bounds = array<i64: 16, 32>}, {transform_indices = @transform_18, window_bounds = array<i64: 1, 8, 32>}]} {
    %c0 = arith.constant 0 : index
    %c0_0 = arith.constant 0 : index
    %0 = vector.load %arg19[%c0, %c0_0] : memref<16x32xf32, #tpu.memory_space<vmem>>, vector<16x32xf32>
    %c0_i32 = arith.constant 0 : i32
    %1 = arith.cmpi eq, %arg1, %c0_i32 : i32
    %2 = arith.extui %1 : i1 to i32
    %cst = arith.constant -1.000000e+30 : f32
    %c0_i32_1 = arith.constant 0 : i32
    %3 = arith.cmpi ne, %2, %c0_i32_1 : i32
    scf.if %3 {
      %c0_42 = arith.constant 0 : index
      %c0_43 = arith.constant 0 : index
      %c0_44 = arith.constant 0 : index
      %73 = vector.load %arg2[%c0_42, %c0_43, %c0_44] : memref<1x8x32xf32, #tpu.memory_space<vmem>>, vector<1x8x32xf32>
      %74 = vector.shape_cast %73 : vector<1x8x32xf32> to vector<8x32xf32>
      %75 = arith.truncf %74 : vector<8x32xf32> to vector<8x32xbf16>
      %c0_45 = arith.constant 0 : index
      %c0_46 = arith.constant 0 : index
      %76 = vector.load %arg6[%c0_45, %c0_46] : memref<32x32xbf16, #tpu.memory_space<vmem>>, vector<32x32xbf16>
      %cst_47 = arith.constant dense<0.000000e+00> : vector<8x32xf32>
      %77 = tpu.matmul %75, %76, %cst_47 {dimension_numbers = #tpu.dot_dimension_numbers<[1], [0], [0], [1], [0, 0, 1, 1], [], []>} : vector<8x32xbf16>, vector<32x32xbf16>, vector<8x32xf32> -> vector<8x32xf32>
      %78 = vector.extract_strided_slice %0 {offsets = [0, 0], sizes = [1, 32], strides = [1, 1]} : vector<16x32xf32> to vector<1x32xf32>
      %79 = vector.broadcast %78 : vector<1x32xf32> to vector<8x32xf32>
      %80 = arith.addf %77, %79 : vector<8x32xf32>
      %81 = arith.truncf %80 : vector<8x32xf32> to vector<8x32xbf16>
      %82 = vector.extract_strided_slice %81 {offsets = [0, 0], sizes = [8, 8], strides = [1, 1]} : vector<8x32xbf16> to vector<8x8xbf16>
      %83 = vector.extract_strided_slice %81 {offsets = [0, 8], sizes = [8, 8], strides = [1, 1]} : vector<8x32xbf16> to vector<8x8xbf16>
      %84 = vector.extract_strided_slice %81 {offsets = [0, 16], sizes = [8, 8], strides = [1, 1]} : vector<8x32xbf16> to vector<8x8xbf16>
      %85 = vector.extract_strided_slice %81 {offsets = [0, 24], sizes = [8, 8], strides = [1, 1]} : vector<8x32xbf16> to vector<8x8xbf16>
      %86 = vector.shape_cast %82 : vector<8x8xbf16> to vector<1x8x8xbf16>
      %87 = vector.shape_cast %83 : vector<8x8xbf16> to vector<1x8x8xbf16>
      %88 = vector.shape_cast %84 : vector<8x8xbf16> to vector<1x8x8xbf16>
      %89 = vector.shape_cast %85 : vector<8x8xbf16> to vector<1x8x8xbf16>
      %90 = tpu.concatenate %86, %87, %88, %89 in 0 : vector<1x8x8xbf16>, vector<1x8x8xbf16>, vector<1x8x8xbf16>, vector<1x8x8xbf16> -> vector<4x8x8xbf16>
      %c0_48 = arith.constant 0 : index
      %c0_49 = arith.constant 0 : index
      %c0_50 = arith.constant 0 : index
      %91 = vector.load %arg21[%c0_48, %c0_49, %c0_50] : memref<4x8x8xbf16, #tpu.memory_space<vmem>>, vector<4x8x8xbf16>
      tpu.vector_store %arg21[%c0_48, %c0_49, %c0_50], %90 {strides = array<i32>} : memref<4x8x8xbf16, #tpu.memory_space<vmem>>, vector<4x8x8xbf16>,
      %92 = vector.broadcast %cst : f32 to vector<4x8x1xf32>
      %c0_51 = arith.constant 0 : index
      %c0_52 = arith.constant 0 : index
      %c0_53 = arith.constant 0 : index
      %93 = vector.load %arg22[%c0_51, %c0_52, %c0_53] : memref<4x8x1xf32, #tpu.memory_space<vmem>>, vector<4x8x1xf32>
      tpu.vector_store %arg22[%c0_51, %c0_52, %c0_53], %92 {strides = array<i32>} : memref<4x8x1xf32, #tpu.memory_space<vmem>>, vector<4x8x1xf32>,
      %cst_54 = arith.constant 0.000000e+00 : f32
      %94 = vector.broadcast %cst_54 : f32 to vector<4x8x1xf32>
      %c0_55 = arith.constant 0 : index
      %c0_56 = arith.constant 0 : index
      %c0_57 = arith.constant 0 : index
      %95 = vector.load %arg23[%c0_55, %c0_56, %c0_57] : memref<4x8x1xf32, #tpu.memory_space<vmem>>, vector<4x8x1xf32>
      tpu.vector_store %arg23[%c0_55, %c0_56, %c0_57], %94 {strides = array<i32>} : memref<4x8x1xf32, #tpu.memory_space<vmem>>, vector<4x8x1xf32>,
      %cst_58 = arith.constant 0.000000e+00 : f32
      %96 = vector.broadcast %cst_58 : f32 to vector<4x8x8xf32>
      %c0_59 = arith.constant 0 : index
      %c0_60 = arith.constant 0 : index
      %c0_61 = arith.constant 0 : index
      %97 = vector.load %arg24[%c0_59, %c0_60, %c0_61] : memref<4x8x8xf32, #tpu.memory_space<vmem>>, vector<4x8x8xf32>
      tpu.vector_store %arg24[%c0_59, %c0_60, %c0_61], %96 {strides = array<i32>} : memref<4x8x8xf32, #tpu.memory_space<vmem>>, vector<4x8x8xf32>,
    } else {
    }
    %c0_2 = arith.constant 0 : index
    %c0_3 = arith.constant 0 : index
    %c0_4 = arith.constant 0 : index
    %4 = vector.load %arg3[%c0_2, %c0_3, %c0_4] : memref<1x16x32xbf16, #tpu.memory_space<vmem>>, vector<1x16x32xbf16>
    %5 = vector.shape_cast %4 : vector<1x16x32xbf16> to vector<16x32xbf16>
    %c0_5 = arith.constant 0 : index
    %c0_6 = arith.constant 0 : index
    %6 = vector.load %arg7[%c0_5, %c0_6] : memref<32x32xbf16, #tpu.memory_space<vmem>>, vector<32x32xbf16>
    %cst_7 = arith.constant dense<0.000000e+00> : vector<16x32xf32>
    %7 = tpu.matmul %5, %6, %cst_7 {dimension_numbers = #tpu.dot_dimension_numbers<[1], [0], [0], [1], [0, 0, 1, 1], [], []>} : vector<16x32xbf16>, vector<32x32xbf16>, vector<16x32xf32> -> vector<16x32xf32>
    %8 = vector.extract_strided_slice %0 {offsets = [1, 0], sizes = [1, 32], strides = [1, 1]} : vector<16x32xf32> to vector<1x32xf32>
    %9 = vector.broadcast %8 : vector<1x32xf32> to vector<16x32xf32>
    %10 = arith.addf %7, %9 : vector<16x32xf32>
    %11 = arith.truncf %10 : vector<16x32xf32> to vector<16x32xbf16>
    %12 = vector.extract_strided_slice %11 {offsets = [0, 0], sizes = [16, 8], strides = [1, 1]} : vector<16x32xbf16> to vector<16x8xbf16>
    %13 = vector.extract_strided_slice %11 {offsets = [0, 8], sizes = [16, 8], strides = [1, 1]} : vector<16x32xbf16> to vector<16x8xbf16>
    %14 = vector.extract_strided_slice %11 {offsets = [0, 16], sizes = [16, 8], strides = [1, 1]} : vector<16x32xbf16> to vector<16x8xbf16>
    %15 = vector.extract_strided_slice %11 {offsets = [0, 24], sizes = [16, 8], strides = [1, 1]} : vector<16x32xbf16> to vector<16x8xbf16>
    %16 = vector.shape_cast %12 : vector<16x8xbf16> to vector<1x16x8xbf16>
    %17 = vector.shape_cast %13 : vector<16x8xbf16> to vector<1x16x8xbf16>
    %18 = vector.shape_cast %14 : vector<16x8xbf16> to vector<1x16x8xbf16>
    %19 = vector.shape_cast %15 : vector<16x8xbf16> to vector<1x16x8xbf16>
    %20 = tpu.concatenate %16, %17, %18, %19 in 0 : vector<1x16x8xbf16>, vector<1x16x8xbf16>, vector<1x16x8xbf16>, vector<1x16x8xbf16> -> vector<4x16x8xbf16>
    %c0_8 = arith.constant 0 : index
    %c0_9 = arith.constant 0 : index
    %21 = vector.load %arg8[%c0_8, %c0_9] : memref<32x32xbf16, #tpu.memory_space<vmem>>, vector<32x32xbf16>
    %cst_10 = arith.constant dense<0.000000e+00> : vector<16x32xf32>
    %22 = tpu.matmul %5, %21, %cst_10 {dimension_numbers = #tpu.dot_dimension_numbers<[1], [0], [0], [1], [0, 0, 1, 1], [], []>} : vector<16x32xbf16>, vector<32x32xbf16>, vector<16x32xf32> -> vector<16x32xf32>
    %23 = vector.extract_strided_slice %0 {offsets = [2, 0], sizes = [1, 32], strides = [1, 1]} : vector<16x32xf32> to vector<1x32xf32>
    %24 = vector.broadcast %23 : vector<1x32xf32> to vector<16x32xf32>
    %25 = arith.addf %22, %24 : vector<16x32xf32>
    %26 = arith.truncf %25 : vector<16x32xf32> to vector<16x32xbf16>
    %27 = vector.extract_strided_slice %26 {offsets = [0, 0], sizes = [16, 8], strides = [1, 1]} : vector<16x32xbf16> to vector<16x8xbf16>
    %28 = vector.extract_strided_slice %26 {offsets = [0, 8], sizes = [16, 8], strides = [1, 1]} : vector<16x32xbf16> to vector<16x8xbf16>
    %29 = vector.extract_strided_slice %26 {offsets = [0, 16], sizes = [16, 8], strides = [1, 1]} : vector<16x32xbf16> to vector<16x8xbf16>
    %30 = vector.extract_strided_slice %26 {offsets = [0, 24], sizes = [16, 8], strides = [1, 1]} : vector<16x32xbf16> to vector<16x8xbf16>
    %31 = vector.shape_cast %27 : vector<16x8xbf16> to vector<1x16x8xbf16>
    %32 = vector.shape_cast %28 : vector<16x8xbf16> to vector<1x16x8xbf16>
    %33 = vector.shape_cast %29 : vector<16x8xbf16> to vector<1x16x8xbf16>
    %34 = vector.shape_cast %30 : vector<16x8xbf16> to vector<1x16x8xbf16>
    %35 = tpu.concatenate %31, %32, %33, %34 in 0 : vector<1x16x8xbf16>, vector<1x16x8xbf16>, vector<1x16x8xbf16>, vector<1x16x8xbf16> -> vector<4x16x8xbf16>
    %c0_11 = arith.constant 0 : index
    %c0_12 = arith.constant 0 : index
    %c0_13 = arith.constant 0 : index
    %36 = vector.load %arg21[%c0_11, %c0_12, %c0_13] : memref<4x8x8xbf16, #tpu.memory_space<vmem>>, vector<4x8x8xbf16>
    %cst_14 = arith.constant dense<0.000000e+00> : vector<4x8x16xf32>
    %37 = tpu.matmul %36, %20, %cst_14 {dimension_numbers = #tpu.dot_dimension_numbers<[2], [2], [1], [1], [0, 0, 0, 1, 1, 1], [0], [0]>} : vector<4x8x8xbf16>, vector<4x16x8xbf16>, vector<4x8x16xf32> -> vector<4x8x16xf32>
    %c0_15 = arith.constant 0 : index
    %c0_16 = arith.constant 0 : index
    %c0_17 = arith.constant 0 : index
    %38 = vector.load %arg5[%c0_15, %c0_16, %c0_17] : memref<1x8x16xi8, #tpu.memory_space<vmem>>, vector<1x8x16xi8>
    %39 = vector.shape_cast %38 : vector<1x8x16xi8> to vector<8x16xi8>
    %c0_i8 = arith.constant 0 : i8
    %40 = vector.broadcast %c0_i8 : i8 to vector<8x16xi8>
    %41 = arith.cmpi ne, %39, %40 : vector<8x16xi8>
    %42 = vector.shape_cast %41 : vector<8x16xi1> to vector<1x8x16xi1>
    %cst_18 = arith.constant -1.000000e+30 : f32
    %43 = vector.shape_cast %42 : vector<1x8x16xi1> to vector<1x8x16xi1>
    %44 = vector.broadcast %43 : vector<1x8x16xi1> to vector<4x8x16xi1>
    %45 = vector.broadcast %cst_18 : f32 to vector<4x8x16xf32>
    %46 = arith.select %44, %45, %37 : vector<4x8x16xi1>, vector<4x8x16xf32>
    %c0_19 = arith.constant 0 : index
    %c0_20 = arith.constant 0 : index
    %c0_21 = arith.constant 0 : index
    %47 = vector.load %arg22[%c0_19, %c0_20, %c0_21] : memref<4x8x1xf32, #tpu.memory_space<vmem>>, vector<4x8x1xf32>
    %cst_22 = arith.constant dense<0xFF800000> : vector<4x8xf32>
    %48 = vector.multi_reduction <maximumf>, %46, %cst_22 [2] : vector<4x8x16xf32> to vector<4x8xf32>
    %49 = vector.shape_cast %48 : vector<4x8xf32> to vector<4x8x1xf32>
    %50 = arith.maximumf %47, %49 : vector<4x8x1xf32>
    %51 = arith.subf %47, %50 : vector<4x8x1xf32>
    %52 = math.exp %51 : vector<4x8x1xf32>
    %53 = vector.broadcast %50 : vector<4x8x1xf32> to vector<4x8x16xf32>
    %54 = arith.subf %46, %53 : vector<4x8x16xf32>
    %55 = math.exp %54 : vector<4x8x16xf32>
    %c0_23 = arith.constant 0 : index
    %c0_24 = arith.constant 0 : index
    %c0_25 = arith.constant 0 : index
    %56 = vector.load %arg23[%c0_23, %c0_24, %c0_25] : memref<4x8x1xf32, #tpu.memory_space<vmem>>, vector<4x8x1xf32>
    %57 = arith.mulf %52, %56 : vector<4x8x1xf32>
    %cst_26 = arith.constant dense<0.000000e+00> : vector<4x8xf32>
    %58 = vector.multi_reduction <add>, %55, %cst_26 [2] : vector<4x8x16xf32> to vector<4x8xf32>
    %59 = vector.shape_cast %58 : vector<4x8xf32> to vector<4x8x1xf32>
    %60 = arith.addf %57, %59 : vector<4x8x1xf32>
    %c0_27 = arith.constant 0 : index
    %c0_28 = arith.constant 0 : index
    %c0_29 = arith.constant 0 : index
    %61 = vector.load %arg23[%c0_27, %c0_28, %c0_29] : memref<4x8x1xf32, #tpu.memory_space<vmem>>, vector<4x8x1xf32>
    tpu.vector_store %arg23[%c0_27, %c0_28, %c0_29], %60 {strides = array<i32>} : memref<4x8x1xf32, #tpu.memory_space<vmem>>, vector<4x8x1xf32>,
    %c0_30 = arith.constant 0 : index
    %c0_31 = arith.constant 0 : index
    %c0_32 = arith.constant 0 : index
    %62 = vector.load %arg24[%c0_30, %c0_31, %c0_32] : memref<4x8x8xf32, #tpu.memory_space<vmem>>, vector<4x8x8xf32>
    %63 = vector.broadcast %52 : vector<4x8x1xf32> to vector<4x8x8xf32>
    %64 = arith.mulf %63, %62 : vector<4x8x8xf32>
    %65 = arith.truncf %55 : vector<4x8x16xf32> to vector<4x8x16xbf16>
    %cst_33 = arith.constant dense<0.000000e+00> : vector<4x8x8xf32>
    %66 = tpu.matmul %65, %35, %cst_33 {dimension_numbers = #tpu.dot_dimension_numbers<[2], [1], [1], [2], [0, 0, 0, 1, 1, 2], [0], [0]>} : vector<4x8x16xbf16>, vector<4x16x8xbf16>, vector<4x8x8xf32> -> vector<4x8x8xf32>
    %67 = arith.addf %64, %66 : vector<4x8x8xf32>
    %c0_34 = arith.constant 0 : index
    %c0_35 = arith.constant 0 : index
    %c0_36 = arith.constant 0 : index
    %68 = vector.load %arg24[%c0_34, %c0_35, %c0_36] : memref<4x8x8xf32, #tpu.memory_space<vmem>>, vector<4x8x8xf32>
    tpu.vector_store %arg24[%c0_34, %c0_35, %c0_36], %67 {strides = array<i32>} : memref<4x8x8xf32, #tpu.memory_space<vmem>>, vector<4x8x8xf32>,
    %c0_37 = arith.constant 0 : index
    %c0_38 = arith.constant 0 : index
    %c0_39 = arith.constant 0 : index
    %69 = vector.load %arg22[%c0_37, %c0_38, %c0_39] : memref<4x8x1xf32, #tpu.memory_space<vmem>>, vector<4x8x1xf32>
    tpu.vector_store %arg22[%c0_37, %c0_38, %c0_39], %50 {strides = array<i32>} : memref<4x8x1xf32, #tpu.memory_space<vmem>>, vector<4x8x1xf32>,
    %c0_i32_40 = arith.constant 0 : i32
    %70 = arith.cmpi eq, %arg1, %c0_i32_40 : i32
    %71 = arith.extui %70 : i1 to i32
    %c0_i32_41 = arith.constant 0 : i32
    %72 = arith.cmpi ne, %71, %c0_i32_41 : i32
    scf.if %72 {
      %c0_42 = arith.constant 0 : index
      %c0_43 = arith.constant 0 : index
      %c0_44 = arith.constant 0 : index
      %73 = vector.load %arg2[%c0_42, %c0_43, %c0_44] : memref<1x8x32xf32, #tpu.memory_space<vmem>>, vector<1x8x32xf32>
      %74 = vector.shape_cast %73 : vector<1x8x32xf32> to vector<8x32xf32>
      %75 = arith.truncf %74 : vector<8x32xf32> to vector<8x32xbf16>
      %c0_45 = arith.constant 0 : index
      %c0_46 = arith.constant 0 : index
      %76 = vector.load %arg4[%c0_45, %c0_46] : memref<8x32xf32, #tpu.memory_space<vmem>>, vector<8x32xf32>
      %c0_47 = arith.constant 0 : index
      %c0_48 = arith.constant 0 : index
      %c0_49 = arith.constant 0 : index
      %77 = vector.load %arg24[%c0_47, %c0_48, %c0_49] : memref<4x8x8xf32, #tpu.memory_space<vmem>>, vector<4x8x8xf32>
      %c0_50 = arith.constant 0 : index
      %c0_51 = arith.constant 0 : index
      %c0_52 = arith.constant 0 : index
      %78 = vector.load %arg23[%c0_50, %c0_51, %c0_52] : memref<4x8x1xf32, #tpu.memory_space<vmem>>, vector<4x8x1xf32>
      %79 = tpu.reciprocal %78 {approx = true} : vector<4x8x1xf32> -> vector<4x8x1xf32>
      %80 = vector.broadcast %79 : vector<4x8x1xf32> to vector<4x8x8xf32>
      %81 = arith.mulf %77, %80 : vector<4x8x8xf32>
      %82 = vector.extract_strided_slice %81 {offsets = [0, 0, 0], sizes = [1, 8, 8], strides = [1, 1, 1]} : vector<4x8x8xf32> to vector<1x8x8xf32>
      %83 = vector.shape_cast %82 : vector<1x8x8xf32> to vector<8x8xf32>
      %84 = vector.extract_strided_slice %81 {offsets = [1, 0, 0], sizes = [1, 8, 8], strides = [1, 1, 1]} : vector<4x8x8xf32> to vector<1x8x8xf32>
      %85 = vector.shape_cast %84 : vector<1x8x8xf32> to vector<8x8xf32>
      %86 = vector.extract_strided_slice %81 {offsets = [2, 0, 0], sizes = [1, 8, 8], strides = [1, 1, 1]} : vector<4x8x8xf32> to vector<1x8x8xf32>
      %87 = vector.shape_cast %86 : vector<1x8x8xf32> to vector<8x8xf32>
      %88 = vector.extract_strided_slice %81 {offsets = [3, 0, 0], sizes = [1, 8, 8], strides = [1, 1, 1]} : vector<4x8x8xf32> to vector<1x8x8xf32>
      %89 = vector.shape_cast %88 : vector<1x8x8xf32> to vector<8x8xf32>
      %90 = tpu.concatenate %83, %85, %87, %89 in 1 : vector<8x8xf32>, vector<8x8xf32>, vector<8x8xf32>, vector<8x8xf32> -> vector<8x32xf32>
      %91 = arith.truncf %90 : vector<8x32xf32> to vector<8x32xbf16>
      %c0_53 = arith.constant 0 : index
      %c0_54 = arith.constant 0 : index
      %92 = vector.load %arg9[%c0_53, %c0_54] : memref<32x32xbf16, #tpu.memory_space<vmem>>, vector<32x32xbf16>
      %cst_55 = arith.constant dense<0.000000e+00> : vector<8x32xf32>
      %93 = tpu.matmul %91, %92, %cst_55 {dimension_numbers = #tpu.dot_dimension_numbers<[1], [0], [0], [1], [0, 0, 1, 1], [], []>} : vector<8x32xbf16>, vector<32x32xbf16>, vector<8x32xf32> -> vector<8x32xf32>
      %94 = vector.extract_strided_slice %0 {offsets = [3, 0], sizes = [1, 32], strides = [1, 1]} : vector<16x32xf32> to vector<1x32xf32>
      %95 = vector.broadcast %94 : vector<1x32xf32> to vector<8x32xf32>
      %96 = arith.addf %93, %95 : vector<8x32xf32>
      %97 = arith.truncf %96 : vector<8x32xf32> to vector<8x32xbf16>
      %c0_56 = arith.constant 0 : index
      %c0_57 = arith.constant 0 : index
      %98 = vector.load %arg10[%c0_56, %c0_57] : memref<32x32xbf16, #tpu.memory_space<vmem>>, vector<32x32xbf16>
      %cst_58 = arith.constant dense<0.000000e+00> : vector<8x32xf32>
      %99 = tpu.matmul %97, %98, %cst_58 {dimension_numbers = #tpu.dot_dimension_numbers<[1], [0], [0], [1], [0, 0, 1, 1], [], []>} : vector<8x32xbf16>, vector<32x32xbf16>, vector<8x32xf32> -> vector<8x32xf32>
      %c0_59 = arith.constant 0 : index
      %c0_60 = arith.constant 0 : index
      %100 = vector.load %arg11[%c0_59, %c0_60] : memref<32x32xbf16, #tpu.memory_space<vmem>>, vector<32x32xbf16>
      %cst_61 = arith.constant dense<0.000000e+00> : vector<8x32xf32>
      %101 = tpu.matmul %75, %100, %cst_61 {dimension_numbers = #tpu.dot_dimension_numbers<[1], [0], [0], [1], [0, 0, 1, 1], [], []>} : vector<8x32xbf16>, vector<32x32xbf16>, vector<8x32xf32> -> vector<8x32xf32>
      %102 = arith.addf %99, %101 : vector<8x32xf32>
      %103 = vector.extract_strided_slice %0 {offsets = [4, 0], sizes = [1, 32], strides = [1, 1]} : vector<16x32xf32> to vector<1x32xf32>
      %104 = vector.broadcast %103 : vector<1x32xf32> to vector<8x32xf32>
      %105 = arith.addf %102, %104 : vector<8x32xf32>
      %106 = arith.addf %74, %105 : vector<8x32xf32>
      %107 = vector.extract_strided_slice %0 {offsets = [5, 0], sizes = [1, 32], strides = [1, 1]} : vector<16x32xf32> to vector<1x32xf32>
      %108 = vector.extract_strided_slice %0 {offsets = [6, 0], sizes = [1, 32], strides = [1, 1]} : vector<16x32xf32> to vector<1x32xf32>
      %cst_62 = arith.constant dense<0.000000e+00> : vector<8xf32>
      %109 = vector.multi_reduction <add>, %106, %cst_62 [1] : vector<8x32xf32> to vector<8xf32>
      %110 = vector.shape_cast %109 : vector<8xf32> to vector<8x1xf32>
      %cst_63 = arith.constant 3.200000e+01 : f32
      %111 = vector.broadcast %cst_63 : f32 to vector<8x1xf32>
      %112 = arith.divf %110, %111 : vector<8x1xf32>
      %113 = vector.broadcast %112 : vector<8x1xf32> to vector<8x32xf32>
      %114 = arith.subf %106, %113 : vector<8x32xf32>
      %115 = arith.mulf %114, %114 : vector<8x32xf32>
      %cst_64 = arith.constant dense<0.000000e+00> : vector<8xf32>
      %116 = vector.multi_reduction <add>, %115, %cst_64 [1] : vector<8x32xf32> to vector<8xf32>
      %117 = vector.shape_cast %116 : vector<8xf32> to vector<8x1xf32>
      %cst_65 = arith.constant 3.200000e+01 : f32
      %118 = vector.broadcast %cst_65 : f32 to vector<8x1xf32>
      %119 = arith.divf %117, %118 : vector<8x1xf32>
      %120 = vector.broadcast %112 : vector<8x1xf32> to vector<8x32xf32>
      %121 = arith.subf %106, %120 : vector<8x32xf32>
      %cst_66 = arith.constant 9.99999974E-6 : f32
      %122 = vector.broadcast %cst_66 : f32 to vector<8x1xf32>
      %123 = arith.addf %119, %122 : vector<8x1xf32>
      %124 = math.rsqrt %123 : vector<8x1xf32>
      %125 = vector.broadcast %124 : vector<8x1xf32> to vector<8x32xf32>
      %126 = arith.mulf %121, %125 : vector<8x32xf32>
      %127 = vector.broadcast %107 : vector<1x32xf32> to vector<8x32xf32>
      %128 = arith.mulf %126, %127 : vector<8x32xf32>
      %129 = vector.broadcast %108 : vector<1x32xf32> to vector<8x32xf32>
      %130 = arith.addf %128, %129 : vector<8x32xf32>
      %131 = arith.addf %130, %76 : vector<8x32xf32>
      %132 = arith.truncf %131 : vector<8x32xf32> to vector<8x32xbf16>
      %c0_67 = arith.constant 0 : index
      %c0_68 = arith.constant 0 : index
      %133 = vector.load %arg12[%c0_67, %c0_68] : memref<32x32xbf16, #tpu.memory_space<vmem>>, vector<32x32xbf16>
      %cst_69 = arith.constant dense<0.000000e+00> : vector<8x32xf32>
      %134 = tpu.matmul %132, %133, %cst_69 {dimension_numbers = #tpu.dot_dimension_numbers<[1], [0], [0], [1], [0, 0, 1, 1], [], []>} : vector<8x32xbf16>, vector<32x32xbf16>, vector<8x32xf32> -> vector<8x32xf32>
      %135 = vector.extract_strided_slice %0 {offsets = [7, 0], sizes = [1, 32], strides = [1, 1]} : vector<16x32xf32> to vector<1x32xf32>
      %136 = vector.broadcast %135 : vector<1x32xf32> to vector<8x32xf32>
      %137 = arith.addf %134, %136 : vector<8x32xf32>
      %138 = arith.truncf %137 : vector<8x32xf32> to vector<8x32xbf16>
      %139 = vector.extract_strided_slice %138 {offsets = [0, 0], sizes = [8, 8], strides = [1, 1]} : vector<8x32xbf16> to vector<8x8xbf16>
      %140 = vector.extract_strided_slice %138 {offsets = [0, 8], sizes = [8, 8], strides = [1, 1]} : vector<8x32xbf16> to vector<8x8xbf16>
      %141 = vector.extract_strided_slice %138 {offsets = [0, 16], sizes = [8, 8], strides = [1, 1]} : vector<8x32xbf16> to vector<8x8xbf16>
      %142 = vector.extract_strided_slice %138 {offsets = [0, 24], sizes = [8, 8], strides = [1, 1]} : vector<8x32xbf16> to vector<8x8xbf16>
      %143 = vector.shape_cast %139 : vector<8x8xbf16> to vector<1x8x8xbf16>
      %144 = vector.shape_cast %140 : vector<8x8xbf16> to vector<1x8x8xbf16>
      %145 = vector.shape_cast %141 : vector<8x8xbf16> to vector<1x8x8xbf16>
      %146 = vector.shape_cast %142 : vector<8x8xbf16> to vector<1x8x8xbf16>
      %147 = tpu.concatenate %143, %144, %145, %146 in 0 : vector<1x8x8xbf16>, vector<1x8x8xbf16>, vector<1x8x8xbf16>, vector<1x8x8xbf16> -> vector<4x8x8xbf16>
      %c0_70 = arith.constant 0 : index
      %c0_71 = arith.constant 0 : index
      %148 = vector.load %arg13[%c0_70, %c0_71] : memref<32x32xbf16, #tpu.memory_space<vmem>>, vector<32x32xbf16>
      %cst_72 = arith.constant dense<0.000000e+00> : vector<8x32xf32>
      %149 = tpu.matmul %132, %148, %cst_72 {dimension_numbers = #tpu.dot_dimension_numbers<[1], [0], [0], [1], [0, 0, 1, 1], [], []>} : vector<8x32xbf16>, vector<32x32xbf16>, vector<8x32xf32> -> vector<8x32xf32>
      %150 = vector.extract_strided_slice %0 {offsets = [8, 0], sizes = [1, 32], strides = [1, 1]} : vector<16x32xf32> to vector<1x32xf32>
      %151 = vector.broadcast %150 : vector<1x32xf32> to vector<8x32xf32>
      %152 = arith.addf %149, %151 : vector<8x32xf32>
      %153 = arith.truncf %152 : vector<8x32xf32> to vector<8x32xbf16>
      %154 = vector.extract_strided_slice %153 {offsets = [0, 0], sizes = [8, 8], strides = [1, 1]} : vector<8x32xbf16> to vector<8x8xbf16>
      %155 = vector.extract_strided_slice %153 {offsets = [0, 8], sizes = [8, 8], strides = [1, 1]} : vector<8x32xbf16> to vector<8x8xbf16>
      %156 = vector.extract_strided_slice %153 {offsets = [0, 16], sizes = [8, 8], strides = [1, 1]} : vector<8x32xbf16> to vector<8x8xbf16>
      %157 = vector.extract_strided_slice %153 {offsets = [0, 24], sizes = [8, 8], strides = [1, 1]} : vector<8x32xbf16> to vector<8x8xbf16>
      %158 = vector.shape_cast %154 : vector<8x8xbf16> to vector<1x8x8xbf16>
      %159 = vector.shape_cast %155 : vector<8x8xbf16> to vector<1x8x8xbf16>
      %160 = vector.shape_cast %156 : vector<8x8xbf16> to vector<1x8x8xbf16>
      %161 = vector.shape_cast %157 : vector<8x8xbf16> to vector<1x8x8xbf16>
      %162 = tpu.concatenate %158, %159, %160, %161 in 0 : vector<1x8x8xbf16>, vector<1x8x8xbf16>, vector<1x8x8xbf16>, vector<1x8x8xbf16> -> vector<4x8x8xbf16>
      %163 = arith.truncf %130 : vector<8x32xf32> to vector<8x32xbf16>
      %c0_73 = arith.constant 0 : index
      %c0_74 = arith.constant 0 : index
      %164 = vector.load %arg14[%c0_73, %c0_74] : memref<32x32xbf16, #tpu.memory_space<vmem>>, vector<32x32xbf16>
      %cst_75 = arith.constant dense<0.000000e+00> : vector<8x32xf32>
      %165 = tpu.matmul %163, %164, %cst_75 {dimension_numbers = #tpu.dot_dimension_numbers<[1], [0], [0], [1], [0, 0, 1, 1], [], []>} : vector<8x32xbf16>, vector<32x32xbf16>, vector<8x32xf32> -> vector<8x32xf32>
      %166 = vector.extract_strided_slice %0 {offsets = [9, 0], sizes = [1, 32], strides = [1, 1]} : vector<16x32xf32> to vector<1x32xf32>
      %167 = vector.broadcast %166 : vector<1x32xf32> to vector<8x32xf32>
      %168 = arith.addf %165, %167 : vector<8x32xf32>
      %169 = arith.truncf %168 : vector<8x32xf32> to vector<8x32xbf16>
      %170 = vector.extract_strided_slice %169 {offsets = [0, 0], sizes = [8, 8], strides = [1, 1]} : vector<8x32xbf16> to vector<8x8xbf16>
      %171 = vector.extract_strided_slice %169 {offsets = [0, 8], sizes = [8, 8], strides = [1, 1]} : vector<8x32xbf16> to vector<8x8xbf16>
      %172 = vector.extract_strided_slice %169 {offsets = [0, 16], sizes = [8, 8], strides = [1, 1]} : vector<8x32xbf16> to vector<8x8xbf16>
      %173 = vector.extract_strided_slice %169 {offsets = [0, 24], sizes = [8, 8], strides = [1, 1]} : vector<8x32xbf16> to vector<8x8xbf16>
      %174 = vector.shape_cast %170 : vector<8x8xbf16> to vector<1x8x8xbf16>
      %175 = vector.shape_cast %171 : vector<8x8xbf16> to vector<1x8x8xbf16>
      %176 = vector.shape_cast %172 : vector<8x8xbf16> to vector<1x8x8xbf16>
      %177 = vector.shape_cast %173 : vector<8x8xbf16> to vector<1x8x8xbf16>
      %178 = tpu.concatenate %174, %175, %176, %177 in 0 : vector<1x8x8xbf16>, vector<1x8x8xbf16>, vector<1x8x8xbf16>, vector<1x8x8xbf16> -> vector<4x8x8xbf16>
      %cst_76 = arith.constant dense<0.000000e+00> : vector<4x8x8xf32>
      %179 = tpu.matmul %147, %162, %cst_76 {dimension_numbers = #tpu.dot_dimension_numbers<[2], [2], [1], [1], [0, 0, 0, 1, 1, 1], [0], [0]>} : vector<4x8x8xbf16>, vector<4x8x8xbf16>, vector<4x8x8xf32> -> vector<4x8x8xf32>
      %cst_77 = arith.constant dense<0xFF800000> : vector<4x8xf32>
      %180 = vector.multi_reduction <maximumf>, %179, %cst_77 [2] : vector<4x8x8xf32> to vector<4x8xf32>
      %181 = vector.shape_cast %180 : vector<4x8xf32> to vector<4x8x1xf32>
      %182 = vector.broadcast %181 : vector<4x8x1xf32> to vector<4x8x8xf32>
      %183 = arith.subf %179, %182 : vector<4x8x8xf32>
      %184 = math.exp %183 : vector<4x8x8xf32>
      %cst_78 = arith.constant dense<0.000000e+00> : vector<4x8xf32>
      %185 = vector.multi_reduction <add>, %184, %cst_78 [2] : vector<4x8x8xf32> to vector<4x8xf32>
      %186 = vector.shape_cast %185 : vector<4x8xf32> to vector<4x8x1xf32>
      %187 = tpu.reciprocal %186 {approx = true} : vector<4x8x1xf32> -> vector<4x8x1xf32>
      %188 = vector.broadcast %187 : vector<4x8x1xf32> to vector<4x8x8xf32>
      %189 = arith.mulf %184, %188 : vector<4x8x8xf32>
      %190 = arith.truncf %189 : vector<4x8x8xf32> to vector<4x8x8xbf16>
      %cst_79 = arith.constant dense<0.000000e+00> : vector<4x8x8xf32>
      %191 = tpu.matmul %190, %178, %cst_79 {dimension_numbers = #tpu.dot_dimension_numbers<[2], [1], [1], [2], [0, 0, 0, 1, 1, 2], [0], [0]>} : vector<4x8x8xbf16>, vector<4x8x8xbf16>, vector<4x8x8xf32> -> vector<4x8x8xf32>
      %192 = vector.extract_strided_slice %191 {offsets = [0, 0, 0], sizes = [1, 8, 8], strides = [1, 1, 1]} : vector<4x8x8xf32> to vector<1x8x8xf32>
      %193 = vector.shape_cast %192 : vector<1x8x8xf32> to vector<8x8xf32>
      %194 = vector.extract_strided_slice %191 {offsets = [1, 0, 0], sizes = [1, 8, 8], strides = [1, 1, 1]} : vector<4x8x8xf32> to vector<1x8x8xf32>
      %195 = vector.shape_cast %194 : vector<1x8x8xf32> to vector<8x8xf32>
      %196 = vector.extract_strided_slice %191 {offsets = [2, 0, 0], sizes = [1, 8, 8], strides = [1, 1, 1]} : vector<4x8x8xf32> to vector<1x8x8xf32>
      %197 = vector.shape_cast %196 : vector<1x8x8xf32> to vector<8x8xf32>
      %198 = vector.extract_strided_slice %191 {offsets = [3, 0, 0], sizes = [1, 8, 8], strides = [1, 1, 1]} : vector<4x8x8xf32> to vector<1x8x8xf32>
      %199 = vector.shape_cast %198 : vector<1x8x8xf32> to vector<8x8xf32>
      %200 = tpu.concatenate %193, %195, %197, %199 in 1 : vector<8x8xf32>, vector<8x8xf32>, vector<8x8xf32>, vector<8x8xf32> -> vector<8x32xf32>
      %201 = arith.truncf %200 : vector<8x32xf32> to vector<8x32xbf16>
      %c0_80 = arith.constant 0 : index
      %c0_81 = arith.constant 0 : index
      %202 = vector.load %arg15[%c0_80, %c0_81] : memref<32x32xbf16, #tpu.memory_space<vmem>>, vector<32x32xbf16>
      %cst_82 = arith.constant dense<0.000000e+00> : vector<8x32xf32>
      %203 = tpu.matmul %201, %202, %cst_82 {dimension_numbers = #tpu.dot_dimension_numbers<[1], [0], [0], [1], [0, 0, 1, 1], [], []>} : vector<8x32xbf16>, vector<32x32xbf16>, vector<8x32xf32> -> vector<8x32xf32>
      %204 = vector.extract_strided_slice %0 {offsets = [10, 0], sizes = [1, 32], strides = [1, 1]} : vector<16x32xf32> to vector<1x32xf32>
      %205 = vector.broadcast %204 : vector<1x32xf32> to vector<8x32xf32>
      %206 = arith.addf %203, %205 : vector<8x32xf32>
      %207 = arith.addf %130, %206 : vector<8x32xf32>
      %208 = vector.extract_strided_slice %0 {offsets = [11, 0], sizes = [1, 32], strides = [1, 1]} : vector<16x32xf32> to vector<1x32xf32>
      %209 = vector.extract_strided_slice %0 {offsets = [12, 0], sizes = [1, 32], strides = [1, 1]} : vector<16x32xf32> to vector<1x32xf32>
      %cst_83 = arith.constant dense<0.000000e+00> : vector<8xf32>
      %210 = vector.multi_reduction <add>, %207, %cst_83 [1] : vector<8x32xf32> to vector<8xf32>
      %211 = vector.shape_cast %210 : vector<8xf32> to vector<8x1xf32>
      %cst_84 = arith.constant 3.200000e+01 : f32
      %212 = vector.broadcast %cst_84 : f32 to vector<8x1xf32>
      %213 = arith.divf %211, %212 : vector<8x1xf32>
      %214 = vector.broadcast %213 : vector<8x1xf32> to vector<8x32xf32>
      %215 = arith.subf %207, %214 : vector<8x32xf32>
      %216 = arith.mulf %215, %215 : vector<8x32xf32>
      %cst_85 = arith.constant dense<0.000000e+00> : vector<8xf32>
      %217 = vector.multi_reduction <add>, %216, %cst_85 [1] : vector<8x32xf32> to vector<8xf32>
      %218 = vector.shape_cast %217 : vector<8xf32> to vector<8x1xf32>
      %cst_86 = arith.constant 3.200000e+01 : f32
      %219 = vector.broadcast %cst_86 : f32 to vector<8x1xf32>
      %220 = arith.divf %218, %219 : vector<8x1xf32>
      %221 = vector.broadcast %213 : vector<8x1xf32> to vector<8x32xf32>
      %222 = arith.subf %207, %221 : vector<8x32xf32>
      %cst_87 = arith.constant 9.99999974E-6 : f32
      %223 = vector.broadcast %cst_87 : f32 to vector<8x1xf32>
      %224 = arith.addf %220, %223 : vector<8x1xf32>
      %225 = math.rsqrt %224 : vector<8x1xf32>
      %226 = vector.broadcast %225 : vector<8x1xf32> to vector<8x32xf32>
      %227 = arith.mulf %222, %226 : vector<8x32xf32>
      %228 = vector.broadcast %208 : vector<1x32xf32> to vector<8x32xf32>
      %229 = arith.mulf %227, %228 : vector<8x32xf32>
      %230 = vector.broadcast %209 : vector<1x32xf32> to vector<8x32xf32>
      %231 = arith.addf %229, %230 : vector<8x32xf32>
      %232 = arith.truncf %231 : vector<8x32xf32> to vector<8x32xbf16>
      %c0_88 = arith.constant 0 : index
      %c0_89 = arith.constant 0 : index
      %233 = vector.load %arg16[%c0_88, %c0_89] : memref<32x64xbf16, #tpu.memory_space<vmem>>, vector<32x64xbf16>
      %cst_90 = arith.constant dense<0.000000e+00> : vector<8x64xf32>
      %234 = tpu.matmul %232, %233, %cst_90 {dimension_numbers = #tpu.dot_dimension_numbers<[1], [0], [0], [1], [0, 0, 1, 1], [], []>} : vector<8x32xbf16>, vector<32x64xbf16>, vector<8x64xf32> -> vector<8x64xf32>
      %c0_91 = arith.constant 0 : index
      %c0_92 = arith.constant 0 : index
      %235 = vector.load %arg17[%c0_91, %c0_92] : memref<1x64xf32, #tpu.memory_space<vmem>>, vector<1x64xf32>
      %236 = vector.broadcast %235 : vector<1x64xf32> to vector<8x64xf32>
      %237 = arith.addf %234, %236 : vector<8x64xf32>
      %cst_93 = arith.constant 0.000000e+00 : f32
      %238 = vector.broadcast %cst_93 : f32 to vector<8x64xf32>
      %239 = arith.maximumf %237, %238 : vector<8x64xf32>
      %240 = arith.truncf %239 : vector<8x64xf32> to vector<8x64xbf16>
      %c0_94 = arith.constant 0 : index
      %c0_95 = arith.constant 0 : index
      %241 = vector.load %arg18[%c0_94, %c0_95] : memref<64x32xbf16, #tpu.memory_space<vmem>>, vector<64x32xbf16>
      %cst_96 = arith.constant dense<0.000000e+00> : vector<8x32xf32>
      %242 = tpu.matmul %240, %241, %cst_96 {dimension_numbers = #tpu.dot_dimension_numbers<[1], [0], [0], [1], [0, 0, 1, 1], [], []>} : vector<8x64xbf16>, vector<64x32xbf16>, vector<8x32xf32> -> vector<8x32xf32>
      %243 = vector.extract_strided_slice %0 {offsets = [13, 0], sizes = [1, 32], strides = [1, 1]} : vector<16x32xf32> to vector<1x32xf32>
      %244 = vector.broadcast %243 : vector<1x32xf32> to vector<8x32xf32>
      %245 = arith.addf %242, %244 : vector<8x32xf32>
      %246 = arith.addf %231, %245 : vector<8x32xf32>
      %247 = vector.extract_strided_slice %0 {offsets = [14, 0], sizes = [1, 32], strides = [1, 1]} : vector<16x32xf32> to vector<1x32xf32>
      %248 = vector.extract_strided_slice %0 {offsets = [15, 0], sizes = [1, 32], strides = [1, 1]} : vector<16x32xf32> to vector<1x32xf32>
      %cst_97 = arith.constant dense<0.000000e+00> : vector<8xf32>
      %249 = vector.multi_reduction <add>, %246, %cst_97 [1] : vector<8x32xf32> to vector<8xf32>
      %250 = vector.shape_cast %249 : vector<8xf32> to vector<8x1xf32>
      %cst_98 = arith.constant 3.200000e+01 : f32
      %251 = vector.broadcast %cst_98 : f32 to vector<8x1xf32>
      %252 = arith.divf %250, %251 : vector<8x1xf32>
      %253 = vector.broadcast %252 : vector<8x1xf32> to vector<8x32xf32>
      %254 = arith.subf %246, %253 : vector<8x32xf32>
      %255 = arith.mulf %254, %254 : vector<8x32xf32>
      %cst_99 = arith.constant dense<0.000000e+00> : vector<8xf32>
      %256 = vector.multi_reduction <add>, %255, %cst_99 [1] : vector<8x32xf32> to vector<8xf32>
      %257 = vector.shape_cast %256 : vector<8xf32> to vector<8x1xf32>
      %cst_100 = arith.constant 3.200000e+01 : f32
      %258 = vector.broadcast %cst_100 : f32 to vector<8x1xf32>
      %259 = arith.divf %257, %258 : vector<8x1xf32>
      %260 = vector.broadcast %252 : vector<8x1xf32> to vector<8x32xf32>
      %261 = arith.subf %246, %260 : vector<8x32xf32>
      %cst_101 = arith.constant 9.99999974E-6 : f32
      %262 = vector.broadcast %cst_101 : f32 to vector<8x1xf32>
      %263 = arith.addf %259, %262 : vector<8x1xf32>
      %264 = math.rsqrt %263 : vector<8x1xf32>
      %265 = vector.broadcast %264 : vector<8x1xf32> to vector<8x32xf32>
      %266 = arith.mulf %261, %265 : vector<8x32xf32>
      %267 = vector.broadcast %247 : vector<1x32xf32> to vector<8x32xf32>
      %268 = arith.mulf %266, %267 : vector<8x32xf32>
      %269 = vector.broadcast %248 : vector<1x32xf32> to vector<8x32xf32>
      %270 = arith.addf %268, %269 : vector<8x32xf32>
      %c0_102 = arith.constant 0 : index
      %c0_103 = arith.constant 0 : index
      %c0_104 = arith.constant 0 : index
      %271 = vector.load %arg20[%c0_102, %c0_103, %c0_104] : memref<1x8x32xf32, #tpu.memory_space<vmem>>, vector<1x8x32xf32>
      %272 = vector.shape_cast %271 : vector<1x8x32xf32> to vector<8x32xf32>
      %273 = vector.shape_cast %270 : vector<8x32xf32> to vector<1x8x32xf32>
      tpu.vector_store %arg20[%c0_102, %c0_103, %c0_104], %273 {strides = array<i32>} : memref<1x8x32xf32, #tpu.memory_space<vmem>>, vector<1x8x32xf32>,
    } else {
    }
    return
  }
  func.func @transform_0(%arg0: i32, %arg1: i32) -> (i32, i32, i32) {
    %c0_i32 = arith.constant 0 : i32
    %c0_i32_0 = arith.constant 0 : i32
    %c0_i32_1 = arith.constant 0 : i32
    return %arg0, %c0_i32, %c0_i32_0 : i32, i32, i32
  }
  func.func @transform_1(%arg0: i32, %arg1: i32) -> (i32, i32, i32) {
    %c0_i32 = arith.constant 0 : i32
    %c0_i32_0 = arith.constant 0 : i32
    return %arg0, %arg1, %c0_i32 : i32, i32, i32
  }
  func.func @transform_2(%arg0: i32, %arg1: i32) -> (i32, i32) {
    %c0_i32 = arith.constant 0 : i32
    %c0_i32_0 = arith.constant 0 : i32
    %c0_i32_1 = arith.constant 0 : i32
    return %c0_i32, %c0_i32_0 : i32, i32
  }
  func.func @transform_3(%arg0: i32, %arg1: i32) -> (i32, i32, i32) {
    %c0_i32 = arith.constant 0 : i32
    %c0_i32_0 = arith.constant 0 : i32
    return %arg0, %c0_i32, %arg1 : i32, i32, i32
  }
  func.func @transform_4(%arg0: i32, %arg1: i32) -> (i32, i32) {
    %c0_i32 = arith.constant 0 : i32
    %c0_i32_0 = arith.constant 0 : i32
    %c0_i32_1 = arith.constant 0 : i32
    return %c0_i32, %c0_i32_0 : i32, i32
  }
  func.func @transform_5(%arg0: i32, %arg1: i32) -> (i32, i32) {
    %c0_i32 = arith.constant 0 : i32
    %c0_i32_0 = arith.constant 0 : i32
    %c0_i32_1 = arith.constant 0 : i32
    return %c0_i32, %c0_i32_0 : i32, i32
  }
  func.func @transform_6(%arg0: i32, %arg1: i32) -> (i32, i32) {
    %c0_i32 = arith.constant 0 : i32
    %c0_i32_0 = arith.constant 0 : i32
    %c0_i32_1 = arith.constant 0 : i32
    return %c0_i32, %c0_i32_0 : i32, i32
  }
  func.func @transform_7(%arg0: i32, %arg1: i32) -> (i32, i32) {
    %c0_i32 = arith.constant 0 : i32
    %c0_i32_0 = arith.constant 0 : i32
    %c0_i32_1 = arith.constant 0 : i32
    return %c0_i32, %c0_i32_0 : i32, i32
  }
  func.func @transform_8(%arg0: i32, %arg1: i32) -> (i32, i32) {
    %c0_i32 = arith.constant 0 : i32
    %c0_i32_0 = arith.constant 0 : i32
    %c0_i32_1 = arith.constant 0 : i32
    return %c0_i32, %c0_i32_0 : i32, i32
  }
  func.func @transform_9(%arg0: i32, %arg1: i32) -> (i32, i32) {
    %c0_i32 = arith.constant 0 : i32
    %c0_i32_0 = arith.constant 0 : i32
    %c0_i32_1 = arith.constant 0 : i32
    return %c0_i32, %c0_i32_0 : i32, i32
  }
  func.func @transform_10(%arg0: i32, %arg1: i32) -> (i32, i32) {
    %c0_i32 = arith.constant 0 : i32
    %c0_i32_0 = arith.constant 0 : i32
    %c0_i32_1 = arith.constant 0 : i32
    return %c0_i32, %c0_i32_0 : i32, i32
  }
  func.func @transform_11(%arg0: i32, %arg1: i32) -> (i32, i32) {
    %c0_i32 = arith.constant 0 : i32
    %c0_i32_0 = arith.constant 0 : i32
    %c0_i32_1 = arith.constant 0 : i32
    return %c0_i32, %c0_i32_0 : i32, i32
  }
  func.func @transform_12(%arg0: i32, %arg1: i32) -> (i32, i32) {
    %c0_i32 = arith.constant 0 : i32
    %c0_i32_0 = arith.constant 0 : i32
    %c0_i32_1 = arith.constant 0 : i32
    return %c0_i32, %c0_i32_0 : i32, i32
  }
  func.func @transform_13(%arg0: i32, %arg1: i32) -> (i32, i32) {
    %c0_i32 = arith.constant 0 : i32
    %c0_i32_0 = arith.constant 0 : i32
    %c0_i32_1 = arith.constant 0 : i32
    return %c0_i32, %c0_i32_0 : i32, i32
  }
  func.func @transform_14(%arg0: i32, %arg1: i32) -> (i32, i32) {
    %c0_i32 = arith.constant 0 : i32
    %c0_i32_0 = arith.constant 0 : i32
    %c0_i32_1 = arith.constant 0 : i32
    return %c0_i32, %c0_i32_0 : i32, i32
  }
  func.func @transform_15(%arg0: i32, %arg1: i32) -> (i32, i32) {
    %c0_i32 = arith.constant 0 : i32
    %c0_i32_0 = arith.constant 0 : i32
    %c0_i32_1 = arith.constant 0 : i32
    return %c0_i32, %c0_i32_0 : i32, i32
  }
  func.func @transform_16(%arg0: i32, %arg1: i32) -> (i32, i32) {
    %c0_i32 = arith.constant 0 : i32
    %c0_i32_0 = arith.constant 0 : i32
    %c0_i32_1 = arith.constant 0 : i32
    return %c0_i32, %c0_i32_0 : i32, i32
  }
  func.func @transform_17(%arg0: i32, %arg1: i32) -> (i32, i32) {
    %c0_i32 = arith.constant 0 : i32
    %c0_i32_0 = arith.constant 0 : i32
    %c0_i32_1 = arith.constant 0 : i32
    return %c0_i32, %c0_i32_0 : i32, i32
  }
  func.func @transform_18(%arg0: i32, %arg1: i32) -> (i32, i32, i32) {
    %c0_i32 = arith.constant 0 : i32
    %c0_i32_0 = arith.constant 0 : i32
    %c0_i32_1 = arith.constant 0 : i32
    return %arg0, %c0_i32, %c0_i32_0 : i32, i32, i32
  }
}

module attributes {stable_mosaic.version = 11 : i64} {
  func.func @_decoder_layer_kernel(%arg0: i32, %arg1: i32, %arg2: memref<1x8x32xf32, #tpu.memory_space<vmem>>, %arg3: memref<1x64x32xbf16, #tpu.memory_space<vmem>>, %arg4: memref<8x32xf32, #tpu.memory_space<vmem>>, %arg5: memref<1x8x64xi8, #tpu.memory_space<vmem>>, %arg6: memref<32x32xbf16, #tpu.memory_space<vmem>>, %arg7: memref<32x32xbf16, #tpu.memory_space<vmem>>, %arg8: memref<32x32xbf16, #tpu.memory_space<vmem>>, %arg9: memref<32x32xbf16, #tpu.memory_space<vmem>>, %arg10: memref<32x32xbf16, #tpu.memory_space<vmem>>, %arg11: memref<32x32xbf16, #tpu.memory_space<vmem>>, %arg12: memref<32x32xbf16, #tpu.memory_space<vmem>>, %arg13: memref<32x32xbf16, #tpu.memory_space<vmem>>, %arg14: memref<32x32xbf16, #tpu.memory_space<vmem>>, %arg15: memref<32x32xbf16, #tpu.memory_space<vmem>>, %arg16: memref<32x64xbf16, #tpu.memory_space<vmem>>, %arg17: memref<1x64xf32, #tpu.memory_space<vmem>>, %arg18: memref<64x32xbf16, #tpu.memory_space<vmem>>, %arg19: memref<16x32xf32, #tpu.memory_space<vmem>>, %arg20: memref<1x8x32xf32, #tpu.memory_space<vmem>>, %arg21: memref<4x8x8xbf16, #tpu.memory_space<vmem>>, %arg22: memref<4x8x1xf32, #tpu.memory_space<vmem>>, %arg23: memref<4x8x1xf32, #tpu.memory_space<vmem>>, %arg24: memref<4x8x8xf32, #tpu.memory_space<vmem>>) attributes {dimension_semantics = [#tpu.dimension_semantics<parallel>, #tpu.dimension_semantics<arbitrary>], iteration_bounds = array<i64: 2, 1>, scalar_prefetch = 0 : i64, scratch_operands = 4 : i64, tpu.core_type = #tpu.core_type<tc>, window_params = [{transform_indices = @transform_0, window_bounds = array<i64: 1, 8, 32>}, {transform_indices = @transform_1, window_bounds = array<i64: 1, 64, 32>}, {pipeline_mode = #tpu.pipeline_mode<synchronous>, transform_indices = @transform_2, window_bounds = array<i64: 8, 32>}, {transform_indices = @transform_3, window_bounds = array<i64: 1, 8, 64>}, {pipeline_mode = #tpu.pipeline_mode<synchronous>, transform_indices = @transform_4, window_bounds = array<i64: 32, 32>}, {pipeline_mode = #tpu.pipeline_mode<synchronous>, transform_indices = @transform_5, window_bounds = array<i64: 32, 32>}, {pipeline_mode = #tpu.pipeline_mode<synchronous>, transform_indices = @transform_6, window_bounds = array<i64: 32, 32>}, {pipeline_mode = #tpu.pipeline_mode<synchronous>, transform_indices = @transform_7, window_bounds = array<i64: 32, 32>}, {pipeline_mode = #tpu.pipeline_mode<synchronous>, transform_indices = @transform_8, window_bounds = array<i64: 32, 32>}, {pipeline_mode = #tpu.pipeline_mode<synchronous>, transform_indices = @transform_9, window_bounds = array<i64: 32, 32>}, {pipeline_mode = #tpu.pipeline_mode<synchronous>, transform_indices = @transform_10, window_bounds = array<i64: 32, 32>}, {pipeline_mode = #tpu.pipeline_mode<synchronous>, transform_indices = @transform_11, window_bounds = array<i64: 32, 32>}, {pipeline_mode = #tpu.pipeline_mode<synchronous>, transform_indices = @transform_12, window_bounds = array<i64: 32, 32>}, {pipeline_mode = #tpu.pipeline_mode<synchronous>, transform_indices = @transform_13, window_bounds = array<i64: 32, 32>}, {pipeline_mode = #tpu.pipeline_mode<synchronous>, transform_indices = @transform_14, window_bounds = array<i64: 32, 64>}, {pipeline_mode = #tpu.pipeline_mode<synchronous>, transform_indices = @transform_15, window_bounds = array<i64: 1, 64>}, {pipeline_mode = #tpu.pipeline_mode<synchronous>, transform_indices = @transform_16, window_bounds = array<i64: 64, 32>}, {pipeline_mode = #tpu.pipeline_mode<synchronous>, transform_indices = @transform_17, window_bounds = array<i64: 16, 32>}, {transform_indices = @transform_18, window_bounds = array<i64: 1, 8, 32>}]} {
    %c0 = arith.constant 0 : index
    %c0_0 = arith.constant 0 : index
    %0 = vector.load %arg19[%c0, %c0_0] : memref<16x32xf32, #tpu.memory_space<vmem>>, vector<16x32xf32>
    %c0_i32 = arith.constant 0 : i32
    %1 = arith.cmpi eq, %arg1, %c0_i32 : i32
    %2 = arith.extui %1 : i1 to i32
    %cst = arith.constant -1.000000e+30 : f32
    %c0_i32_1 = arith.constant 0 : i32
    %3 = arith.cmpi ne, %2, %c0_i32_1 : i32
    scf.if %3 {
      %c0_42 = arith.constant 0 : index
      %c0_43 = arith.constant 0 : index
      %c0_44 = arith.constant 0 : index
      %73 = vector.load %arg2[%c0_42, %c0_43, %c0_44] : memref<1x8x32xf32, #tpu.memory_space<vmem>>, vector<1x8x32xf32>
      %74 = vector.shape_cast %73 : vector<1x8x32xf32> to vector<8x32xf32>
      %75 = arith.truncf %74 : vector<8x32xf32> to vector<8x32xbf16>
      %c0_45 = arith.constant 0 : index
      %c0_46 = arith.constant 0 : index
      %76 = vector.load %arg6[%c0_45, %c0_46] : memref<32x32xbf16, #tpu.memory_space<vmem>>, vector<32x32xbf16>
      %cst_47 = arith.constant dense<0.000000e+00> : vector<8x32xf32>
      %77 = tpu.matmul %75, %76, %cst_47 {dimension_numbers = #tpu.dot_dimension_numbers<[1], [0], [0], [1], [0, 0, 1, 1], [], []>} : vector<8x32xbf16>, vector<32x32xbf16>, vector<8x32xf32> -> vector<8x32xf32>
      %78 = vector.extract_strided_slice %0 {offsets = [0, 0], sizes = [1, 32], strides = [1, 1]} : vector<16x32xf32> to vector<1x32xf32>
      %79 = vector.broadcast %78 : vector<1x32xf32> to vector<8x32xf32>
      %80 = arith.addf %77, %79 : vector<8x32xf32>
      %81 = arith.truncf %80 : vector<8x32xf32> to vector<8x32xbf16>
      %82 = vector.extract_strided_slice %81 {offsets = [0, 0], sizes = [8, 8], strides = [1, 1]} : vector<8x32xbf16> to vector<8x8xbf16>
      %83 = vector.extract_strided_slice %81 {offsets = [0, 8], sizes = [8, 8], strides = [1, 1]} : vector<8x32xbf16> to vector<8x8xbf16>
      %84 = vector.extract_strided_slice %81 {offsets = [0, 16], sizes = [8, 8], strides = [1, 1]} : vector<8x32xbf16> to vector<8x8xbf16>
      %85 = vector.extract_strided_slice %81 {offsets = [0, 24], sizes = [8, 8], strides = [1, 1]} : vector<8x32xbf16> to vector<8x8xbf16>
      %86 = vector.shape_cast %82 : vector<8x8xbf16> to vector<1x8x8xbf16>
      %87 = vector.shape_cast %83 : vector<8x8xbf16> to vector<1x8x8xbf16>
      %88 = vector.shape_cast %84 : vector<8x8xbf16> to vector<1x8x8xbf16>
      %89 = vector.shape_cast %85 : vector<8x8xbf16> to vector<1x8x8xbf16>
      %90 = tpu.concatenate %86, %87, %88, %89 in 0 : vector<1x8x8xbf16>, vector<1x8x8xbf16>, vector<1x8x8xbf16>, vector<1x8x8xbf16> -> vector<4x8x8xbf16>
      %c0_48 = arith.constant 0 : index
      %c0_49 = arith.constant 0 : index
      %c0_50 = arith.constant 0 : index
      %91 = vector.load %arg21[%c0_48, %c0_49, %c0_50] : memref<4x8x8xbf16, #tpu.memory_space<vmem>>, vector<4x8x8xbf16>
      tpu.vector_store %arg21[%c0_48, %c0_49, %c0_50], %90 {strides = array<i32>} : memref<4x8x8xbf16, #tpu.memory_space<vmem>>, vector<4x8x8xbf16>,
      %92 = vector.broadcast %cst : f32 to vector<4x8x1xf32>
      %c0_51 = arith.constant 0 : index
      %c0_52 = arith.constant 0 : index
      %c0_53 = arith.constant 0 : index
      %93 = vector.load %arg22[%c0_51, %c0_52, %c0_53] : memref<4x8x1xf32, #tpu.memory_space<vmem>>, vector<4x8x1xf32>
      tpu.vector_store %arg22[%c0_51, %c0_52, %c0_53], %92 {strides = array<i32>} : memref<4x8x1xf32, #tpu.memory_space<vmem>>, vector<4x8x1xf32>,
      %cst_54 = arith.constant 0.000000e+00 : f32
      %94 = vector.broadcast %cst_54 : f32 to vector<4x8x1xf32>
      %c0_55 = arith.constant 0 : index
      %c0_56 = arith.constant 0 : index
      %c0_57 = arith.constant 0 : index
      %95 = vector.load %arg23[%c0_55, %c0_56, %c0_57] : memref<4x8x1xf32, #tpu.memory_space<vmem>>, vector<4x8x1xf32>
      tpu.vector_store %arg23[%c0_55, %c0_56, %c0_57], %94 {strides = array<i32>} : memref<4x8x1xf32, #tpu.memory_space<vmem>>, vector<4x8x1xf32>,
      %cst_58 = arith.constant 0.000000e+00 : f32
      %96 = vector.broadcast %cst_58 : f32 to vector<4x8x8xf32>
      %c0_59 = arith.constant 0 : index
      %c0_60 = arith.constant 0 : index
      %c0_61 = arith.constant 0 : index
      %97 = vector.load %arg24[%c0_59, %c0_60, %c0_61] : memref<4x8x8xf32, #tpu.memory_space<vmem>>, vector<4x8x8xf32>
      tpu.vector_store %arg24[%c0_59, %c0_60, %c0_61], %96 {strides = array<i32>} : memref<4x8x8xf32, #tpu.memory_space<vmem>>, vector<4x8x8xf32>,
    } else {
    }
    %c0_2 = arith.constant 0 : index
    %c0_3 = arith.constant 0 : index
    %c0_4 = arith.constant 0 : index
    %4 = vector.load %arg3[%c0_2, %c0_3, %c0_4] : memref<1x64x32xbf16, #tpu.memory_space<vmem>>, vector<1x64x32xbf16>
    %5 = vector.shape_cast %4 : vector<1x64x32xbf16> to vector<64x32xbf16>
    %c0_5 = arith.constant 0 : index
    %c0_6 = arith.constant 0 : index
    %6 = vector.load %arg7[%c0_5, %c0_6] : memref<32x32xbf16, #tpu.memory_space<vmem>>, vector<32x32xbf16>
    %cst_7 = arith.constant dense<0.000000e+00> : vector<64x32xf32>
    %7 = tpu.matmul %5, %6, %cst_7 {dimension_numbers = #tpu.dot_dimension_numbers<[1], [0], [0], [1], [0, 0, 1, 1], [], []>} : vector<64x32xbf16>, vector<32x32xbf16>, vector<64x32xf32> -> vector<64x32xf32>
    %8 = vector.extract_strided_slice %0 {offsets = [1, 0], sizes = [1, 32], strides = [1, 1]} : vector<16x32xf32> to vector<1x32xf32>
    %9 = vector.broadcast %8 : vector<1x32xf32> to vector<64x32xf32>
    %10 = arith.addf %7, %9 : vector<64x32xf32>
    %11 = arith.truncf %10 : vector<64x32xf32> to vector<64x32xbf16>
    %12 = vector.extract_strided_slice %11 {offsets = [0, 0], sizes = [64, 8], strides = [1, 1]} : vector<64x32xbf16> to vector<64x8xbf16>
    %13 = vector.extract_strided_slice %11 {offsets = [0, 8], sizes = [64, 8], strides = [1, 1]} : vector<64x32xbf16> to vector<64x8xbf16>
    %14 = vector.extract_strided_slice %11 {offsets = [0, 16], sizes = [64, 8], strides = [1, 1]} : vector<64x32xbf16> to vector<64x8xbf16>
    %15 = vector.extract_strided_slice %11 {offsets = [0, 24], sizes = [64, 8], strides = [1, 1]} : vector<64x32xbf16> to vector<64x8xbf16>
    %16 = vector.shape_cast %12 : vector<64x8xbf16> to vector<1x64x8xbf16>
    %17 = vector.shape_cast %13 : vector<64x8xbf16> to vector<1x64x8xbf16>
    %18 = vector.shape_cast %14 : vector<64x8xbf16> to vector<1x64x8xbf16>
    %19 = vector.shape_cast %15 : vector<64x8xbf16> to vector<1x64x8xbf16>
    %20 = tpu.concatenate %16, %17, %18, %19 in 0 : vector<1x64x8xbf16>, vector<1x64x8xbf16>, vector<1x64x8xbf16>, vector<1x64x8xbf16> -> vector<4x64x8xbf16>
    %c0_8 = arith.constant 0 : index
    %c0_9 = arith.constant 0 : index
    %21 = vector.load %arg8[%c0_8, %c0_9] : memref<32x32xbf16, #tpu.memory_space<vmem>>, vector<32x32xbf16>
    %cst_10 = arith.constant dense<0.000000e+00> : vector<64x32xf32>
    %22 = tpu.matmul %5, %21, %cst_10 {dimension_numbers = #tpu.dot_dimension_numbers<[1], [0], [0], [1], [0, 0, 1, 1], [], []>} : vector<64x32xbf16>, vector<32x32xbf16>, vector<64x32xf32> -> vector<64x32xf32>
    %23 = vector.extract_strided_slice %0 {offsets = [2, 0], sizes = [1, 32], strides = [1, 1]} : vector<16x32xf32> to vector<1x32xf32>
    %24 = vector.broadcast %23 : vector<1x32xf32> to vector<64x32xf32>
    %25 = arith.addf %22, %24 : vector<64x32xf32>
    %26 = arith.truncf %25 : vector<64x32xf32> to vector<64x32xbf16>
    %27 = vector.extract_strided_slice %26 {offsets = [0, 0], sizes = [64, 8], strides = [1, 1]} : vector<64x32xbf16> to vector<64x8xbf16>
    %28 = vector.extract_strided_slice %26 {offsets = [0, 8], sizes = [64, 8], strides = [1, 1]} : vector<64x32xbf16> to vector<64x8xbf16>
    %29 = vector.extract_strided_slice %26 {offsets = [0, 16], sizes = [64, 8], strides = [1, 1]} : vector<64x32xbf16> to vector<64x8xbf16>
    %30 = vector.extract_strided_slice %26 {offsets = [0, 24], sizes = [64, 8], strides = [1, 1]} : vector<64x32xbf16> to vector<64x8xbf16>
    %31 = vector.shape_cast %27 : vector<64x8xbf16> to vector<1x64x8xbf16>
    %32 = vector.shape_cast %28 : vector<64x8xbf16> to vector<1x64x8xbf16>
    %33 = vector.shape_cast %29 : vector<64x8xbf16> to vector<1x64x8xbf16>
    %34 = vector.shape_cast %30 : vector<64x8xbf16> to vector<1x64x8xbf16>
    %35 = tpu.concatenate %31, %32, %33, %34 in 0 : vector<1x64x8xbf16>, vector<1x64x8xbf16>, vector<1x64x8xbf16>, vector<1x64x8xbf16> -> vector<4x64x8xbf16>
    %c0_11 = arith.constant 0 : index
    %c0_12 = arith.constant 0 : index
    %c0_13 = arith.constant 0 : index
    %36 = vector.load %arg21[%c0_11, %c0_12, %c0_13] : memref<4x8x8xbf16, #tpu.memory_space<vmem>>, vector<4x8x8xbf16>
    %cst_14 = arith.constant dense<0.000000e+00> : vector<4x8x64xf32>
    %37 = tpu.matmul %36, %20, %cst_14 {dimension_numbers = #tpu.dot_dimension_numbers<[2], [2], [1], [1], [0, 0, 0, 1, 1, 1], [0], [0]>} : vector<4x8x8xbf16>, vector<4x64x8xbf16>, vector<4x8x64xf32> -> vector<4x8x64xf32>
    %c0_15 = arith.constant 0 : index
    %c0_16 = arith.constant 0 : index
    %c0_17 = arith.constant 0 : index
    %38 = vector.load %arg5[%c0_15, %c0_16, %c0_17] : memref<1x8x64xi8, #tpu.memory_space<vmem>>, vector<1x8x64xi8>
    %39 = vector.shape_cast %38 : vector<1x8x64xi8> to vector<8x64xi8>
    %c0_i8 = arith.constant 0 : i8
    %40 = vector.broadcast %c0_i8 : i8 to vector<8x64xi8>
    %41 = arith.cmpi ne, %39, %40 : vector<8x64xi8>
    %42 = vector.shape_cast %41 : vector<8x64xi1> to vector<1x8x64xi1>
    %cst_18 = arith.constant -1.000000e+30 : f32
    %43 = vector.shape_cast %42 : vector<1x8x64xi1> to vector<1x8x64xi1>
    %44 = vector.broadcast %43 : vector<1x8x64xi1> to vector<4x8x64xi1>
    %45 = vector.broadcast %cst_18 : f32 to vector<4x8x64xf32>
    %46 = arith.select %44, %45, %37 : vector<4x8x64xi1>, vector<4x8x64xf32>
    %c0_19 = arith.constant 0 : index
    %c0_20 = arith.constant 0 : index
    %c0_21 = arith.constant 0 : index
    %47 = vector.load %arg22[%c0_19, %c0_20, %c0_21] : memref<4x8x1xf32, #tpu.memory_space<vmem>>, vector<4x8x1xf32>
    %cst_22 = arith.constant dense<0xFF800000> : vector<4x8xf32>
    %48 = vector.multi_reduction <maximumf>, %46, %cst_22 [2] : vector<4x8x64xf32> to vector<4x8xf32>
    %49 = vector.shape_cast %48 : vector<4x8xf32> to vector<4x8x1xf32>
    %50 = arith.maximumf %47, %49 : vector<4x8x1xf32>
    %51 = arith.subf %47, %50 : vector<4x8x1xf32>
    %52 = math.exp %51 : vector<4x8x1xf32>
    %53 = vector.broadcast %50 : vector<4x8x1xf32> to vector<4x8x64xf32>
    %54 = arith.subf %46, %53 : vector<4x8x64xf32>
    %55 = math.exp %54 : vector<4x8x64xf32>
    %c0_23 = arith.constant 0 : index
    %c0_24 = arith.constant 0 : index
    %c0_25 = arith.constant 0 : index
    %56 = vector.load %arg23[%c0_23, %c0_24, %c0_25] : memref<4x8x1xf32, #tpu.memory_space<vmem>>, vector<4x8x1xf32>
    %57 = arith.mulf %52, %56 : vector<4x8x1xf32>
    %cst_26 = arith.constant dense<0.000000e+00> : vector<4x8xf32>
    %58 = vector.multi_reduction <add>, %55, %cst_26 [2] : vector<4x8x64xf32> to vector<4x8xf32>
    %59 = vector.shape_cast %58 : vector<4x8xf32> to vector<4x8x1xf32>
    %60 = arith.addf %57, %59 : vector<4x8x1xf32>
    %c0_27 = arith.constant 0 : index
    %c0_28 = arith.constant 0 : index
    %c0_29 = arith.constant 0 : index
    %61 = vector.load %arg23[%c0_27, %c0_28, %c0_29] : memref<4x8x1xf32, #tpu.memory_space<vmem>>, vector<4x8x1xf32>
    tpu.vector_store %arg23[%c0_27, %c0_28, %c0_29], %60 {strides = array<i32>} : memref<4x8x1xf32, #tpu.memory_space<vmem>>, vector<4x8x1xf32>,
    %c0_30 = arith.constant 0 : index
    %c0_31 = arith.constant 0 : index
    %c0_32 = arith.constant 0 : index
    %62 = vector.load %arg24[%c0_30, %c0_31, %c0_32] : memref<4x8x8xf32, #tpu.memory_space<vmem>>, vector<4x8x8xf32>
    %63 = vector.broadcast %52 : vector<4x8x1xf32> to vector<4x8x8xf32>
    %64 = arith.mulf %63, %62 : vector<4x8x8xf32>
    %65 = arith.truncf %55 : vector<4x8x64xf32> to vector<4x8x64xbf16>
    %cst_33 = arith.constant dense<0.000000e+00> : vector<4x8x8xf32>
    %66 = tpu.matmul %65, %35, %cst_33 {dimension_numbers = #tpu.dot_dimension_numbers<[2], [1], [1], [2], [0, 0, 0, 1, 1, 2], [0], [0]>} : vector<4x8x64xbf16>, vector<4x64x8xbf16>, vector<4x8x8xf32> -> vector<4x8x8xf32>
    %67 = arith.addf %64, %66 : vector<4x8x8xf32>
    %c0_34 = arith.constant 0 : index
    %c0_35 = arith.constant 0 : index
    %c0_36 = arith.constant 0 : index
    %68 = vector.load %arg24[%c0_34, %c0_35, %c0_36] : memref<4x8x8xf32, #tpu.memory_space<vmem>>, vector<4x8x8xf32>
    tpu.vector_store %arg24[%c0_34, %c0_35, %c0_36], %67 {strides = array<i32>} : memref<4x8x8xf32, #tpu.memory_space<vmem>>, vector<4x8x8xf32>,
    %c0_37 = arith.constant 0 : index
    %c0_38 = arith.constant 0 : index
    %c0_39 = arith.constant 0 : index
    %69 = vector.load %arg22[%c0_37, %c0_38, %c0_39] : memref<4x8x1xf32, #tpu.memory_space<vmem>>, vector<4x8x1xf32>
    tpu.vector_store %arg22[%c0_37, %c0_38, %c0_39], %50 {strides = array<i32>} : memref<4x8x1xf32, #tpu.memory_space<vmem>>, vector<4x8x1xf32>,
    %c0_i32_40 = arith.constant 0 : i32
    %70 = arith.cmpi eq, %arg1, %c0_i32_40 : i32
    %71 = arith.extui %70 : i1 to i32
    %c0_i32_41 = arith.constant 0 : i32
    %72 = arith.cmpi ne, %71, %c0_i32_41 : i32
    scf.if %72 {
      %c0_42 = arith.constant 0 : index
      %c0_43 = arith.constant 0 : index
      %c0_44 = arith.constant 0 : index
      %73 = vector.load %arg2[%c0_42, %c0_43, %c0_44] : memref<1x8x32xf32, #tpu.memory_space<vmem>>, vector<1x8x32xf32>
      %74 = vector.shape_cast %73 : vector<1x8x32xf32> to vector<8x32xf32>
      %75 = arith.truncf %74 : vector<8x32xf32> to vector<8x32xbf16>
      %c0_45 = arith.constant 0 : index
      %c0_46 = arith.constant 0 : index
      %76 = vector.load %arg4[%c0_45, %c0_46] : memref<8x32xf32, #tpu.memory_space<vmem>>, vector<8x32xf32>
      %c0_47 = arith.constant 0 : index
      %c0_48 = arith.constant 0 : index
      %c0_49 = arith.constant 0 : index
      %77 = vector.load %arg24[%c0_47, %c0_48, %c0_49] : memref<4x8x8xf32, #tpu.memory_space<vmem>>, vector<4x8x8xf32>
      %c0_50 = arith.constant 0 : index
      %c0_51 = arith.constant 0 : index
      %c0_52 = arith.constant 0 : index
      %78 = vector.load %arg23[%c0_50, %c0_51, %c0_52] : memref<4x8x1xf32, #tpu.memory_space<vmem>>, vector<4x8x1xf32>
      %79 = tpu.reciprocal %78 {approx = true} : vector<4x8x1xf32> -> vector<4x8x1xf32>
      %80 = vector.broadcast %79 : vector<4x8x1xf32> to vector<4x8x8xf32>
      %81 = arith.mulf %77, %80 : vector<4x8x8xf32>
      %82 = vector.extract_strided_slice %81 {offsets = [0, 0, 0], sizes = [1, 8, 8], strides = [1, 1, 1]} : vector<4x8x8xf32> to vector<1x8x8xf32>
      %83 = vector.shape_cast %82 : vector<1x8x8xf32> to vector<8x8xf32>
      %84 = vector.extract_strided_slice %81 {offsets = [1, 0, 0], sizes = [1, 8, 8], strides = [1, 1, 1]} : vector<4x8x8xf32> to vector<1x8x8xf32>
      %85 = vector.shape_cast %84 : vector<1x8x8xf32> to vector<8x8xf32>
      %86 = vector.extract_strided_slice %81 {offsets = [2, 0, 0], sizes = [1, 8, 8], strides = [1, 1, 1]} : vector<4x8x8xf32> to vector<1x8x8xf32>
      %87 = vector.shape_cast %86 : vector<1x8x8xf32> to vector<8x8xf32>
      %88 = vector.extract_strided_slice %81 {offsets = [3, 0, 0], sizes = [1, 8, 8], strides = [1, 1, 1]} : vector<4x8x8xf32> to vector<1x8x8xf32>
      %89 = vector.shape_cast %88 : vector<1x8x8xf32> to vector<8x8xf32>
      %90 = tpu.concatenate %83, %85, %87, %89 in 1 : vector<8x8xf32>, vector<8x8xf32>, vector<8x8xf32>, vector<8x8xf32> -> vector<8x32xf32>
      %91 = arith.truncf %90 : vector<8x32xf32> to vector<8x32xbf16>
      %c0_53 = arith.constant 0 : index
      %c0_54 = arith.constant 0 : index
      %92 = vector.load %arg9[%c0_53, %c0_54] : memref<32x32xbf16, #tpu.memory_space<vmem>>, vector<32x32xbf16>
      %cst_55 = arith.constant dense<0.000000e+00> : vector<8x32xf32>
      %93 = tpu.matmul %91, %92, %cst_55 {dimension_numbers = #tpu.dot_dimension_numbers<[1], [0], [0], [1], [0, 0, 1, 1], [], []>} : vector<8x32xbf16>, vector<32x32xbf16>, vector<8x32xf32> -> vector<8x32xf32>
      %94 = vector.extract_strided_slice %0 {offsets = [3, 0], sizes = [1, 32], strides = [1, 1]} : vector<16x32xf32> to vector<1x32xf32>
      %95 = vector.broadcast %94 : vector<1x32xf32> to vector<8x32xf32>
      %96 = arith.addf %93, %95 : vector<8x32xf32>
      %97 = arith.truncf %96 : vector<8x32xf32> to vector<8x32xbf16>
      %c0_56 = arith.constant 0 : index
      %c0_57 = arith.constant 0 : index
      %98 = vector.load %arg10[%c0_56, %c0_57] : memref<32x32xbf16, #tpu.memory_space<vmem>>, vector<32x32xbf16>
      %cst_58 = arith.constant dense<0.000000e+00> : vector<8x32xf32>
      %99 = tpu.matmul %97, %98, %cst_58 {dimension_numbers = #tpu.dot_dimension_numbers<[1], [0], [0], [1], [0, 0, 1, 1], [], []>} : vector<8x32xbf16>, vector<32x32xbf16>, vector<8x32xf32> -> vector<8x32xf32>
      %c0_59 = arith.constant 0 : index
      %c0_60 = arith.constant 0 : index
      %100 = vector.load %arg11[%c0_59, %c0_60] : memref<32x32xbf16, #tpu.memory_space<vmem>>, vector<32x32xbf16>
      %cst_61 = arith.constant dense<0.000000e+00> : vector<8x32xf32>
      %101 = tpu.matmul %75, %100, %cst_61 {dimension_numbers = #tpu.dot_dimension_numbers<[1], [0], [0], [1], [0, 0, 1, 1], [], []>} : vector<8x32xbf16>, vector<32x32xbf16>, vector<8x32xf32> -> vector<8x32xf32>
      %102 = arith.addf %99, %101 : vector<8x32xf32>
      %103 = vector.extract_strided_slice %0 {offsets = [4, 0], sizes = [1, 32], strides = [1, 1]} : vector<16x32xf32> to vector<1x32xf32>
      %104 = vector.broadcast %103 : vector<1x32xf32> to vector<8x32xf32>
      %105 = arith.addf %102, %104 : vector<8x32xf32>
      %106 = arith.addf %74, %105 : vector<8x32xf32>
      %107 = vector.extract_strided_slice %0 {offsets = [5, 0], sizes = [1, 32], strides = [1, 1]} : vector<16x32xf32> to vector<1x32xf32>
      %108 = vector.extract_strided_slice %0 {offsets = [6, 0], sizes = [1, 32], strides = [1, 1]} : vector<16x32xf32> to vector<1x32xf32>
      %cst_62 = arith.constant dense<0.000000e+00> : vector<8xf32>
      %109 = vector.multi_reduction <add>, %106, %cst_62 [1] : vector<8x32xf32> to vector<8xf32>
      %110 = vector.shape_cast %109 : vector<8xf32> to vector<8x1xf32>
      %cst_63 = arith.constant 3.200000e+01 : f32
      %111 = vector.broadcast %cst_63 : f32 to vector<8x1xf32>
      %112 = arith.divf %110, %111 : vector<8x1xf32>
      %113 = vector.broadcast %112 : vector<8x1xf32> to vector<8x32xf32>
      %114 = arith.subf %106, %113 : vector<8x32xf32>
      %115 = arith.mulf %114, %114 : vector<8x32xf32>
      %cst_64 = arith.constant dense<0.000000e+00> : vector<8xf32>
      %116 = vector.multi_reduction <add>, %115, %cst_64 [1] : vector<8x32xf32> to vector<8xf32>
      %117 = vector.shape_cast %116 : vector<8xf32> to vector<8x1xf32>
      %cst_65 = arith.constant 3.200000e+01 : f32
      %118 = vector.broadcast %cst_65 : f32 to vector<8x1xf32>
      %119 = arith.divf %117, %118 : vector<8x1xf32>
      %120 = vector.broadcast %112 : vector<8x1xf32> to vector<8x32xf32>
      %121 = arith.subf %106, %120 : vector<8x32xf32>
      %cst_66 = arith.constant 9.99999974E-6 : f32
      %122 = vector.broadcast %cst_66 : f32 to vector<8x1xf32>
      %123 = arith.addf %119, %122 : vector<8x1xf32>
      %124 = math.rsqrt %123 : vector<8x1xf32>
      %125 = vector.broadcast %124 : vector<8x1xf32> to vector<8x32xf32>
      %126 = arith.mulf %121, %125 : vector<8x32xf32>
      %127 = vector.broadcast %107 : vector<1x32xf32> to vector<8x32xf32>
      %128 = arith.mulf %126, %127 : vector<8x32xf32>
      %129 = vector.broadcast %108 : vector<1x32xf32> to vector<8x32xf32>
      %130 = arith.addf %128, %129 : vector<8x32xf32>
      %131 = arith.addf %130, %76 : vector<8x32xf32>
      %132 = arith.truncf %131 : vector<8x32xf32> to vector<8x32xbf16>
      %c0_67 = arith.constant 0 : index
      %c0_68 = arith.constant 0 : index
      %133 = vector.load %arg12[%c0_67, %c0_68] : memref<32x32xbf16, #tpu.memory_space<vmem>>, vector<32x32xbf16>
      %cst_69 = arith.constant dense<0.000000e+00> : vector<8x32xf32>
      %134 = tpu.matmul %132, %133, %cst_69 {dimension_numbers = #tpu.dot_dimension_numbers<[1], [0], [0], [1], [0, 0, 1, 1], [], []>} : vector<8x32xbf16>, vector<32x32xbf16>, vector<8x32xf32> -> vector<8x32xf32>
      %135 = vector.extract_strided_slice %0 {offsets = [7, 0], sizes = [1, 32], strides = [1, 1]} : vector<16x32xf32> to vector<1x32xf32>
      %136 = vector.broadcast %135 : vector<1x32xf32> to vector<8x32xf32>
      %137 = arith.addf %134, %136 : vector<8x32xf32>
      %138 = arith.truncf %137 : vector<8x32xf32> to vector<8x32xbf16>
      %139 = vector.extract_strided_slice %138 {offsets = [0, 0], sizes = [8, 8], strides = [1, 1]} : vector<8x32xbf16> to vector<8x8xbf16>
      %140 = vector.extract_strided_slice %138 {offsets = [0, 8], sizes = [8, 8], strides = [1, 1]} : vector<8x32xbf16> to vector<8x8xbf16>
      %141 = vector.extract_strided_slice %138 {offsets = [0, 16], sizes = [8, 8], strides = [1, 1]} : vector<8x32xbf16> to vector<8x8xbf16>
      %142 = vector.extract_strided_slice %138 {offsets = [0, 24], sizes = [8, 8], strides = [1, 1]} : vector<8x32xbf16> to vector<8x8xbf16>
      %143 = vector.shape_cast %139 : vector<8x8xbf16> to vector<1x8x8xbf16>
      %144 = vector.shape_cast %140 : vector<8x8xbf16> to vector<1x8x8xbf16>
      %145 = vector.shape_cast %141 : vector<8x8xbf16> to vector<1x8x8xbf16>
      %146 = vector.shape_cast %142 : vector<8x8xbf16> to vector<1x8x8xbf16>
      %147 = tpu.concatenate %143, %144, %145, %146 in 0 : vector<1x8x8xbf16>, vector<1x8x8xbf16>, vector<1x8x8xbf16>, vector<1x8x8xbf16> -> vector<4x8x8xbf16>
      %c0_70 = arith.constant 0 : index
      %c0_71 = arith.constant 0 : index
      %148 = vector.load %arg13[%c0_70, %c0_71] : memref<32x32xbf16, #tpu.memory_space<vmem>>, vector<32x32xbf16>
      %cst_72 = arith.constant dense<0.000000e+00> : vector<8x32xf32>
      %149 = tpu.matmul %132, %148, %cst_72 {dimension_numbers = #tpu.dot_dimension_numbers<[1], [0], [0], [1], [0, 0, 1, 1], [], []>} : vector<8x32xbf16>, vector<32x32xbf16>, vector<8x32xf32> -> vector<8x32xf32>
      %150 = vector.extract_strided_slice %0 {offsets = [8, 0], sizes = [1, 32], strides = [1, 1]} : vector<16x32xf32> to vector<1x32xf32>
      %151 = vector.broadcast %150 : vector<1x32xf32> to vector<8x32xf32>
      %152 = arith.addf %149, %151 : vector<8x32xf32>
      %153 = arith.truncf %152 : vector<8x32xf32> to vector<8x32xbf16>
      %154 = vector.extract_strided_slice %153 {offsets = [0, 0], sizes = [8, 8], strides = [1, 1]} : vector<8x32xbf16> to vector<8x8xbf16>
      %155 = vector.extract_strided_slice %153 {offsets = [0, 8], sizes = [8, 8], strides = [1, 1]} : vector<8x32xbf16> to vector<8x8xbf16>
      %156 = vector.extract_strided_slice %153 {offsets = [0, 16], sizes = [8, 8], strides = [1, 1]} : vector<8x32xbf16> to vector<8x8xbf16>
      %157 = vector.extract_strided_slice %153 {offsets = [0, 24], sizes = [8, 8], strides = [1, 1]} : vector<8x32xbf16> to vector<8x8xbf16>
      %158 = vector.shape_cast %154 : vector<8x8xbf16> to vector<1x8x8xbf16>
      %159 = vector.shape_cast %155 : vector<8x8xbf16> to vector<1x8x8xbf16>
      %160 = vector.shape_cast %156 : vector<8x8xbf16> to vector<1x8x8xbf16>
      %161 = vector.shape_cast %157 : vector<8x8xbf16> to vector<1x8x8xbf16>
      %162 = tpu.concatenate %158, %159, %160, %161 in 0 : vector<1x8x8xbf16>, vector<1x8x8xbf16>, vector<1x8x8xbf16>, vector<1x8x8xbf16> -> vector<4x8x8xbf16>
      %163 = arith.truncf %130 : vector<8x32xf32> to vector<8x32xbf16>
      %c0_73 = arith.constant 0 : index
      %c0_74 = arith.constant 0 : index
      %164 = vector.load %arg14[%c0_73, %c0_74] : memref<32x32xbf16, #tpu.memory_space<vmem>>, vector<32x32xbf16>
      %cst_75 = arith.constant dense<0.000000e+00> : vector<8x32xf32>
      %165 = tpu.matmul %163, %164, %cst_75 {dimension_numbers = #tpu.dot_dimension_numbers<[1], [0], [0], [1], [0, 0, 1, 1], [], []>} : vector<8x32xbf16>, vector<32x32xbf16>, vector<8x32xf32> -> vector<8x32xf32>
      %166 = vector.extract_strided_slice %0 {offsets = [9, 0], sizes = [1, 32], strides = [1, 1]} : vector<16x32xf32> to vector<1x32xf32>
      %167 = vector.broadcast %166 : vector<1x32xf32> to vector<8x32xf32>
      %168 = arith.addf %165, %167 : vector<8x32xf32>
      %169 = arith.truncf %168 : vector<8x32xf32> to vector<8x32xbf16>
      %170 = vector.extract_strided_slice %169 {offsets = [0, 0], sizes = [8, 8], strides = [1, 1]} : vector<8x32xbf16> to vector<8x8xbf16>
      %171 = vector.extract_strided_slice %169 {offsets = [0, 8], sizes = [8, 8], strides = [1, 1]} : vector<8x32xbf16> to vector<8x8xbf16>
      %172 = vector.extract_strided_slice %169 {offsets = [0, 16], sizes = [8, 8], strides = [1, 1]} : vector<8x32xbf16> to vector<8x8xbf16>
      %173 = vector.extract_strided_slice %169 {offsets = [0, 24], sizes = [8, 8], strides = [1, 1]} : vector<8x32xbf16> to vector<8x8xbf16>
      %174 = vector.shape_cast %170 : vector<8x8xbf16> to vector<1x8x8xbf16>
      %175 = vector.shape_cast %171 : vector<8x8xbf16> to vector<1x8x8xbf16>
      %176 = vector.shape_cast %172 : vector<8x8xbf16> to vector<1x8x8xbf16>
      %177 = vector.shape_cast %173 : vector<8x8xbf16> to vector<1x8x8xbf16>
      %178 = tpu.concatenate %174, %175, %176, %177 in 0 : vector<1x8x8xbf16>, vector<1x8x8xbf16>, vector<1x8x8xbf16>, vector<1x8x8xbf16> -> vector<4x8x8xbf16>
      %cst_76 = arith.constant dense<0.000000e+00> : vector<4x8x8xf32>
      %179 = tpu.matmul %147, %162, %cst_76 {dimension_numbers = #tpu.dot_dimension_numbers<[2], [2], [1], [1], [0, 0, 0, 1, 1, 1], [0], [0]>} : vector<4x8x8xbf16>, vector<4x8x8xbf16>, vector<4x8x8xf32> -> vector<4x8x8xf32>
      %cst_77 = arith.constant dense<0xFF800000> : vector<4x8xf32>
      %180 = vector.multi_reduction <maximumf>, %179, %cst_77 [2] : vector<4x8x8xf32> to vector<4x8xf32>
      %181 = vector.shape_cast %180 : vector<4x8xf32> to vector<4x8x1xf32>
      %182 = vector.broadcast %181 : vector<4x8x1xf32> to vector<4x8x8xf32>
      %183 = arith.subf %179, %182 : vector<4x8x8xf32>
      %184 = math.exp %183 : vector<4x8x8xf32>
      %cst_78 = arith.constant dense<0.000000e+00> : vector<4x8xf32>
      %185 = vector.multi_reduction <add>, %184, %cst_78 [2] : vector<4x8x8xf32> to vector<4x8xf32>
      %186 = vector.shape_cast %185 : vector<4x8xf32> to vector<4x8x1xf32>
      %187 = tpu.reciprocal %186 {approx = true} : vector<4x8x1xf32> -> vector<4x8x1xf32>
      %188 = vector.broadcast %187 : vector<4x8x1xf32> to vector<4x8x8xf32>
      %189 = arith.mulf %184, %188 : vector<4x8x8xf32>
      %190 = arith.truncf %189 : vector<4x8x8xf32> to vector<4x8x8xbf16>
      %cst_79 = arith.constant dense<0.000000e+00> : vector<4x8x8xf32>
      %191 = tpu.matmul %190, %178, %cst_79 {dimension_numbers = #tpu.dot_dimension_numbers<[2], [1], [1], [2], [0, 0, 0, 1, 1, 2], [0], [0]>} : vector<4x8x8xbf16>, vector<4x8x8xbf16>, vector<4x8x8xf32> -> vector<4x8x8xf32>
      %192 = vector.extract_strided_slice %191 {offsets = [0, 0, 0], sizes = [1, 8, 8], strides = [1, 1, 1]} : vector<4x8x8xf32> to vector<1x8x8xf32>
      %193 = vector.shape_cast %192 : vector<1x8x8xf32> to vector<8x8xf32>
      %194 = vector.extract_strided_slice %191 {offsets = [1, 0, 0], sizes = [1, 8, 8], strides = [1, 1, 1]} : vector<4x8x8xf32> to vector<1x8x8xf32>
      %195 = vector.shape_cast %194 : vector<1x8x8xf32> to vector<8x8xf32>
      %196 = vector.extract_strided_slice %191 {offsets = [2, 0, 0], sizes = [1, 8, 8], strides = [1, 1, 1]} : vector<4x8x8xf32> to vector<1x8x8xf32>
      %197 = vector.shape_cast %196 : vector<1x8x8xf32> to vector<8x8xf32>
      %198 = vector.extract_strided_slice %191 {offsets = [3, 0, 0], sizes = [1, 8, 8], strides = [1, 1, 1]} : vector<4x8x8xf32> to vector<1x8x8xf32>
      %199 = vector.shape_cast %198 : vector<1x8x8xf32> to vector<8x8xf32>
      %200 = tpu.concatenate %193, %195, %197, %199 in 1 : vector<8x8xf32>, vector<8x8xf32>, vector<8x8xf32>, vector<8x8xf32> -> vector<8x32xf32>
      %201 = arith.truncf %200 : vector<8x32xf32> to vector<8x32xbf16>
      %c0_80 = arith.constant 0 : index
      %c0_81 = arith.constant 0 : index
      %202 = vector.load %arg15[%c0_80, %c0_81] : memref<32x32xbf16, #tpu.memory_space<vmem>>, vector<32x32xbf16>
      %cst_82 = arith.constant dense<0.000000e+00> : vector<8x32xf32>
      %203 = tpu.matmul %201, %202, %cst_82 {dimension_numbers = #tpu.dot_dimension_numbers<[1], [0], [0], [1], [0, 0, 1, 1], [], []>} : vector<8x32xbf16>, vector<32x32xbf16>, vector<8x32xf32> -> vector<8x32xf32>
      %204 = vector.extract_strided_slice %0 {offsets = [10, 0], sizes = [1, 32], strides = [1, 1]} : vector<16x32xf32> to vector<1x32xf32>
      %205 = vector.broadcast %204 : vector<1x32xf32> to vector<8x32xf32>
      %206 = arith.addf %203, %205 : vector<8x32xf32>
      %207 = arith.addf %130, %206 : vector<8x32xf32>
      %208 = vector.extract_strided_slice %0 {offsets = [11, 0], sizes = [1, 32], strides = [1, 1]} : vector<16x32xf32> to vector<1x32xf32>
      %209 = vector.extract_strided_slice %0 {offsets = [12, 0], sizes = [1, 32], strides = [1, 1]} : vector<16x32xf32> to vector<1x32xf32>
      %cst_83 = arith.constant dense<0.000000e+00> : vector<8xf32>
      %210 = vector.multi_reduction <add>, %207, %cst_83 [1] : vector<8x32xf32> to vector<8xf32>
      %211 = vector.shape_cast %210 : vector<8xf32> to vector<8x1xf32>
      %cst_84 = arith.constant 3.200000e+01 : f32
      %212 = vector.broadcast %cst_84 : f32 to vector<8x1xf32>
      %213 = arith.divf %211, %212 : vector<8x1xf32>
      %214 = vector.broadcast %213 : vector<8x1xf32> to vector<8x32xf32>
      %215 = arith.subf %207, %214 : vector<8x32xf32>
      %216 = arith.mulf %215, %215 : vector<8x32xf32>
      %cst_85 = arith.constant dense<0.000000e+00> : vector<8xf32>
      %217 = vector.multi_reduction <add>, %216, %cst_85 [1] : vector<8x32xf32> to vector<8xf32>
      %218 = vector.shape_cast %217 : vector<8xf32> to vector<8x1xf32>
      %cst_86 = arith.constant 3.200000e+01 : f32
      %219 = vector.broadcast %cst_86 : f32 to vector<8x1xf32>
      %220 = arith.divf %218, %219 : vector<8x1xf32>
      %221 = vector.broadcast %213 : vector<8x1xf32> to vector<8x32xf32>
      %222 = arith.subf %207, %221 : vector<8x32xf32>
      %cst_87 = arith.constant 9.99999974E-6 : f32
      %223 = vector.broadcast %cst_87 : f32 to vector<8x1xf32>
      %224 = arith.addf %220, %223 : vector<8x1xf32>
      %225 = math.rsqrt %224 : vector<8x1xf32>
      %226 = vector.broadcast %225 : vector<8x1xf32> to vector<8x32xf32>
      %227 = arith.mulf %222, %226 : vector<8x32xf32>
      %228 = vector.broadcast %208 : vector<1x32xf32> to vector<8x32xf32>
      %229 = arith.mulf %227, %228 : vector<8x32xf32>
      %230 = vector.broadcast %209 : vector<1x32xf32> to vector<8x32xf32>
      %231 = arith.addf %229, %230 : vector<8x32xf32>
      %232 = arith.truncf %231 : vector<8x32xf32> to vector<8x32xbf16>
      %c0_88 = arith.constant 0 : index
      %c0_89 = arith.constant 0 : index
      %233 = vector.load %arg16[%c0_88, %c0_89] : memref<32x64xbf16, #tpu.memory_space<vmem>>, vector<32x64xbf16>
      %cst_90 = arith.constant dense<0.000000e+00> : vector<8x64xf32>
      %234 = tpu.matmul %232, %233, %cst_90 {dimension_numbers = #tpu.dot_dimension_numbers<[1], [0], [0], [1], [0, 0, 1, 1], [], []>} : vector<8x32xbf16>, vector<32x64xbf16>, vector<8x64xf32> -> vector<8x64xf32>
      %c0_91 = arith.constant 0 : index
      %c0_92 = arith.constant 0 : index
      %235 = vector.load %arg17[%c0_91, %c0_92] : memref<1x64xf32, #tpu.memory_space<vmem>>, vector<1x64xf32>
      %236 = vector.broadcast %235 : vector<1x64xf32> to vector<8x64xf32>
      %237 = arith.addf %234, %236 : vector<8x64xf32>
      %cst_93 = arith.constant 0.000000e+00 : f32
      %238 = vector.broadcast %cst_93 : f32 to vector<8x64xf32>
      %239 = arith.maximumf %237, %238 : vector<8x64xf32>
      %240 = arith.truncf %239 : vector<8x64xf32> to vector<8x64xbf16>
      %c0_94 = arith.constant 0 : index
      %c0_95 = arith.constant 0 : index
      %241 = vector.load %arg18[%c0_94, %c0_95] : memref<64x32xbf16, #tpu.memory_space<vmem>>, vector<64x32xbf16>
      %cst_96 = arith.constant dense<0.000000e+00> : vector<8x32xf32>
      %242 = tpu.matmul %240, %241, %cst_96 {dimension_numbers = #tpu.dot_dimension_numbers<[1], [0], [0], [1], [0, 0, 1, 1], [], []>} : vector<8x64xbf16>, vector<64x32xbf16>, vector<8x32xf32> -> vector<8x32xf32>
      %243 = vector.extract_strided_slice %0 {offsets = [13, 0], sizes = [1, 32], strides = [1, 1]} : vector<16x32xf32> to vector<1x32xf32>
      %244 = vector.broadcast %243 : vector<1x32xf32> to vector<8x32xf32>
      %245 = arith.addf %242, %244 : vector<8x32xf32>
      %246 = arith.addf %231, %245 : vector<8x32xf32>
      %247 = vector.extract_strided_slice %0 {offsets = [14, 0], sizes = [1, 32], strides = [1, 1]} : vector<16x32xf32> to vector<1x32xf32>
      %248 = vector.extract_strided_slice %0 {offsets = [15, 0], sizes = [1, 32], strides = [1, 1]} : vector<16x32xf32> to vector<1x32xf32>
      %cst_97 = arith.constant dense<0.000000e+00> : vector<8xf32>
      %249 = vector.multi_reduction <add>, %246, %cst_97 [1] : vector<8x32xf32> to vector<8xf32>
      %250 = vector.shape_cast %249 : vector<8xf32> to vector<8x1xf32>
      %cst_98 = arith.constant 3.200000e+01 : f32
      %251 = vector.broadcast %cst_98 : f32 to vector<8x1xf32>
      %252 = arith.divf %250, %251 : vector<8x1xf32>
      %253 = vector.broadcast %252 : vector<8x1xf32> to vector<8x32xf32>
      %254 = arith.subf %246, %253 : vector<8x32xf32>
      %255 = arith.mulf %254, %254 : vector<8x32xf32>
      %cst_99 = arith.constant dense<0.000000e+00> : vector<8xf32>
      %256 = vector.multi_reduction <add>, %255, %cst_99 [1] : vector<8x32xf32> to vector<8xf32>
      %257 = vector.shape_cast %256 : vector<8xf32> to vector<8x1xf32>
      %cst_100 = arith.constant 3.200000e+01 : f32
      %258 = vector.broadcast %cst_100 : f32 to vector<8x1xf32>
      %259 = arith.divf %257, %258 : vector<8x1xf32>
      %260 = vector.broadcast %252 : vector<8x1xf32> to vector<8x32xf32>
      %261 = arith.subf %246, %260 : vector<8x32xf32>
      %cst_101 = arith.constant 9.99999974E-6 : f32
      %262 = vector.broadcast %cst_101 : f32 to vector<8x1xf32>
      %263 = arith.addf %259, %262 : vector<8x1xf32>
      %264 = math.rsqrt %263 : vector<8x1xf32>
      %265 = vector.broadcast %264 : vector<8x1xf32> to vector<8x32xf32>
      %266 = arith.mulf %261, %265 : vector<8x32xf32>
      %267 = vector.broadcast %247 : vector<1x32xf32> to vector<8x32xf32>
      %268 = arith.mulf %266, %267 : vector<8x32xf32>
      %269 = vector.broadcast %248 : vector<1x32xf32> to vector<8x32xf32>
      %270 = arith.addf %268, %269 : vector<8x32xf32>
      %c0_102 = arith.constant 0 : index
      %c0_103 = arith.constant 0 : index
      %c0_104 = arith.constant 0 : index
      %271 = vector.load %arg20[%c0_102, %c0_103, %c0_104] : memref<1x8x32xf32, #tpu.memory_space<vmem>>, vector<1x8x32xf32>
      %272 = vector.shape_cast %271 : vector<1x8x32xf32> to vector<8x32xf32>
      %273 = vector.shape_cast %270 : vector<8x32xf32> to vector<1x8x32xf32>
      tpu.vector_store %arg20[%c0_102, %c0_103, %c0_104], %273 {strides = array<i32>} : memref<1x8x32xf32, #tpu.memory_space<vmem>>, vector<1x8x32xf32>,
    } else {
    }
    return
  }
  func.func @transform_0(%arg0: i32, %arg1: i32) -> (i32, i32, i32) {
    %c0_i32 = arith.constant 0 : i32
    %c0_i32_0 = arith.constant 0 : i32
    %c0_i32_1 = arith.constant 0 : i32
    return %arg0, %c0_i32, %c0_i32_0 : i32, i32, i32
  }
  func.func @transform_1(%arg0: i32, %arg1: i32) -> (i32, i32, i32) {
    %c0_i32 = arith.constant 0 : i32
    %c0_i32_0 = arith.constant 0 : i32
    return %arg0, %arg1, %c0_i32 : i32, i32, i32
  }
  func.func @transform_2(%arg0: i32, %arg1: i32) -> (i32, i32) {
    %c0_i32 = arith.constant 0 : i32
    %c0_i32_0 = arith.constant 0 : i32
    %c0_i32_1 = arith.constant 0 : i32
    return %c0_i32, %c0_i32_0 : i32, i32
  }
  func.func @transform_3(%arg0: i32, %arg1: i32) -> (i32, i32, i32) {
    %c0_i32 = arith.constant 0 : i32
    %c0_i32_0 = arith.constant 0 : i32
    return %arg0, %c0_i32, %arg1 : i32, i32, i32
  }
  func.func @transform_4(%arg0: i32, %arg1: i32) -> (i32, i32) {
    %c0_i32 = arith.constant 0 : i32
    %c0_i32_0 = arith.constant 0 : i32
    %c0_i32_1 = arith.constant 0 : i32
    return %c0_i32, %c0_i32_0 : i32, i32
  }
  func.func @transform_5(%arg0: i32, %arg1: i32) -> (i32, i32) {
    %c0_i32 = arith.constant 0 : i32
    %c0_i32_0 = arith.constant 0 : i32
    %c0_i32_1 = arith.constant 0 : i32
    return %c0_i32, %c0_i32_0 : i32, i32
  }
  func.func @transform_6(%arg0: i32, %arg1: i32) -> (i32, i32) {
    %c0_i32 = arith.constant 0 : i32
    %c0_i32_0 = arith.constant 0 : i32
    %c0_i32_1 = arith.constant 0 : i32
    return %c0_i32, %c0_i32_0 : i32, i32
  }
  func.func @transform_7(%arg0: i32, %arg1: i32) -> (i32, i32) {
    %c0_i32 = arith.constant 0 : i32
    %c0_i32_0 = arith.constant 0 : i32
    %c0_i32_1 = arith.constant 0 : i32
    return %c0_i32, %c0_i32_0 : i32, i32
  }
  func.func @transform_8(%arg0: i32, %arg1: i32) -> (i32, i32) {
    %c0_i32 = arith.constant 0 : i32
    %c0_i32_0 = arith.constant 0 : i32
    %c0_i32_1 = arith.constant 0 : i32
    return %c0_i32, %c0_i32_0 : i32, i32
  }
  func.func @transform_9(%arg0: i32, %arg1: i32) -> (i32, i32) {
    %c0_i32 = arith.constant 0 : i32
    %c0_i32_0 = arith.constant 0 : i32
    %c0_i32_1 = arith.constant 0 : i32
    return %c0_i32, %c0_i32_0 : i32, i32
  }
  func.func @transform_10(%arg0: i32, %arg1: i32) -> (i32, i32) {
    %c0_i32 = arith.constant 0 : i32
    %c0_i32_0 = arith.constant 0 : i32
    %c0_i32_1 = arith.constant 0 : i32
    return %c0_i32, %c0_i32_0 : i32, i32
  }
  func.func @transform_11(%arg0: i32, %arg1: i32) -> (i32, i32) {
    %c0_i32 = arith.constant 0 : i32
    %c0_i32_0 = arith.constant 0 : i32
    %c0_i32_1 = arith.constant 0 : i32
    return %c0_i32, %c0_i32_0 : i32, i32
  }
  func.func @transform_12(%arg0: i32, %arg1: i32) -> (i32, i32) {
    %c0_i32 = arith.constant 0 : i32
    %c0_i32_0 = arith.constant 0 : i32
    %c0_i32_1 = arith.constant 0 : i32
    return %c0_i32, %c0_i32_0 : i32, i32
  }
  func.func @transform_13(%arg0: i32, %arg1: i32) -> (i32, i32) {
    %c0_i32 = arith.constant 0 : i32
    %c0_i32_0 = arith.constant 0 : i32
    %c0_i32_1 = arith.constant 0 : i32
    return %c0_i32, %c0_i32_0 : i32, i32
  }
  func.func @transform_14(%arg0: i32, %arg1: i32) -> (i32, i32) {
    %c0_i32 = arith.constant 0 : i32
    %c0_i32_0 = arith.constant 0 : i32
    %c0_i32_1 = arith.constant 0 : i32
    return %c0_i32, %c0_i32_0 : i32, i32
  }
  func.func @transform_15(%arg0: i32, %arg1: i32) -> (i32, i32) {
    %c0_i32 = arith.constant 0 : i32
    %c0_i32_0 = arith.constant 0 : i32
    %c0_i32_1 = arith.constant 0 : i32
    return %c0_i32, %c0_i32_0 : i32, i32
  }
  func.func @transform_16(%arg0: i32, %arg1: i32) -> (i32, i32) {
    %c0_i32 = arith.constant 0 : i32
    %c0_i32_0 = arith.constant 0 : i32
    %c0_i32_1 = arith.constant 0 : i32
    return %c0_i32, %c0_i32_0 : i32, i32
  }
  func.func @transform_17(%arg0: i32, %arg1: i32) -> (i32, i32) {
    %c0_i32 = arith.constant 0 : i32
    %c0_i32_0 = arith.constant 0 : i32
    %c0_i32_1 = arith.constant 0 : i32
    return %c0_i32, %c0_i32_0 : i32, i32
  }
  func.func @transform_18(%arg0: i32, %arg1: i32) -> (i32, i32, i32) {
    %c0_i32 = arith.constant 0 : i32
    %c0_i32_0 = arith.constant 0 : i32
    %c0_i32_1 = arith.constant 0 : i32
    return %arg0, %c0_i32, %c0_i32_0 : i32, i32, i32
  }
}

module attributes {stable_mosaic.version = 11 : i64} {
  func.func @_decoder_layer_kernel(%arg0: i32, %arg1: i32, %arg2: memref<1x8x32xf32, #tpu.memory_space<vmem>>, %arg3: memref<1x128x32xbf16, #tpu.memory_space<vmem>>, %arg4: memref<8x32xf32, #tpu.memory_space<vmem>>, %arg5: memref<1x8x128xi8, #tpu.memory_space<vmem>>, %arg6: memref<32x32xbf16, #tpu.memory_space<vmem>>, %arg7: memref<32x32xbf16, #tpu.memory_space<vmem>>, %arg8: memref<32x32xbf16, #tpu.memory_space<vmem>>, %arg9: memref<32x32xbf16, #tpu.memory_space<vmem>>, %arg10: memref<32x32xbf16, #tpu.memory_space<vmem>>, %arg11: memref<32x32xbf16, #tpu.memory_space<vmem>>, %arg12: memref<32x32xbf16, #tpu.memory_space<vmem>>, %arg13: memref<32x32xbf16, #tpu.memory_space<vmem>>, %arg14: memref<32x32xbf16, #tpu.memory_space<vmem>>, %arg15: memref<32x32xbf16, #tpu.memory_space<vmem>>, %arg16: memref<32x64xbf16, #tpu.memory_space<vmem>>, %arg17: memref<1x64xf32, #tpu.memory_space<vmem>>, %arg18: memref<64x32xbf16, #tpu.memory_space<vmem>>, %arg19: memref<16x32xf32, #tpu.memory_space<vmem>>, %arg20: memref<1x8x32xf32, #tpu.memory_space<vmem>>, %arg21: memref<4x8x8xbf16, #tpu.memory_space<vmem>>, %arg22: memref<4x8x1xf32, #tpu.memory_space<vmem>>, %arg23: memref<4x8x1xf32, #tpu.memory_space<vmem>>, %arg24: memref<4x8x8xf32, #tpu.memory_space<vmem>>) attributes {dimension_semantics = [#tpu.dimension_semantics<parallel>, #tpu.dimension_semantics<arbitrary>], iteration_bounds = array<i64: 2, 2>, scalar_prefetch = 0 : i64, scratch_operands = 4 : i64, tpu.core_type = #tpu.core_type<tc>, window_params = [{transform_indices = @transform_0, window_bounds = array<i64: 1, 8, 32>}, {transform_indices = @transform_1, window_bounds = array<i64: 1, 128, 32>}, {pipeline_mode = #tpu.pipeline_mode<synchronous>, transform_indices = @transform_2, window_bounds = array<i64: 8, 32>}, {transform_indices = @transform_3, window_bounds = array<i64: 1, 8, 128>}, {pipeline_mode = #tpu.pipeline_mode<synchronous>, transform_indices = @transform_4, window_bounds = array<i64: 32, 32>}, {pipeline_mode = #tpu.pipeline_mode<synchronous>, transform_indices = @transform_5, window_bounds = array<i64: 32, 32>}, {pipeline_mode = #tpu.pipeline_mode<synchronous>, transform_indices = @transform_6, window_bounds = array<i64: 32, 32>}, {pipeline_mode = #tpu.pipeline_mode<synchronous>, transform_indices = @transform_7, window_bounds = array<i64: 32, 32>}, {pipeline_mode = #tpu.pipeline_mode<synchronous>, transform_indices = @transform_8, window_bounds = array<i64: 32, 32>}, {pipeline_mode = #tpu.pipeline_mode<synchronous>, transform_indices = @transform_9, window_bounds = array<i64: 32, 32>}, {pipeline_mode = #tpu.pipeline_mode<synchronous>, transform_indices = @transform_10, window_bounds = array<i64: 32, 32>}, {pipeline_mode = #tpu.pipeline_mode<synchronous>, transform_indices = @transform_11, window_bounds = array<i64: 32, 32>}, {pipeline_mode = #tpu.pipeline_mode<synchronous>, transform_indices = @transform_12, window_bounds = array<i64: 32, 32>}, {pipeline_mode = #tpu.pipeline_mode<synchronous>, transform_indices = @transform_13, window_bounds = array<i64: 32, 32>}, {pipeline_mode = #tpu.pipeline_mode<synchronous>, transform_indices = @transform_14, window_bounds = array<i64: 32, 64>}, {pipeline_mode = #tpu.pipeline_mode<synchronous>, transform_indices = @transform_15, window_bounds = array<i64: 1, 64>}, {pipeline_mode = #tpu.pipeline_mode<synchronous>, transform_indices = @transform_16, window_bounds = array<i64: 64, 32>}, {pipeline_mode = #tpu.pipeline_mode<synchronous>, transform_indices = @transform_17, window_bounds = array<i64: 16, 32>}, {transform_indices = @transform_18, window_bounds = array<i64: 1, 8, 32>}]} {
    %c0 = arith.constant 0 : index
    %c0_0 = arith.constant 0 : index
    %0 = vector.load %arg19[%c0, %c0_0] : memref<16x32xf32, #tpu.memory_space<vmem>>, vector<16x32xf32>
    %c0_i32 = arith.constant 0 : i32
    %1 = arith.cmpi eq, %arg1, %c0_i32 : i32
    %2 = arith.extui %1 : i1 to i32
    %cst = arith.constant -1.000000e+30 : f32
    %c0_i32_1 = arith.constant 0 : i32
    %3 = arith.cmpi ne, %2, %c0_i32_1 : i32
    scf.if %3 {
      %c0_41 = arith.constant 0 : index
      %c0_42 = arith.constant 0 : index
      %c0_43 = arith.constant 0 : index
      %73 = vector.load %arg2[%c0_41, %c0_42, %c0_43] : memref<1x8x32xf32, #tpu.memory_space<vmem>>, vector<1x8x32xf32>
      %74 = vector.shape_cast %73 : vector<1x8x32xf32> to vector<8x32xf32>
      %75 = arith.truncf %74 : vector<8x32xf32> to vector<8x32xbf16>
      %c0_44 = arith.constant 0 : index
      %c0_45 = arith.constant 0 : index
      %76 = vector.load %arg6[%c0_44, %c0_45] : memref<32x32xbf16, #tpu.memory_space<vmem>>, vector<32x32xbf16>
      %cst_46 = arith.constant dense<0.000000e+00> : vector<8x32xf32>
      %77 = tpu.matmul %75, %76, %cst_46 {dimension_numbers = #tpu.dot_dimension_numbers<[1], [0], [0], [1], [0, 0, 1, 1], [], []>} : vector<8x32xbf16>, vector<32x32xbf16>, vector<8x32xf32> -> vector<8x32xf32>
      %78 = vector.extract_strided_slice %0 {offsets = [0, 0], sizes = [1, 32], strides = [1, 1]} : vector<16x32xf32> to vector<1x32xf32>
      %79 = vector.broadcast %78 : vector<1x32xf32> to vector<8x32xf32>
      %80 = arith.addf %77, %79 : vector<8x32xf32>
      %81 = arith.truncf %80 : vector<8x32xf32> to vector<8x32xbf16>
      %82 = vector.extract_strided_slice %81 {offsets = [0, 0], sizes = [8, 8], strides = [1, 1]} : vector<8x32xbf16> to vector<8x8xbf16>
      %83 = vector.extract_strided_slice %81 {offsets = [0, 8], sizes = [8, 8], strides = [1, 1]} : vector<8x32xbf16> to vector<8x8xbf16>
      %84 = vector.extract_strided_slice %81 {offsets = [0, 16], sizes = [8, 8], strides = [1, 1]} : vector<8x32xbf16> to vector<8x8xbf16>
      %85 = vector.extract_strided_slice %81 {offsets = [0, 24], sizes = [8, 8], strides = [1, 1]} : vector<8x32xbf16> to vector<8x8xbf16>
      %86 = vector.shape_cast %82 : vector<8x8xbf16> to vector<1x8x8xbf16>
      %87 = vector.shape_cast %83 : vector<8x8xbf16> to vector<1x8x8xbf16>
      %88 = vector.shape_cast %84 : vector<8x8xbf16> to vector<1x8x8xbf16>
      %89 = vector.shape_cast %85 : vector<8x8xbf16> to vector<1x8x8xbf16>
      %90 = tpu.concatenate %86, %87, %88, %89 in 0 : vector<1x8x8xbf16>, vector<1x8x8xbf16>, vector<1x8x8xbf16>, vector<1x8x8xbf16> -> vector<4x8x8xbf16>
      %c0_47 = arith.constant 0 : index
      %c0_48 = arith.constant 0 : index
      %c0_49 = arith.constant 0 : index
      %91 = vector.load %arg21[%c0_47, %c0_48, %c0_49] : memref<4x8x8xbf16, #tpu.memory_space<vmem>>, vector<4x8x8xbf16>
      tpu.vector_store %arg21[%c0_47, %c0_48, %c0_49], %90 {strides = array<i32>} : memref<4x8x8xbf16, #tpu.memory_space<vmem>>, vector<4x8x8xbf16>,
      %92 = vector.broadcast %cst : f32 to vector<4x8x1xf32>
      %c0_50 = arith.constant 0 : index
      %c0_51 = arith.constant 0 : index
      %c0_52 = arith.constant 0 : index
      %93 = vector.load %arg22[%c0_50, %c0_51, %c0_52] : memref<4x8x1xf32, #tpu.memory_space<vmem>>, vector<4x8x1xf32>
      tpu.vector_store %arg22[%c0_50, %c0_51, %c0_52], %92 {strides = array<i32>} : memref<4x8x1xf32, #tpu.memory_space<vmem>>, vector<4x8x1xf32>,
      %cst_53 = arith.constant 0.000000e+00 : f32
      %94 = vector.broadcast %cst_53 : f32 to vector<4x8x1xf32>
      %c0_54 = arith.constant 0 : index
      %c0_55 = arith.constant 0 : index
      %c0_56 = arith.constant 0 : index
      %95 = vector.load %arg23[%c0_54, %c0_55, %c0_56] : memref<4x8x1xf32, #tpu.memory_space<vmem>>, vector<4x8x1xf32>
      tpu.vector_store %arg23[%c0_54, %c0_55, %c0_56], %94 {strides = array<i32>} : memref<4x8x1xf32, #tpu.memory_space<vmem>>, vector<4x8x1xf32>,
      %cst_57 = arith.constant 0.000000e+00 : f32
      %96 = vector.broadcast %cst_57 : f32 to vector<4x8x8xf32>
      %c0_58 = arith.constant 0 : index
      %c0_59 = arith.constant 0 : index
      %c0_60 = arith.constant 0 : index
      %97 = vector.load %arg24[%c0_58, %c0_59, %c0_60] : memref<4x8x8xf32, #tpu.memory_space<vmem>>, vector<4x8x8xf32>
      tpu.vector_store %arg24[%c0_58, %c0_59, %c0_60], %96 {strides = array<i32>} : memref<4x8x8xf32, #tpu.memory_space<vmem>>, vector<4x8x8xf32>,
    } else {
    }
    %c0_2 = arith.constant 0 : index
    %c0_3 = arith.constant 0 : index
    %c0_4 = arith.constant 0 : index
    %4 = vector.load %arg3[%c0_2, %c0_3, %c0_4] : memref<1x128x32xbf16, #tpu.memory_space<vmem>>, vector<1x128x32xbf16>
    %5 = vector.shape_cast %4 : vector<1x128x32xbf16> to vector<128x32xbf16>
    %c0_5 = arith.constant 0 : index
    %c0_6 = arith.constant 0 : index
    %6 = vector.load %arg7[%c0_5, %c0_6] : memref<32x32xbf16, #tpu.memory_space<vmem>>, vector<32x32xbf16>
    %cst_7 = arith.constant dense<0.000000e+00> : vector<128x32xf32>
    %7 = tpu.matmul %5, %6, %cst_7 {dimension_numbers = #tpu.dot_dimension_numbers<[1], [0], [0], [1], [0, 0, 1, 1], [], []>} : vector<128x32xbf16>, vector<32x32xbf16>, vector<128x32xf32> -> vector<128x32xf32>
    %8 = vector.extract_strided_slice %0 {offsets = [1, 0], sizes = [1, 32], strides = [1, 1]} : vector<16x32xf32> to vector<1x32xf32>
    %9 = vector.broadcast %8 : vector<1x32xf32> to vector<128x32xf32>
    %10 = arith.addf %7, %9 : vector<128x32xf32>
    %11 = arith.truncf %10 : vector<128x32xf32> to vector<128x32xbf16>
    %12 = vector.extract_strided_slice %11 {offsets = [0, 0], sizes = [128, 8], strides = [1, 1]} : vector<128x32xbf16> to vector<128x8xbf16>
    %13 = vector.extract_strided_slice %11 {offsets = [0, 8], sizes = [128, 8], strides = [1, 1]} : vector<128x32xbf16> to vector<128x8xbf16>
    %14 = vector.extract_strided_slice %11 {offsets = [0, 16], sizes = [128, 8], strides = [1, 1]} : vector<128x32xbf16> to vector<128x8xbf16>
    %15 = vector.extract_strided_slice %11 {offsets = [0, 24], sizes = [128, 8], strides = [1, 1]} : vector<128x32xbf16> to vector<128x8xbf16>
    %16 = vector.shape_cast %12 : vector<128x8xbf16> to vector<1x128x8xbf16>
    %17 = vector.shape_cast %13 : vector<128x8xbf16> to vector<1x128x8xbf16>
    %18 = vector.shape_cast %14 : vector<128x8xbf16> to vector<1x128x8xbf16>
    %19 = vector.shape_cast %15 : vector<128x8xbf16> to vector<1x128x8xbf16>
    %20 = tpu.concatenate %16, %17, %18, %19 in 0 : vector<1x128x8xbf16>, vector<1x128x8xbf16>, vector<1x128x8xbf16>, vector<1x128x8xbf16> -> vector<4x128x8xbf16>
    %c0_8 = arith.constant 0 : index
    %c0_9 = arith.constant 0 : index
    %21 = vector.load %arg8[%c0_8, %c0_9] : memref<32x32xbf16, #tpu.memory_space<vmem>>, vector<32x32xbf16>
    %cst_10 = arith.constant dense<0.000000e+00> : vector<128x32xf32>
    %22 = tpu.matmul %5, %21, %cst_10 {dimension_numbers = #tpu.dot_dimension_numbers<[1], [0], [0], [1], [0, 0, 1, 1], [], []>} : vector<128x32xbf16>, vector<32x32xbf16>, vector<128x32xf32> -> vector<128x32xf32>
    %23 = vector.extract_strided_slice %0 {offsets = [2, 0], sizes = [1, 32], strides = [1, 1]} : vector<16x32xf32> to vector<1x32xf32>
    %24 = vector.broadcast %23 : vector<1x32xf32> to vector<128x32xf32>
    %25 = arith.addf %22, %24 : vector<128x32xf32>
    %26 = arith.truncf %25 : vector<128x32xf32> to vector<128x32xbf16>
    %27 = vector.extract_strided_slice %26 {offsets = [0, 0], sizes = [128, 8], strides = [1, 1]} : vector<128x32xbf16> to vector<128x8xbf16>
    %28 = vector.extract_strided_slice %26 {offsets = [0, 8], sizes = [128, 8], strides = [1, 1]} : vector<128x32xbf16> to vector<128x8xbf16>
    %29 = vector.extract_strided_slice %26 {offsets = [0, 16], sizes = [128, 8], strides = [1, 1]} : vector<128x32xbf16> to vector<128x8xbf16>
    %30 = vector.extract_strided_slice %26 {offsets = [0, 24], sizes = [128, 8], strides = [1, 1]} : vector<128x32xbf16> to vector<128x8xbf16>
    %31 = vector.shape_cast %27 : vector<128x8xbf16> to vector<1x128x8xbf16>
    %32 = vector.shape_cast %28 : vector<128x8xbf16> to vector<1x128x8xbf16>
    %33 = vector.shape_cast %29 : vector<128x8xbf16> to vector<1x128x8xbf16>
    %34 = vector.shape_cast %30 : vector<128x8xbf16> to vector<1x128x8xbf16>
    %35 = tpu.concatenate %31, %32, %33, %34 in 0 : vector<1x128x8xbf16>, vector<1x128x8xbf16>, vector<1x128x8xbf16>, vector<1x128x8xbf16> -> vector<4x128x8xbf16>
    %c0_11 = arith.constant 0 : index
    %c0_12 = arith.constant 0 : index
    %c0_13 = arith.constant 0 : index
    %36 = vector.load %arg21[%c0_11, %c0_12, %c0_13] : memref<4x8x8xbf16, #tpu.memory_space<vmem>>, vector<4x8x8xbf16>
    %cst_14 = arith.constant dense<0.000000e+00> : vector<4x8x128xf32>
    %37 = tpu.matmul %36, %20, %cst_14 {dimension_numbers = #tpu.dot_dimension_numbers<[2], [2], [1], [1], [0, 0, 0, 1, 1, 1], [0], [0]>} : vector<4x8x8xbf16>, vector<4x128x8xbf16>, vector<4x8x128xf32> -> vector<4x8x128xf32>
    %c0_15 = arith.constant 0 : index
    %c0_16 = arith.constant 0 : index
    %c0_17 = arith.constant 0 : index
    %38 = vector.load %arg5[%c0_15, %c0_16, %c0_17] : memref<1x8x128xi8, #tpu.memory_space<vmem>>, vector<1x8x128xi8>
    %39 = vector.shape_cast %38 : vector<1x8x128xi8> to vector<8x128xi8>
    %c0_i8 = arith.constant 0 : i8
    %40 = vector.broadcast %c0_i8 : i8 to vector<8x128xi8>
    %41 = arith.cmpi ne, %39, %40 : vector<8x128xi8>
    %42 = vector.shape_cast %41 : vector<8x128xi1> to vector<1x8x128xi1>
    %cst_18 = arith.constant -1.000000e+30 : f32
    %43 = vector.shape_cast %42 : vector<1x8x128xi1> to vector<1x8x128xi1>
    %44 = vector.broadcast %43 : vector<1x8x128xi1> to vector<4x8x128xi1>
    %45 = vector.broadcast %cst_18 : f32 to vector<4x8x128xf32>
    %46 = arith.select %44, %45, %37 : vector<4x8x128xi1>, vector<4x8x128xf32>
    %c0_19 = arith.constant 0 : index
    %c0_20 = arith.constant 0 : index
    %c0_21 = arith.constant 0 : index
    %47 = vector.load %arg22[%c0_19, %c0_20, %c0_21] : memref<4x8x1xf32, #tpu.memory_space<vmem>>, vector<4x8x1xf32>
    %cst_22 = arith.constant dense<0xFF800000> : vector<4x8xf32>
    %48 = vector.multi_reduction <maximumf>, %46, %cst_22 [2] : vector<4x8x128xf32> to vector<4x8xf32>
    %49 = vector.shape_cast %48 : vector<4x8xf32> to vector<4x8x1xf32>
    %50 = arith.maximumf %47, %49 : vector<4x8x1xf32>
    %51 = arith.subf %47, %50 : vector<4x8x1xf32>
    %52 = math.exp %51 : vector<4x8x1xf32>
    %53 = vector.broadcast %50 : vector<4x8x1xf32> to vector<4x8x128xf32>
    %54 = arith.subf %46, %53 : vector<4x8x128xf32>
    %55 = math.exp %54 : vector<4x8x128xf32>
    %c0_23 = arith.constant 0 : index
    %c0_24 = arith.constant 0 : index
    %c0_25 = arith.constant 0 : index
    %56 = vector.load %arg23[%c0_23, %c0_24, %c0_25] : memref<4x8x1xf32, #tpu.memory_space<vmem>>, vector<4x8x1xf32>
    %57 = arith.mulf %52, %56 : vector<4x8x1xf32>
    %cst_26 = arith.constant dense<0.000000e+00> : vector<4x8xf32>
    %58 = vector.multi_reduction <add>, %55, %cst_26 [2] : vector<4x8x128xf32> to vector<4x8xf32>
    %59 = vector.shape_cast %58 : vector<4x8xf32> to vector<4x8x1xf32>
    %60 = arith.addf %57, %59 : vector<4x8x1xf32>
    %c0_27 = arith.constant 0 : index
    %c0_28 = arith.constant 0 : index
    %c0_29 = arith.constant 0 : index
    %61 = vector.load %arg23[%c0_27, %c0_28, %c0_29] : memref<4x8x1xf32, #tpu.memory_space<vmem>>, vector<4x8x1xf32>
    tpu.vector_store %arg23[%c0_27, %c0_28, %c0_29], %60 {strides = array<i32>} : memref<4x8x1xf32, #tpu.memory_space<vmem>>, vector<4x8x1xf32>,
    %c0_30 = arith.constant 0 : index
    %c0_31 = arith.constant 0 : index
    %c0_32 = arith.constant 0 : index
    %62 = vector.load %arg24[%c0_30, %c0_31, %c0_32] : memref<4x8x8xf32, #tpu.memory_space<vmem>>, vector<4x8x8xf32>
    %63 = vector.broadcast %52 : vector<4x8x1xf32> to vector<4x8x8xf32>
    %64 = arith.mulf %63, %62 : vector<4x8x8xf32>
    %65 = arith.truncf %55 : vector<4x8x128xf32> to vector<4x8x128xbf16>
    %cst_33 = arith.constant dense<0.000000e+00> : vector<4x8x8xf32>
    %66 = tpu.matmul %65, %35, %cst_33 {dimension_numbers = #tpu.dot_dimension_numbers<[2], [1], [1], [2], [0, 0, 0, 1, 1, 2], [0], [0]>} : vector<4x8x128xbf16>, vector<4x128x8xbf16>, vector<4x8x8xf32> -> vector<4x8x8xf32>
    %67 = arith.addf %64, %66 : vector<4x8x8xf32>
    %c0_34 = arith.constant 0 : index
    %c0_35 = arith.constant 0 : index
    %c0_36 = arith.constant 0 : index
    %68 = vector.load %arg24[%c0_34, %c0_35, %c0_36] : memref<4x8x8xf32, #tpu.memory_space<vmem>>, vector<4x8x8xf32>
    tpu.vector_store %arg24[%c0_34, %c0_35, %c0_36], %67 {strides = array<i32>} : memref<4x8x8xf32, #tpu.memory_space<vmem>>, vector<4x8x8xf32>,
    %c0_37 = arith.constant 0 : index
    %c0_38 = arith.constant 0 : index
    %c0_39 = arith.constant 0 : index
    %69 = vector.load %arg22[%c0_37, %c0_38, %c0_39] : memref<4x8x1xf32, #tpu.memory_space<vmem>>, vector<4x8x1xf32>
    tpu.vector_store %arg22[%c0_37, %c0_38, %c0_39], %50 {strides = array<i32>} : memref<4x8x1xf32, #tpu.memory_space<vmem>>, vector<4x8x1xf32>,
    %c1_i32 = arith.constant 1 : i32
    %70 = arith.cmpi eq, %arg1, %c1_i32 : i32
    %71 = arith.extui %70 : i1 to i32
    %c0_i32_40 = arith.constant 0 : i32
    %72 = arith.cmpi ne, %71, %c0_i32_40 : i32
    scf.if %72 {
      %c0_41 = arith.constant 0 : index
      %c0_42 = arith.constant 0 : index
      %c0_43 = arith.constant 0 : index
      %73 = vector.load %arg2[%c0_41, %c0_42, %c0_43] : memref<1x8x32xf32, #tpu.memory_space<vmem>>, vector<1x8x32xf32>
      %74 = vector.shape_cast %73 : vector<1x8x32xf32> to vector<8x32xf32>
      %75 = arith.truncf %74 : vector<8x32xf32> to vector<8x32xbf16>
      %c0_44 = arith.constant 0 : index
      %c0_45 = arith.constant 0 : index
      %76 = vector.load %arg4[%c0_44, %c0_45] : memref<8x32xf32, #tpu.memory_space<vmem>>, vector<8x32xf32>
      %c0_46 = arith.constant 0 : index
      %c0_47 = arith.constant 0 : index
      %c0_48 = arith.constant 0 : index
      %77 = vector.load %arg24[%c0_46, %c0_47, %c0_48] : memref<4x8x8xf32, #tpu.memory_space<vmem>>, vector<4x8x8xf32>
      %c0_49 = arith.constant 0 : index
      %c0_50 = arith.constant 0 : index
      %c0_51 = arith.constant 0 : index
      %78 = vector.load %arg23[%c0_49, %c0_50, %c0_51] : memref<4x8x1xf32, #tpu.memory_space<vmem>>, vector<4x8x1xf32>
      %79 = tpu.reciprocal %78 {approx = true} : vector<4x8x1xf32> -> vector<4x8x1xf32>
      %80 = vector.broadcast %79 : vector<4x8x1xf32> to vector<4x8x8xf32>
      %81 = arith.mulf %77, %80 : vector<4x8x8xf32>
      %82 = vector.extract_strided_slice %81 {offsets = [0, 0, 0], sizes = [1, 8, 8], strides = [1, 1, 1]} : vector<4x8x8xf32> to vector<1x8x8xf32>
      %83 = vector.shape_cast %82 : vector<1x8x8xf32> to vector<8x8xf32>
      %84 = vector.extract_strided_slice %81 {offsets = [1, 0, 0], sizes = [1, 8, 8], strides = [1, 1, 1]} : vector<4x8x8xf32> to vector<1x8x8xf32>
      %85 = vector.shape_cast %84 : vector<1x8x8xf32> to vector<8x8xf32>
      %86 = vector.extract_strided_slice %81 {offsets = [2, 0, 0], sizes = [1, 8, 8], strides = [1, 1, 1]} : vector<4x8x8xf32> to vector<1x8x8xf32>
      %87 = vector.shape_cast %86 : vector<1x8x8xf32> to vector<8x8xf32>
      %88 = vector.extract_strided_slice %81 {offsets = [3, 0, 0], sizes = [1, 8, 8], strides = [1, 1, 1]} : vector<4x8x8xf32> to vector<1x8x8xf32>
      %89 = vector.shape_cast %88 : vector<1x8x8xf32> to vector<8x8xf32>
      %90 = tpu.concatenate %83, %85, %87, %89 in 1 : vector<8x8xf32>, vector<8x8xf32>, vector<8x8xf32>, vector<8x8xf32> -> vector<8x32xf32>
      %91 = arith.truncf %90 : vector<8x32xf32> to vector<8x32xbf16>
      %c0_52 = arith.constant 0 : index
      %c0_53 = arith.constant 0 : index
      %92 = vector.load %arg9[%c0_52, %c0_53] : memref<32x32xbf16, #tpu.memory_space<vmem>>, vector<32x32xbf16>
      %cst_54 = arith.constant dense<0.000000e+00> : vector<8x32xf32>
      %93 = tpu.matmul %91, %92, %cst_54 {dimension_numbers = #tpu.dot_dimension_numbers<[1], [0], [0], [1], [0, 0, 1, 1], [], []>} : vector<8x32xbf16>, vector<32x32xbf16>, vector<8x32xf32> -> vector<8x32xf32>
      %94 = vector.extract_strided_slice %0 {offsets = [3, 0], sizes = [1, 32], strides = [1, 1]} : vector<16x32xf32> to vector<1x32xf32>
      %95 = vector.broadcast %94 : vector<1x32xf32> to vector<8x32xf32>
      %96 = arith.addf %93, %95 : vector<8x32xf32>
      %97 = arith.truncf %96 : vector<8x32xf32> to vector<8x32xbf16>
      %c0_55 = arith.constant 0 : index
      %c0_56 = arith.constant 0 : index
      %98 = vector.load %arg10[%c0_55, %c0_56] : memref<32x32xbf16, #tpu.memory_space<vmem>>, vector<32x32xbf16>
      %cst_57 = arith.constant dense<0.000000e+00> : vector<8x32xf32>
      %99 = tpu.matmul %97, %98, %cst_57 {dimension_numbers = #tpu.dot_dimension_numbers<[1], [0], [0], [1], [0, 0, 1, 1], [], []>} : vector<8x32xbf16>, vector<32x32xbf16>, vector<8x32xf32> -> vector<8x32xf32>
      %c0_58 = arith.constant 0 : index
      %c0_59 = arith.constant 0 : index
      %100 = vector.load %arg11[%c0_58, %c0_59] : memref<32x32xbf16, #tpu.memory_space<vmem>>, vector<32x32xbf16>
      %cst_60 = arith.constant dense<0.000000e+00> : vector<8x32xf32>
      %101 = tpu.matmul %75, %100, %cst_60 {dimension_numbers = #tpu.dot_dimension_numbers<[1], [0], [0], [1], [0, 0, 1, 1], [], []>} : vector<8x32xbf16>, vector<32x32xbf16>, vector<8x32xf32> -> vector<8x32xf32>
      %102 = arith.addf %99, %101 : vector<8x32xf32>
      %103 = vector.extract_strided_slice %0 {offsets = [4, 0], sizes = [1, 32], strides = [1, 1]} : vector<16x32xf32> to vector<1x32xf32>
      %104 = vector.broadcast %103 : vector<1x32xf32> to vector<8x32xf32>
      %105 = arith.addf %102, %104 : vector<8x32xf32>
      %106 = arith.addf %74, %105 : vector<8x32xf32>
      %107 = vector.extract_strided_slice %0 {offsets = [5, 0], sizes = [1, 32], strides = [1, 1]} : vector<16x32xf32> to vector<1x32xf32>
      %108 = vector.extract_strided_slice %0 {offsets = [6, 0], sizes = [1, 32], strides = [1, 1]} : vector<16x32xf32> to vector<1x32xf32>
      %cst_61 = arith.constant dense<0.000000e+00> : vector<8xf32>
      %109 = vector.multi_reduction <add>, %106, %cst_61 [1] : vector<8x32xf32> to vector<8xf32>
      %110 = vector.shape_cast %109 : vector<8xf32> to vector<8x1xf32>
      %cst_62 = arith.constant 3.200000e+01 : f32
      %111 = vector.broadcast %cst_62 : f32 to vector<8x1xf32>
      %112 = arith.divf %110, %111 : vector<8x1xf32>
      %113 = vector.broadcast %112 : vector<8x1xf32> to vector<8x32xf32>
      %114 = arith.subf %106, %113 : vector<8x32xf32>
      %115 = arith.mulf %114, %114 : vector<8x32xf32>
      %cst_63 = arith.constant dense<0.000000e+00> : vector<8xf32>
      %116 = vector.multi_reduction <add>, %115, %cst_63 [1] : vector<8x32xf32> to vector<8xf32>
      %117 = vector.shape_cast %116 : vector<8xf32> to vector<8x1xf32>
      %cst_64 = arith.constant 3.200000e+01 : f32
      %118 = vector.broadcast %cst_64 : f32 to vector<8x1xf32>
      %119 = arith.divf %117, %118 : vector<8x1xf32>
      %120 = vector.broadcast %112 : vector<8x1xf32> to vector<8x32xf32>
      %121 = arith.subf %106, %120 : vector<8x32xf32>
      %cst_65 = arith.constant 9.99999974E-6 : f32
      %122 = vector.broadcast %cst_65 : f32 to vector<8x1xf32>
      %123 = arith.addf %119, %122 : vector<8x1xf32>
      %124 = math.rsqrt %123 : vector<8x1xf32>
      %125 = vector.broadcast %124 : vector<8x1xf32> to vector<8x32xf32>
      %126 = arith.mulf %121, %125 : vector<8x32xf32>
      %127 = vector.broadcast %107 : vector<1x32xf32> to vector<8x32xf32>
      %128 = arith.mulf %126, %127 : vector<8x32xf32>
      %129 = vector.broadcast %108 : vector<1x32xf32> to vector<8x32xf32>
      %130 = arith.addf %128, %129 : vector<8x32xf32>
      %131 = arith.addf %130, %76 : vector<8x32xf32>
      %132 = arith.truncf %131 : vector<8x32xf32> to vector<8x32xbf16>
      %c0_66 = arith.constant 0 : index
      %c0_67 = arith.constant 0 : index
      %133 = vector.load %arg12[%c0_66, %c0_67] : memref<32x32xbf16, #tpu.memory_space<vmem>>, vector<32x32xbf16>
      %cst_68 = arith.constant dense<0.000000e+00> : vector<8x32xf32>
      %134 = tpu.matmul %132, %133, %cst_68 {dimension_numbers = #tpu.dot_dimension_numbers<[1], [0], [0], [1], [0, 0, 1, 1], [], []>} : vector<8x32xbf16>, vector<32x32xbf16>, vector<8x32xf32> -> vector<8x32xf32>
      %135 = vector.extract_strided_slice %0 {offsets = [7, 0], sizes = [1, 32], strides = [1, 1]} : vector<16x32xf32> to vector<1x32xf32>
      %136 = vector.broadcast %135 : vector<1x32xf32> to vector<8x32xf32>
      %137 = arith.addf %134, %136 : vector<8x32xf32>
      %138 = arith.truncf %137 : vector<8x32xf32> to vector<8x32xbf16>
      %139 = vector.extract_strided_slice %138 {offsets = [0, 0], sizes = [8, 8], strides = [1, 1]} : vector<8x32xbf16> to vector<8x8xbf16>
      %140 = vector.extract_strided_slice %138 {offsets = [0, 8], sizes = [8, 8], strides = [1, 1]} : vector<8x32xbf16> to vector<8x8xbf16>
      %141 = vector.extract_strided_slice %138 {offsets = [0, 16], sizes = [8, 8], strides = [1, 1]} : vector<8x32xbf16> to vector<8x8xbf16>
      %142 = vector.extract_strided_slice %138 {offsets = [0, 24], sizes = [8, 8], strides = [1, 1]} : vector<8x32xbf16> to vector<8x8xbf16>
      %143 = vector.shape_cast %139 : vector<8x8xbf16> to vector<1x8x8xbf16>
      %144 = vector.shape_cast %140 : vector<8x8xbf16> to vector<1x8x8xbf16>
      %145 = vector.shape_cast %141 : vector<8x8xbf16> to vector<1x8x8xbf16>
      %146 = vector.shape_cast %142 : vector<8x8xbf16> to vector<1x8x8xbf16>
      %147 = tpu.concatenate %143, %144, %145, %146 in 0 : vector<1x8x8xbf16>, vector<1x8x8xbf16>, vector<1x8x8xbf16>, vector<1x8x8xbf16> -> vector<4x8x8xbf16>
      %c0_69 = arith.constant 0 : index
      %c0_70 = arith.constant 0 : index
      %148 = vector.load %arg13[%c0_69, %c0_70] : memref<32x32xbf16, #tpu.memory_space<vmem>>, vector<32x32xbf16>
      %cst_71 = arith.constant dense<0.000000e+00> : vector<8x32xf32>
      %149 = tpu.matmul %132, %148, %cst_71 {dimension_numbers = #tpu.dot_dimension_numbers<[1], [0], [0], [1], [0, 0, 1, 1], [], []>} : vector<8x32xbf16>, vector<32x32xbf16>, vector<8x32xf32> -> vector<8x32xf32>
      %150 = vector.extract_strided_slice %0 {offsets = [8, 0], sizes = [1, 32], strides = [1, 1]} : vector<16x32xf32> to vector<1x32xf32>
      %151 = vector.broadcast %150 : vector<1x32xf32> to vector<8x32xf32>
      %152 = arith.addf %149, %151 : vector<8x32xf32>
      %153 = arith.truncf %152 : vector<8x32xf32> to vector<8x32xbf16>
      %154 = vector.extract_strided_slice %153 {offsets = [0, 0], sizes = [8, 8], strides = [1, 1]} : vector<8x32xbf16> to vector<8x8xbf16>
      %155 = vector.extract_strided_slice %153 {offsets = [0, 8], sizes = [8, 8], strides = [1, 1]} : vector<8x32xbf16> to vector<8x8xbf16>
      %156 = vector.extract_strided_slice %153 {offsets = [0, 16], sizes = [8, 8], strides = [1, 1]} : vector<8x32xbf16> to vector<8x8xbf16>
      %157 = vector.extract_strided_slice %153 {offsets = [0, 24], sizes = [8, 8], strides = [1, 1]} : vector<8x32xbf16> to vector<8x8xbf16>
      %158 = vector.shape_cast %154 : vector<8x8xbf16> to vector<1x8x8xbf16>
      %159 = vector.shape_cast %155 : vector<8x8xbf16> to vector<1x8x8xbf16>
      %160 = vector.shape_cast %156 : vector<8x8xbf16> to vector<1x8x8xbf16>
      %161 = vector.shape_cast %157 : vector<8x8xbf16> to vector<1x8x8xbf16>
      %162 = tpu.concatenate %158, %159, %160, %161 in 0 : vector<1x8x8xbf16>, vector<1x8x8xbf16>, vector<1x8x8xbf16>, vector<1x8x8xbf16> -> vector<4x8x8xbf16>
      %163 = arith.truncf %130 : vector<8x32xf32> to vector<8x32xbf16>
      %c0_72 = arith.constant 0 : index
      %c0_73 = arith.constant 0 : index
      %164 = vector.load %arg14[%c0_72, %c0_73] : memref<32x32xbf16, #tpu.memory_space<vmem>>, vector<32x32xbf16>
      %cst_74 = arith.constant dense<0.000000e+00> : vector<8x32xf32>
      %165 = tpu.matmul %163, %164, %cst_74 {dimension_numbers = #tpu.dot_dimension_numbers<[1], [0], [0], [1], [0, 0, 1, 1], [], []>} : vector<8x32xbf16>, vector<32x32xbf16>, vector<8x32xf32> -> vector<8x32xf32>
      %166 = vector.extract_strided_slice %0 {offsets = [9, 0], sizes = [1, 32], strides = [1, 1]} : vector<16x32xf32> to vector<1x32xf32>
      %167 = vector.broadcast %166 : vector<1x32xf32> to vector<8x32xf32>
      %168 = arith.addf %165, %167 : vector<8x32xf32>
      %169 = arith.truncf %168 : vector<8x32xf32> to vector<8x32xbf16>
      %170 = vector.extract_strided_slice %169 {offsets = [0, 0], sizes = [8, 8], strides = [1, 1]} : vector<8x32xbf16> to vector<8x8xbf16>
      %171 = vector.extract_strided_slice %169 {offsets = [0, 8], sizes = [8, 8], strides = [1, 1]} : vector<8x32xbf16> to vector<8x8xbf16>
      %172 = vector.extract_strided_slice %169 {offsets = [0, 16], sizes = [8, 8], strides = [1, 1]} : vector<8x32xbf16> to vector<8x8xbf16>
      %173 = vector.extract_strided_slice %169 {offsets = [0, 24], sizes = [8, 8], strides = [1, 1]} : vector<8x32xbf16> to vector<8x8xbf16>
      %174 = vector.shape_cast %170 : vector<8x8xbf16> to vector<1x8x8xbf16>
      %175 = vector.shape_cast %171 : vector<8x8xbf16> to vector<1x8x8xbf16>
      %176 = vector.shape_cast %172 : vector<8x8xbf16> to vector<1x8x8xbf16>
      %177 = vector.shape_cast %173 : vector<8x8xbf16> to vector<1x8x8xbf16>
      %178 = tpu.concatenate %174, %175, %176, %177 in 0 : vector<1x8x8xbf16>, vector<1x8x8xbf16>, vector<1x8x8xbf16>, vector<1x8x8xbf16> -> vector<4x8x8xbf16>
      %cst_75 = arith.constant dense<0.000000e+00> : vector<4x8x8xf32>
      %179 = tpu.matmul %147, %162, %cst_75 {dimension_numbers = #tpu.dot_dimension_numbers<[2], [2], [1], [1], [0, 0, 0, 1, 1, 1], [0], [0]>} : vector<4x8x8xbf16>, vector<4x8x8xbf16>, vector<4x8x8xf32> -> vector<4x8x8xf32>
      %cst_76 = arith.constant dense<0xFF800000> : vector<4x8xf32>
      %180 = vector.multi_reduction <maximumf>, %179, %cst_76 [2] : vector<4x8x8xf32> to vector<4x8xf32>
      %181 = vector.shape_cast %180 : vector<4x8xf32> to vector<4x8x1xf32>
      %182 = vector.broadcast %181 : vector<4x8x1xf32> to vector<4x8x8xf32>
      %183 = arith.subf %179, %182 : vector<4x8x8xf32>
      %184 = math.exp %183 : vector<4x8x8xf32>
      %cst_77 = arith.constant dense<0.000000e+00> : vector<4x8xf32>
      %185 = vector.multi_reduction <add>, %184, %cst_77 [2] : vector<4x8x8xf32> to vector<4x8xf32>
      %186 = vector.shape_cast %185 : vector<4x8xf32> to vector<4x8x1xf32>
      %187 = tpu.reciprocal %186 {approx = true} : vector<4x8x1xf32> -> vector<4x8x1xf32>
      %188 = vector.broadcast %187 : vector<4x8x1xf32> to vector<4x8x8xf32>
      %189 = arith.mulf %184, %188 : vector<4x8x8xf32>
      %190 = arith.truncf %189 : vector<4x8x8xf32> to vector<4x8x8xbf16>
      %cst_78 = arith.constant dense<0.000000e+00> : vector<4x8x8xf32>
      %191 = tpu.matmul %190, %178, %cst_78 {dimension_numbers = #tpu.dot_dimension_numbers<[2], [1], [1], [2], [0, 0, 0, 1, 1, 2], [0], [0]>} : vector<4x8x8xbf16>, vector<4x8x8xbf16>, vector<4x8x8xf32> -> vector<4x8x8xf32>
      %192 = vector.extract_strided_slice %191 {offsets = [0, 0, 0], sizes = [1, 8, 8], strides = [1, 1, 1]} : vector<4x8x8xf32> to vector<1x8x8xf32>
      %193 = vector.shape_cast %192 : vector<1x8x8xf32> to vector<8x8xf32>
      %194 = vector.extract_strided_slice %191 {offsets = [1, 0, 0], sizes = [1, 8, 8], strides = [1, 1, 1]} : vector<4x8x8xf32> to vector<1x8x8xf32>
      %195 = vector.shape_cast %194 : vector<1x8x8xf32> to vector<8x8xf32>
      %196 = vector.extract_strided_slice %191 {offsets = [2, 0, 0], sizes = [1, 8, 8], strides = [1, 1, 1]} : vector<4x8x8xf32> to vector<1x8x8xf32>
      %197 = vector.shape_cast %196 : vector<1x8x8xf32> to vector<8x8xf32>
      %198 = vector.extract_strided_slice %191 {offsets = [3, 0, 0], sizes = [1, 8, 8], strides = [1, 1, 1]} : vector<4x8x8xf32> to vector<1x8x8xf32>
      %199 = vector.shape_cast %198 : vector<1x8x8xf32> to vector<8x8xf32>
      %200 = tpu.concatenate %193, %195, %197, %199 in 1 : vector<8x8xf32>, vector<8x8xf32>, vector<8x8xf32>, vector<8x8xf32> -> vector<8x32xf32>
      %201 = arith.truncf %200 : vector<8x32xf32> to vector<8x32xbf16>
      %c0_79 = arith.constant 0 : index
      %c0_80 = arith.constant 0 : index
      %202 = vector.load %arg15[%c0_79, %c0_80] : memref<32x32xbf16, #tpu.memory_space<vmem>>, vector<32x32xbf16>
      %cst_81 = arith.constant dense<0.000000e+00> : vector<8x32xf32>
      %203 = tpu.matmul %201, %202, %cst_81 {dimension_numbers = #tpu.dot_dimension_numbers<[1], [0], [0], [1], [0, 0, 1, 1], [], []>} : vector<8x32xbf16>, vector<32x32xbf16>, vector<8x32xf32> -> vector<8x32xf32>
      %204 = vector.extract_strided_slice %0 {offsets = [10, 0], sizes = [1, 32], strides = [1, 1]} : vector<16x32xf32> to vector<1x32xf32>
      %205 = vector.broadcast %204 : vector<1x32xf32> to vector<8x32xf32>
      %206 = arith.addf %203, %205 : vector<8x32xf32>
      %207 = arith.addf %130, %206 : vector<8x32xf32>
      %208 = vector.extract_strided_slice %0 {offsets = [11, 0], sizes = [1, 32], strides = [1, 1]} : vector<16x32xf32> to vector<1x32xf32>
      %209 = vector.extract_strided_slice %0 {offsets = [12, 0], sizes = [1, 32], strides = [1, 1]} : vector<16x32xf32> to vector<1x32xf32>
      %cst_82 = arith.constant dense<0.000000e+00> : vector<8xf32>
      %210 = vector.multi_reduction <add>, %207, %cst_82 [1] : vector<8x32xf32> to vector<8xf32>
      %211 = vector.shape_cast %210 : vector<8xf32> to vector<8x1xf32>
      %cst_83 = arith.constant 3.200000e+01 : f32
      %212 = vector.broadcast %cst_83 : f32 to vector<8x1xf32>
      %213 = arith.divf %211, %212 : vector<8x1xf32>
      %214 = vector.broadcast %213 : vector<8x1xf32> to vector<8x32xf32>
      %215 = arith.subf %207, %214 : vector<8x32xf32>
      %216 = arith.mulf %215, %215 : vector<8x32xf32>
      %cst_84 = arith.constant dense<0.000000e+00> : vector<8xf32>
      %217 = vector.multi_reduction <add>, %216, %cst_84 [1] : vector<8x32xf32> to vector<8xf32>
      %218 = vector.shape_cast %217 : vector<8xf32> to vector<8x1xf32>
      %cst_85 = arith.constant 3.200000e+01 : f32
      %219 = vector.broadcast %cst_85 : f32 to vector<8x1xf32>
      %220 = arith.divf %218, %219 : vector<8x1xf32>
      %221 = vector.broadcast %213 : vector<8x1xf32> to vector<8x32xf32>
      %222 = arith.subf %207, %221 : vector<8x32xf32>
      %cst_86 = arith.constant 9.99999974E-6 : f32
      %223 = vector.broadcast %cst_86 : f32 to vector<8x1xf32>
      %224 = arith.addf %220, %223 : vector<8x1xf32>
      %225 = math.rsqrt %224 : vector<8x1xf32>
      %226 = vector.broadcast %225 : vector<8x1xf32> to vector<8x32xf32>
      %227 = arith.mulf %222, %226 : vector<8x32xf32>
      %228 = vector.broadcast %208 : vector<1x32xf32> to vector<8x32xf32>
      %229 = arith.mulf %227, %228 : vector<8x32xf32>
      %230 = vector.broadcast %209 : vector<1x32xf32> to vector<8x32xf32>
      %231 = arith.addf %229, %230 : vector<8x32xf32>
      %232 = arith.truncf %231 : vector<8x32xf32> to vector<8x32xbf16>
      %c0_87 = arith.constant 0 : index
      %c0_88 = arith.constant 0 : index
      %233 = vector.load %arg16[%c0_87, %c0_88] : memref<32x64xbf16, #tpu.memory_space<vmem>>, vector<32x64xbf16>
      %cst_89 = arith.constant dense<0.000000e+00> : vector<8x64xf32>
      %234 = tpu.matmul %232, %233, %cst_89 {dimension_numbers = #tpu.dot_dimension_numbers<[1], [0], [0], [1], [0, 0, 1, 1], [], []>} : vector<8x32xbf16>, vector<32x64xbf16>, vector<8x64xf32> -> vector<8x64xf32>
      %c0_90 = arith.constant 0 : index
      %c0_91 = arith.constant 0 : index
      %235 = vector.load %arg17[%c0_90, %c0_91] : memref<1x64xf32, #tpu.memory_space<vmem>>, vector<1x64xf32>
      %236 = vector.broadcast %235 : vector<1x64xf32> to vector<8x64xf32>
      %237 = arith.addf %234, %236 : vector<8x64xf32>
      %cst_92 = arith.constant 0.000000e+00 : f32
      %238 = vector.broadcast %cst_92 : f32 to vector<8x64xf32>
      %239 = arith.maximumf %237, %238 : vector<8x64xf32>
      %240 = arith.truncf %239 : vector<8x64xf32> to vector<8x64xbf16>
      %c0_93 = arith.constant 0 : index
      %c0_94 = arith.constant 0 : index
      %241 = vector.load %arg18[%c0_93, %c0_94] : memref<64x32xbf16, #tpu.memory_space<vmem>>, vector<64x32xbf16>
      %cst_95 = arith.constant dense<0.000000e+00> : vector<8x32xf32>
      %242 = tpu.matmul %240, %241, %cst_95 {dimension_numbers = #tpu.dot_dimension_numbers<[1], [0], [0], [1], [0, 0, 1, 1], [], []>} : vector<8x64xbf16>, vector<64x32xbf16>, vector<8x32xf32> -> vector<8x32xf32>
      %243 = vector.extract_strided_slice %0 {offsets = [13, 0], sizes = [1, 32], strides = [1, 1]} : vector<16x32xf32> to vector<1x32xf32>
      %244 = vector.broadcast %243 : vector<1x32xf32> to vector<8x32xf32>
      %245 = arith.addf %242, %244 : vector<8x32xf32>
      %246 = arith.addf %231, %245 : vector<8x32xf32>
      %247 = vector.extract_strided_slice %0 {offsets = [14, 0], sizes = [1, 32], strides = [1, 1]} : vector<16x32xf32> to vector<1x32xf32>
      %248 = vector.extract_strided_slice %0 {offsets = [15, 0], sizes = [1, 32], strides = [1, 1]} : vector<16x32xf32> to vector<1x32xf32>
      %cst_96 = arith.constant dense<0.000000e+00> : vector<8xf32>
      %249 = vector.multi_reduction <add>, %246, %cst_96 [1] : vector<8x32xf32> to vector<8xf32>
      %250 = vector.shape_cast %249 : vector<8xf32> to vector<8x1xf32>
      %cst_97 = arith.constant 3.200000e+01 : f32
      %251 = vector.broadcast %cst_97 : f32 to vector<8x1xf32>
      %252 = arith.divf %250, %251 : vector<8x1xf32>
      %253 = vector.broadcast %252 : vector<8x1xf32> to vector<8x32xf32>
      %254 = arith.subf %246, %253 : vector<8x32xf32>
      %255 = arith.mulf %254, %254 : vector<8x32xf32>
      %cst_98 = arith.constant dense<0.000000e+00> : vector<8xf32>
      %256 = vector.multi_reduction <add>, %255, %cst_98 [1] : vector<8x32xf32> to vector<8xf32>
      %257 = vector.shape_cast %256 : vector<8xf32> to vector<8x1xf32>
      %cst_99 = arith.constant 3.200000e+01 : f32
      %258 = vector.broadcast %cst_99 : f32 to vector<8x1xf32>
      %259 = arith.divf %257, %258 : vector<8x1xf32>
      %260 = vector.broadcast %252 : vector<8x1xf32> to vector<8x32xf32>
      %261 = arith.subf %246, %260 : vector<8x32xf32>
      %cst_100 = arith.constant 9.99999974E-6 : f32
      %262 = vector.broadcast %cst_100 : f32 to vector<8x1xf32>
      %263 = arith.addf %259, %262 : vector<8x1xf32>
      %264 = math.rsqrt %263 : vector<8x1xf32>
      %265 = vector.broadcast %264 : vector<8x1xf32> to vector<8x32xf32>
      %266 = arith.mulf %261, %265 : vector<8x32xf32>
      %267 = vector.broadcast %247 : vector<1x32xf32> to vector<8x32xf32>
      %268 = arith.mulf %266, %267 : vector<8x32xf32>
      %269 = vector.broadcast %248 : vector<1x32xf32> to vector<8x32xf32>
      %270 = arith.addf %268, %269 : vector<8x32xf32>
      %c0_101 = arith.constant 0 : index
      %c0_102 = arith.constant 0 : index
      %c0_103 = arith.constant 0 : index
      %271 = vector.load %arg20[%c0_101, %c0_102, %c0_103] : memref<1x8x32xf32, #tpu.memory_space<vmem>>, vector<1x8x32xf32>
      %272 = vector.shape_cast %271 : vector<1x8x32xf32> to vector<8x32xf32>
      %273 = vector.shape_cast %270 : vector<8x32xf32> to vector<1x8x32xf32>
      tpu.vector_store %arg20[%c0_101, %c0_102, %c0_103], %273 {strides = array<i32>} : memref<1x8x32xf32, #tpu.memory_space<vmem>>, vector<1x8x32xf32>,
    } else {
    }
    return
  }
  func.func @transform_0(%arg0: i32, %arg1: i32) -> (i32, i32, i32) {
    %c0_i32 = arith.constant 0 : i32
    %c0_i32_0 = arith.constant 0 : i32
    %c0_i32_1 = arith.constant 0 : i32
    return %arg0, %c0_i32, %c0_i32_0 : i32, i32, i32
  }
  func.func @transform_1(%arg0: i32, %arg1: i32) -> (i32, i32, i32) {
    %c0_i32 = arith.constant 0 : i32
    %c0_i32_0 = arith.constant 0 : i32
    return %arg0, %arg1, %c0_i32 : i32, i32, i32
  }
  func.func @transform_2(%arg0: i32, %arg1: i32) -> (i32, i32) {
    %c0_i32 = arith.constant 0 : i32
    %c0_i32_0 = arith.constant 0 : i32
    %c0_i32_1 = arith.constant 0 : i32
    return %c0_i32, %c0_i32_0 : i32, i32
  }
  func.func @transform_3(%arg0: i32, %arg1: i32) -> (i32, i32, i32) {
    %c0_i32 = arith.constant 0 : i32
    %c0_i32_0 = arith.constant 0 : i32
    return %arg0, %c0_i32, %arg1 : i32, i32, i32
  }
  func.func @transform_4(%arg0: i32, %arg1: i32) -> (i32, i32) {
    %c0_i32 = arith.constant 0 : i32
    %c0_i32_0 = arith.constant 0 : i32
    %c0_i32_1 = arith.constant 0 : i32
    return %c0_i32, %c0_i32_0 : i32, i32
  }
  func.func @transform_5(%arg0: i32, %arg1: i32) -> (i32, i32) {
    %c0_i32 = arith.constant 0 : i32
    %c0_i32_0 = arith.constant 0 : i32
    %c0_i32_1 = arith.constant 0 : i32
    return %c0_i32, %c0_i32_0 : i32, i32
  }
  func.func @transform_6(%arg0: i32, %arg1: i32) -> (i32, i32) {
    %c0_i32 = arith.constant 0 : i32
    %c0_i32_0 = arith.constant 0 : i32
    %c0_i32_1 = arith.constant 0 : i32
    return %c0_i32, %c0_i32_0 : i32, i32
  }
  func.func @transform_7(%arg0: i32, %arg1: i32) -> (i32, i32) {
    %c0_i32 = arith.constant 0 : i32
    %c0_i32_0 = arith.constant 0 : i32
    %c0_i32_1 = arith.constant 0 : i32
    return %c0_i32, %c0_i32_0 : i32, i32
  }
  func.func @transform_8(%arg0: i32, %arg1: i32) -> (i32, i32) {
    %c0_i32 = arith.constant 0 : i32
    %c0_i32_0 = arith.constant 0 : i32
    %c0_i32_1 = arith.constant 0 : i32
    return %c0_i32, %c0_i32_0 : i32, i32
  }
  func.func @transform_9(%arg0: i32, %arg1: i32) -> (i32, i32) {
    %c0_i32 = arith.constant 0 : i32
    %c0_i32_0 = arith.constant 0 : i32
    %c0_i32_1 = arith.constant 0 : i32
    return %c0_i32, %c0_i32_0 : i32, i32
  }
  func.func @transform_10(%arg0: i32, %arg1: i32) -> (i32, i32) {
    %c0_i32 = arith.constant 0 : i32
    %c0_i32_0 = arith.constant 0 : i32
    %c0_i32_1 = arith.constant 0 : i32
    return %c0_i32, %c0_i32_0 : i32, i32
  }
  func.func @transform_11(%arg0: i32, %arg1: i32) -> (i32, i32) {
    %c0_i32 = arith.constant 0 : i32
    %c0_i32_0 = arith.constant 0 : i32
    %c0_i32_1 = arith.constant 0 : i32
    return %c0_i32, %c0_i32_0 : i32, i32
  }
  func.func @transform_12(%arg0: i32, %arg1: i32) -> (i32, i32) {
    %c0_i32 = arith.constant 0 : i32
    %c0_i32_0 = arith.constant 0 : i32
    %c0_i32_1 = arith.constant 0 : i32
    return %c0_i32, %c0_i32_0 : i32, i32
  }
  func.func @transform_13(%arg0: i32, %arg1: i32) -> (i32, i32) {
    %c0_i32 = arith.constant 0 : i32
    %c0_i32_0 = arith.constant 0 : i32
    %c0_i32_1 = arith.constant 0 : i32
    return %c0_i32, %c0_i32_0 : i32, i32
  }
  func.func @transform_14(%arg0: i32, %arg1: i32) -> (i32, i32) {
    %c0_i32 = arith.constant 0 : i32
    %c0_i32_0 = arith.constant 0 : i32
    %c0_i32_1 = arith.constant 0 : i32
    return %c0_i32, %c0_i32_0 : i32, i32
  }
  func.func @transform_15(%arg0: i32, %arg1: i32) -> (i32, i32) {
    %c0_i32 = arith.constant 0 : i32
    %c0_i32_0 = arith.constant 0 : i32
    %c0_i32_1 = arith.constant 0 : i32
    return %c0_i32, %c0_i32_0 : i32, i32
  }
  func.func @transform_16(%arg0: i32, %arg1: i32) -> (i32, i32) {
    %c0_i32 = arith.constant 0 : i32
    %c0_i32_0 = arith.constant 0 : i32
    %c0_i32_1 = arith.constant 0 : i32
    return %c0_i32, %c0_i32_0 : i32, i32
  }
  func.func @transform_17(%arg0: i32, %arg1: i32) -> (i32, i32) {
    %c0_i32 = arith.constant 0 : i32
    %c0_i32_0 = arith.constant 0 : i32
    %c0_i32_1 = arith.constant 0 : i32
    return %c0_i32, %c0_i32_0 : i32, i32
  }
  func.func @transform_18(%arg0: i32, %arg1: i32) -> (i32, i32, i32) {
    %c0_i32 = arith.constant 0 : i32
    %c0_i32_0 = arith.constant 0 : i32
    %c0_i32_1 = arith.constant 0 : i32
    return %arg0, %c0_i32, %c0_i32_0 : i32, i32, i32
  }
}

module attributes {stable_mosaic.version = 11 : i64} {
  func.func @_project_kernel(%arg0: i32, %arg1: i32, %arg2: memref<1x8x32xbf16, #tpu.memory_space<vmem>>, %arg3: memref<1x32x64xbf16, #tpu.memory_space<vmem>>, %arg4: memref<1x8x64xf32, #tpu.memory_space<vmem>>) attributes {dimension_semantics = [#tpu.dimension_semantics<parallel>, #tpu.dimension_semantics<parallel>], iteration_bounds = array<i64: 2, 1>, scalar_prefetch = 0 : i64, scratch_operands = 0 : i64, tpu.core_type = #tpu.core_type<tc>, window_params = [{transform_indices = @transform_0, window_bounds = array<i64: 1, 8, 32>}, {transform_indices = @transform_1, window_bounds = array<i64: 1, 32, 64>}, {transform_indices = @transform_2, window_bounds = array<i64: 1, 8, 64>}]} {
    %c0 = arith.constant 0 : index
    %c0_0 = arith.constant 0 : index
    %c0_1 = arith.constant 0 : index
    %0 = vector.load %arg2[%c0, %c0_0, %c0_1] : memref<1x8x32xbf16, #tpu.memory_space<vmem>>, vector<1x8x32xbf16>
    %1 = vector.shape_cast %0 : vector<1x8x32xbf16> to vector<8x32xbf16>
    %c0_2 = arith.constant 0 : index
    %c0_3 = arith.constant 0 : index
    %c0_4 = arith.constant 0 : index
    %2 = vector.load %arg3[%c0_2, %c0_3, %c0_4] : memref<1x32x64xbf16, #tpu.memory_space<vmem>>, vector<1x32x64xbf16>
    %3 = vector.shape_cast %2 : vector<1x32x64xbf16> to vector<32x64xbf16>
    %cst = arith.constant dense<0.000000e+00> : vector<8x64xf32>
    %4 = tpu.matmul %1, %3, %cst {dimension_numbers = #tpu.dot_dimension_numbers<[1], [0], [0], [1], [0, 0, 1, 1], [], []>} : vector<8x32xbf16>, vector<32x64xbf16>, vector<8x64xf32> -> vector<8x64xf32>
    %c0_5 = arith.constant 0 : index
    %c0_6 = arith.constant 0 : index
    %c0_7 = arith.constant 0 : index
    %5 = vector.load %arg4[%c0_5, %c0_6, %c0_7] : memref<1x8x64xf32, #tpu.memory_space<vmem>>, vector<1x8x64xf32>
    %6 = vector.shape_cast %5 : vector<1x8x64xf32> to vector<8x64xf32>
    %7 = vector.shape_cast %4 : vector<8x64xf32> to vector<1x8x64xf32>
    tpu.vector_store %arg4[%c0_5, %c0_6, %c0_7], %7 {strides = array<i32>} : memref<1x8x64xf32, #tpu.memory_space<vmem>>, vector<1x8x64xf32>,
    return
  }
  func.func @transform_0(%arg0: i32, %arg1: i32) -> (i32, i32, i32) {
    %c0_i32 = arith.constant 0 : i32
    %c0_i32_0 = arith.constant 0 : i32
    %c0_i32_1 = arith.constant 0 : i32
    return %arg0, %c0_i32, %c0_i32_0 : i32, i32, i32
  }
  func.func @transform_1(%arg0: i32, %arg1: i32) -> (i32, i32, i32) {
    %c0_i32 = arith.constant 0 : i32
    %c0_i32_0 = arith.constant 0 : i32
    return %arg0, %c0_i32, %arg1 : i32, i32, i32
  }
  func.func @transform_2(%arg0: i32, %arg1: i32) -> (i32, i32, i32) {
    %c0_i32 = arith.constant 0 : i32
    %c0_i32_0 = arith.constant 0 : i32
    return %arg0, %c0_i32, %arg1 : i32, i32, i32
  }
}

module attributes {stable_mosaic.version = 11 : i64} {
  func.func @_project_kernel(%arg0: i32, %arg1: i32, %arg2: memref<1x8x32xbf16, #tpu.memory_space<vmem>>, %arg3: memref<1x32x256xbf16, #tpu.memory_space<vmem>>, %arg4: memref<1x8x256xf32, #tpu.memory_space<vmem>>) attributes {dimension_semantics = [#tpu.dimension_semantics<parallel>, #tpu.dimension_semantics<parallel>], iteration_bounds = array<i64: 2, 1>, scalar_prefetch = 0 : i64, scratch_operands = 0 : i64, tpu.core_type = #tpu.core_type<tc>, window_params = [{transform_indices = @transform_0, window_bounds = array<i64: 1, 8, 32>}, {transform_indices = @transform_1, window_bounds = array<i64: 1, 32, 256>}, {transform_indices = @transform_2, window_bounds = array<i64: 1, 8, 256>}]} {
    %c0 = arith.constant 0 : index
    %c0_0 = arith.constant 0 : index
    %c0_1 = arith.constant 0 : index
    %0 = vector.load %arg2[%c0, %c0_0, %c0_1] : memref<1x8x32xbf16, #tpu.memory_space<vmem>>, vector<1x8x32xbf16>
    %1 = vector.shape_cast %0 : vector<1x8x32xbf16> to vector<8x32xbf16>
    %c0_2 = arith.constant 0 : index
    %c0_3 = arith.constant 0 : index
    %c0_4 = arith.constant 0 : index
    %2 = vector.load %arg3[%c0_2, %c0_3, %c0_4] : memref<1x32x256xbf16, #tpu.memory_space<vmem>>, vector<1x32x256xbf16>
    %3 = vector.shape_cast %2 : vector<1x32x256xbf16> to vector<32x256xbf16>
    %cst = arith.constant dense<0.000000e+00> : vector<8x256xf32>
    %4 = tpu.matmul %1, %3, %cst {dimension_numbers = #tpu.dot_dimension_numbers<[1], [0], [0], [1], [0, 0, 1, 1], [], []>} : vector<8x32xbf16>, vector<32x256xbf16>, vector<8x256xf32> -> vector<8x256xf32>
    %c0_5 = arith.constant 0 : index
    %c0_6 = arith.constant 0 : index
    %c0_7 = arith.constant 0 : index
    %5 = vector.load %arg4[%c0_5, %c0_6, %c0_7] : memref<1x8x256xf32, #tpu.memory_space<vmem>>, vector<1x8x256xf32>
    %6 = vector.shape_cast %5 : vector<1x8x256xf32> to vector<8x256xf32>
    %7 = vector.shape_cast %4 : vector<8x256xf32> to vector<1x8x256xf32>
    tpu.vector_store %arg4[%c0_5, %c0_6, %c0_7], %7 {strides = array<i32>} : memref<1x8x256xf32, #tpu.memory_space<vmem>>, vector<1x8x256xf32>,
    return
  }
  func.func @transform_0(%arg0: i32, %arg1: i32) -> (i32, i32, i32) {
    %c0_i32 = arith.constant 0 : i32
    %c0_i32_0 = arith.constant 0 : i32
    %c0_i32_1 = arith.constant 0 : i32
    return %arg0, %c0_i32, %c0_i32_0 : i32, i32, i32
  }
  func.func @transform_1(%arg0: i32, %arg1: i32) -> (i32, i32, i32) {
    %c0_i32 = arith.constant 0 : i32
    %c0_i32_0 = arith.constant 0 : i32
    return %arg0, %c0_i32, %arg1 : i32, i32, i32
  }
  func.func @transform_2(%arg0: i32, %arg1: i32) -> (i32, i32, i32) {
    %c0_i32 = arith.constant 0 : i32
    %c0_i32_0 = arith.constant 0 : i32
    return %arg0, %c0_i32, %arg1 : i32, i32, i32
  }
}

module attributes {stable_mosaic.version = 11 : i64} {
  func.func @_project_kernel(%arg0: i32, %arg1: i32, %arg2: memref<1x8x32xbf16, #tpu.memory_space<vmem>>, %arg3: memref<1x32x16xbf16, #tpu.memory_space<vmem>>, %arg4: memref<1x8x16xf32, #tpu.memory_space<vmem>>) attributes {dimension_semantics = [#tpu.dimension_semantics<parallel>, #tpu.dimension_semantics<parallel>], iteration_bounds = array<i64: 2, 1>, scalar_prefetch = 0 : i64, scratch_operands = 0 : i64, tpu.core_type = #tpu.core_type<tc>, window_params = [{transform_indices = @transform_0, window_bounds = array<i64: 1, 8, 32>}, {transform_indices = @transform_1, window_bounds = array<i64: 1, 32, 16>}, {transform_indices = @transform_2, window_bounds = array<i64: 1, 8, 16>}]} {
    %c0 = arith.constant 0 : index
    %c0_0 = arith.constant 0 : index
    %c0_1 = arith.constant 0 : index
    %0 = vector.load %arg2[%c0, %c0_0, %c0_1] : memref<1x8x32xbf16, #tpu.memory_space<vmem>>, vector<1x8x32xbf16>
    %1 = vector.shape_cast %0 : vector<1x8x32xbf16> to vector<8x32xbf16>
    %c0_2 = arith.constant 0 : index
    %c0_3 = arith.constant 0 : index
    %c0_4 = arith.constant 0 : index
    %2 = vector.load %arg3[%c0_2, %c0_3, %c0_4] : memref<1x32x16xbf16, #tpu.memory_space<vmem>>, vector<1x32x16xbf16>
    %3 = vector.shape_cast %2 : vector<1x32x16xbf16> to vector<32x16xbf16>
    %cst = arith.constant dense<0.000000e+00> : vector<8x16xf32>
    %4 = tpu.matmul %1, %3, %cst {dimension_numbers = #tpu.dot_dimension_numbers<[1], [0], [0], [1], [0, 0, 1, 1], [], []>} : vector<8x32xbf16>, vector<32x16xbf16>, vector<8x16xf32> -> vector<8x16xf32>
    %c0_5 = arith.constant 0 : index
    %c0_6 = arith.constant 0 : index
    %c0_7 = arith.constant 0 : index
    %5 = vector.load %arg4[%c0_5, %c0_6, %c0_7] : memref<1x8x16xf32, #tpu.memory_space<vmem>>, vector<1x8x16xf32>
    %6 = vector.shape_cast %5 : vector<1x8x16xf32> to vector<8x16xf32>
    %7 = vector.shape_cast %4 : vector<8x16xf32> to vector<1x8x16xf32>
    tpu.vector_store %arg4[%c0_5, %c0_6, %c0_7], %7 {strides = array<i32>} : memref<1x8x16xf32, #tpu.memory_space<vmem>>, vector<1x8x16xf32>,
    return
  }
  func.func @transform_0(%arg0: i32, %arg1: i32) -> (i32, i32, i32) {
    %c0_i32 = arith.constant 0 : i32
    %c0_i32_0 = arith.constant 0 : i32
    %c0_i32_1 = arith.constant 0 : i32
    return %arg0, %c0_i32, %c0_i32_0 : i32, i32, i32
  }
  func.func @transform_1(%arg0: i32, %arg1: i32) -> (i32, i32, i32) {
    %c0_i32 = arith.constant 0 : i32
    %c0_i32_0 = arith.constant 0 : i32
    return %arg0, %c0_i32, %arg1 : i32, i32, i32
  }
  func.func @transform_2(%arg0: i32, %arg1: i32) -> (i32, i32, i32) {
    %c0_i32 = arith.constant 0 : i32
    %c0_i32_0 = arith.constant 0 : i32
    return %arg0, %c0_i32, %arg1 : i32, i32, i32
  }
}

</mosaic_0001>

<bundles_post_ra>
// kernel: decoder_forward.18
= control target key start
LH: loop header
LB: loop body
LE: loop exit
PB: predicated region body
PF: predicated region fallthrough
CT: control target
= control target key end

     0   :  { %s607_s18 = smov 0   ;;  %s657_s0 = inlined_call_operand.vmem [shape: f32[2,8,32], index: 0, kind: input, shape index: {}]   ;;  %s658_s1 = inlined_call_operand.vmem [shape: bf16[32,32], index: 1, kind: input, shape index: {}]   ;;  %s659_s2 = inlined_call_operand.vmem [shape: bf16[32,32], index: 2, kind: input, shape index: {}]   ;;  %s660_s3 = inlined_call_operand.vmem [shape: bf16[32,32], index: 3, kind: input, shape index: {}]   ;;  %s661_s4 = inlined_call_operand.vmem [shape: f32[8,32], index: 4, kind: input, shape index: {}]   ;;  %s662_s5 = inlined_call_operand.vmem [shape: bf16[2,8,32], index: 5, kind: output, shape index: {}]  }
   0x1 LB: > { %s498_s19 = sadd.s32 4294967295, %s573_s18   ;;  %p502_p0 = scmp.ge.s32.totalorder %s573_s18, 1  ;;  %s573_s18 = sphi %s607_s18, %s15_s18  }
   0x2   : > { %p186_p1 = scmp.lt.s32.totalorder %s573_s18, 3 }
   0x4   : > { %p187_p2 = pnand %p502_p0, %p186_p1 }
   0x5   : > { %p212_p3 = scmp.lt.s32.totalorder (!%p187_p2), %s498_s19, 1 }
   0x6   : > { %190 = sbr.rel (%p187_p2) target bundleno = 922 (0x39a), region = 40 }
   0xb   : > { %s664_s19 = smov (!%p212_p3, %s498_s19), 1  ;;  %vm223_vm0 = vcmask 261120   ;;  %v559_v7 = vld [vmem:[%s658_s1 + $0x8] sm:$0xff]   ;;  %v575_v8 = vmov 0.0   ;;  %vm576_vm1 = vmmov 0   ;;  %v560_v9 = vld [vmem:[%s658_s1] sm:$0xff]   ;;  %v238_v13 = vlaneseq }
   0xc   : > { %s503_s20 = sshll.u32 %s664_s19, 3  ;;  %525 = vmatprep.subr.bf16.mxu0 %v575_v8  ;;  %529 = vmatprep.mubr.msk.bf16.mxu0 %vm576_vm1, %v575_v8  ;;  %v221_v16 = vld [vmem:[%s661_s4] sm:$0xff]  ;;  %v561_v25 = vld [vmem:[%s659_s2 + $0x8] sm:$0xff]   ;;  %s504_s13 = sshll.u32 %s664_s19, 2  ;;  %vm443_vm2 = vcmask 257024  }
   0xd   : > { %s215_s23 = scalar_lea.vmem %s657_s0, %s503_s20  ;;  %526 = vmatpush3.bf16.msra.mxu0 %v559_v7  ;;  %533 = vmatprep.subr.bf16.mxu1 %v575_v8  ;;  %v239_v14 = vshrl.u32 %v238_v13, 7  ;;  %v562_v26 = vld [vmem:[%s659_s2] sm:$0xff]   ;;  %v563_v27 = vld [vmem:[%s660_s3 + $0x8] sm:$0xff]   ;;  %s219_s16 = scalar_lea.vmem %s662_s5, %s504_s13 }
   0xe   : > { %v222_v0 = vld [vmem:[%s215_s23] sm:$0xff]  ;;  %527 = vmatprep.subr.bf16.mxu0 %v575_v8  ;;  %537 = vmatprep.mubr.msk.bf16.mxu1 %vm576_vm1, %v575_v8 }
   0xf   : > { %v224_v1 = vsel %vm223_vm0, %v222_v0, 0.0  ;;  %v240_v15 = vsub.s32 0, %v239_v14  ;;  %v245_v17 = vsub.s32 1, %v239_v14  ;;  %534 = vmatpush3.bf16.msra.mxu1 %v561_v25  ;;  %v255_v28 = vsub.s32 5, %v239_v14  ;;  %v564_v37 = vld [vmem:[%s660_s3] sm:$0xff]  }
  0x10   : > { %225 = vadd.xlane.f32.xlu0 %v224_v1  ;;  %535 = vmatprep.subr.bf16.mxu1 %v575_v8  ;;  %v320_v38 = vsub.s32 6, %v239_v14  ;;  %v385_v47 = vsub.s32 7, %v239_v14 }
  0x11   : > { %528 = vmatpush3.bf16.msra.mxu0 %v560_v9  ;;  %v241_v18 = vrot.slane %v221_v16, %v240_v15  ;;  %v246_v21 = vrot.slane %v221_v16, %v245_v17  ;;  %v256_v29 = vrot.slane %v221_v16, %v255_v28 }
  0x12   : > { %541 = vmatprep.subr.bf16.mxu0 %v575_v8  ;;  %v321_v39 = vrot.slane %v221_v16, %v320_v38  ;;  %v386_v48 = vrot.slane %v221_v16, %v385_v47 }
  0x13   : > { %536 = vmatpush3.bf16.msra.mxu1 %v562_v26 }
  0x99   : > { %v226_v2 = vpop.xlane.xlu0 %225 }
  0x9a   : > { %v228_v3 = vmul.f32 0.03125, %v226_v2 }
  0x9c   : > { %v229_v4 = vsub.f32 %v222_v0, %v228_v3 }
  0x9e   : > { %v230_v5 = vmul.f32 %v229_v4, %v229_v4 }
  0xa0   : > { %v231_v6 = vsel %vm223_vm0, %v230_v5, 0.0 }
  0xa1   : > { %232 = vadd.xlane.f32.xlu0 %v231_v6 }
 0x12a   : > { %v233_v10 = vpop.xlane.xlu0 %232 }
 0x12b   : > { %v234_v11 = vmul.f32 0.03125, %v233_v10 }
 0x12d   : > { %v235_v12 = vadd.f32 1e-05, %v234_v11 }
 0x12f   : > { %565 = vrsqrt.f32 %v235_v12 }
 0x13c   : > { %v566_v19 = vpop.eup %565 }
 0x13d   : > { %v237_v20 = vmul.f32 %v566_v19, %v229_v4 }
 0x13f   : > { %v242_v22 = vmul.f32 %v241_v18, %v237_v20 }
 0x141   : > { %v247_v23 = vadd.f32 %v246_v21, %v242_v22 }
 0x143   : > { %v248_v24 = vpack.c.bf16 %v247_v23, %v247_v23 }
 0x145   : > { %530 = vmatmul.mubr.msk.bf16.vlgmr.msra.gmra.mxu0 %vm223_vm0, %v248_v24 }
 0x146   : > { %545 = vmatprep.mubr.msk.bf16.mxu0 %vm576_vm1, %v575_v8  ;;  %542 = vmatpush3.bf16.msra.mxu0 %v563_v27 }
 0x147   : > { %543 = vmatprep.subr.bf16.mxu0 %v575_v8 }
 0x14a   : > { %544 = vmatpush3.bf16.msra.mxu0 %v564_v37 }
 0x205   : > { %v306_v30 = vpop.f32.mrf.mxu0 }
 0x206   : > { %v307_v31 = vadd.f32 %v306_v30, %v256_v29 }
 0x207   : > { %v531_v32 = vpop.f32.mrf.mxu0 }
 0x208   : > { %v312_v33 = vmax.f32 %v307_v31, 0.0 }
 0x209   : > { %v309_v34 = vpop.f32.mrf.mxu0 }
 0x20a   : > { %v313_v35 = vpack.c.bf16 %v312_v33, %v312_v33 }
 0x20b   : > { %v532_v36 = vpop.f32.mrf.mxu0 }
 0x20c   : > { %538 = vmatmul.mubr.msk.bf16.vlgmr.msra.gmra.mxu1 %vm223_vm0, %v313_v35 }
 0x2cc   : > { %v371_v40 = vpop.f32.mrf.mxu1 }
 0x2cd   : > { %v372_v41 = vadd.f32 %v371_v40, %v321_v39 }
 0x2ce   : > { %v539_v42 = vpop.f32.mrf.mxu1 }
 0x2cf   : > { %v377_v43 = vmax.f32 %v372_v41, 0.0 }
 0x2d0   : > { %v374_v44 = vpop.f32.mrf.mxu1 }
 0x2d1   : > { %v378_v45 = vpack.c.bf16 %v377_v43, %v377_v43 }
 0x2d2   : > { %v540_v46 = vpop.f32.mrf.mxu1 }
 0x2d3   : > { %546 = vmatmul.mubr.msk.bf16.vlgmr.msra.gmra.mxu0 %vm223_vm0, %v378_v45 }
 0x393   : > { %v436_v49 = vpop.f32.mrf.mxu0 }
 0x394   : > { %v437_v50 = vadd.f32 %v436_v49, %v386_v48 }
 0x395   : > { %v547_v51 = vpop.f32.mrf.mxu0 }
 0x396   : > { %v442_v52 = vpack.c.bf16 %v437_v50, %v437_v50 }
 0x397   : > { %v439_v53 = vpop.f32.mrf.mxu0 }
 0x398   : > { %444 = vst.msk [vmem:[%s219_s16] sm:$0xf] %vm443_vm2, %v442_v52 }
 0x399   : > { %v548_v54 = vpop.f32.mrf.mxu0 }
 0x39a PF: > { %s15_s18 = sadd.s32 1, %s573_s18  }
 0x39b   : > { %p12_p4 = scmp.ge.s32.totalorder %s15_s18, 4  }
 0x39d   :  { %14 = sbr.rel (!%p12_p4) target bundleno = 1 (0x1), region = 70 }

// kernel: decoder_forward.19
= control target key start
LH: loop header
LB: loop body
LE: loop exit
PB: predicated region body
PF: predicated region fallthrough
CT: control target
= control target key end

     0   :  { %s463_s9 = smov 0   ;;  %s465_s10 = smov 0   ;;  %s499_s0 = inlined_call_operand.vmem [shape: bf16[2,8,32], index: 0, kind: input, shape index: {}]   ;;  %s500_s1 = inlined_call_operand.vmem [shape: bf16[2,32,144], index: 1, kind: input, shape index: {}]   ;;  %s501_s2 = inlined_call_operand.vmem [shape: f32[2,8,144], index: 2, kind: output, shape index: {}]  }
   0x1   :  { %s467_s11 = smov 0  }
   0x2 LB: > { %s24_s12 = sadd.s32 1, %s441_s10  ;;  %p377_p0 = scmp.ge.s32.totalorder %s445_s11, 1  ;;  %s445_s11 = sphi %s467_s11, %s12_s11   ;;  %s441_s10 = sphi %s465_s10, %s503_s10   ;;  %s437_s9 = sphi %s463_s9, %s502_s9  }
   0x3   : > { %p26_p1 = scmp.ge.s32.totalorder %s24_s12, 2  ;;  %p142_p2 = scmp.lt.s32.totalorder %s445_s11, 3 }
   0x5   : > { %s505_s12 = smov (%p26_p1, %s24_s12), 0  ;;  %p143_p3 = pnand %p377_p0, %p142_p2 }
   0x6   : > { %p176_p4 = scmp.lt.s32.totalorder (!%p143_p3), %s437_s9, 1 }
   0x7   : > { %146 = sbr.rel (%p143_p3) target bundleno = 223 (0xdf), region = 28 }
   0xc   : > { %v447_v0 = vmov 0   ;;  %s507_s9 = smov (!%p176_p4, %s437_s9), 1  ;;  %vm226_vm0 = vcmask 261120   ;;  %vm272_vm1 = vcmask 130048  }
   0xd   : > { %262 = vmatprep.mubr.bf16.mxu0 %v447_v0  ;;  %s390_s13 = sshll.u32 %s507_s9, 5  ;;  %s378_s17 = sshll.u32 %s507_s9, 2 }
   0xe   : > { %s188_s16 = scalar_lea.vmem %s500_s1, %s390_s13  ;;  %s179_s20 = scalar_lea.vmem %s499_s0, %s378_s17 }
   0xf   : > { %v417_v1 = vld [vmem:[%s188_s16 + $0x14] ss:$8 sps:$4 sm:$0xff]   ;;  %v419_v2 = vld [vmem:[%s188_s16 + $0x10] ss:$8 sps:$4 sm:$0xff]   ;;  %v420_v3 = vld [vmem:[%s188_s16 + $0x4] ss:$8 sps:$4 sm:$0xff]  }
  0x10   : > { %242 = vmatprep.subr.bf16.mxu0 %v417_v1  ;;  %v422_v4 = vld [vmem:[%s188_s16] ss:$8 sps:$4 sm:$0xff]   ;;  %s391_s21 = sshll.u32 %s507_s9, 4 }
  0x11   : > { %243 = vmatpush1.bf16.msra.mxu0 %v419_v2  ;;  %v201_v5 = vld [vmem:[%s179_s20] sm:$0xf]  ;;  %s198_s24 = scalar_lea.vmem %s501_s2, %s391_s21 }
  0x12   : > { %244 = vmatprep.subr.bf16.mxu0 %v420_v3 }
  0x15   : > { %245 = vmatpush1.bf16.msra.mxu0 %v422_v4 }
  0x18   : > { %387 = vmatmul.mubr.msk.bf16.vlgmr.msra.gmra.mxu0 %vm226_vm0, %v201_v5 }
  0xd8   : > { %v264_v6 = vpop.f32.mrf.mxu0 }
  0xd9   : > { %271 = vst [vmem:[%s198_s24] sm:$0xff] %v264_v6 }
  0xda   : > { %v266_v7 = vpop.f32.mrf.mxu0 }
  0xdb   : > { %273 = vst.msk [vmem:[%s198_s24 + $0x8] sm:$0xff] %vm272_vm1, %v266_v7 }
  0xdc   : > { %v268_v8 = vpop.f32.mrf.mxu0 }
  0xde   : > { %v269_v9 = vpop.f32.mrf.mxu0 }
  0xdf PF: > { %s12_s11 = sadd.s32 1, %s445_s11   ;;  %s502_s9 = smov %s441_s10 }
  0xe0   : > { %p9_p5 = scmp.ge.s32.totalorder %s12_s11, 4   ;;  %s503_s10 = smov %s505_s12 }
  0xe2   :  { %11 = sbr.rel (!%p9_p5) target bundleno = 2 (0x2), region = 61 }

// kernel: decoder_forward.21
= control target key start
LH: loop header
LB: loop body
LE: loop exit
PB: predicated region body
PF: predicated region fallthrough
CT: control target
= control target key end

     0   :  { %s1018_s30 = smov 0   ;;  %s1135_s0 = inlined_call_operand.vmem [shape: f32[2,8,32], index: 0, kind: input, shape index: {}]   ;;  %s1136_s1 = inlined_call_operand.vmem [shape: bf16[32,32], index: 1, kind: input, shape index: {}]   ;;  %s1137_s2 = inlined_call_operand.vmem [shape: bf16[32,32], index: 2, kind: input, shape index: {}]   ;;  %s1138_s3 = inlined_call_operand.vmem [shape: bf16[32,32], index: 3, kind: input, shape index: {}]   ;;  %s1139_s4 = inlined_call_operand.vmem [shape: bf16[32,32], index: 4, kind: input, shape index: {}]   ;;  %s1140_s5 = inlined_call_operand.vmem [shape: bf16[32,32], index: 5, kind: input, shape index: {}]   ;;  %s1141_s6 = inlined_call_operand.vmem [shape: bf16[32,32], index: 6, kind: input, shape index: {}]   ;;  %s1142_s7 = inlined_call_operand.vmem [shape: f32[8,32], index: 7, kind: input, shape index: {}]   ;;  %s1143_s8 = inlined_call_operand.vmem [shape: bf16[2,8,32], index: 8, kind: output, shape index: {0}]   ;;  %s1144_s9 = inlined_call_operand.vmem [shape: bf16[2,8,32], index: 9, kind: output, shape index: {1}]  }
   0x1 LB: > { %s840_s10 = sadd.s32 4294967295, %s964_s30   ;;  %p844_p0 = scmp.ge.s32.totalorder %s964_s30, 1  ;;  %s964_s30 = sphi %s1018_s30, %s20_s30  }
   0x2   : > { %p289_p1 = scmp.lt.s32.totalorder %s964_s30, 3 }
   0x4   : > { %p290_p2 = pnand %p844_p0, %p289_p1 }
   0x5   : > { %p327_p3 = scmp.lt.s32.totalorder (!%p290_p2), %s840_s10, 1 }
   0x6   : > { %293 = sbr.rel (%p290_p2) target bundleno = 1129 (0x469), region = 52 }
   0xb   : > { %s1146_s10 = smov (!%p327_p3, %s840_s10), 1  ;;  %vm342_vm0 = vcmask 261120   ;;  %v944_v7 = vld [vmem:[%s1136_s1 + $0x8] sm:$0xff]   ;;  %v966_v8 = vmov 0.0   ;;  %vm967_vm1 = vmmov 0   ;;  %v945_v9 = vld [vmem:[%s1136_s1] sm:$0xff]   ;;  %v357_v14 = vlaneseq }
   0xc   : > { %s845_s11 = sshll.u32 %s1146_s10, 3  ;;  %886 = vmatprep.subr.bf16.mxu0 %v966_v8  ;;  %890 = vmatprep.mubr.msk.bf16.mxu0 %vm967_vm1, %v966_v8  ;;  %v946_v10 = vld [vmem:[%s1137_s2 + $0x8] sm:$0xff]   ;;  %v1058_v17 = vld [vmem:[%s1142_s7] sm:$0xff]  ;;  %s846_s22 = sshll.u32 %s1146_s10, 2  ;;  %vm562_vm2 = vcmask 257024  }
   0xd   : > { %s330_s14 = scalar_lea.vmem %s1135_s0, %s845_s11  ;;  %887 = vmatpush3.bf16.msra.mxu0 %v944_v7  ;;  %894 = vmatprep.subr.bf16.mxu1 %v966_v8  ;;  %v1052_v15 = vshrl.u32 %v357_v14, 7  ;;  %v947_v26 = vld [vmem:[%s1137_s2] sm:$0xff]   ;;  %v950_v27 = vld [vmem:[%s1138_s3 + $0x8] sm:$0xff]   ;;  %s334_s25 = scalar_lea.vmem %s1143_s8, %s846_s22 }
   0xe   : > { %v341_v0 = vld [vmem:[%s330_s14] sm:$0xff]  ;;  %888 = vmatprep.subr.bf16.mxu0 %v966_v8  ;;  %898 = vmatprep.mubr.msk.bf16.mxu1 %vm967_vm1, %v966_v8  ;;  %v948_v35 = vld [vmem:[%s1139_s4 + $0x8] sm:$0xff]   ;;  %s338_s27 = scalar_lea.vmem %s1144_s9, %s846_s22 }
   0xf   : > { %v343_v1 = vsel %vm342_vm0, %v341_v0, 0.0  ;;  %895 = vmatpush3.bf16.msra.mxu1 %v946_v10  ;;  %v359_v16 = vsub.s32 0, %v1052_v15  ;;  %v364_v18 = vsub.s32 1, %v1052_v15  ;;  %v374_v28 = vsub.s32 2, %v1052_v15  ;;  %v949_v38 = vld [vmem:[%s1139_s4] sm:$0xff]   ;;  %v952_v48 = vld [vmem:[%s1140_s5 + $0x8] sm:$0xff]  }
  0x10   : > { %344 = vadd.xlane.f32.xlu0 %v343_v1  ;;  %896 = vmatprep.subr.bf16.mxu1 %v966_v8  ;;  %v951_v39 = vld [vmem:[%s1138_s3] sm:$0xff]   ;;  %v439_v40 = vsub.s32 3, %v1052_v15  ;;  %v570_v44 = vsub.s32 5, %v1052_v15  ;;  %v954_v60 = vld [vmem:[%s1141_s6 + $0x8] sm:$0xff]   ;;  %v504_v62 = vsub.s32 4, %v1052_v15 }
  0x11   : > { %889 = vmatpush3.bf16.msra.mxu0 %v945_v9  ;;  %v360_v19 = vrot.slane %v1058_v17, %v359_v16  ;;  %v365_v22 = vrot.slane %v1058_v17, %v364_v18  ;;  %v375_v29 = vrot.slane %v1058_v17, %v374_v28  ;;  %v953_v53 = vld [vmem:[%s1140_s5] sm:$0xff]   ;;  %v697_v16 = vsub.s32 7, %v1052_v15 }
  0x12   : > { %902 = vmatprep.subr.bf16.mxu0 %v966_v8  ;;  %v440_v41 = vrot.slane %v1058_v17, %v439_v40  ;;  %v571_v50 = vrot.slane %v1058_v17, %v570_v44  ;;  %v955_v61 = vld [vmem:[%s1141_s6] sm:$0xff]   ;;  %v505_v63 = vrot.slane %v1058_v17, %v504_v62 }
  0x13   : > { %897 = vmatpush3.bf16.msra.mxu1 %v947_v26  ;;  %v698_v18 = vrot.slane %v1058_v17, %v697_v16 }
  0x14   : > { %910 = vmatprep.subr.bf16.mxu1 %v966_v8 }
  0x99   : > { %v345_v2 = vpop.xlane.xlu0 %344 }
  0x9a   : > { %v347_v3 = vmul.f32 0.03125, %v345_v2  ;;  %v632_v2 = vsub.s32 6, %v1052_v15 }
  0x9c   : > { %v348_v4 = vsub.f32 %v341_v0, %v347_v3 }
  0x9e   : > { %v349_v5 = vmul.f32 %v348_v4, %v348_v4 }
  0xa0   : > { %v350_v6 = vsel %vm342_vm0, %v349_v5, 0.0 }
  0xa1   : > { %351 = vadd.xlane.f32.xlu0 %v350_v6  ;;  %v633_v6 = vrot.slane %v1058_v17, %v632_v2 }
 0x12a   : > { %v352_v11 = vpop.xlane.xlu0 %351 }
 0x12b   : > { %v353_v12 = vmul.f32 0.03125, %v352_v11 }
 0x12d   : > { %v354_v13 = vadd.f32 1e-05, %v353_v12 }
 0x12f   : > { %956 = vrsqrt.f32 %v354_v13 }
 0x13c   : > { %v957_v20 = vpop.eup %956 }
 0x13d   : > { %v356_v21 = vmul.f32 %v957_v20, %v348_v4 }
 0x13f   : > { %v361_v23 = vmul.f32 %v360_v19, %v356_v21 }
 0x141   : > { %v366_v24 = vadd.f32 %v365_v22, %v361_v23 }
 0x143   : > { %v367_v25 = vpack.c.bf16 %v366_v24, %v366_v24 }
 0x145   : > { %891 = vmatmul.mubr.msk.bf16.vlgmr.msra.gmra.mxu0 %vm342_vm0, %v367_v25 }
 0x146   : > { %906 = vmatprep.mubr.msk.bf16.mxu0 %vm967_vm1, %v966_v8  ;;  %903 = vmatpush3.bf16.msra.mxu0 %v950_v27 }
 0x147   : > { %904 = vmatprep.subr.bf16.mxu0 %v966_v8 }
 0x14a   : > { %905 = vmatpush3.bf16.msra.mxu0 %v951_v39 }
 0x14b   : > { %918 = vmatprep.subr.bf16.mxu0 %v966_v8 }
 0x205   : > { %v425_v30 = vpop.f32.mrf.mxu0 }
 0x206   : > { %v426_v31 = vadd.f32 %v425_v30, %v375_v29 }
 0x207   : > { %v892_v32 = vpop.f32.mrf.mxu0 }
 0x208   : > { %v431_v33 = vmax.f32 %v426_v31, 0.0 }
 0x209   : > { %v428_v34 = vpop.f32.mrf.mxu0 }
 0x20a   : > { %v432_v36 = vpack.c.bf16 %v431_v33, %v431_v33 }
 0x20b   : > { %v893_v37 = vpop.f32.mrf.mxu0 }
 0x20c   : > { %899 = vmatmul.mubr.msk.bf16.vlgmr.msra.gmra.mxu1 %vm342_vm0, %v432_v36 }
 0x20d   : > { %911 = vmatpush3.bf16.msra.mxu1 %v948_v35  ;;  %914 = vmatprep.mubr.msk.bf16.mxu1 %vm967_vm1, %v966_v8 }
 0x20e   : > { %912 = vmatprep.subr.bf16.mxu1 %v966_v8 }
 0x211   : > { %913 = vmatpush3.bf16.msra.mxu1 %v949_v38 }
 0x212   : > { %926 = vmatprep.subr.bf16.mxu1 %v966_v8 }
 0x214   : > { %915 = vmatmul.mubr.msk.bf16.vlgmr.msra.gmra.mxu1 %vm342_vm0, %v367_v25 }
 0x215   : > { %930 = vmatprep.mubr.msk.bf16.mxu1 %vm967_vm1, %v966_v8  ;;  %927 = vmatpush3.bf16.msra.mxu1 %v954_v60 }
 0x216   : > { %928 = vmatprep.subr.bf16.mxu1 %v966_v8 }
 0x219   : > { %929 = vmatpush3.bf16.msra.mxu1 %v955_v61 }
 0x2cc   : > { %v490_v42 = vpop.f32.mrf.mxu1 }
 0x2cd   : > { %v491_v43 = vadd.f32 %v490_v42, %v440_v41 }
 0x2ce   : > { %v900_v45 = vpop.f32.mrf.mxu1 }
 0x2cf   : > { %v496_v46 = vmax.f32 %v491_v43, 0.0 }
 0x2d0   : > { %v493_v47 = vpop.f32.mrf.mxu1 }
 0x2d1   : > { %v497_v49 = vpack.c.bf16 %v496_v46, %v496_v46 }
 0x2d2   : > { %v901_v51 = vpop.f32.mrf.mxu1 }
 0x2d3   : > { %907 = vmatmul.mubr.msk.bf16.vlgmr.msra.gmra.mxu0 %vm342_vm0, %v497_v49 }
 0x2d4   : > { %919 = vmatpush3.bf16.msra.mxu0 %v952_v48  ;;  %v618_v52 = vpop.f32.mrf.mxu1  ;;  %922 = vmatprep.mubr.msk.bf16.mxu0 %vm967_vm1, %v966_v8 }
 0x2d5   : > { %v619_v54 = vadd.f32 %v618_v52, %v571_v50  ;;  %920 = vmatprep.subr.bf16.mxu0 %v966_v8 }
 0x2d6   : > { %v916_v55 = vpop.f32.mrf.mxu1 }
 0x2d7   : > { %v624_v56 = vmax.f32 %v619_v54, 0.0 }
 0x2d8   : > { %921 = vmatpush3.bf16.msra.mxu0 %v953_v53  ;;  %v621_v57 = vpop.f32.mrf.mxu1 }
 0x2d9   : > { %v625_v58 = vpack.c.bf16 %v624_v56, %v624_v56 }
 0x2da   : > { %v917_v59 = vpop.f32.mrf.mxu1 }
 0x2db   : > { %923 = vmatmul.mubr.msk.bf16.vlgmr.msra.gmra.mxu0 %vm342_vm0, %v625_v58 }
 0x393   : > { %v555_v0 = vpop.f32.mrf.mxu0 }
 0x394   : > { %v556_v1 = vadd.f32 %v555_v0, %v505_v63 }
 0x395   : > { %v908_v3 = vpop.f32.mrf.mxu0 }
 0x396   : > { %v561_v4 = vpack.c.bf16 %v556_v1, %v556_v1 }
 0x397   : > { %v558_v5 = vpop.f32.mrf.mxu0 }
 0x398   : > { %563 = vst.msk [vmem:[%s334_s25] sm:$0xf] %vm562_vm2, %v561_v4 }
 0x399   : > { %v909_v7 = vpop.f32.mrf.mxu0 }
 0x39b   : > { %v683_v8 = vpop.f32.mrf.mxu0 }
 0x39c   : > { %v684_v9 = vadd.f32 %v683_v8, %v633_v6 }
 0x39d   : > { %v924_v10 = vpop.f32.mrf.mxu0 }
 0x39e   : > { %v689_v11 = vmax.f32 %v684_v9, 0.0 }
 0x39f   : > { %v686_v12 = vpop.f32.mrf.mxu0 }
 0x3a0   : > { %v690_v13 = vpack.c.bf16 %v689_v11, %v689_v11 }
 0x3a1   : > { %v925_v14 = vpop.f32.mrf.mxu0 }
 0x3a2   : > { %931 = vmatmul.mubr.msk.bf16.vlgmr.msra.gmra.mxu1 %vm342_vm0, %v690_v13 }
 0x462   : > { %v748_v19 = vpop.f32.mrf.mxu1 }
 0x463   : > { %v749_v20 = vadd.f32 %v748_v19, %v698_v18 }
 0x464   : > { %v932_v21 = vpop.f32.mrf.mxu1 }
 0x465   : > { %v754_v22 = vpack.c.bf16 %v749_v20, %v749_v20 }
 0x466   : > { %v751_v23 = vpop.f32.mrf.mxu1 }
 0x467   : > { %755 = vst.msk [vmem:[%s338_s27] sm:$0xf] %vm562_vm2, %v754_v22 }
 0x468   : > { %v933_v24 = vpop.f32.mrf.mxu1 }
 0x469 PF: > { %s20_s30 = sadd.s32 1, %s964_s30  }
 0x46a   : > { %p17_p4 = scmp.ge.s32.totalorder %s20_s30, 4  }
 0x46c   :  { %19 = sbr.rel (!%p17_p4) target bundleno = 1 (0x1), region = 94 }

// kernel: decoder_forward.20
= control target key start
LH: loop header
LB: loop body
LE: loop exit
PB: predicated region body
PF: predicated region fallthrough
CT: control target
= control target key end

     0   :  { %s3259_s27 = smov 0   ;;  %s3261_s28 = smov 0   ;;  %s3755_s0 = inlined_call_operand.vmem [shape: f32[2,8,32], index: 0, kind: input, shape index: {}]   ;;  %s3756_s1 = inlined_call_operand.vmem [shape: bf16[2,16,32], index: 1, kind: input, shape index: {}]   ;;  %s3757_s2 = inlined_call_operand.vmem [shape: f32[8,32], index: 2, kind: input, shape index: {}]   ;;  %s3758_s3 = inlined_call_operand.vmem [shape: s8[2,8,16], index: 3, kind: input, shape index: {}]   ;;  %s3759_s4 = inlined_call_operand.vmem [shape: bf16[32,32], index: 4, kind: input, shape index: {}]   ;;  %s3760_s5 = inlined_call_operand.vmem [shape: bf16[32,32], index: 5, kind: input, shape index: {}]   ;;  %s3761_s6 = inlined_call_operand.vmem [shape: bf16[32,32], index: 6, kind: input, shape index: {}]   ;;  %s3762_s7 = inlined_call_operand.vmem [shape: bf16[32,32], index: 7, kind: input, shape index: {}]   ;;  %s3763_s8 = inlined_call_operand.vmem [shape: bf16[32,32], index: 8, kind: input, shape index: {}]   ;;  %s3764_s9 = inlined_call_operand.vmem [shape: bf16[32,32], index: 9, kind: input, shape index: {}]   ;;  %s3765_s10 = inlined_call_operand.vmem [shape: bf16[32,32], index: 10, kind: input, shape index: {}]   ;;  %s3766_s11 = inlined_call_operand.vmem [shape: bf16[32,32], index: 11, kind: input, shape index: {}]   ;;  %s3767_s12 = inlined_call_operand.vmem [shape: bf16[32,32], index: 12, kind: input, shape index: {}]   ;;  %s3768_s13 = inlined_call_operand.vmem [shape: bf16[32,32], index: 13, kind: input, shape index: {}]   ;;  %s3769_s14 = inlined_call_operand.vmem [shape: bf16[32,64], index: 14, kind: input, shape index: {}]   ;;  %s3770_s15 = inlined_call_operand.vmem [shape: f32[1,64], index: 15, kind: input, shape index: {}]   ;;  %s3771_s16 = inlined_call_operand.vmem [shape: bf16[64,32], index: 16, kind: input, shape index: {}]   ;;  %s3772_s17 = inlined_call_operand.vmem [shape: f32[16,32], index: 17, kind: input, shape index: {}]   ;;  %s3773_s18 = inlined_call_operand.vmem [shape: f32[2,8,32], index: 18, kind: output, shape index: {}]  }
   0x1   :  { %3777 = sst [smem:[#allocation6_spill]] %s3755_s0  ;;  %s3263_s29 = smov 0  }
   0x2   :  { %3778 = sst [smem:[#allocation7_spill]] %s3756_s1 }
   0x3   :  { %3779 = sst [smem:[#allocation8_spill]] %s3757_s2 }
   0x4 LB: > { %s40_s30 = sadd.s32 1, %s3148_s28  ;;  %p2690_p0 = scmp.ge.s32.totalorder %s3152_s29, 1  ;;  %s3152_s29 = sphi %s3263_s29, %s28_s29   ;;  %s3148_s28 = sphi %s3261_s28, %s3789_s28   ;;  %s3144_s27 = sphi %s3259_s27, %s3788_s27  }
   0x5   : > { %p42_p1 = scmp.ge.s32.totalorder %s40_s30, 2  ;;  %p554_p2 = scmp.lt.s32.totalorder %s3152_s29, 3 }
   0x7   : > { %s3791_s30 = smov (%p42_p1, %s40_s30), 0  ;;  %p555_p3 = pnand %p2690_p0, %p554_p2 }
   0x8   : > { %p622_p4 = scmp.lt.s32.totalorder (!%p555_p3), %s3144_s27, 1  ;;  %s3780_s0 = sld [smem:[#allocation6_spill]] (!%p555_p3) }
   0x9   : > { %558 = sbr.rel (%p555_p3) target bundleno = 4307 (0x10d3), region = 92  ;;  %s3781_s21 = sld [smem:[#allocation7_spill]] (!%p555_p3) }
   0xa   : > { %s3156_s1 = smov (!%p555_p3), 112   ;;  %s3157_s20 = smov (!%p555_p3), 120  }
   0xb   : > { %s3776_s23 = smov (!%p555_p3), 16   ;;  %s3775_s26 = smov (!%p555_p3), 8  }
   0xe   : > { %v3057_v0 = vld [vmem:[%s3759_s4 + $0x8] sm:$0xff]   ;;  %v3154_v1 = vmov 0.0   ;;  %v3059_v3 = vld [vmem:[%s3759_s4] sm:$0xff]   ;;  %vm3155_vm0 = vmmov 0   ;;  %s3793_s27 = smov (!%p622_p4, %s3144_s27), 1  ;;  %vm678_vm1 = vcmask 261120   ;;  %v662_v10 = vlaneseq }
   0xf   : > { %2825 = vmatprep.subr.bf16.mxu0 %v3154_v1  ;;  %2833 = vmatprep.subr.bf16.mxu1 %v3154_v1  ;;  %v3058_v2 = vld [vmem:[%s3760_s5 + $0x8] sm:$0xff]   ;;  %v3060_v4 = vld [vmem:[%s3760_s5] sm:$0xff]   ;;  %s3300_s24 = sshll.u32 %s3793_s27, 3  ;;  %vm747_vm2 = vcmask 64512   ;;  %vm733_vm3 = vcmask 60416   ;;  %v3159_v32 = vmov 0  }
  0x10   : > { %2826 = vmatpush3.bf16.msra.mxu0 %v3057_v0  ;;  %2829 = vmatprep.mubr.msk.bf16.mxu0 %vm3155_vm0, %v3154_v1  ;;  %s625_s19 = scalar_lea.vmem %s3780_s0, %s3300_s24  ;;  %s634_s22 = scalar_lea.vmem %s3781_s21, %s3300_s24  ;;  %748 = vst.msk [vmem:[#allocation5] sm:$0xff] %vm747_vm2, %v3154_v1  ;;  %749 = vst.msk [vmem:[#allocation5 + $0x8] sm:$0xff] %vm747_vm2, %v3154_v1  ;;  %v3062_v8 = vld [vmem:[%s3761_s6 + $0x8] sm:$0xff]   ;;  %v3063_v9 = vld [vmem:[%s3761_s6] sm:$0xff]   ;;  %v3344_v11 = vshrl.u32 %v662_v10, 7  ;;  %vm1108_vm6 = vcmask 130048  }
  0x11   : > { %2834 = vmatpush3.bf16.msra.mxu1 %v3058_v2  ;;  %2827 = vmatprep.subr.bf16.mxu0 %v3154_v1  ;;  %v3307_v5 = vld [vmem:[%s625_s19] sm:$0xff]  ;;  %750 = vst.msk [vmem:[#allocation5 + $0x10] sm:$0xff] %vm747_vm2, %v3154_v1  ;;  %751 = vst.msk [vmem:[#allocation5 + $0x18] sm:$0xff] %vm747_vm2, %v3154_v1  ;;  %s3158_s21 = smov 104   ;;  %vm738_vm7 = vcmask 7168   ;;  %s3774_s0 = smov 24  }
  0x12   : > { %2835 = vmatprep.subr.bf16.mxu1 %v3154_v1  ;;  %2837 = vmatprep.mubr.msk.bf16.mxu1 %vm3155_vm0, %v3154_v1  ;;  %v3316_v6 = vpack.c.bf16 %v3307_v5, %v3307_v5  ;;  %v3061_v7 = vld [vmem:[%s634_s22] sm:$0xff]   ;;  %v664_v12 = vsub.s32 0, %v3344_v11  ;;  %v760_v15 = vsub.s32 1, %v3344_v11  ;;  %v838_v37 = vsub.s32 2, %v3344_v11  ;;  %s2694_s22 = sshll.u32 %s3793_s27, 1  ;;  %743 = vst.msk [vmem:[#allocation4] sm:$0xff] %vm738_vm7, %v3154_v1 }
  0x13   : > { %v3350_v13 = vld [vmem:[%s3772_s17] sm:$0xff]  ;;  %3055 = vset.pattern.permute.xlu1 %v3159_v32  ;;  %3056 = vset.pattern.permute.xlu0 %v3159_v32  ;;  %s642_s25 = scalar_lea.vmem %s3758_s3, %s2694_s22  ;;  %v3160_v62 = vmov -1e+30   ;;  %744 = vst.msk [vmem:[#allocation4 + $0x8] sm:$0xff] %vm738_vm7, %v3154_v1  ;;  %745 = vst.msk [vmem:[#allocation4 + $0x10] sm:$0xff] %vm738_vm7, %v3154_v1  ;;  %vm1470_vm8 = vcmask 195584  }
  0x14   : > { %2828 = vmatpush3.bf16.msra.mxu0 %v3059_v3  ;;  %v665_v14 = vrot.slane %v3350_v13, %v664_v12  ;;  %v761_v19 = vrot.slane %v3350_v13, %v760_v15  ;;  %v839_v40 = vrot.slane %v3350_v13, %v838_v37  ;;  %v1093_v54 = vld [vmem:[%s642_s25] sm:$0x3]  ;;  %739 = vst.msk [vmem:[#allocation3] sm:$0xff] %vm738_vm7, %v3160_v62  ;;  %740 = vst.msk [vmem:[#allocation3 + $0x8] sm:$0xff] %vm738_vm7, %v3160_v62  ;;  %vm2133_vm9 = vcmask 1043456   ;;  %s3786_s27 = smov 8  }
  0x15   : > { %2836 = vmatpush3.bf16.msra.mxu1 %v3060_v4  ;;  %2841 = vmatprep.subr.bf16.mxu0 %v3154_v1  ;;  %vm1094_vm4 = vnez %v1093_v54  ;;  %741 = vst.msk [vmem:[#allocation3 + $0x10] sm:$0xff] %vm738_vm7, %v3160_v62  ;;  %742 = vst.msk [vmem:[#allocation3 + $0x18] sm:$0xff] %vm738_vm7, %v3160_v62  ;;  %s3787_s19 = smov 24   ;;  %vm2523_vm10 = vcmask 523264  }
  0x16   : > { %2849 = vmatprep.subr.bf16.mxu1 %v3154_v1  ;;  %v1095_v55 = vsel %vm1094_vm4, 16843009, %v3159_v32  ;;  %746 = vst.msk [vmem:[#allocation4 + $0x18] sm:$0xff] %vm738_vm7, %v3154_v1 }
  0x17   : > { %2830 = vmatmul.mubr.msk.bf16.vlgmr.msra.gmra.mxu0 %vm678_vm1, %v3316_v6  ;;  %v1096_v56 = vunpack.c.0.s8 %v1095_v55 }
  0x18   : > { %2838 = vmatmul.mubr.msk.bf16.vlgmr.msra.gmra.mxu1 %vm678_vm1, %v3061_v7  ;;  %2845 = vmatprep.mubr.msk.bf16.mxu0 %vm3155_vm0, %v3154_v1 }
  0x19   : > { %2851 = vmatprep.mubr.msk.bf16.mxu1 %vm3155_vm0, %v3154_v1  ;;  %2842 = vmatpush3.bf16.msra.mxu0 %v3062_v8  ;;  %vm3401_vm5 = vcmp.ne.s32.totalorder %v1096_v56, 0 }
  0x1a   : > { %2843 = vmatprep.subr.bf16.mxu0 %v3154_v1 }
  0x1d   : > { %2844 = vmatpush3.bf16.msra.mxu0 %v3063_v9 }
  0x1e   : > { %2855 = vmatprep.subr.bf16.mxu0 %v3154_v1 }
  0x20   : > { %2846 = vmatmul.mubr.msk.bf16.vlgmr.msra.gmra.mxu0 %vm678_vm1, %v3061_v7 }
  0x21   : > { %2857 = vmatprep.mubr.msk.bf16.mxu0 %vm3155_vm0, %v3154_v1 }
  0xd7   : > { %v716_v16 = vpop.f32.mrf.mxu0 }
  0xd8   : > { %v817_v17 = vpop.f32.mrf.mxu1  ;;  %v717_v18 = vadd.f32 %v716_v16, %v665_v14 }
  0xd9   : > { %v2831_v20 = vpop.f32.mrf.mxu0  ;;  %v818_v25 = vadd.f32 %v817_v17, %v761_v19 }
  0xda   : > { %v2839_v21 = vpop.f32.mrf.mxu1  ;;  %v722_v22 = vpack.c.bf16 %v717_v18, %v717_v18 }
  0xdb   : > { %v719_v23 = vpop.f32.mrf.mxu0 }
  0xdc   : > { %v820_v24 = vpop.f32.mrf.mxu1  ;;  %734 = vst.msk [vmem:[#allocation2] sm:$0xf] %vm733_vm3, %v722_v22  ;;  %727 = vrot.lane.b32.xlu1 %v722_v22, %s3156_s1  ;;  %724 = vrot.lane.b32.xlu0 %v722_v22, %s3157_s20 }
  0xdd   : > { %v821_v26 = vadd.f32 %v820_v24, %v761_v19  ;;  %v2832_v27 = vpop.f32.mrf.mxu0 }
  0xde   : > { %v2840_v28 = vpop.f32.mrf.mxu1 }
  0xdf   : > { %v824_v29 = vpack.c.bf16 %v821_v26, %v818_v25  ;;  %v3432_v26 = vld [vmem:[#allocation3] sm:$0xff] }
  0xe0   : > { %v886_v33 = vpop.f32.mrf.mxu0 }
  0xe1   : > { %828 = vrot.lane.b32.xlu1 %v824_v29, %s3156_s1  ;;  %826 = vrot.lane.b32.xlu0 %v824_v29, %s3157_s20  ;;  %v913_v30 = vsel %vm747_vm2, %v824_v29, 0  ;;  %v887_v45 = vadd.f32 %v886_v33, %v839_v40 }
  0xe2   : > { %2850 = vmatpush3.bf16.xpose.msra.mxu1 %v913_v30  ;;  %v2847_v34 = vpop.f32.mrf.mxu0  ;;  %v3442_v30 = vld [vmem:[#allocation3 + $0x10] sm:$0xff] }
  0xe3   : > { %2861 = vmatprep.subr.bf16.mxu1 %v3154_v1  ;;  %v904_v31 = vld [vmem:[#allocation2] sm:$0xf] }
  0xe4   : > { %v889_v35 = vpop.f32.mrf.mxu0 }
  0xe5   : > { %830 = vrot.lane.b32.xlu1 %v824_v29, %s3158_s21  ;;  %730 = vrot.lane.b32.xlu0 %v722_v22, %s3158_s21  ;;  %v890_v46 = vadd.f32 %v889_v35, %v839_v40 }
  0xe6   : > { %v2848_v36 = vpop.f32.mrf.mxu0 }
  0xe7   : > { %v3382_v49 = vpack.c.bf16 %v890_v46, %v887_v45 }
  0xe9   : > { %2852 = vmatmul.mubr.msk.bf16.vlgmr.msra.gmra.mxu1 %vm747_vm2, %v904_v31  ;;  %v1105_v31 = vld [vmem:[#allocation3 + $0x8] sm:$0xff] }
  0xea   : > { %2863 = vmatprep.mubr.msk.bf16.mxu1 %vm3155_vm0, %v3154_v1 }
 0x14e   : > { %v728_v38 = vpop.permute.xlu1 %727  ;;  %v725_v39 = vpop.permute.xlu0 %724 }
 0x14f   : > { %736 = vst.msk [vmem:[#allocation2 + $0x8] sm:$0xf] %vm733_vm3, %v728_v38  ;;  %735 = vst.msk [vmem:[#allocation2 + $0x4] sm:$0xf] %vm733_vm3, %v725_v39  ;;  %v1107_v39 = vld [vmem:[#allocation3 + $0x18] sm:$0xff] }
 0x153   : > { %v829_v41 = vpop.permute.xlu1 %828  ;;  %v827_v42 = vpop.permute.xlu0 %826 }
 0x154   : > { %v1005_v43 = vsel %vm747_vm2, %v829_v41, 0  ;;  %v959_v44 = vsel %vm747_vm2, %v827_v42, 0 }
 0x155   : > { %2856 = vmatpush3.bf16.xpose.msra.mxu0 %v959_v44  ;;  %2862 = vmatpush3.bf16.xpose.msra.mxu1 %v1005_v43 }
 0x156   : > { %2867 = vmatprep.subr.bf16.mxu0 %v3154_v1  ;;  %2873 = vmatprep.subr.bf16.mxu1 %v3154_v1  ;;  %v905_v50 = vld [vmem:[#allocation2 + $0x4] sm:$0xf]  ;;  %v906_v51 = vld [vmem:[#allocation2 + $0x8] sm:$0xf] }
 0x157   : > { %v731_v47 = vpop.permute.xlu0 %730  ;;  %v831_v48 = vpop.permute.xlu1 %830 }
 0x158   : > { %737 = vst.msk [vmem:[#allocation2 + $0xc] sm:$0xf] %vm733_vm3, %v731_v47  ;;  %v1051_v52 = vsel %vm747_vm2, %v831_v48, 0 }
 0x15c   : > { %2858 = vmatmul.mubr.msk.bf16.vlgmr.msra.gmra.mxu0 %vm747_vm2, %v905_v50  ;;  %2864 = vmatmul.mubr.msk.bf16.vlgmr.msra.gmra.mxu1 %vm747_vm2, %v906_v51 }
 0x15d   : > { %2868 = vmatpush3.bf16.xpose.msra.mxu0 %v1051_v52  ;;  %2869 = vmatprep.mubr.msk.bf16.mxu0 %vm3155_vm0, %v3154_v1 }
 0x15e   : > { %2874 = vmatpush3.bf16.msra.mxu1 %v3382_v49  ;;  %2875 = vmatprep.mubr.msk.bf16.mxu1 %vm3155_vm0, %v3154_v1 }
 0x15f   : > { %2879 = vmatprep.subr.bf16.mxu0 %v3154_v1  ;;  %2885 = vmatprep.subr.bf16.mxu1 %v3154_v1  ;;  %v907_v53 = vld [vmem:[#allocation2 + $0xc] sm:$0xf] }
 0x164   : > { %2870 = vmatmul.mubr.msk.bf16.vlgmr.msra.gmra.mxu0 %vm747_vm2, %v907_v53 }
 0x165   : > { %2881 = vmatprep.mubr.msk.bf16.mxu0 %vm3155_vm0, %v3154_v1 }
 0x1a9   : > { %v949_v58 = vpop.f32.mrf.mxu1 }
 0x1aa   : > { %v3407_v59 = vsel %vm3401_vm5, -1e+30, %v949_v58 }
 0x1ab   : > { %v2853_v60 = vpop.f32.mrf.mxu1  ;;  %v1109_v61 = vsel %vm1108_vm6, %v3407_v59, -inf }
 0x1ac   : > { %1110 = vmax.xlane.f32.xlu0 %v1109_v61 }
 0x1ad   : > { %v952_v63 = vpop.f32.mrf.mxu1 }
 0x1af   : > { %v2854_v0 = vpop.f32.mrf.mxu1 }
 0x21c   : > { %v995_v2 = vpop.f32.mrf.mxu0  ;;  %v1041_v3 = vpop.f32.mrf.mxu1 }
 0x21d   : > { %v1101_v4 = vsel %vm3401_vm5, -1e+30, %v995_v2  ;;  %v1102_v7 = vsel %vm3401_vm5, -1e+30, %v1041_v3 }
 0x21e   : > { %v2859_v8 = vpop.f32.mrf.mxu0  ;;  %v2865_v9 = vpop.f32.mrf.mxu1  ;;  %v1115_v10 = vsel %vm1108_vm6, %v1102_v7, -inf  ;;  %v1112_v14 = vsel %vm1108_vm6, %v1101_v4, -inf }
 0x21f   : > { %1116 = vmax.xlane.f32.xlu0 %v1115_v10  ;;  %1113 = vmax.xlane.f32.xlu1 %v1112_v14 }
 0x220   : > { %v998_v16 = vpop.f32.mrf.mxu0  ;;  %v1044_v17 = vpop.f32.mrf.mxu1 }
 0x222   : > { %v2860_v18 = vpop.f32.mrf.mxu0  ;;  %v2866_v19 = vpop.f32.mrf.mxu1 }
 0x224   : > { %v1087_v20 = vpop.f32.mrf.mxu0 }
 0x225   : > { %v1103_v21 = vsel %vm3401_vm5, -1e+30, %v1087_v20 }
 0x226   : > { %v2871_v22 = vpop.f32.mrf.mxu0  ;;  %v1118_v23 = vsel %vm1108_vm6, %v1103_v21, -inf }
 0x227   : > { %1119 = vmax.xlane.f32.xlu0 %v1118_v23 }
 0x228   : > { %v1090_v24 = vpop.f32.mrf.mxu0 }
 0x229   : > { %v1171_v24 = vld [vmem:[#allocation4 + $0x10] sm:$0xff] }
 0x22a   : > { %v2872_v25 = vpop.f32.mrf.mxu0 }
 0x22b   : > { %v1170_v25 = vld [vmem:[#allocation4 + $0x8] sm:$0xff] }
 0x235   : > { %v1111_v27 = vpop.xlane.xlu0 %1110 }
 0x236   : > { %v3435_v28 = vmax.f32 %v3432_v26, %v1111_v27 }
 0x238   : > { %v1125_v29 = vsub.f32 %v3432_v26, %v3435_v28  ;;  %1410 = vst.msk [vmem:[#allocation3] sm:$0xff] %vm738_vm7, %v3435_v28  ;;  %1139 = vperm.xlu1 %3055, %v3435_v28  }
 0x23a   : > { %v1129_v23 = vmul.f32 1.442695, %v1125_v29 }
 0x2a8   : > { %v1117_v32 = vpop.xlane.xlu0 %1116  ;;  %v1114_v33 = vpop.xlane.xlu1 %1113 }
 0x2a9   : > { %v3445_v34 = vmax.f32 %v3442_v30, %v1117_v32  ;;  %v1122_v35 = vmax.f32 %v1105_v31, %v1114_v33 }
 0x2ab   : > { %v1127_v36 = vsub.f32 %v3442_v30, %v3445_v34  ;;  %1412 = vst.msk [vmem:[#allocation3 + $0x10] sm:$0xff] %vm738_vm7, %v3445_v34  ;;  %v1126_v38 = vsub.f32 %v1105_v31, %v1122_v35  ;;  %1411 = vst.msk [vmem:[#allocation3 + $0x8] sm:$0xff] %vm738_vm7, %v1122_v35  ;;  %1149 = vperm.xlu1 %3055, %v3445_v34   ;;  %1144 = vperm.xlu0 %3056, %v1122_v35   ;;  %v1172_v35 = vld [vmem:[#allocation4 + $0x18] sm:$0xff] }
 0x2ad   : > { %v1131_v3 = vmul.f32 1.442695, %v1126_v38  ;;  %v1133_v9 = vmul.f32 1.442695, %v1127_v36 }
 0x2b0   : > { %v1120_v40 = vpop.xlane.xlu0 %1119 }
 0x2b1   : > { %v1124_v41 = vmax.f32 %v1107_v39, %v1120_v40  ;;  %v1169_v40 = vld [vmem:[#allocation4] sm:$0xff] }
 0x2b3   : > { %v1128_v42 = vsub.f32 %v1107_v39, %v1124_v41  ;;  %1413 = vst.msk [vmem:[#allocation3 + $0x18] sm:$0xff] %vm738_vm7, %v1124_v41  ;;  %v1140_v43 = vpop.permute.xlu1 %1139  ;;  %1154 = vperm.xlu1 %3055, %v1124_v41  }
 0x2b4   : > { %v1157_v44 = vsub.f32 %v3407_v59, %v1140_v43 }
 0x2b5   : > { %v1135_v14 = vmul.f32 1.442695, %v1128_v42 }
 0x2b6   : > { %v1161_v45 = vmul.f32 1.442695, %v1157_v44 }
 0x2b7   : > { %895 = vrot.lane.b32.xlu1 %v3382_v49, %s3157_s20 }
 0x2b8   : > { %3084 = vpow2.f32 %v1161_v45 }
 0x2bb   : > { %898 = vrot.lane.b32.xlu1 %v3382_v49, %s3156_s1 }
 0x2bf   : > { %901 = vrot.lane.b32.xlu1 %v3382_v49, %s3158_s21 }
 0x2c5   : > { %v3085_v46 = vpop.eup %3084 }
 0x2c6   : > { %v1226_v47 = vpack.c.bf16 %v3085_v46, %v3085_v46  ;;  %v1177_v10 = vsel %vm1108_vm6, %v3085_v46, 0.0 }
 0x2c8   : > { %2876 = vmatmul.mubr.msk.bf16.vlgmr.msra.gmra.mxu1 %vm1108_vm6, %v1226_v47 }
 0x2c9   : > { %2887 = vmatprep.mubr.msk.bf16.mxu1 %vm3155_vm0, %v3154_v1 }
 0x326   : > { %v1150_v48 = vpop.permute.xlu1 %1149  ;;  %v1145_v50 = vpop.permute.xlu0 %1144 }
 0x327   : > { %v1159_v51 = vsub.f32 %v1102_v7, %v1150_v48  ;;  %v1158_v52 = vsub.f32 %v1101_v4, %v1145_v50 }
 0x329   : > { %v1165_v53 = vmul.f32 1.442695, %v1159_v51  ;;  %v1163_v54 = vmul.f32 1.442695, %v1158_v52  ;;  %v1200_v51 = vld [vmem:[#allocation5 + $0x10] sm:$0xff] }
 0x32b   : > { %3086 = vpow2.f32 %v1165_v53  ;;  %v1199_v53 = vld [vmem:[#allocation5 + $0x8] sm:$0xff] }
 0x32c   : > { %3088 = vpow2.f32 %v1163_v54 }
 0x32e   : > { %v1155_v55 = vpop.permute.xlu1 %1154 }
 0x32f   : > { %v1160_v56 = vsub.f32 %v1103_v21, %v1155_v55 }
 0x331   : > { %v1167_v57 = vmul.f32 1.442695, %v1160_v56 }
 0x332   : > { %v896_v58 = vpop.permute.xlu1 %895 }
 0x333   : > { %3090 = vpow2.f32 %v1167_v57  ;;  %2880 = vmatpush3.bf16.msra.mxu0 %v896_v58 }
 0x334   : > { %2891 = vmatprep.subr.bf16.mxu0 %v3154_v1  ;;  %3092 = vpow2.f32 %v1131_v3 }
 0x335   : > { %3094 = vpow2.f32 %v1133_v9 }
 0x336   : > { %v899_v49 = vpop.permute.xlu1 %898  ;;  %3096 = vpow2.f32 %v1135_v14 }
 0x337   : > { %2886 = vmatpush3.bf16.msra.mxu1 %v899_v49  ;;  %3098 = vpow2.f32 %v1129_v23 }
 0x338   : > { %v3087_v59 = vpop.eup %3086  ;;  %2897 = vmatprep.subr.bf16.mxu1 %v3154_v1 }
 0x339   : > { %v3089_v60 = vpop.eup %3088  ;;  %v1183_v61 = vsel %vm1108_vm6, %v3087_v59, 0.0  ;;  %v1228_v62 = vpack.c.bf16 %v3087_v59, %v3087_v59 }
 0x33a   : > { %1184 = vadd.xlane.f32.xlu0 %v1183_v61  ;;  %v902_v63 = vpop.permute.xlu1 %901  ;;  %v1180_v0 = vsel %vm1108_vm6, %v3089_v60, 0.0  ;;  %v1227_v2 = vpack.c.bf16 %v3089_v60, %v3089_v60 }
 0x33b   : > { %1181 = vadd.xlane.f32.xlu1 %v1180_v0  ;;  %2888 = vmatmul.mubr.msk.bf16.vlgmr.msra.gmra.mxu1 %vm1108_vm6, %v1228_v62 }
 0x33c   : > { %2882 = vmatmul.mubr.msk.bf16.vlgmr.msra.gmra.mxu0 %vm1108_vm6, %v1227_v2  ;;  %2901 = vmatprep.mubr.msk.bf16.mxu1 %vm3155_vm0, %v3154_v1 }
 0x33d   : > { %2892 = vmatpush3.bf16.msra.mxu0 %v902_v63  ;;  %2893 = vmatprep.mubr.msk.bf16.mxu0 %vm3155_vm0, %v3154_v1  ;;  %v1201_v63 = vld [vmem:[#allocation5 + $0x18] sm:$0xff] }
 0x33e   : > { %2905 = vmatprep.subr.bf16.mxu0 %v3154_v1 }
 0x340   : > { %v3091_v4 = vpop.eup %3090 }
 0x341   : > { %v1186_v7 = vsel %vm1108_vm6, %v3091_v4, 0.0  ;;  %v1229_v8 = vpack.c.bf16 %v3091_v4, %v3091_v4  ;;  %v3093_v16 = vpop.eup %3092 }
 0x342   : > { %1187 = vadd.xlane.f32.xlu1 %v1186_v7  ;;  %v3095_v17 = vpop.eup %3094  ;;  %v1174_v30 = vmul.f32 %v3093_v16, %v1170_v25  ;;  %v3066_v25 = vld [vmem:[%s3764_s9 + $0x8] sm:$0xff]  }
 0x343   : > { %v3097_v18 = vpop.eup %3096  ;;  %v1175_v27 = vmul.f32 %v3095_v17, %v1171_v24 }
 0x344   : > { %2894 = vmatmul.mubr.msk.bf16.vlgmr.msra.gmra.mxu0 %vm1108_vm6, %v1229_v8  ;;  %v1176_v36 = vmul.f32 %v3097_v18, %v1172_v35  ;;  %v3099_v38 = vpop.eup %3098 }
 0x345   : > { %2909 = vmatprep.mubr.msk.bf16.mxu0 %vm3155_vm0, %v3154_v1  ;;  %v1173_v29 = vmul.f32 %v3099_v38, %v1169_v40  ;;  %2906 = vmatpush3.bf16.msra.mxu0 %v3066_v25 }
 0x346   : > { %1178 = vadd.xlane.f32.xlu1 %v1177_v10  ;;  %2907 = vmatprep.subr.bf16.mxu0 %v3154_v1 }
 0x350   : > { %1209 = vperm.xlu0 %3056, %v3093_v16  }
 0x357   : > { %1214 = vperm.xlu1 %3055, %v3095_v17   ;;  %v3064_v17 = vld [vmem:[%s3762_s7 + $0x8] sm:$0xff]  }
 0x358   : > { %2898 = vmatpush3.bf16.msra.mxu1 %v3064_v17  ;;  %v3071_v17 = vld [vmem:[%s3766_s11 + $0x8] sm:$0xff]  }
 0x359   : > { %2899 = vmatprep.subr.bf16.mxu1 %v3154_v1 }
 0x35b   : > { %1219 = vperm.xlu1 %3055, %v3097_v18   ;;  %v3065_v18 = vld [vmem:[%s3762_s7] sm:$0xff]  }
 0x35c   : > { %2900 = vmatpush3.bf16.msra.mxu1 %v3065_v18  ;;  %v3073_v18 = vld [vmem:[%s3766_s11] sm:$0xff]  }
 0x35d   : > { %2913 = vmatprep.subr.bf16.mxu1 %v3154_v1 }
 0x388   : > { %v3483_v19 = vpop.f32.mrf.mxu1 }
 0x38a   : > { %v2877_v20 = vpop.f32.mrf.mxu1 }
 0x38c   : > { %v1270_v21 = vpop.f32.mrf.mxu1 }
 0x38e   : > { %v2878_v22 = vpop.f32.mrf.mxu1 }
 0x3c3   : > { %v1185_v31 = vpop.xlane.xlu0 %1184 }
 0x3c4   : > { %v1182_v32 = vpop.xlane.xlu1 %1181  ;;  %v1191_v33 = vadd.f32 %v1185_v31, %v1175_v27  ;;  %v3067_v31 = vld [vmem:[%s3764_s9] sm:$0xff]  }
 0x3c5   : > { %v1190_v34 = vadd.f32 %v1182_v32, %v1174_v30  ;;  %v1198_v30 = vld [vmem:[#allocation5] sm:$0xff]  ;;  %2908 = vmatpush3.bf16.msra.mxu0 %v3067_v31 }
 0x3c6   : > { %1196 = vst.msk [vmem:[#allocation4 + $0x10] sm:$0xff] %vm738_vm7, %v1191_v33  ;;  %2921 = vmatprep.subr.bf16.mxu0 %v3154_v1 }
 0x3c7   : > { %1195 = vst.msk [vmem:[#allocation4 + $0x8] sm:$0xff] %vm738_vm7, %v1190_v34 }
 0x3c8   : > { %2910 = vmatmul.mubr.msk.bf16.vlgmr.msra.gmra.mxu0 %vm678_vm1, %v3316_v6  ;;  %v3068_v6 = vld [vmem:[%s3763_s8 + $0x8] sm:$0xff]  }
 0x3c9   : > { %2925 = vmatprep.mubr.msk.bf16.mxu0 %vm3155_vm0, %v3154_v1 }
 0x3cb   : > { %v1188_v39 = vpop.xlane.xlu1 %1187  ;;  %v1210_v54 = vpop.permute.xlu0 %1209 }
 0x3cc   : > { %v1192_v26 = vadd.f32 %v1188_v39, %v1176_v36  ;;  %v1223_v56 = vmul.f32 %v1210_v54, %v1199_v53 }
 0x3cd   : > { %v1426_v28 = vld [vmem:[#allocation4 + $0x10] sm:$0xff] }
 0x3ce   : > { %1197 = vst.msk [vmem:[#allocation4 + $0x18] sm:$0xff] %vm738_vm7, %v1192_v26  ;;  %v1425_v41 = vld [vmem:[#allocation4 + $0x8] sm:$0xff]  ;;  %3100 = vrcp.f32 %v1426_v28 }
 0x3cf   : > { %v1179_v42 = vpop.xlane.xlu1 %1178  ;;  %3102 = vrcp.f32 %v1425_v41 }
 0x3d0   : > { %v1189_v43 = vadd.f32 %v1179_v42, %v1173_v29 }
 0x3d2   : > { %1194 = vst.msk [vmem:[#allocation4] sm:$0xff] %vm738_vm7, %v1189_v43 }
 0x3d3   : > { %v1215_v52 = vpop.permute.xlu1 %1214 }
 0x3d4   : > { %v1224_v55 = vmul.f32 %v1215_v52, %v1200_v51  ;;  %v1479_v51 = vsub.s32 3, %v3344_v11 }
 0x3d5   : > { %v1427_v44 = vld [vmem:[#allocation4 + $0x18] sm:$0xff] }
 0x3d6   : > { %3104 = vrcp.f32 %v1427_v44  ;;  %v1480_v52 = vrot.slane %v3350_v13, %v1479_v51 }
 0x3d7   : > { %v1220_v0 = vpop.permute.xlu1 %1219 }
 0x3d8   : > { %v1225_v7 = vmul.f32 %v1220_v0, %v1201_v63 }
 0x3d9   : > { %v1424_v45 = vld [vmem:[#allocation4] sm:$0xff] }
 0x3da   : > { %3106 = vrcp.f32 %v1424_v45  ;;  %v3069_v45 = vld [vmem:[%s3763_s8] sm:$0xff]  }
 0x3db   : > { %v3101_v46 = vpop.eup %3100 }
 0x3dc   : > { %v3103_v47 = vpop.eup %3102  ;;  %1444 = vperm.xlu1 %3055, %v3101_v46  }
 0x3dd   : > { %1439 = vperm.xlu0 %3056, %v3103_v47  }
 0x3e0   : > { %1204 = vperm.xlu1 %3055, %v3099_v38  }
 0x3e3   : > { %v3105_v48 = vpop.eup %3104 }
 0x3e4   : > { %1449 = vperm.xlu0 %3056, %v3105_v48  }
 0x3e7   : > { %v3107_v50 = vpop.eup %3106 }
 0x3e8   : > { %1434 = vperm.xlu0 %3056, %v3107_v50  }
 0x3fb   : > { %v1353_v57 = vpop.f32.mrf.mxu1 }
 0x3fc   : > { %v1310_v58 = vpop.f32.mrf.mxu0  ;;  %v1404_v49 = vadd.f32 %v1353_v57, %v1224_v55 }
 0x3fd   : > { %v1403_v59 = vadd.f32 %v1310_v58, %v1223_v56  ;;  %v2889_v60 = vpop.f32.mrf.mxu1 }
 0x3fe   : > { %1408 = vst.msk [vmem:[#allocation5 + $0x10] sm:$0xff] %vm747_vm2, %v1404_v49  ;;  %v2883_v61 = vpop.f32.mrf.mxu0  ;;  %v1657_v49 = vsub.s32 4, %v3344_v11 }
 0x3ff   : > { %1407 = vst.msk [vmem:[#allocation5 + $0x8] sm:$0xff] %vm747_vm2, %v1403_v59  ;;  %v1356_v62 = vpop.f32.mrf.mxu1 }
 0x400   : > { %v1313_v2 = vpop.f32.mrf.mxu0  ;;  %v1658_v59 = vrot.slane %v3350_v13, %v1657_v49 }
 0x401   : > { %v2890_v3 = vpop.f32.mrf.mxu1 }
 0x402   : > { %v2884_v4 = vpop.f32.mrf.mxu0 }
 0x404   : > { %v1396_v8 = vpop.f32.mrf.mxu0 }
 0x405   : > { %v1405_v9 = vadd.f32 %v1396_v8, %v1225_v7  ;;  %v1422_v20 = vld [vmem:[#allocation5 + $0x10] sm:$0xff] }
 0x406   : > { %v2895_v10 = vpop.f32.mrf.mxu0  ;;  %v1421_v24 = vld [vmem:[#allocation5 + $0x8] sm:$0xff] }
 0x407   : > { %1409 = vst.msk [vmem:[#allocation5 + $0x18] sm:$0xff] %vm747_vm2, %v1405_v9 }
 0x408   : > { %v1399_v14 = vpop.f32.mrf.mxu0 }
 0x40a   : > { %v2896_v16 = vpop.f32.mrf.mxu0 }
 0x40b   : > { %v3070_v16 = vld [vmem:[%s3765_s10 + $0x8] sm:$0xff]  }
 0x40c   : > { %2922 = vmatpush3.bf16.msra.mxu0 %v3070_v16 }
 0x40d   : > { %2923 = vmatprep.subr.bf16.mxu0 %v3154_v1 }
 0x40e   : > { %v1423_v36 = vld [vmem:[#allocation5 + $0x18] sm:$0xff] }
 0x457   : > { %v1445_v21 = vpop.permute.xlu1 %1444 }
 0x458   : > { %v1454_v22 = vmul.f32 %v1445_v21, %v1422_v20  ;;  %v1440_v23 = vpop.permute.xlu0 %1439 }
 0x459   : > { %v1453_v27 = vmul.f32 %v1440_v23, %v1421_v24  ;;  %v1677_v23 = vsub.s32 5, %v3344_v11  ;;  %v1682_v24 = vsub.s32 6, %v3344_v11 }
 0x45a   : > { %1461 = vrot.lane.b32.xlu0 %v1454_v22, %s3776_s23 }
 0x45b   : > { %1457 = vrot.lane.b32.xlu1 %v1453_v27, %s3775_s26  ;;  %v1205_v32 = vpop.permute.xlu1 %1204  ;;  %v1678_v25 = vrot.slane %v3350_v13, %v1677_v23  ;;  %v1683_v31 = vrot.slane %v3350_v13, %v1682_v24 }
 0x45c   : > { %v1222_v33 = vmul.f32 %v1205_v32, %v1198_v30 }
 0x45e   : > { %v1402_v34 = vadd.f32 %v3483_v19, %v1222_v33 }
 0x45f   : > { %v1450_v35 = vpop.permute.xlu0 %1449 }
 0x460   : > { %1406 = vst.msk [vmem:[#allocation5] sm:$0xff] %vm747_vm2, %v1402_v34  ;;  %v1455_v38 = vmul.f32 %v1450_v35, %v1423_v36  ;;  %v3074_v36 = vld [vmem:[%s3767_s12 + $0x8] sm:$0xff]  }
 0x462   : > { %1465 = vrot.lane.b32.xlu1 %v1455_v38, %s3774_s0  ;;  %s3784_s0 = sld [smem:[#allocation8_spill]] }
 0x463   : > { %v1435_v40 = vpop.permute.xlu0 %1434 }
 0x467   : > { %v1420_v39 = vld [vmem:[#allocation5] sm:$0xff] }
 0x468   : > { %v1452_v26 = vmul.f32 %v1435_v40, %v1420_v39  ;;  %v1419_v33 = vld [vmem:[%s3784_s0] sm:$0xff]  ;;  %s3785_s0 = smov 16  }
 0x469   : > { %v3075_v39 = vld [vmem:[%s3767_s12] sm:$0xff]  }
 0x488   : > { %v1594_v46 = vpop.f32.mrf.mxu0 }
 0x48a   : > { %v2911_v47 = vpop.f32.mrf.mxu0 }
 0x48c   : > { %v1597_v48 = vpop.f32.mrf.mxu0 }
 0x48e   : > { %v2912_v50 = vpop.f32.mrf.mxu0 }
 0x4cc   : > { %v1462_v28 = vpop.permute.xlu0 %1461 }
 0x4cd   : > { %v1458_v19 = vpop.permute.xlu1 %1457 }
 0x4ce   : > { %v1468_v29 = vsel %vm747_vm2, %v1452_v26, %v1458_v19  ;;  %v3600_v19 = vld [vmem:[%s3772_s17 + $0x8] sm:$0xff]  ;;  %v1693_v26 = vsub.s32 7, %v3344_v11 }
 0x4cf   : > { %v1469_v41 = vsel %vm1108_vm6, %v1468_v29, %v1462_v28  ;;  %v1765_v28 = vrot.slane %v3600_v19, %v664_v12 }
 0x4d0   : > { %v1694_v29 = vrot.slane %v3350_v13, %v1693_v26 }
 0x4d4   : > { %v1466_v42 = vpop.permute.xlu1 %1465 }
 0x4d5   : > { %v1471_v43 = vsel %vm1470_vm8, %v1469_v41, %v1466_v42 }
 0x4d6   : > { %v1472_v44 = vpack.c.bf16 %v1471_v43, %v1471_v43 }
 0x4d8   : > { %2902 = vmatmul.mubr.msk.bf16.vlgmr.msra.gmra.mxu1 %vm678_vm1, %v1472_v44 }
 0x4d9   : > { %2914 = vmatpush3.bf16.msra.mxu1 %v3068_v6  ;;  %2917 = vmatprep.mubr.msk.bf16.mxu1 %vm3155_vm0, %v3154_v1 }
 0x4da   : > { %2915 = vmatprep.subr.bf16.mxu1 %v3154_v1 }
 0x4dd   : > { %2916 = vmatpush3.bf16.msra.mxu1 %v3069_v45 }
 0x4de   : > { %2929 = vmatprep.subr.bf16.mxu1 %v3154_v1 }
 0x598   : > { %v1530_v53 = vpop.f32.mrf.mxu1 }
 0x599   : > { %v1531_v54 = vadd.f32 %v1530_v53, %v1480_v52 }
 0x59a   : > { %v2903_v55 = vpop.f32.mrf.mxu1 }
 0x59b   : > { %v1536_v56 = vpack.c.bf16 %v1531_v54, %v1531_v54 }
 0x59c   : > { %v1533_v57 = vpop.f32.mrf.mxu1 }
 0x59d   : > { %2918 = vmatmul.mubr.msk.bf16.vlgmr.msra.gmra.mxu1 %vm678_vm1, %v1536_v56  ;;  %v1834_v57 = vrot.slane %v3600_v19, %v760_v15 }
 0x59e   : > { %v2904_v58 = vpop.f32.mrf.mxu1  ;;  %2933 = vmatprep.mubr.msk.bf16.mxu1 %vm3155_vm0, %v3154_v1  ;;  %2930 = vmatpush3.bf16.msra.mxu1 %v3071_v17 }
 0x59f   : > { %2931 = vmatprep.subr.bf16.mxu1 %v3154_v1 }
 0x5a2   : > { %2932 = vmatpush3.bf16.msra.mxu1 %v3073_v18 }
 0x5a3   : > { %2945 = vmatprep.subr.bf16.mxu1 %v3154_v1 }
 0x65d   : > { %v1649_v60 = vpop.f32.mrf.mxu1 }
 0x65e   : > { %v1650_v61 = vadd.f32 %v1649_v60, %v1594_v46 }
 0x65f   : > { %v2919_v62 = vpop.f32.mrf.mxu1 }
 0x660   : > { %v1659_v63 = vadd.f32 %v1658_v59, %v1650_v61 }
 0x661   : > { %v1652_v0 = vpop.f32.mrf.mxu1 }
 0x662   : > { %v1660_v2 = vadd.f32 %v1659_v63, %v3307_v5  ;;  %v3072_v5 = vld [vmem:[%s3765_s10] sm:$0xff]  }
 0x663   : > { %v2920_v3 = vpop.f32.mrf.mxu1  ;;  %2924 = vmatpush3.bf16.msra.mxu0 %v3072_v5 }
 0x664   : > { %v1661_v4 = vsel %vm678_vm1, %v1660_v2, 0.0  ;;  %2937 = vmatprep.subr.bf16.mxu0 %v3154_v1 }
 0x665   : > { %1662 = vadd.xlane.f32.xlu0 %v1661_v4 }
 0x6ee   : > { %v1663_v7 = vpop.xlane.xlu0 %1662 }
 0x6ef   : > { %v1665_v8 = vmul.f32 0.03125, %v1663_v7 }
 0x6f1   : > { %v1666_v9 = vsub.f32 %v1660_v2, %v1665_v8 }
 0x6f3   : > { %v1667_v10 = vmul.f32 %v1666_v9, %v1666_v9 }
 0x6f5   : > { %v1668_v14 = vsel %vm678_vm1, %v1667_v10, 0.0 }
 0x6f6   : > { %1669 = vadd.xlane.f32.xlu1 %v1668_v14 }
 0x77f   : > { %v1670_v20 = vpop.xlane.xlu1 %1669 }
 0x780   : > { %v1671_v21 = vmul.f32 0.03125, %v1670_v20 }
 0x782   : > { %v1672_v22 = vadd.f32 1e-05, %v1671_v21 }
 0x784   : > { %3108 = vrsqrt.f32 %v1672_v22 }
 0x791   : > { %v3109_v27 = vpop.eup %3108 }
 0x792   : > { %v1674_v30 = vmul.f32 %v3109_v27, %v1666_v9 }
 0x794   : > { %v1679_v32 = vmul.f32 %v1678_v25, %v1674_v30 }
 0x796   : > { %v3575_v34 = vadd.f32 %v1683_v31, %v1679_v32 }
 0x798   : > { %v1685_v35 = vadd.f32 %v3575_v34, %v1419_v33  ;;  %v1826_v40 = vpack.c.bf16 %v3575_v34, %v3575_v34 }
 0x79a   : > { %v1686_v38 = vpack.c.bf16 %v1685_v35, %v1685_v35 }
 0x79c   : > { %2926 = vmatmul.mubr.msk.bf16.vlgmr.msra.gmra.mxu0 %vm678_vm1, %v1686_v38  ;;  %2934 = vmatmul.mubr.msk.bf16.vlgmr.msra.gmra.mxu1 %vm678_vm1, %v1686_v38 }
 0x79d   : > { %2938 = vmatpush3.bf16.msra.mxu0 %v3074_v36  ;;  %2941 = vmatprep.mubr.msk.bf16.mxu0 %vm3155_vm0, %v3154_v1 }
 0x79e   : > { %2939 = vmatprep.subr.bf16.mxu0 %v3154_v1  ;;  %2947 = vmatprep.mubr.msk.bf16.mxu1 %vm3155_vm0, %v3154_v1 }
 0x7a1   : > { %2940 = vmatpush3.bf16.msra.mxu0 %v3075_v39 }
 0x7a2   : > { %2951 = vmatprep.subr.bf16.mxu0 %v3154_v1 }
 0x7a4   : > { %2942 = vmatmul.mubr.msk.bf16.vlgmr.msra.gmra.mxu0 %vm678_vm1, %v1826_v40 }
 0x7a5   : > { %2953 = vmatprep.mubr.msk.bf16.mxu0 %vm3155_vm0, %v3154_v1 }
 0x85c   : > { %v1744_v41 = vpop.f32.mrf.mxu0  ;;  %v1812_v42 = vpop.f32.mrf.mxu1 }
 0x85d   : > { %v1813_v43 = vadd.f32 %v1812_v42, %v1765_v28  ;;  %v1745_v45 = vadd.f32 %v1744_v41, %v1694_v29 }
 0x85e   : > { %v2927_v6 = vpop.f32.mrf.mxu0  ;;  %v2935_v44 = vpop.f32.mrf.mxu1 }
 0x85f   : > { %v1818_v46 = vpack.c.bf16 %v1813_v43, %v1813_v43  ;;  %v1750_v53 = vpack.c.bf16 %v1745_v45, %v1745_v45 }
 0x860   : > { %v1747_v47 = vpop.f32.mrf.mxu0  ;;  %v1815_v48 = vpop.f32.mrf.mxu1 }
 0x861   : > { %1822 = vrot.lane.b32.xlu1 %v1818_v46, %s3156_s1  ;;  %1820 = vrot.lane.b32.xlu0 %v1818_v46, %s3157_s20  ;;  %v1902_v50 = vsel %vm747_vm2, %v1818_v46, 0 }
 0x862   : > { %v2928_v12 = vpop.f32.mrf.mxu0  ;;  %v2936_v52 = vpop.f32.mrf.mxu1  ;;  %2946 = vmatpush3.bf16.xpose.msra.mxu1 %v1902_v50 }
 0x863   : > { %2957 = vmatprep.subr.bf16.mxu1 %v3154_v1 }
 0x864   : > { %v1884_v13 = vpop.f32.mrf.mxu0 }
 0x865   : > { %1824 = vrot.lane.b32.xlu1 %v1818_v46, %s3158_s21  ;;  %1752 = vrot.lane.b32.xlu0 %v1750_v53, %s3157_s20  ;;  %v1885_v60 = vadd.f32 %v1884_v13, %v1834_v57 }
 0x866   : > { %v2943_v54 = vpop.f32.mrf.mxu0 }
 0x867   : > { %v3627_v0 = vpack.c.bf16 %v1885_v60, %v1885_v60 }
 0x868   : > { %v1887_v55 = vpop.f32.mrf.mxu0 }
 0x869   : > { %1756 = vrot.lane.b32.xlu1 %v1750_v53, %s3158_s21  ;;  %1754 = vrot.lane.b32.xlu0 %v1750_v53, %s3156_s1  ;;  %v2135_v4 = vsel %vm2133_vm9, %v3627_v0, 0 }
 0x86a   : > { %2948 = vmatmul.mubr.msk.bf16.vlgmr.msra.gmra.mxu1 %vm747_vm2, %v1750_v53  ;;  %v2944_v56 = vpop.f32.mrf.mxu0 }
 0x86b   : > { %2959 = vmatprep.mubr.msk.bf16.mxu1 %vm3155_vm0, %v3154_v1 }
 0x8d3   : > { %v1823_v58 = vpop.permute.xlu1 %1822  ;;  %v1821_v59 = vpop.permute.xlu0 %1820 }
 0x8d4   : > { %v1994_v61 = vsel %vm747_vm2, %v1823_v58, 0  ;;  %v1948_v62 = vsel %vm747_vm2, %v1821_v59, 0 }
 0x8d5   : > { %2952 = vmatpush3.bf16.xpose.msra.mxu0 %v1948_v62  ;;  %2958 = vmatpush3.bf16.xpose.msra.mxu1 %v1994_v61 }
 0x8d6   : > { %2963 = vmatprep.subr.bf16.mxu0 %v3154_v1  ;;  %2969 = vmatprep.subr.bf16.mxu1 %v3154_v1 }
 0x8d7   : > { %v1753_v63 = vpop.permute.xlu0 %1752  ;;  %v1825_v2 = vpop.permute.xlu1 %1824 }
 0x8d8   : > { %v2040_v15 = vsel %vm747_vm2, %v1825_v2, 0 }
 0x8db   : > { %v1755_v3 = vpop.permute.xlu0 %1754  ;;  %v1757_v7 = vpop.permute.xlu1 %1756 }
 0x8dc   : > { %2954 = vmatmul.mubr.msk.bf16.vlgmr.msra.gmra.mxu0 %vm747_vm2, %v1753_v63  ;;  %2960 = vmatmul.mubr.msk.bf16.vlgmr.msra.gmra.mxu1 %vm747_vm2, %v1755_v3 }
 0x8dd   : > { %2964 = vmatpush3.bf16.xpose.msra.mxu0 %v2040_v15  ;;  %2970 = vmatpush3.bf16.msra.mxu1 %v2135_v4 }
 0x8de   : > { %2965 = vmatprep.mubr.msk.bf16.mxu0 %vm3155_vm0, %v3154_v1  ;;  %2975 = vmatprep.subr.bf16.mxu0 %v3154_v1 }
 0x8df   : > { %2971 = vmatprep.mubr.msk.bf16.mxu1 %vm3155_vm0, %v3154_v1  ;;  %2981 = vmatprep.subr.bf16.mxu1 %v3154_v1 }
 0x8e4   : > { %2966 = vmatmul.mubr.msk.bf16.vlgmr.msra.gmra.mxu0 %vm747_vm2, %v1757_v7 }
 0x8e5   : > { %2977 = vmatprep.mubr.msk.bf16.mxu0 %vm3155_vm0, %v3154_v1 }
 0x92a   : > { %v1938_v8 = vpop.f32.mrf.mxu1 }
 0x92b   : > { %v2082_v9 = vsel %vm747_vm2, %v1938_v8, -inf }
 0x92c   : > { %2083 = vmax.xlane.f32.xlu0 %v2082_v9  ;;  %v2949_v10 = vpop.f32.mrf.mxu1 }
 0x92e   : > { %v1941_v14 = vpop.f32.mrf.mxu1 }
 0x930   : > { %v2950_v16 = vpop.f32.mrf.mxu1 }
 0x99c   : > { %v1984_v17 = vpop.f32.mrf.mxu0  ;;  %v2030_v5 = vpop.f32.mrf.mxu1 }
 0x99d   : > { %v2088_v18 = vsel %vm747_vm2, %v2030_v5, -inf  ;;  %v2085_v20 = vsel %vm747_vm2, %v1984_v17, -inf }
 0x99e   : > { %2089 = vmax.xlane.f32.xlu0 %v2088_v18  ;;  %v2961_v21 = vpop.f32.mrf.mxu1  ;;  %2086 = vmax.xlane.f32.xlu1 %v2085_v20  ;;  %v2955_v22 = vpop.f32.mrf.mxu0 }
 0x9a0   : > { %v1987_v25 = vpop.f32.mrf.mxu0  ;;  %v2033_v27 = vpop.f32.mrf.mxu1 }
 0x9a1   : > { %v3076_v27 = vld [vmem:[%s3768_s13 + $0x8] sm:$0xff]  }
 0x9a2   : > { %v2956_v30 = vpop.f32.mrf.mxu0  ;;  %v2962_v31 = vpop.f32.mrf.mxu1 }
 0x9a3   : > { %v3077_v30 = vld [vmem:[%s3768_s13] sm:$0xff]  }
 0x9a4   : > { %v2076_v32 = vpop.f32.mrf.mxu0 }
 0x9a5   : > { %v2091_v33 = vsel %vm747_vm2, %v2076_v32, -inf }
 0x9a6   : > { %2092 = vmax.xlane.f32.xlu0 %v2091_v33  ;;  %v2967_v35 = vpop.f32.mrf.mxu0 }
 0x9a8   : > { %v2079_v36 = vpop.f32.mrf.mxu0 }
 0x9aa   : > { %v2968_v38 = vpop.f32.mrf.mxu0 }
 0x9af   : > { %1892 = vrot.lane.b32.xlu1 %v3627_v0, %s3157_s20  ;;  %s646_s20 = scalar_lea.vmem %s3773_s18, %s3300_s24 }
 0x9b5   : > { %v2084_v39 = vpop.xlane.xlu0 %2083 }
 0x9b6   : > { %v2094_v40 = vsub.f32 %v1938_v8, %v2084_v39 }
 0x9b8   : > { %v2098_v28 = vmul.f32 1.442695, %v2094_v40 }
 0x9ba   : > { %3110 = vpow2.f32 %v2098_v28 }
 0x9c7   : > { %v3111_v29 = vpop.eup %3110 }
 0x9c8   : > { %v2106_v41 = vsel %vm747_vm2, %v3111_v29, 0.0 }
 0x9d3   : > { %2107 = vadd.xlane.f32.xlu1 %v2106_v41 }
 0xa27   : > { %v2090_v42 = vpop.xlane.xlu0 %2089  ;;  %v2087_v43 = vpop.xlane.xlu1 %2086 }
 0xa28   : > { %v2096_v6 = vsub.f32 %v2030_v5, %v2090_v42  ;;  %v2095_v44 = vsub.f32 %v1984_v17, %v2087_v43 }
 0xa2a   : > { %v2102_v45 = vmul.f32 1.442695, %v2096_v6  ;;  %v2100_v46 = vmul.f32 1.442695, %v2095_v44 }
 0xa2b   : > { %v1893_v47 = vpop.permute.xlu1 %1892 }
 0xa2c   : > { %3112 = vpow2.f32 %v2102_v45  ;;  %v2181_v48 = vsel %vm2133_vm9, %v1893_v47, 0 }
 0xa2d   : > { %3114 = vpow2.f32 %v2100_v46  ;;  %2976 = vmatpush3.bf16.msra.mxu0 %v2181_v48 }
 0xa2e   : > { %2987 = vmatprep.subr.bf16.mxu0 %v3154_v1 }
 0xa2f   : > { %v2093_v50 = vpop.xlane.xlu0 %2092 }
 0xa30   : > { %v2097_v12 = vsub.f32 %v2076_v32, %v2093_v50  ;;  %v2338_v50 = vrot.slane %v3600_v19, %v838_v37  ;;  %v3078_v37 = vld [vmem:[%s3769_s14 + $0x8] sm:$0xff]  }
 0xa32   : > { %v2104_v52 = vmul.f32 1.442695, %v2097_v12 }
 0xa34   : > { %3116 = vpow2.f32 %v2104_v52 }
 0xa39   : > { %v3113_v53 = vpop.eup %3112 }
 0xa3a   : > { %v3115_v13 = vpop.eup %3114  ;;  %v2112_v54 = vsel %vm747_vm2, %v3113_v53, 0.0 }
 0xa3b   : > { %2113 = vadd.xlane.f32.xlu1 %v2112_v54  ;;  %v2109_v55 = vsel %vm747_vm2, %v3115_v13, 0.0 }
 0xa3c   : > { %2110 = vadd.xlane.f32.xlu0 %v2109_v55 }
 0xa41   : > { %v3117_v56 = vpop.eup %3116 }
 0xa42   : > { %v2115_v57 = vsel %vm747_vm2, %v3117_v56, 0.0 }
 0xa43   : > { %2116 = vadd.xlane.f32.xlu0 %v2115_v57 }
 0xa4c   : > { %1896 = vrot.lane.b32.xlu1 %v3627_v0, %s3158_s21 }
 0xa59   : > { %1894 = vrot.lane.b32.xlu0 %v3627_v0, %s3156_s1 }
 0xa5c   : > { %v2108_v58 = vpop.xlane.xlu1 %2107 }
 0xa5d   : > { %3118 = vrcp.f32 %v2108_v58 }
 0xa6a   : > { %v3119_v59 = vpop.eup %3118 }
 0xa6b   : > { %v2122_v60 = vmul.f32 %v3119_v59, %v3111_v29 }
 0xa6d   : > { %v2126_v61 = vpack.c.bf16 %v2122_v60, %v2122_v60 }
 0xa6f   : > { %2972 = vmatmul.mubr.msk.bf16.vlgmr.msra.gmra.mxu1 %vm747_vm2, %v2126_v61 }
 0xa70   : > { %2983 = vmatprep.mubr.msk.bf16.mxu1 %vm3155_vm0, %v3154_v1 }
 0xac4   : > { %v2114_v62 = vpop.xlane.xlu1 %2113 }
 0xac5   : > { %3120 = vrcp.f32 %v2114_v62  ;;  %v2111_v63 = vpop.xlane.xlu0 %2110  ;;  %v3080_v62 = vld [vmem:[%s3771_s16 + $0x18] sm:$0xff]  }
 0xac6   : > { %3122 = vrcp.f32 %v2111_v63  ;;  %v3081_v63 = vld [vmem:[%s3771_s16 + $0x10] sm:$0xff]  }
 0xac8   : > { %v1897_v9 = vpop.permute.xlu1 %1896 }
 0xac9   : > { %v2273_v16 = vsel %vm2133_vm9, %v1897_v9, 0 }
 0xacc   : > { %v2117_v2 = vpop.xlane.xlu0 %2116 }
 0xacd   : > { %3124 = vrcp.f32 %v2117_v2 }
 0xad0   : > { %v1895_v3 = vpop.permute.xlu0 %1894 }
 0xad1   : > { %v2227_v15 = vsel %vm2133_vm9, %v1895_v3, 0 }
 0xad2   : > { %v3121_v0 = vpop.eup %3120  ;;  %2982 = vmatpush3.bf16.msra.mxu1 %v2227_v15 }
 0xad3   : > { %v3123_v4 = vpop.eup %3122  ;;  %v2124_v7 = vmul.f32 %v3121_v0, %v3113_v53  ;;  %2993 = vmatprep.subr.bf16.mxu1 %v3154_v1  ;;  %v2411_v0 = vrot.slane %v3600_v19, %v1479_v51  ;;  %v3083_v51 = vld [vmem:[%s3771_s16] sm:$0xff]  }
 0xad4   : > { %v2123_v8 = vmul.f32 %v3123_v4, %v3115_v13 }
 0xad5   : > { %v2128_v10 = vpack.c.bf16 %v2124_v7, %v2124_v7  ;;  %v2416_v7 = vrot.slane %v3600_v19, %v1657_v49  ;;  %v2743_v49 = vld [vmem:[%s3770_s15] ss:$0 sm:$0xff] }
 0xad6   : > { %v2127_v14 = vpack.c.bf16 %v2123_v8, %v2123_v8 }
 0xad7   : > { %2984 = vmatmul.mubr.msk.bf16.vlgmr.msra.gmra.mxu1 %vm747_vm2, %v2128_v10 }
 0xad8   : > { %2978 = vmatmul.mubr.msk.bf16.vlgmr.msra.gmra.mxu0 %vm747_vm2, %v2127_v14  ;;  %2997 = vmatprep.mubr.msk.bf16.mxu1 %vm3155_vm0, %v3154_v1 }
 0xad9   : > { %2988 = vmatpush3.bf16.msra.mxu0 %v2273_v16  ;;  %2989 = vmatprep.mubr.msk.bf16.mxu0 %vm3155_vm0, %v3154_v1  ;;  %v3082_v16 = vld [vmem:[%s3771_s16 + $0x8] sm:$0xff]  }
 0xada   : > { %v3125_v17 = vpop.eup %3124  ;;  %3001 = vmatprep.subr.bf16.mxu0 %v3154_v1  ;;  %2994 = vmatpush3.bf16.msra.mxu1 %v3076_v27 }
 0xadb   : > { %v2125_v5 = vmul.f32 %v3125_v17, %v3117_v56  ;;  %2995 = vmatprep.subr.bf16.mxu1 %v3154_v1 }
 0xadd   : > { %v2129_v18 = vpack.c.bf16 %v2125_v5, %v2125_v5 }
 0xade   : > { %2996 = vmatpush3.bf16.msra.mxu1 %v3077_v30 }
 0xadf   : > { %3009 = vmatprep.subr.bf16.mxu1 %v3154_v1 }
 0xae0   : > { %2990 = vmatmul.mubr.msk.bf16.vlgmr.msra.gmra.mxu0 %vm747_vm2, %v2129_v18 }
 0xae1   : > { %3005 = vmatprep.mubr.msk.bf16.mxu0 %vm3155_vm0, %v3154_v1  ;;  %3002 = vmatpush3.bf16.msra.mxu0 %v3078_v37 }
 0xae2   : > { %3003 = vmatprep.subr.bf16.mxu0 %v3154_v1 }
 0xb2f   : > { %v2171_v20 = vpop.f32.mrf.mxu1 }
 0xb31   : > { %v2973_v21 = vpop.f32.mrf.mxu1 }
 0xb33   : > { %v2174_v22 = vpop.f32.mrf.mxu1 }
 0xb35   : > { %v2974_v25 = vpop.f32.mrf.mxu1 }
 0xb97   : > { %v2263_v31 = vpop.f32.mrf.mxu1 }
 0xb98   : > { %v2217_v32 = vpop.f32.mrf.mxu0  ;;  %2320 = vrot.lane.b32.xlu0 %v2263_v31, %s3785_s0 }
 0xb99   : > { %2316 = vrot.lane.b32.xlu1 %v2217_v32, %s3786_s27  ;;  %v2985_v33 = vpop.f32.mrf.mxu1 }
 0xb9a   : > { %v2979_v35 = vpop.f32.mrf.mxu0 }
 0xb9b   : > { %v2266_v36 = vpop.f32.mrf.mxu1 }
 0xb9c   : > { %v2220_v38 = vpop.f32.mrf.mxu0 }
 0xb9d   : > { %v2986_v39 = vpop.f32.mrf.mxu1 }
 0xb9e   : > { %v2980_v40 = vpop.f32.mrf.mxu0 }
 0xba0   : > { %v2309_v28 = vpop.f32.mrf.mxu0 }
 0xba1   : > { %2324 = vrot.lane.b32.xlu1 %v2309_v28, %s3787_s19 }
 0xba2   : > { %v2991_v29 = vpop.f32.mrf.mxu0 }
 0xba4   : > { %v2312_v41 = vpop.f32.mrf.mxu0 }
 0xba6   : > { %v2992_v42 = vpop.f32.mrf.mxu0 }
 0xc0a   : > { %v2321_v6 = vpop.permute.xlu0 %2320 }
 0xc0b   : > { %v2317_v43 = vpop.permute.xlu1 %2316 }
 0xc0c   : > { %v2327_v44 = vsel %vm747_vm2, %v2171_v20, %v2317_v43  ;;  %v2584_v43 = vrot.slane %v3600_v19, %v1682_v24 }
 0xc0d   : > { %v2328_v45 = vsel %vm1108_vm6, %v2327_v44, %v2321_v6  ;;  %v2589_v44 = vrot.slane %v3600_v19, %v1693_v26 }
 0xc13   : > { %v2325_v46 = vpop.permute.xlu1 %2324 }
 0xc14   : > { %v2329_v47 = vsel %vm1470_vm8, %v2328_v45, %v2325_v46 }
 0xc15   : > { %v2330_v48 = vpack.c.bf16 %v2329_v47, %v2329_v47 }
 0xc17   : > { %2998 = vmatmul.mubr.msk.bf16.vlgmr.msra.gmra.mxu1 %vm678_vm1, %v2330_v48 }
 0xc18   : > { %3017 = vmatprep.mubr.msk.bf16.mxu1 %vm3155_vm0, %v3154_v1  ;;  %3010 = vmatpush3.bf16.msra.mxu1 %v3080_v62 }
 0xc19   : > { %3011 = vmatprep.subr.bf16.mxu1 %v3154_v1 }
 0xc1c   : > { %3012 = vmatpush3.bf16.msra.mxu1 %v3081_v63 }
 0xc1d   : > { %3013 = vmatprep.subr.bf16.mxu1 %v3154_v1 }
 0xc20   : > { %3014 = vmatpush3.bf16.msra.mxu1 %v3082_v16 }
 0xc21   : > { %3015 = vmatprep.subr.bf16.mxu1 %v3154_v1  ;;  %v2498_v1 = vrot.slane %v3600_v19, %v1677_v23 }
 0xc24   : > { %3016 = vmatpush3.bf16.msra.mxu1 %v3083_v51 }
 0xcd7   : > { %v2388_v12 = vpop.f32.mrf.mxu1 }
 0xcd8   : > { %v2389_v52 = vadd.f32 %v2388_v12, %v2338_v50 }
 0xcd9   : > { %v2999_v53 = vpop.f32.mrf.mxu1 }
 0xcda   : > { %v2394_v13 = vadd.f32 %v2389_v52, %v3575_v34  ;;  %v3079_v34 = vld [vmem:[%s3769_s14] sm:$0xff]  }
 0xcdb   : > { %v2391_v54 = vpop.f32.mrf.mxu1  ;;  %3004 = vmatpush3.bf16.msra.mxu0 %v3079_v34 }
 0xcdc   : > { %v2395_v55 = vsel %vm678_vm1, %v2394_v13, 0.0 }
 0xcdd   : > { %2396 = vadd.xlane.f32.xlu0 %v2395_v55  ;;  %v3000_v56 = vpop.f32.mrf.mxu1 }
 0xd66   : > { %v2397_v57 = vpop.xlane.xlu0 %2396 }
 0xd67   : > { %v2398_v58 = vmul.f32 0.03125, %v2397_v57 }
 0xd69   : > { %v2399_v59 = vsub.f32 %v2394_v13, %v2398_v58 }
 0xd6b   : > { %v2400_v60 = vmul.f32 %v2399_v59, %v2399_v59 }
 0xd6d   : > { %v2401_v61 = vsel %vm678_vm1, %v2400_v60, 0.0 }
 0xd6e   : > { %2402 = vadd.xlane.f32.xlu1 %v2401_v61 }
 0xdf7   : > { %v2403_v2 = vpop.xlane.xlu1 %2402 }
 0xdf8   : > { %v2404_v3 = vmul.f32 0.03125, %v2403_v2 }
 0xdfa   : > { %v2405_v15 = vadd.f32 1e-05, %v2404_v3 }
 0xdfc   : > { %3126 = vrsqrt.f32 %v2405_v15 }
 0xe09   : > { %v3127_v4 = vpop.eup %3126 }
 0xe0a   : > { %v2407_v8 = vmul.f32 %v3127_v4, %v2399_v59 }
 0xe0c   : > { %v2412_v9 = vmul.f32 %v2411_v0, %v2407_v8 }
 0xe0e   : > { %v2417_v10 = vadd.f32 %v2416_v7, %v2412_v9 }
 0xe10   : > { %v2418_v14 = vpack.c.bf16 %v2417_v10, %v2417_v10 }
 0xe12   : > { %3006 = vmatmul.mubr.msk.bf16.vlgmr.msra.gmra.mxu0 %vm678_vm1, %v2418_v14 }
 0xed2   : > { %v2479_v17 = vpop.f32.mrf.mxu0 }
 0xed3   : > { %v2480_v5 = vadd.f32 %v2743_v49, %v2479_v17 }
 0xed4   : > { %v3007_v18 = vpop.f32.mrf.mxu0 }
 0xed5   : > { %v2485_v20 = vmax.f32 %v2480_v5, 0.0 }
 0xed6   : > { %v2482_v21 = vpop.f32.mrf.mxu0 }
 0xed7   : > { %v2486_v22 = vpack.c.bf16 %v2485_v20, %v2485_v20 }
 0xed8   : > { %v3008_v25 = vpop.f32.mrf.mxu0 }
 0xed9   : > { %3018 = vmatmul.mubr.msk.bf16.vlgmr.msra.gmra.mxu1 %vm2523_vm10, %v2486_v22 }
 0xf99   : > { %v2561_v27 = vpop.f32.mrf.mxu1 }
 0xf9a   : > { %v2562_v30 = vadd.f32 %v2561_v27, %v2498_v1 }
 0xf9b   : > { %v3019_v31 = vpop.f32.mrf.mxu1 }
 0xf9c   : > { %v2567_v32 = vadd.f32 %v2562_v30, %v2417_v10 }
 0xf9d   : > { %v2564_v33 = vpop.f32.mrf.mxu1 }
 0xf9e   : > { %v2568_v35 = vsel %vm678_vm1, %v2567_v32, 0.0 }
 0xf9f   : > { %2569 = vadd.xlane.f32.xlu0 %v2568_v35  ;;  %v3020_v36 = vpop.f32.mrf.mxu1 }
0x1028   : > { %v2570_v38 = vpop.xlane.xlu0 %2569 }
0x1029   : > { %v2571_v39 = vmul.f32 0.03125, %v2570_v38 }
0x102b   : > { %v2572_v40 = vsub.f32 %v2567_v32, %v2571_v39 }
0x102d   : > { %v2573_v28 = vmul.f32 %v2572_v40, %v2572_v40 }
0x102f   : > { %v2574_v29 = vsel %vm678_vm1, %v2573_v28, 0.0 }
0x1030   : > { %2575 = vadd.xlane.f32.xlu0 %v2574_v29 }
0x10b9   : > { %v2576_v41 = vpop.xlane.xlu0 %2575 }
0x10ba   : > { %v2577_v42 = vmul.f32 0.03125, %v2576_v41 }
0x10bc   : > { %v2578_v23 = vadd.f32 1e-05, %v2577_v42 }
0x10be   : > { %3128 = vrsqrt.f32 %v2578_v23 }
0x10cb   : > { %v3129_v6 = vpop.eup %3128 }
0x10cc   : > { %v2580_v45 = vmul.f32 %v3129_v6, %v2572_v40 }
0x10ce   : > { %v2585_v46 = vmul.f32 %v2584_v43, %v2580_v45 }
0x10d0   : > { %v2590_v47 = vadd.f32 %v2589_v44, %v2585_v46 }
0x10d2   : > { %2591 = vst.msk [vmem:[%s646_s20] sm:$0xff] %vm678_vm1, %v2590_v47 }
0x10d3 PF: > { %s28_s29 = sadd.s32 1, %s3152_s29   ;;  %s3788_s27 = smov %s3148_s28 }
0x10d4   : > { %p25_p5 = scmp.ge.s32.totalorder %s28_s29, 4   ;;  %s3789_s28 = smov %s3791_s30 }
0x10d6   :  { %27 = sbr.rel (!%p25_p5) target bundleno = 4 (0x4), region = 136 }

// kernel: decoder_forward.24
= control target key start
LH: loop header
LB: loop body
LE: loop exit
PB: predicated region body
PF: predicated region fallthrough
CT: control target
= control target key end

     0   :  { %s3530_s27 = smov 0   ;;  %s3532_s28 = smov 0   ;;  %s4117_s0 = inlined_call_operand.vmem [shape: f32[2,8,32], index: 0, kind: input, shape index: {}]   ;;  %s4118_s1 = inlined_call_operand.vmem [shape: bf16[2,64,32], index: 1, kind: input, shape index: {}]   ;;  %s4119_s2 = inlined_call_operand.vmem [shape: f32[8,32], index: 2, kind: input, shape index: {}]   ;;  %s4120_s3 = inlined_call_operand.vmem [shape: s8[2,8,64], index: 3, kind: input, shape index: {}]   ;;  %s4121_s4 = inlined_call_operand.vmem [shape: bf16[32,32], index: 4, kind: input, shape index: {}]   ;;  %s4122_s5 = inlined_call_operand.vmem [shape: bf16[32,32], index: 5, kind: input, shape index: {}]   ;;  %s4123_s6 = inlined_call_operand.vmem [shape: bf16[32,32], index: 6, kind: input, shape index: {}]   ;;  %s4124_s7 = inlined_call_operand.vmem [shape: bf16[32,32], index: 7, kind: input, shape index: {}]   ;;  %s4125_s8 = inlined_call_operand.vmem [shape: bf16[32,32], index: 8, kind: input, shape index: {}]   ;;  %s4126_s9 = inlined_call_operand.vmem [shape: bf16[32,32], index: 9, kind: input, shape index: {}]   ;;  %s4127_s10 = inlined_call_operand.vmem [shape: bf16[32,32], index: 10, kind: input, shape index: {}]   ;;  %s4128_s11 = inlined_call_operand.vmem [shape: bf16[32,32], index: 11, kind: input, shape index: {}]   ;;  %s4129_s12 = inlined_call_operand.vmem [shape: bf16[32,32], index: 12, kind: input, shape index: {}]   ;;  %s4130_s13 = inlined_call_operand.vmem [shape: bf16[32,32], index: 13, kind: input, shape index: {}]   ;;  %s4131_s14 = inlined_call_operand.vmem [shape: bf16[32,64], index: 14, kind: input, shape index: {}]   ;;  %s4132_s15 = inlined_call_operand.vmem [shape: f32[1,64], index: 15, kind: input, shape index: {}]   ;;  %s4133_s16 = inlined_call_operand.vmem [shape: bf16[64,32], index: 16, kind: input, shape index: {}]   ;;  %s4134_s17 = inlined_call_operand.vmem [shape: f32[16,32], index: 17, kind: input, shape index: {}]   ;;  %s4135_s18 = inlined_call_operand.vmem [shape: f32[2,8,32], index: 18, kind: output, shape index: {}]  }
   0x1   :  { %4140 = sst [smem:[#allocation6_spill]] %s4117_s0  ;;  %s3534_s29 = smov 0  }
   0x2   :  { %4141 = sst [smem:[#allocation7_spill]] %s4118_s1 }
   0x3   :  { %4142 = sst [smem:[#allocation8_spill]] %s4119_s2 }
   0x4 LB: > { %s40_s30 = sadd.s32 1, %s3419_s28  ;;  %p2861_p0 = scmp.ge.s32.totalorder %s3423_s29, 1  ;;  %s3423_s29 = sphi %s3534_s29, %s28_s29   ;;  %s3419_s28 = sphi %s3532_s28, %s4153_s28   ;;  %s3415_s27 = sphi %s3530_s27, %s4152_s27  }
   0x5   : > { %p42_p1 = scmp.ge.s32.totalorder %s40_s30, 2  ;;  %p554_p2 = scmp.lt.s32.totalorder %s3423_s29, 3 }
   0x7   : > { %s4155_s30 = smov (%p42_p1, %s40_s30), 0  ;;  %p555_p3 = pnand %p2861_p0, %p554_p2 }
   0x8   : > { %p622_p4 = scmp.lt.s32.totalorder (!%p555_p3), %s3415_s27, 1  ;;  %s4143_s19 = sld [smem:[#allocation7_spill]] (!%p555_p3) }
   0x9   : > { %558 = sbr.rel (%p555_p3) target bundleno = 4361 (0x1109), region = 92  ;;  %s4144_s22 = sld [smem:[#allocation6_spill]] (!%p555_p3) }
   0xa   : > { %s3427_s20 = smov (!%p555_p3), 120   ;;  %s3428_s21 = smov (!%p555_p3), 112  }
   0xb   : > { %s4137_s24 = smov (!%p555_p3), 16   ;;  %s4138_s26 = smov (!%p555_p3), 24  }
   0xe   : > { %v3323_v0 = vld [vmem:[%s4122_s5 + $0x8] sm:$0xff]   ;;  %v3324_v1 = vld [vmem:[%s4122_s5] sm:$0xff]   ;;  %s4157_s27 = smov (!%p622_p4, %s3415_s27), 1  ;;  %v3425_v2 = vmov 0.0   ;;  %vm678_vm0 = vcmask 261120   ;;  %vm3426_vm1 = vmmov 0   ;;  %v662_v13 = vlaneseq }
   0xf   : > { %3043 = vmatprep.subr.bf16.mxu1 %v3323_v0  ;;  %3035 = vmatprep.subr.bf16.mxu0 %v3425_v2  ;;  %v3329_v3 = vld [vmem:[%s4121_s4 + $0x8] sm:$0xff]   ;;  %s2934_s2 = sshll.u32 %s4157_s27, 5  ;;  %v3330_v4 = vld [vmem:[%s4121_s4] sm:$0xff]   ;;  %s4136_s25 = sshll.u32 %s4157_s27, 3  ;;  %vm747_vm2 = vcmask 64512   ;;  %vm733_vm3 = vcmask 60416  }
  0x10   : > { %3044 = vmatpush3.bf16.msra.mxu1 %v3323_v0  ;;  %3039 = vmatprep.mubr.msk.bf16.mxu0 %vm3426_vm1, %v3425_v2  ;;  %s634_s1 = scalar_lea.vmem %s4143_s19, %s2934_s2  ;;  %s3576_s23 = scalar_lea.vmem %s4144_s22, %s4136_s25  ;;  %748 = vst.msk [vmem:[#allocation5] sm:$0xff] %vm747_vm2, %v3425_v2  ;;  %749 = vst.msk [vmem:[#allocation5 + $0x8] sm:$0xff] %vm747_vm2, %v3425_v2  ;;  %v3331_v11 = vld [vmem:[%s4123_s6 + $0x8] sm:$0xff]   ;;  %v3332_v12 = vld [vmem:[%s4123_s6] sm:$0xff]   ;;  %v3611_v14 = vshrl.u32 %v662_v13, 7  ;;  %v3430_v51 = vmov 0  }
  0x11   : > { %3045 = vmatprep.subr.bf16.mxu1 %v3324_v1  ;;  %3036 = vmatpush3.bf16.msra.mxu0 %v3329_v3  ;;  %v3325_v5 = vld [vmem:[%s634_s1] sm:$0xff]   ;;  %v3326_v6 = vld [vmem:[%s634_s1 + $0x8] sm:$0xff]   ;;  %v3327_v7 = vld [vmem:[%s634_s1 + $0x10] sm:$0xff]   ;;  %750 = vst.msk [vmem:[#allocation5 + $0x10] sm:$0xff] %vm747_vm2, %v3425_v2  ;;  %s3429_s22 = smov 104   ;;  %s2865_s2 = sshll.u32 %s4157_s27, 1 }
  0x12   : > { %3037 = vmatprep.subr.bf16.mxu0 %v3425_v2  ;;  %3047 = vmatprep.mubr.msk.bf16.mxu1 %vm678_vm0, %v3325_v5  ;;  %v656_v8 = vld [vmem:[%s3576_s23] sm:$0xff]  ;;  %v3328_v10 = vld [vmem:[%s634_s1 + $0x18] sm:$0xff]   ;;  %751 = vst.msk [vmem:[#allocation5 + $0x18] sm:$0xff] %vm747_vm2, %v3425_v2  ;;  %v664_v15 = vsub.s32 0, %v3611_v14  ;;  %v766_v16 = vsub.s32 1, %v3611_v14  ;;  %v916_v13 = vsub.s32 2, %v3611_v14  ;;  %s642_s0 = scalar_lea.vmem %s4120_s3, %s2865_s2 }
  0x13   : > { %v3583_v9 = vpack.c.bf16 %v656_v8, %v656_v8  ;;  %v3618_v17 = vld [vmem:[%s4134_s17] sm:$0xff]  ;;  %3321 = vset.pattern.permute.xlu0 %v3430_v51  ;;  %3322 = vset.pattern.permute.xlu1 %v3430_v51  ;;  %vm738_vm5 = vcmask 7168   ;;  %vm1279_vm7 = vcmask 523264   ;;  %s4139_s2 = smov 8   ;;  %vm1640_vm8 = vcmask 130048   ;;  %s4147_s1 = sld [smem:[#allocation8_spill]] }
  0x14   : > { %3046 = vmatpush3.bf16.msra.mxu1 %v3324_v1  ;;  %v665_v19 = vrot.slane %v3618_v17, %v664_v15  ;;  %v767_v20 = vrot.slane %v3618_v17, %v766_v16  ;;  %743 = vst.msk [vmem:[#allocation4] sm:$0xff] %vm738_vm5, %v3425_v2  ;;  %744 = vst.msk [vmem:[#allocation4 + $0x8] sm:$0xff] %vm738_vm5, %v3425_v2  ;;  %vm1642_vm9 = vcmask 195584   ;;  %vm2305_vm10 = vcmask 1043456  }
  0x15   : > { %3067 = vmatprep.subr.bf16.mxu1 %v3425_v2  ;;  %3038 = vmatpush3.bf16.msra.mxu0 %v3330_v4  ;;  %745 = vst.msk [vmem:[#allocation4 + $0x10] sm:$0xff] %vm738_vm5, %v3425_v2  ;;  %746 = vst.msk [vmem:[#allocation4 + $0x18] sm:$0xff] %vm738_vm5, %v3425_v2 }
  0x16   : > { %3055 = vmatprep.subr.bf16.mxu0 %v3331_v11 }
  0x17   : > { %3048 = vmatmul.mubr.msk.bf16.vlgmr.msra.gmra.mxu1 %vm678_vm0, %v3326_v6 }
  0x18   : > { %3051 = vmatprep.mubr.msk.bf16.mxu1 %vm678_vm0, %v3327_v7  ;;  %3040 = vmatmul.mubr.msk.bf16.vlgmr.msra.gmra.mxu0 %vm678_vm0, %v3583_v9 }
  0x19   : > { %3059 = vmatprep.mubr.msk.bf16.mxu0 %vm678_vm0, %v3325_v5  ;;  %3056 = vmatpush3.bf16.msra.mxu0 %v3331_v11 }
  0x1a   : > { %3057 = vmatprep.subr.bf16.mxu0 %v3332_v12 }
  0x1d   : > { %3058 = vmatpush3.bf16.msra.mxu0 %v3332_v12 }
  0x1e   : > { %3079 = vmatprep.subr.bf16.mxu0 %v3425_v2 }
  0x1f   : > { %3052 = vmatmul.mubr.msk.bf16.gmra.mxu1 %vm678_vm0, %v3328_v10 }
  0x20   : > { %3075 = vmatprep.mubr.msk.bf16.mxu1 %vm3426_vm1, %v3425_v2  ;;  %3060 = vmatmul.mubr.msk.bf16.vlgmr.msra.gmra.mxu0 %vm678_vm0, %v3326_v6 }
  0x21   : > { %3063 = vmatprep.mubr.msk.bf16.mxu0 %vm678_vm0, %v3327_v7 }
  0x28   : > { %3064 = vmatmul.mubr.msk.bf16.gmra.mxu0 %vm678_vm0, %v3328_v10 }
  0x29   : > { %3087 = vmatprep.mubr.msk.bf16.mxu0 %vm3426_vm1, %v3425_v2 }
  0xd7   : > { %v3049_v18 = vpop.f32.mrf.mxu1 }
  0xd8   : > { %v716_v22 = vpop.f32.mrf.mxu0  ;;  %v856_v25 = vadd.f32 %v3049_v18, %v767_v20 }
  0xd9   : > { %v847_v21 = vpop.f32.mrf.mxu1  ;;  %v717_v24 = vadd.f32 %v716_v22, %v665_v19 }
  0xda   : > { %v3041_v27 = vpop.f32.mrf.mxu0  ;;  %v848_v34 = vadd.f32 %v847_v21, %v767_v20 }
  0xdb   : > { %v3050_v23 = vpop.f32.mrf.mxu1  ;;  %v722_v29 = vpack.c.bf16 %v717_v24, %v717_v24 }
  0xdc   : > { %v859_v26 = vadd.f32 %v3050_v23, %v767_v20  ;;  %v719_v32 = vpop.f32.mrf.mxu0 }
  0xdd   : > { %v850_v28 = vpop.f32.mrf.mxu1  ;;  %734 = vst.msk [vmem:[#allocation2] sm:$0xf] %vm733_vm3, %v722_v29 }
  0xde   : > { %v879_v30 = vpack.c.bf16 %v859_v26, %v856_v25  ;;  %v851_v31 = vadd.f32 %v850_v28, %v767_v20  ;;  %v3042_v35 = vpop.f32.mrf.mxu0 }
  0xdf   : > { %v3053_v33 = vpop.f32.mrf.mxu1 }
  0xe0   : > { %888 = vrot.lane.b32.xlu1 %v879_v30, %s3427_s20  ;;  %v878_v37 = vpack.c.bf16 %v851_v31, %v848_v34  ;;  %v872_v39 = vadd.f32 %v3053_v33, %v767_v20  ;;  %v1051_v48 = vsel %vm747_vm2, %v879_v30, 0  ;;  %v3061_v54 = vpop.f32.mrf.mxu0 }
  0xe1   : > { %v863_v36 = vpop.f32.mrf.mxu1 }
  0xe2   : > { %v864_v44 = vadd.f32 %v863_v36, %v767_v20  ;;  %v1048_v49 = vsel %vm747_vm2, %v878_v37, 0  ;;  %v964_v59 = vpop.f32.mrf.mxu0 }
  0xe3   : > { %v3054_v38 = vpop.f32.mrf.mxu1 }
  0xe4   : > { %v875_v40 = vadd.f32 %v3054_v38, %v767_v20  ;;  %886 = vrot.lane.b32.xlu1 %v878_v37, %s3427_s20  ;;  %v1039_v50 = vld [vmem:[#allocation2] sm:$0xf]  ;;  %v3062_v62 = vpop.f32.mrf.mxu0 }
  0xe5   : > { %v866_v41 = vpop.f32.mrf.mxu1 }
  0xe6   : > { %v881_v42 = vpack.c.bf16 %v875_v40, %v872_v39  ;;  %v867_v43 = vadd.f32 %v866_v41, %v767_v20  ;;  %v967_v4 = vpop.f32.mrf.mxu0  ;;  %v917_v20 = vrot.slane %v3618_v17, %v916_v13 }
  0xe8   : > { %892 = vrot.lane.b32.xlu0 %v881_v42, %s3427_s20  ;;  %900 = vrot.lane.b32.xlu1 %v881_v42, %s3428_s21  ;;  %v1057_v45 = vsel %vm747_vm2, %v881_v42, 0  ;;  %v880_v46 = vpack.c.bf16 %v867_v43, %v864_v44  ;;  %v3065_v7 = vpop.f32.mrf.mxu0  ;;  %v973_v34 = vadd.f32 %v3061_v54, %v917_v20  ;;  %v976_v35 = vadd.f32 %v3062_v62, %v917_v20 }
  0xe9   : > { %3068 = vmatpush3.bf16.xpose.msra.mxu1 %v1057_v45  ;;  %v989_v25 = vadd.f32 %v3065_v7, %v917_v20  ;;  %v968_v39 = vadd.f32 %v967_v4, %v917_v20 }
  0xea   : > { %3069 = vmatprep.subr.bf16.mxu1 %v3425_v2  ;;  %v1054_v47 = vsel %vm747_vm2, %v880_v46, 0  ;;  %v980_v19 = vpop.f32.mrf.mxu0  ;;  %v3692_v38 = vpack.c.bf16 %v976_v35, %v973_v34 }
  0xec   : > { %890 = vrot.lane.b32.xlu0 %v880_v46, %s3427_s20  ;;  %898 = vrot.lane.b32.xlu1 %v880_v46, %s3428_s21  ;;  %v3066_v22 = vpop.f32.mrf.mxu0 }
  0xed   : > { %v992_v26 = vadd.f32 %v3066_v22, %v917_v20 }
  0xee   : > { %v983_v27 = vpop.f32.mrf.mxu0 }
  0xef   : > { %v3678_v31 = vpack.c.bf16 %v992_v26, %v989_v25  ;;  %v984_v32 = vadd.f32 %v983_v27, %v917_v20 }
  0xf0   : > { %896 = vrot.lane.b32.xlu1 %v879_v30, %s3428_s21  ;;  %724 = vrot.lane.b32.xlu0 %v722_v29, %s3427_s20 }
  0xf1   : > { %3070 = vmatpush3.bf16.xpose.msra.mxu1 %v1054_v47 }
  0xf2   : > { %3071 = vmatprep.subr.bf16.mxu1 %v3425_v2 }
  0xf4   : > { %908 = vrot.lane.b32.xlu0 %v881_v42, %s3429_s22  ;;  %727 = vrot.lane.b32.xlu1 %v722_v29, %s3428_s21 }
  0xf8   : > { %906 = vrot.lane.b32.xlu0 %v880_v46, %s3429_s22  ;;  %730 = vrot.lane.b32.xlu1 %v722_v29, %s3429_s22  ;;  %v1264_v46 = vld [vmem:[%s642_s0] sm:$0x3]  ;;  %s4149_s0 = smov 16  }
  0xf9   : > { %3072 = vmatpush3.bf16.xpose.msra.mxu1 %v1051_v48  ;;  %vm1265_vm4 = vnez %v1264_v46 }
  0xfa   : > { %3073 = vmatprep.subr.bf16.mxu1 %v3425_v2  ;;  %v1266_v47 = vsel %vm1265_vm4, 16843009, %v3430_v51 }
  0xfb   : > { %v1267_v48 = vunpack.c.0.s8 %v1266_v47 }
  0xfc   : > { %904 = vrot.lane.b32.xlu0 %v879_v30, %s3429_s22  ;;  %v981_v30 = vadd.f32 %v980_v19, %v917_v20 }
  0xfd   : > { %vm3728_vm6 = vcmp.ne.s32.totalorder %v1267_v48, 0 }
  0xfe   : > { %v3686_v36 = vpack.c.bf16 %v984_v32, %v981_v30 }
 0x100   : > { %894 = vrot.lane.b32.xlu0 %v878_v37, %s3428_s21 }
 0x101   : > { %3074 = vmatpush3.bf16.xpose.msra.mxu1 %v1048_v49  ;;  %v3431_v49 = vmov -1e+30  }
 0x102   : > { %3091 = vmatprep.subr.bf16.mxu1 %v3425_v2  ;;  %739 = vst.msk [vmem:[#allocation3] sm:$0xff] %vm738_vm5, %v3431_v49  ;;  %740 = vst.msk [vmem:[#allocation3 + $0x8] sm:$0xff] %vm738_vm5, %v3431_v49 }
 0x103   : > { %741 = vst.msk [vmem:[#allocation3 + $0x10] sm:$0xff] %vm738_vm5, %v3431_v49  ;;  %742 = vst.msk [vmem:[#allocation3 + $0x18] sm:$0xff] %vm738_vm5, %v3431_v49 }
 0x104   : > { %902 = vrot.lane.b32.xlu0 %v878_v37, %s3429_s22  ;;  %v965_v37 = vadd.f32 %v964_v59, %v917_v20 }
 0x106   : > { %v3698_v41 = vpack.c.bf16 %v968_v39, %v965_v37 }
 0x108   : > { %3076 = vmatmul.mubr.msk.bf16.vlgmr.msra.gmra.mxu1 %vm747_vm2, %v1039_v50 }
 0x109   : > { %3099 = vmatprep.mubr.msk.bf16.mxu1 %vm3426_vm1, %v3425_v2  ;;  %v3773_v22 = vld [vmem:[#allocation3 + $0x8] sm:$0xff] }
 0x10a   : > { %v1277_v25 = vld [vmem:[#allocation3 + $0x10] sm:$0xff]  ;;  %v1278_v35 = vld [vmem:[#allocation3 + $0x18] sm:$0xff] }
 0x152   : > { %v889_v52 = vpop.permute.xlu1 %888 }
 0x153   : > { %v1106_v11 = vsel %vm747_vm2, %v889_v52, 0 }
 0x156   : > { %v887_v53 = vpop.permute.xlu1 %886 }
 0x157   : > { %v1103_v23 = vsel %vm747_vm2, %v887_v53, 0 }
 0x15a   : > { %v893_v55 = vpop.permute.xlu0 %892  ;;  %v901_v56 = vpop.permute.xlu1 %900 }
 0x15b   : > { %v1112_v57 = vsel %vm747_vm2, %v893_v55, 0  ;;  %v1167_v58 = vsel %vm747_vm2, %v901_v56, 0 }
 0x15c   : > { %3080 = vmatpush3.bf16.xpose.msra.mxu0 %v1112_v57  ;;  %3092 = vmatpush3.bf16.xpose.msra.mxu1 %v1167_v58 }
 0x15d   : > { %3081 = vmatprep.subr.bf16.mxu0 %v3425_v2  ;;  %3093 = vmatprep.subr.bf16.mxu1 %v3425_v2 }
 0x15e   : > { %v891_v60 = vpop.permute.xlu0 %890  ;;  %v899_v61 = vpop.permute.xlu1 %898 }
 0x15f   : > { %v1109_v1 = vsel %vm747_vm2, %v891_v60, 0  ;;  %v1164_v3 = vsel %vm747_vm2, %v899_v61, 0 }
 0x162   : > { %v897_v63 = vpop.permute.xlu1 %896  ;;  %v725_v0 = vpop.permute.xlu0 %724 }
 0x163   : > { %735 = vst.msk [vmem:[#allocation2 + $0x4] sm:$0xf] %vm733_vm3, %v725_v0  ;;  %v1161_v12 = vsel %vm747_vm2, %v897_v63, 0 }
 0x164   : > { %3082 = vmatpush3.bf16.xpose.msra.mxu0 %v1109_v1  ;;  %3094 = vmatpush3.bf16.xpose.msra.mxu1 %v1164_v3 }
 0x165   : > { %3083 = vmatprep.subr.bf16.mxu0 %v3425_v2  ;;  %3095 = vmatprep.subr.bf16.mxu1 %v3425_v2 }
 0x166   : > { %v909_v5 = vpop.permute.xlu0 %908  ;;  %v728_v6 = vpop.permute.xlu1 %727 }
 0x167   : > { %736 = vst.msk [vmem:[#allocation2 + $0x8] sm:$0xf] %vm733_vm3, %v728_v6  ;;  %v1222_v33 = vsel %vm747_vm2, %v909_v5, 0  ;;  %v3747_v6 = vld [vmem:[#allocation3] sm:$0xff] }
 0x16a   : > { %v907_v8 = vpop.permute.xlu0 %906  ;;  %v731_v10 = vpop.permute.xlu1 %730  ;;  %v1040_v28 = vld [vmem:[#allocation2 + $0x4] sm:$0xf] }
 0x16b   : > { %737 = vst.msk [vmem:[#allocation2 + $0xc] sm:$0xf] %vm733_vm3, %v731_v10  ;;  %v1219_v40 = vsel %vm747_vm2, %v907_v8, 0 }
 0x16c   : > { %3084 = vmatpush3.bf16.xpose.msra.mxu0 %v1106_v11  ;;  %3096 = vmatpush3.bf16.xpose.msra.mxu1 %v1161_v12 }
 0x16d   : > { %3085 = vmatprep.subr.bf16.mxu0 %v3425_v2  ;;  %3097 = vmatprep.subr.bf16.mxu1 %v3425_v2 }
 0x16e   : > { %v905_v18 = vpop.permute.xlu0 %904  ;;  %v1041_v29 = vld [vmem:[#allocation2 + $0x8] sm:$0xf] }
 0x16f   : > { %v1216_v42 = vsel %vm747_vm2, %v905_v18, 0 }
 0x172   : > { %v895_v21 = vpop.permute.xlu0 %894  ;;  %v1042_v45 = vld [vmem:[#allocation2 + $0xc] sm:$0xf] }
 0x173   : > { %v1158_v24 = vsel %vm747_vm2, %v895_v21, 0 }
 0x174   : > { %3086 = vmatpush3.bf16.xpose.msra.mxu0 %v1103_v23  ;;  %3098 = vmatpush3.bf16.xpose.msra.mxu1 %v1158_v24 }
 0x175   : > { %3103 = vmatprep.subr.bf16.mxu0 %v3425_v2  ;;  %3115 = vmatprep.subr.bf16.mxu1 %v3425_v2 }
 0x176   : > { %v903_v43 = vpop.permute.xlu0 %902 }
 0x177   : > { %v1213_v44 = vsel %vm747_vm2, %v903_v43, 0 }
 0x17b   : > { %3088 = vmatmul.mubr.msk.bf16.vlgmr.msra.gmra.mxu0 %vm747_vm2, %v1040_v28  ;;  %3100 = vmatmul.mubr.msk.bf16.vlgmr.msra.gmra.mxu1 %vm747_vm2, %v1041_v29 }
 0x17c   : > { %3104 = vmatpush3.bf16.xpose.msra.mxu0 %v1222_v33  ;;  %3111 = vmatprep.mubr.msk.bf16.mxu0 %vm3426_vm1, %v3425_v2 }
 0x17d   : > { %3105 = vmatprep.subr.bf16.mxu0 %v3425_v2  ;;  %3116 = vmatpush3.bf16.msra.mxu1 %v3678_v31 }
 0x17e   : > { %3117 = vmatprep.subr.bf16.mxu1 %v3425_v2  ;;  %3123 = vmatprep.mubr.msk.bf16.mxu1 %vm3426_vm1, %v3425_v2 }
 0x181   : > { %3118 = vmatpush3.bf16.msra.mxu1 %v3686_v36 }
 0x182   : > { %3119 = vmatprep.subr.bf16.mxu1 %v3425_v2 }
 0x184   : > { %3106 = vmatpush3.bf16.xpose.msra.mxu0 %v1219_v40 }
 0x185   : > { %3107 = vmatprep.subr.bf16.mxu0 %v3425_v2  ;;  %3120 = vmatpush3.bf16.msra.mxu1 %v3692_v38 }
 0x186   : > { %3121 = vmatprep.subr.bf16.mxu1 %v3425_v2 }
 0x189   : > { %3122 = vmatpush3.bf16.msra.mxu1 %v3698_v41 }
 0x18a   : > { %3139 = vmatprep.subr.bf16.mxu1 %v3425_v2 }
 0x18c   : > { %3108 = vmatpush3.bf16.xpose.msra.mxu0 %v1216_v42 }
 0x18d   : > { %3109 = vmatprep.subr.bf16.mxu0 %v3425_v2 }
 0x194   : > { %3110 = vmatpush3.bf16.xpose.msra.mxu0 %v1213_v44 }
 0x195   : > { %3127 = vmatprep.subr.bf16.mxu0 %v3425_v2 }
 0x19b   : > { %3112 = vmatmul.mubr.msk.bf16.vlgmr.msra.gmra.mxu0 %vm747_vm2, %v1042_v45 }
 0x19c   : > { %3135 = vmatprep.mubr.msk.bf16.mxu0 %vm3426_vm1, %v3425_v2 }
 0x1c8   : > { %v1093_v51 = vpop.f32.mrf.mxu1 }
 0x1c9   : > { %v1271_v52 = vsel %vm3728_vm6, -1e+30, %v1093_v51 }
 0x1ca   : > { %v3077_v53 = vpop.f32.mrf.mxu1  ;;  %v1280_v54 = vsel %vm1279_vm7, %v1271_v52, -inf }
 0x1cb   : > { %1281 = vmax.xlane.f32.xlu1 %v1280_v54 }
 0x1cc   : > { %v1096_v55 = vpop.f32.mrf.mxu1 }
 0x1ce   : > { %v3078_v56 = vpop.f32.mrf.mxu1 }
 0x23b   : > { %v1148_v57 = vpop.f32.mrf.mxu0  ;;  %v1203_v58 = vpop.f32.mrf.mxu1 }
 0x23c   : > { %v3737_v59 = vsel %vm3728_vm6, -1e+30, %v1148_v57  ;;  %v3743_v63 = vsel %vm3728_vm6, -1e+30, %v1203_v58 }
 0x23d   : > { %v3089_v60 = vpop.f32.mrf.mxu0  ;;  %v3101_v61 = vpop.f32.mrf.mxu1  ;;  %v1283_v62 = vsel %vm1279_vm7, %v3737_v59, -inf  ;;  %v1286_v5 = vsel %vm1279_vm7, %v3743_v63, -inf }
 0x23e   : > { %1284 = vmax.xlane.f32.xlu0 %v1283_v62 }
 0x23f   : > { %v1151_v0 = vpop.f32.mrf.mxu0  ;;  %v1206_v1 = vpop.f32.mrf.mxu1 }
 0x241   : > { %v3090_v3 = vpop.f32.mrf.mxu0  ;;  %v3102_v4 = vpop.f32.mrf.mxu1 }
 0x242   : > { %1287 = vmax.xlane.f32.xlu0 %v1286_v5 }
 0x254   : > { %v1282_v7 = vpop.xlane.xlu1 %1281 }
 0x255   : > { %v3750_v8 = vmax.f32 %v3747_v6, %v1282_v7 }
 0x257   : > { %v1296_v10 = vsub.f32 %v3747_v6, %v3750_v8  ;;  %1581 = vst.msk [vmem:[#allocation3] sm:$0xff] %vm738_vm5, %v3750_v8 }
 0x258   : > { %1310 = vperm.xlu0 %3321, %v3750_v8  }
 0x25b   : > { %v1258_v11 = vpop.f32.mrf.mxu0 }
 0x25c   : > { %v3759_v12 = vsel %vm3728_vm6, -1e+30, %v1258_v11  ;;  %1033 = vrot.lane.b32.xlu0 %v3678_v31, %s3429_s22 }
 0x25d   : > { %v3113_v18 = vpop.f32.mrf.mxu0  ;;  %v1289_v19 = vsel %vm1279_vm7, %v3759_v12, -inf }
 0x25e   : > { %1290 = vmax.xlane.f32.xlu1 %v1289_v19 }
 0x25f   : > { %v1261_v20 = vpop.f32.mrf.mxu0 }
 0x260   : > { %1031 = vrot.lane.b32.xlu0 %v3686_v36, %s3429_s22 }
 0x261   : > { %v3114_v21 = vpop.f32.mrf.mxu0 }
 0x264   : > { %1029 = vrot.lane.b32.xlu0 %v3692_v38, %s3429_s22 }
 0x268   : > { %1027 = vrot.lane.b32.xlu0 %v3698_v41, %s3429_s22 }
 0x26f   : > { %1009 = vrot.lane.b32.xlu1 %v3678_v31, %s3427_s20 }
 0x2c7   : > { %v1285_v23 = vpop.xlane.xlu0 %1284 }
 0x2c8   : > { %v3776_v24 = vmax.f32 %v3773_v22, %v1285_v23 }
 0x2ca   : > { %v1297_v26 = vsub.f32 %v3773_v22, %v3776_v24  ;;  %1582 = vst.msk [vmem:[#allocation3 + $0x8] sm:$0xff] %vm738_vm5, %v3776_v24  ;;  %1315 = vperm.xlu1 %3322, %v3776_v24  }
 0x2cb   : > { %v1288_v27 = vpop.xlane.xlu0 %1287 }
 0x2cc   : > { %v1294_v28 = vmax.f32 %v1277_v25, %v1288_v27  ;;  %v1302_v11 = vmul.f32 1.442695, %v1297_v26  ;;  %v1300_v26 = vmul.f32 1.442695, %v1296_v10  ;;  %v1341_v27 = vld [vmem:[#allocation4 + $0x8] sm:$0xff] }
 0x2ce   : > { %v1298_v29 = vsub.f32 %v1277_v25, %v1294_v28  ;;  %1583 = vst.msk [vmem:[#allocation3 + $0x10] sm:$0xff] %vm738_vm5, %v1294_v28  ;;  %1007 = vrot.lane.b32.xlu1 %v3686_v36, %s3427_s20 }
 0x2d0   : > { %v1304_v50 = vmul.f32 1.442695, %v1298_v29 }
 0x2d2   : > { %1320 = vperm.xlu1 %3322, %v1294_v28  }
 0x2d3   : > { %v1311_v30 = vpop.permute.xlu0 %1310 }
 0x2d4   : > { %v1328_v32 = vsub.f32 %v1271_v52, %v1311_v30 }
 0x2d6   : > { %v1332_v33 = vmul.f32 1.442695, %v1328_v32  ;;  %v1340_v32 = vld [vmem:[#allocation4] sm:$0xff] }
 0x2d7   : > { %v1034_v58 = vpop.permute.xlu0 %1033 }
 0x2d8   : > { %3353 = vpow2.f32 %v1332_v33 }
 0x2db   : > { %v1032_v0 = vpop.permute.xlu0 %1031 }
 0x2df   : > { %v1030_v4 = vpop.permute.xlu0 %1029 }
 0x2e3   : > { %v1028_v18 = vpop.permute.xlu0 %1027 }
 0x2e5   : > { %v3354_v34 = vpop.eup %3353 }
 0x2e6   : > { %v1397_v37 = vpack.c.bf16 %v3354_v34, %v3354_v34 }
 0x2e7   : > { %v1291_v39 = vpop.xlane.xlu1 %1290 }
 0x2e8   : > { %v1295_v40 = vmax.f32 %v1278_v35, %v1291_v39  ;;  %3124 = vmatmul.mubr.msk.bf16.vlgmr.msra.gmra.mxu1 %vm1279_vm7, %v1397_v37  ;;  %v1342_v37 = vld [vmem:[#allocation4 + $0x10] sm:$0xff] }
 0x2e9   : > { %3147 = vmatprep.mubr.msk.bf16.mxu1 %vm3426_vm1, %v3425_v2 }
 0x2ea   : > { %v1299_v42 = vsub.f32 %v1278_v35, %v1295_v40  ;;  %1584 = vst.msk [vmem:[#allocation3 + $0x18] sm:$0xff] %vm738_vm5, %v1295_v40  ;;  %1325 = vperm.xlu1 %3322, %v1295_v40  }
 0x2eb   : > { %v1010_v43 = vpop.permute.xlu1 %1009 }
 0x2ec   : > { %3128 = vmatpush3.bf16.msra.mxu0 %v1010_v43  ;;  %v1306_v52 = vmul.f32 1.442695, %v1299_v42 }
 0x2ed   : > { %3129 = vmatprep.subr.bf16.mxu0 %v3425_v2 }
 0x2ee   : > { %1005 = vrot.lane.b32.xlu1 %v3692_v38, %s3427_s20 }
 0x2f2   : > { %1003 = vrot.lane.b32.xlu1 %v3698_v41, %s3427_s20 }
 0x2f6   : > { %1021 = vrot.lane.b32.xlu1 %v3678_v31, %s3428_s21 }
 0x2fa   : > { %1019 = vrot.lane.b32.xlu1 %v3686_v36, %s3428_s21 }
 0x2fe   : > { %1017 = vrot.lane.b32.xlu1 %v3692_v38, %s3428_s21 }
 0x302   : > { %1015 = vrot.lane.b32.xlu1 %v3698_v41, %s3428_s21  ;;  %v1348_v41 = vsel %vm1279_vm7, %v3354_v34, 0.0 }
 0x345   : > { %v1316_v44 = vpop.permute.xlu1 %1315 }
 0x346   : > { %v1329_v45 = vsub.f32 %v3737_v59, %v1316_v44  ;;  %v1343_v44 = vld [vmem:[#allocation4 + $0x18] sm:$0xff] }
 0x348   : > { %v1334_v46 = vmul.f32 1.442695, %v1329_v45 }
 0x349   : > { %v1008_v47 = vpop.permute.xlu1 %1007 }
 0x34a   : > { %3355 = vpow2.f32 %v1334_v46  ;;  %3130 = vmatpush3.bf16.msra.mxu0 %v1008_v47 }
 0x34b   : > { %3131 = vmatprep.subr.bf16.mxu0 %v3425_v2 }
 0x34d   : > { %v1321_v48 = vpop.permute.xlu1 %1320 }
 0x34e   : > { %v1330_v31 = vsub.f32 %v3743_v63, %v1321_v48 }
 0x350   : > { %v1336_v49 = vmul.f32 1.442695, %v1330_v31 }
 0x352   : > { %3357 = vpow2.f32 %v1336_v49 }
 0x353   : > { %3359 = vpow2.f32 %v1304_v50  ;;  %v1370_v50 = vld [vmem:[#allocation5 + $0x8] sm:$0xff] }
 0x354   : > { %3361 = vpow2.f32 %v1306_v52 }
 0x357   : > { %v3356_v36 = vpop.eup %3355 }
 0x358   : > { %v1351_v38 = vsel %vm1279_vm7, %v3356_v36, 0.0  ;;  %v1398_v61 = vpack.c.bf16 %v3356_v36, %v3356_v36 }
 0x359   : > { %1352 = vadd.xlane.f32.xlu1 %v1351_v38 }
 0x35d   : > { %1349 = vadd.xlane.f32.xlu1 %v1348_v41 }
 0x35f   : > { %v3358_v51 = vpop.eup %3357 }
 0x360   : > { %v1354_v53 = vsel %vm1279_vm7, %v3358_v51, 0.0  ;;  %v3811_v59 = vpop.eup %3359  ;;  %v1399_v19 = vpack.c.bf16 %v3358_v51, %v3358_v51 }
 0x361   : > { %1355 = vadd.xlane.f32.xlu0 %v1354_v53  ;;  %v3815_v62 = vpop.eup %3361  ;;  %v1346_v40 = vmul.f32 %v3811_v59, %v1342_v37 }
 0x362   : > { %v1347_v45 = vmul.f32 %v3815_v62, %v1343_v44 }
 0x365   : > { %v1326_v54 = vpop.permute.xlu1 %1325 }
 0x366   : > { %v1331_v55 = vsub.f32 %v3759_v12, %v1326_v54 }
 0x368   : > { %v1338_v56 = vmul.f32 1.442695, %v1331_v55 }
 0x369   : > { %v1006_v57 = vpop.permute.xlu1 %1005 }
 0x36a   : > { %3363 = vpow2.f32 %v1338_v56  ;;  %3132 = vmatpush3.bf16.msra.mxu0 %v1006_v57 }
 0x36b   : > { %3133 = vmatprep.subr.bf16.mxu0 %v3425_v2  ;;  %3365 = vpow2.f32 %v1302_v11 }
 0x36c   : > { %3367 = vpow2.f32 %v1300_v26 }
 0x36d   : > { %v1004_v60 = vpop.permute.xlu1 %1003 }
 0x36e   : > { %1385 = vperm.xlu1 %3322, %v3811_v59   ;;  %3134 = vmatpush3.bf16.msra.mxu0 %v1004_v60  ;;  %v1372_v59 = vld [vmem:[#allocation5 + $0x18] sm:$0xff] }
 0x36f   : > { %3151 = vmatprep.subr.bf16.mxu0 %v3425_v2 }
 0x371   : > { %3136 = vmatmul.mubr.msk.bf16.vlgmr.msra.gmra.mxu0 %vm1279_vm7, %v1398_v61  ;;  %v1022_v63 = vpop.permute.xlu1 %1021 }
 0x372   : > { %1390 = vperm.xlu1 %3322, %v3815_v62   ;;  %3140 = vmatpush3.bf16.msra.mxu1 %v1022_v63 }
 0x373   : > { %3152 = vmatpush3.bf16.msra.mxu0 %v1034_v58  ;;  %3141 = vmatprep.subr.bf16.mxu1 %v3425_v2  ;;  %v1371_v58 = vld [vmem:[#allocation5 + $0x10] sm:$0xff] }
 0x374   : > { %3153 = vmatprep.subr.bf16.mxu0 %v3425_v2  ;;  %3159 = vmatprep.mubr.msk.bf16.mxu0 %vm3426_vm1, %v3425_v2 }
 0x375   : > { %v1020_v1 = vpop.permute.xlu1 %1019 }
 0x376   : > { %3142 = vmatpush3.bf16.msra.mxu1 %v1020_v1 }
 0x377   : > { %v3364_v3 = vpop.eup %3363  ;;  %3154 = vmatpush3.bf16.msra.mxu0 %v1032_v0  ;;  %3143 = vmatprep.subr.bf16.mxu1 %v3425_v2 }
 0x378   : > { %v1357_v5 = vsel %vm1279_vm7, %v3364_v3, 0.0  ;;  %3155 = vmatprep.subr.bf16.mxu0 %v3425_v2  ;;  %v1400_v20 = vpack.c.bf16 %v3364_v3, %v3364_v3  ;;  %v3366_v21 = vpop.eup %3365 }
 0x379   : > { %1358 = vadd.xlane.f32.xlu0 %v1357_v5  ;;  %v1018_v7 = vpop.permute.xlu1 %1017  ;;  %v1345_v28 = vmul.f32 %v3366_v21, %v1341_v27  ;;  %v3368_v29 = vpop.eup %3367  ;;  %v1369_v27 = vld [vmem:[#allocation5] sm:$0xff] }
 0x37a   : > { %3144 = vmatpush3.bf16.msra.mxu1 %v1018_v7  ;;  %v1344_v34 = vmul.f32 %v3368_v29, %v1340_v32  ;;  %v3334_v32 = vld [vmem:[%s4124_s7] sm:$0xff]  }
 0x37b   : > { %3156 = vmatpush3.bf16.msra.mxu0 %v1030_v4  ;;  %3145 = vmatprep.subr.bf16.mxu1 %v3425_v2 }
 0x37c   : > { %3157 = vmatprep.subr.bf16.mxu0 %v3425_v2 }
 0x37d   : > { %v1016_v12 = vpop.permute.xlu1 %1015 }
 0x37e   : > { %3146 = vmatpush3.bf16.msra.mxu1 %v1016_v12 }
 0x37f   : > { %3158 = vmatpush3.bf16.msra.mxu0 %v1028_v18  ;;  %3163 = vmatprep.subr.bf16.mxu1 %v3425_v2 }
 0x380   : > { %3171 = vmatprep.subr.bf16.mxu0 %v3425_v2 }
 0x381   : > { %3148 = vmatmul.mubr.msk.bf16.vlgmr.msra.gmra.mxu1 %vm1279_vm7, %v1399_v19  ;;  %v3333_v19 = vld [vmem:[%s4124_s7 + $0x8] sm:$0xff]  }
 0x382   : > { %3160 = vmatmul.mubr.msk.bf16.vlgmr.msra.gmra.mxu0 %vm1279_vm7, %v1400_v20  ;;  %3167 = vmatprep.mubr.msk.bf16.mxu1 %vm3426_vm1, %v3425_v2 }
 0x383   : > { %3175 = vmatprep.mubr.msk.bf16.mxu0 %vm3426_vm1, %v3425_v2  ;;  %3164 = vmatpush3.bf16.msra.mxu1 %v3333_v19  ;;  %v3340_v19 = vld [vmem:[%s4128_s11 + $0x8] sm:$0xff]  }
 0x384   : > { %3165 = vmatprep.subr.bf16.mxu1 %v3425_v2 }
 0x387   : > { %3166 = vmatpush3.bf16.msra.mxu1 %v3334_v32 }
 0x388   : > { %3179 = vmatprep.subr.bf16.mxu1 %v3425_v2 }
 0x38f   : > { %1380 = vperm.xlu0 %3321, %v3366_v21  }
 0x3a8   : > { %v3839_v22 = vpop.f32.mrf.mxu1 }
 0x3aa   : > { %v3125_v23 = vpop.f32.mrf.mxu1 }
 0x3ac   : > { %v1441_v24 = vpop.f32.mrf.mxu1 }
 0x3ae   : > { %v3126_v25 = vpop.f32.mrf.mxu1 }
 0x3e2   : > { %v1353_v30 = vpop.xlane.xlu1 %1352 }
 0x3e3   : > { %v1361_v33 = vadd.f32 %v1353_v30, %v1345_v28 }
 0x3e5   : > { %1366 = vst.msk [vmem:[#allocation4 + $0x8] sm:$0xff] %vm738_vm5, %v1361_v33  ;;  %v3335_v33 = vld [vmem:[%s4126_s9 + $0x8] sm:$0xff]  }
 0x3e6   : > { %v1350_v35 = vpop.xlane.xlu1 %1349  ;;  %3172 = vmatpush3.bf16.msra.mxu0 %v3335_v33 }
 0x3e7   : > { %v1360_v39 = vadd.f32 %v1350_v35, %v1344_v34  ;;  %v3336_v34 = vld [vmem:[%s4126_s9] sm:$0xff]   ;;  %3173 = vmatprep.subr.bf16.mxu0 %v3425_v2 }
 0x3e9   : > { %1365 = vst.msk [vmem:[#allocation4] sm:$0xff] %vm738_vm5, %v1360_v39 }
 0x3ea   : > { %v1356_v42 = vpop.xlane.xlu0 %1355  ;;  %v1386_v57 = vpop.permute.xlu1 %1385  ;;  %3174 = vmatpush3.bf16.msra.mxu0 %v3336_v34  ;;  %v1590_v34 = vld [vmem:[%s4147_s1] sm:$0xff]  ;;  %s4151_s1 = sshll.u32 %s4157_s27, 3 }
 0x3eb   : > { %v1362_v6 = vadd.f32 %v1356_v42, %v1346_v40  ;;  %v1395_v61 = vmul.f32 %v1386_v57, %v1371_v58  ;;  %3187 = vmatprep.subr.bf16.mxu0 %v3425_v2 }
 0x3ec   : > { %v1596_v8 = vld [vmem:[#allocation4 + $0x8] sm:$0xff] }
 0x3ed   : > { %1367 = vst.msk [vmem:[#allocation4 + $0x10] sm:$0xff] %vm738_vm5, %v1362_v6  ;;  %3369 = vrcp.f32 %v1596_v8  ;;  %3176 = vmatmul.mubr.msk.bf16.vlgmr.msra.gmra.mxu0 %vm678_vm0, %v3583_v9 }
 0x3ee   : > { %v1391_v60 = vpop.permute.xlu1 %1390  ;;  %3191 = vmatprep.mubr.msk.bf16.mxu0 %vm3426_vm1, %v3425_v2 }
 0x3ef   : > { %v1396_v62 = vmul.f32 %v1391_v60, %v1372_v59 }
 0x3f0   : > { %v1595_v49 = vld [vmem:[#allocation4] sm:$0xff] }
 0x3f4   : > { %v1597_v10 = vld [vmem:[#allocation4 + $0x10] sm:$0xff] }
 0x3f5   : > { %3371 = vrcp.f32 %v1597_v10 }
 0x3fa   : > { %v3370_v43 = vpop.eup %3369 }
 0x3fb   : > { %1610 = vperm.xlu0 %3321, %v3370_v43  }
 0x402   : > { %v3372_v46 = vpop.eup %3371  ;;  %v1359_v47 = vpop.xlane.xlu0 %1358 }
 0x403   : > { %v1363_v48 = vadd.f32 %v1359_v47, %v1347_v45  ;;  %1615 = vperm.xlu1 %3322, %v3372_v46   ;;  %v3337_v45 = vld [vmem:[%s4125_s8 + $0x8] sm:$0xff]   ;;  %v3338_v47 = vld [vmem:[%s4125_s8] sm:$0xff]  }
 0x405   : > { %1368 = vst.msk [vmem:[#allocation4 + $0x18] sm:$0xff] %vm738_vm5, %v1363_v48 }
 0x407   : > { %1375 = vperm.xlu1 %3322, %v3368_v29  }
 0x40a   : > { %v1381_v41 = vpop.permute.xlu0 %1380 }
 0x40b   : > { %v1394_v51 = vmul.f32 %v1381_v41, %v1370_v50 }
 0x40c   : > { %v1598_v31 = vld [vmem:[#allocation4 + $0x18] sm:$0xff] }
 0x40d   : > { %3373 = vrcp.f32 %v1598_v31 }
 0x40e   : > { %3375 = vrcp.f32 %v1595_v49 }
 0x41a   : > { %v3374_v36 = vpop.eup %3373 }
 0x41b   : > { %1620 = vperm.xlu0 %3321, %v3374_v36   ;;  %v3376_v38 = vpop.eup %3375 }
 0x41f   : > { %1605 = vperm.xlu0 %3321, %v3376_v38   ;;  %v1651_v38 = vsub.s32 3, %v3611_v14 }
 0x421   : > { %v1652_v50 = vrot.slane %v3618_v17, %v1651_v38 }
 0x431   : > { %v1481_v52 = vpop.f32.mrf.mxu0 }
 0x432   : > { %v1574_v53 = vadd.f32 %v1481_v52, %v1394_v51 }
 0x433   : > { %v3137_v54 = vpop.f32.mrf.mxu0 }
 0x434   : > { %1578 = vst.msk [vmem:[#allocation5 + $0x8] sm:$0xff] %vm747_vm2, %v1574_v53 }
 0x435   : > { %v1484_v55 = vpop.f32.mrf.mxu0 }
 0x437   : > { %v3138_v56 = vpop.f32.mrf.mxu0 }
 0x438   : > { %v1829_v56 = vsub.s32 4, %v3611_v14 }
 0x43a   : > { %v1830_v57 = vrot.slane %v3618_v17, %v1829_v56 }
 0x43b   : > { %v1592_v20 = vld [vmem:[#allocation5 + $0x8] sm:$0xff] }
 0x441   : > { %v1524_v63 = vpop.f32.mrf.mxu1 }
 0x442   : > { %v1575_v0 = vadd.f32 %v1524_v63, %v1395_v61  ;;  %v1567_v1 = vpop.f32.mrf.mxu0  ;;  %v3399_v63 = vld [vmem:[%s3576_s23] sm:$0xff]  ;;  %s4150_s23 = smov 24  }
 0x443   : > { %v1576_v3 = vadd.f32 %v1567_v1, %v1396_v62  ;;  %v3149_v4 = vpop.f32.mrf.mxu1 }
 0x444   : > { %1579 = vst.msk [vmem:[#allocation5 + $0x10] sm:$0xff] %vm747_vm2, %v1575_v0  ;;  %v3161_v5 = vpop.f32.mrf.mxu0 }
 0x445   : > { %1580 = vst.msk [vmem:[#allocation5 + $0x18] sm:$0xff] %vm747_vm2, %v1576_v3  ;;  %v1527_v7 = vpop.f32.mrf.mxu1 }
 0x446   : > { %v1570_v11 = vpop.f32.mrf.mxu0 }
 0x447   : > { %v3150_v12 = vpop.f32.mrf.mxu1 }
 0x448   : > { %v3162_v18 = vpop.f32.mrf.mxu0 }
 0x449   : > { %v3339_v18 = vld [vmem:[%s4127_s10 + $0x8] sm:$0xff]  }
 0x44a   : > { %3188 = vmatpush3.bf16.msra.mxu0 %v3339_v18 }
 0x44b   : > { %v1593_v25 = vld [vmem:[#allocation5 + $0x10] sm:$0xff]  ;;  %3189 = vmatprep.subr.bf16.mxu0 %v3425_v2 }
 0x44c   : > { %v1594_v35 = vld [vmem:[#allocation5 + $0x18] sm:$0xff] }
 0x476   : > { %v1611_v21 = vpop.permute.xlu0 %1610 }
 0x477   : > { %v1624_v23 = vmul.f32 %v1611_v21, %v1592_v20  ;;  %v3341_v20 = vld [vmem:[%s4127_s10] sm:$0xff]  }
 0x478   : > { %v3342_v21 = vld [vmem:[%s4128_s11] sm:$0xff]   ;;  %3190 = vmatpush3.bf16.msra.mxu0 %v3341_v20 }
 0x479   : > { %1628 = vrot.lane.b32.xlu1 %v1624_v23, %s4139_s2  ;;  %3203 = vmatprep.subr.bf16.mxu0 %v3425_v2 }
 0x47e   : > { %v1616_v24 = vpop.permute.xlu1 %1615 }
 0x47f   : > { %v1625_v26 = vmul.f32 %v1616_v24, %v1593_v25 }
 0x481   : > { %1632 = vrot.lane.b32.xlu0 %v1625_v26, %s4137_s24  ;;  %v1849_v26 = vsub.s32 5, %v3611_v14  ;;  %s4148_s24 = smov 8  }
 0x482   : > { %v1376_v28 = vpop.permute.xlu1 %1375 }
 0x483   : > { %v1393_v29 = vmul.f32 %v1376_v28, %v1369_v27  ;;  %v1854_v27 = vsub.s32 6, %v3611_v14  ;;  %v1850_v28 = vrot.slane %v3618_v17, %v1849_v26 }
 0x485   : > { %v1573_v30 = vadd.f32 %v3839_v22, %v1393_v29  ;;  %v1855_v32 = vrot.slane %v3618_v17, %v1854_v27  ;;  %v3344_v17 = vld [vmem:[%s4129_s12] sm:$0xff]  }
 0x487   : > { %1577 = vst.msk [vmem:[#allocation5] sm:$0xff] %vm747_vm2, %v1573_v30 }
 0x48e   : > { %v1591_v40 = vld [vmem:[#allocation5] sm:$0xff] }
 0x496   : > { %v1621_v22 = vpop.permute.xlu0 %1620 }
 0x497   : > { %v1626_v37 = vmul.f32 %v1621_v22, %v1594_v35 }
 0x499   : > { %1636 = vrot.lane.b32.xlu1 %v1626_v37, %s4138_s26  ;;  %v3343_v37 = vld [vmem:[%s4129_s12 + $0x8] sm:$0xff]  }
 0x49a   : > { %v1606_v39 = vpop.permute.xlu0 %1605 }
 0x49b   : > { %v1623_v6 = vmul.f32 %v1606_v39, %v1591_v40 }
 0x4ad   : > { %v1766_v48 = vpop.f32.mrf.mxu0 }
 0x4af   : > { %v3177_v31 = vpop.f32.mrf.mxu0 }
 0x4b1   : > { %v1769_v49 = vpop.f32.mrf.mxu0 }
 0x4b3   : > { %v3178_v36 = vpop.f32.mrf.mxu0 }
 0x4eb   : > { %v1629_v42 = vpop.permute.xlu1 %1628 }
 0x4ec   : > { %v1639_v10 = vsel %vm747_vm2, %v1623_v6, %v1629_v42  ;;  %v3958_v42 = vld [vmem:[%s4134_s17 + $0x8] sm:$0xff]  ;;  %v1865_v6 = vsub.s32 7, %v3611_v14 }
 0x4f3   : > { %v1633_v8 = vpop.permute.xlu0 %1632 }
 0x4f4   : > { %v1641_v43 = vsel %vm1640_vm8, %v1639_v10, %v1633_v8  ;;  %v1937_v8 = vrot.slane %v3958_v42, %v664_v15  ;;  %v3400_v10 = vld [vmem:[%s4134_s17] sm:$0xff] }
 0x50b   : > { %v1637_v44 = vpop.permute.xlu1 %1636 }
 0x50c   : > { %v1643_v9 = vsel %vm1642_vm9, %v1641_v43, %v1637_v44  ;;  %v1866_v43 = vrot.slane %v3400_v10, %v1865_v6 }
 0x50d   : > { %v1644_v46 = vpack.c.bf16 %v1643_v9, %v1643_v9 }
 0x50f   : > { %3168 = vmatmul.mubr.msk.bf16.vlgmr.msra.gmra.mxu1 %vm678_vm0, %v1644_v46 }
 0x510   : > { %3180 = vmatpush3.bf16.msra.mxu1 %v3337_v45  ;;  %3183 = vmatprep.mubr.msk.bf16.mxu1 %vm3426_vm1, %v3425_v2 }
 0x511   : > { %3181 = vmatprep.subr.bf16.mxu1 %v3425_v2 }
 0x514   : > { %3182 = vmatpush3.bf16.msra.mxu1 %v3338_v47 }
 0x515   : > { %3195 = vmatprep.subr.bf16.mxu1 %v3425_v2 }
 0x5cf   : > { %v1702_v41 = vpop.f32.mrf.mxu1 }
 0x5d0   : > { %v1703_v51 = vadd.f32 %v1702_v41, %v1652_v50 }
 0x5d1   : > { %v3169_v52 = vpop.f32.mrf.mxu1 }
 0x5d2   : > { %v1708_v53 = vpack.c.bf16 %v1703_v51, %v1703_v51 }
 0x5d3   : > { %v1705_v54 = vpop.f32.mrf.mxu1 }
 0x5d4   : > { %3184 = vmatmul.mubr.msk.bf16.vlgmr.msra.gmra.mxu1 %vm678_vm0, %v1708_v53 }
 0x5d5   : > { %v3170_v55 = vpop.f32.mrf.mxu1  ;;  %3199 = vmatprep.mubr.msk.bf16.mxu1 %vm3426_vm1, %v3425_v2  ;;  %3196 = vmatpush3.bf16.msra.mxu1 %v3340_v19 }
 0x5d6   : > { %3197 = vmatprep.subr.bf16.mxu1 %v3425_v2 }
 0x5d9   : > { %3198 = vmatpush3.bf16.msra.mxu1 %v3342_v21 }
 0x5da   : > { %3211 = vmatprep.subr.bf16.mxu1 %v3425_v2 }
 0x694   : > { %v1821_v58 = vpop.f32.mrf.mxu1 }
 0x695   : > { %v1822_v59 = vadd.f32 %v1821_v58, %v1766_v48 }
 0x696   : > { %v3185_v60 = vpop.f32.mrf.mxu1 }
 0x697   : > { %v1831_v61 = vadd.f32 %v1830_v57, %v1822_v59  ;;  %v2006_v57 = vrot.slane %v3958_v42, %v766_v16 }
 0x698   : > { %v1824_v62 = vpop.f32.mrf.mxu1 }
 0x699   : > { %v1832_v0 = vadd.f32 %v3399_v63, %v1831_v61 }
 0x69a   : > { %v3186_v1 = vpop.f32.mrf.mxu1 }
 0x69b   : > { %v1833_v3 = vsel %vm678_vm0, %v1832_v0, 0.0 }
 0x69c   : > { %1834 = vadd.xlane.f32.xlu0 %v1833_v3 }
 0x725   : > { %v1835_v4 = vpop.xlane.xlu0 %1834 }
 0x726   : > { %v1837_v5 = vmul.f32 0.03125, %v1835_v4 }
 0x728   : > { %v1838_v7 = vsub.f32 %v1832_v0, %v1837_v5 }
 0x72a   : > { %v1839_v11 = vmul.f32 %v1838_v7, %v1838_v7 }
 0x72c   : > { %v1840_v12 = vsel %vm678_vm0, %v1839_v11, 0.0 }
 0x72d   : > { %1841 = vadd.xlane.f32.xlu1 %v1840_v12 }
 0x7b6   : > { %v1842_v23 = vpop.xlane.xlu1 %1841 }
 0x7b7   : > { %v1843_v24 = vmul.f32 0.03125, %v1842_v23 }
 0x7b9   : > { %v1844_v25 = vadd.f32 1e-05, %v1843_v24 }
 0x7bb   : > { %3377 = vrsqrt.f32 %v1844_v25 }
 0x7c8   : > { %v3378_v29 = vpop.eup %3377 }
 0x7c9   : > { %v1846_v30 = vmul.f32 %v3378_v29, %v1838_v7 }
 0x7cb   : > { %v1851_v33 = vmul.f32 %v1850_v28, %v1846_v30 }
 0x7cd   : > { %v3933_v22 = vadd.f32 %v1855_v32, %v1851_v33 }
 0x7cf   : > { %v1857_v35 = vadd.f32 %v3933_v22, %v1590_v34  ;;  %v1998_v40 = vpack.c.bf16 %v3933_v22, %v3933_v22 }
 0x7d1   : > { %v1858_v39 = vpack.c.bf16 %v1857_v35, %v1857_v35 }
 0x7d3   : > { %3192 = vmatmul.mubr.msk.bf16.vlgmr.msra.gmra.mxu0 %vm678_vm0, %v1858_v39  ;;  %3200 = vmatmul.mubr.msk.bf16.vlgmr.msra.gmra.mxu1 %vm678_vm0, %v1858_v39 }
 0x7d4   : > { %3204 = vmatpush3.bf16.msra.mxu0 %v3343_v37  ;;  %3207 = vmatprep.mubr.msk.bf16.mxu0 %vm3426_vm1, %v3425_v2 }
 0x7d5   : > { %3205 = vmatprep.subr.bf16.mxu0 %v3425_v2  ;;  %3213 = vmatprep.mubr.msk.bf16.mxu1 %vm3426_vm1, %v3425_v2 }
 0x7d8   : > { %3206 = vmatpush3.bf16.msra.mxu0 %v3344_v17 }
 0x7d9   : > { %3217 = vmatprep.subr.bf16.mxu0 %v3425_v2 }
 0x7db   : > { %3208 = vmatmul.mubr.msk.bf16.vlgmr.msra.gmra.mxu0 %vm678_vm0, %v1998_v40 }
 0x7dc   : > { %3219 = vmatprep.mubr.msk.bf16.mxu0 %vm3426_vm1, %v3425_v2 }
 0x893   : > { %v1916_v44 = vpop.f32.mrf.mxu0  ;;  %v1984_v9 = vpop.f32.mrf.mxu1 }
 0x894   : > { %v1985_v45 = vadd.f32 %v1984_v9, %v1937_v8  ;;  %v1917_v48 = vadd.f32 %v1916_v44, %v1866_v43 }
 0x895   : > { %v3193_v46 = vpop.f32.mrf.mxu0  ;;  %v3201_v47 = vpop.f32.mrf.mxu1 }
 0x896   : > { %v1990_v31 = vpack.c.bf16 %v1985_v45, %v1985_v45  ;;  %v1922_v51 = vpack.c.bf16 %v1917_v48, %v1917_v48 }
 0x897   : > { %v1919_v49 = vpop.f32.mrf.mxu0  ;;  %v1987_v36 = vpop.f32.mrf.mxu1 }
 0x898   : > { %1994 = vrot.lane.b32.xlu1 %v1990_v31, %s3428_s21  ;;  %1992 = vrot.lane.b32.xlu0 %v1990_v31, %s3427_s20  ;;  %v2074_v15 = vsel %vm747_vm2, %v1990_v31, 0 }
 0x899   : > { %v3194_v50 = vpop.f32.mrf.mxu0  ;;  %v3202_v41 = vpop.f32.mrf.mxu1  ;;  %3212 = vmatpush3.bf16.xpose.msra.mxu1 %v2074_v15 }
 0x89a   : > { %3223 = vmatprep.subr.bf16.mxu1 %v3425_v2 }
 0x89b   : > { %v2056_v52 = vpop.f32.mrf.mxu0 }
 0x89c   : > { %1996 = vrot.lane.b32.xlu1 %v1990_v31, %s3429_s22  ;;  %1924 = vrot.lane.b32.xlu0 %v1922_v51, %s3427_s20  ;;  %v2057_v60 = vadd.f32 %v2056_v52, %v2006_v57 }
 0x89d   : > { %v3209_v53 = vpop.f32.mrf.mxu0 }
 0x89e   : > { %v3987_v0 = vpack.c.bf16 %v2057_v60, %v2057_v60 }
 0x89f   : > { %v2059_v54 = vpop.f32.mrf.mxu0 }
 0x8a0   : > { %1928 = vrot.lane.b32.xlu1 %v1922_v51, %s3429_s22  ;;  %1926 = vrot.lane.b32.xlu0 %v1922_v51, %s3428_s21  ;;  %v2307_v4 = vsel %vm2305_vm10, %v3987_v0, 0 }
 0x8a1   : > { %3214 = vmatmul.mubr.msk.bf16.vlgmr.msra.gmra.mxu1 %vm747_vm2, %v1922_v51  ;;  %v3210_v55 = vpop.f32.mrf.mxu0 }
 0x8a2   : > { %3225 = vmatprep.mubr.msk.bf16.mxu1 %vm3426_vm1, %v3425_v2 }
 0x90a   : > { %v1995_v58 = vpop.permute.xlu1 %1994  ;;  %v1993_v59 = vpop.permute.xlu0 %1992 }
 0x90b   : > { %v2166_v61 = vsel %vm747_vm2, %v1995_v58, 0  ;;  %v2120_v62 = vsel %vm747_vm2, %v1993_v59, 0 }
 0x90c   : > { %3218 = vmatpush3.bf16.xpose.msra.mxu0 %v2120_v62  ;;  %3224 = vmatpush3.bf16.xpose.msra.mxu1 %v2166_v61 }
 0x90d   : > { %3229 = vmatprep.subr.bf16.mxu0 %v3425_v2  ;;  %3235 = vmatprep.subr.bf16.mxu1 %v3425_v2 }
 0x90e   : > { %v1925_v63 = vpop.permute.xlu0 %1924  ;;  %v1997_v1 = vpop.permute.xlu1 %1996 }
 0x90f   : > { %v2212_v16 = vsel %vm747_vm2, %v1997_v1, 0 }
 0x912   : > { %v1927_v3 = vpop.permute.xlu0 %1926  ;;  %v1929_v5 = vpop.permute.xlu1 %1928 }
 0x913   : > { %3220 = vmatmul.mubr.msk.bf16.vlgmr.msra.gmra.mxu0 %vm747_vm2, %v1925_v63  ;;  %3226 = vmatmul.mubr.msk.bf16.vlgmr.msra.gmra.mxu1 %vm747_vm2, %v1927_v3 }
 0x914   : > { %3230 = vmatpush3.bf16.xpose.msra.mxu0 %v2212_v16  ;;  %3236 = vmatpush3.bf16.msra.mxu1 %v2307_v4 }
 0x915   : > { %3231 = vmatprep.mubr.msk.bf16.mxu0 %vm3426_vm1, %v3425_v2  ;;  %3241 = vmatprep.subr.bf16.mxu0 %v3425_v2 }
 0x916   : > { %3237 = vmatprep.mubr.msk.bf16.mxu1 %vm3426_vm1, %v3425_v2  ;;  %3247 = vmatprep.subr.bf16.mxu1 %v3425_v2 }
 0x91b   : > { %3232 = vmatmul.mubr.msk.bf16.vlgmr.msra.gmra.mxu0 %vm747_vm2, %v1929_v5 }
 0x91c   : > { %3243 = vmatprep.mubr.msk.bf16.mxu0 %vm3426_vm1, %v3425_v2 }
 0x961   : > { %v2110_v7 = vpop.f32.mrf.mxu1 }
 0x962   : > { %v2254_v11 = vsel %vm747_vm2, %v2110_v7, -inf }
 0x963   : > { %2255 = vmax.xlane.f32.xlu0 %v2254_v11  ;;  %v3215_v12 = vpop.f32.mrf.mxu1 }
 0x965   : > { %v2113_v18 = vpop.f32.mrf.mxu1 }
 0x967   : > { %v3216_v19 = vpop.f32.mrf.mxu1 }
 0x9d3   : > { %v2156_v20 = vpop.f32.mrf.mxu0  ;;  %v2202_v21 = vpop.f32.mrf.mxu1 }
 0x9d4   : > { %v2257_v23 = vsel %vm747_vm2, %v2156_v20, -inf  ;;  %v2260_v24 = vsel %vm747_vm2, %v2202_v21, -inf }
 0x9d5   : > { %2258 = vmax.xlane.f32.xlu1 %v2257_v23  ;;  %v3221_v25 = vpop.f32.mrf.mxu0  ;;  %2261 = vmax.xlane.f32.xlu0 %v2260_v24  ;;  %v3227_v28 = vpop.f32.mrf.mxu1 }
 0x9d7   : > { %v2159_v29 = vpop.f32.mrf.mxu0  ;;  %v2205_v30 = vpop.f32.mrf.mxu1 }
 0x9d8   : > { %v3345_v30 = vld [vmem:[%s4130_s13 + $0x8] sm:$0xff]  }
 0x9d9   : > { %v3222_v32 = vpop.f32.mrf.mxu0  ;;  %v3228_v33 = vpop.f32.mrf.mxu1 }
 0x9da   : > { %v3346_v32 = vld [vmem:[%s4130_s13] sm:$0xff]  }
 0x9db   : > { %v2248_v34 = vpop.f32.mrf.mxu0 }
 0x9dc   : > { %v2263_v35 = vsel %vm747_vm2, %v2248_v34, -inf }
 0x9dd   : > { %v3233_v37 = vpop.f32.mrf.mxu0  ;;  %2264 = vmax.xlane.f32.xlu0 %v2263_v35 }
 0x9df   : > { %v2251_v39 = vpop.f32.mrf.mxu0 }
 0x9e1   : > { %v3234_v17 = vpop.f32.mrf.mxu0 }
 0x9e6   : > { %2064 = vrot.lane.b32.xlu1 %v3987_v0, %s3427_s20 }
 0x9ec   : > { %v2256_v40 = vpop.xlane.xlu0 %2255 }
 0x9ed   : > { %v2266_v8 = vsub.f32 %v2110_v7, %v2256_v40 }
 0x9ef   : > { %v2270_v10 = vmul.f32 1.442695, %v2266_v8 }
 0x9f1   : > { %3379 = vpow2.f32 %v2270_v10 }
 0x9fe   : > { %v3380_v43 = vpop.eup %3379 }
 0x9ff   : > { %v2278_v44 = vsel %vm747_vm2, %v3380_v43, 0.0 }
 0xa0a   : > { %2279 = vadd.xlane.f32.xlu1 %v2278_v44 }
 0xa5e   : > { %v2259_v9 = vpop.xlane.xlu1 %2258  ;;  %v2262_v45 = vpop.xlane.xlu0 %2261 }
 0xa5f   : > { %v2267_v46 = vsub.f32 %v2156_v20, %v2259_v9  ;;  %v2268_v47 = vsub.f32 %v2202_v21, %v2262_v45 }
 0xa61   : > { %v2272_v48 = vmul.f32 1.442695, %v2267_v46  ;;  %v2274_v31 = vmul.f32 1.442695, %v2268_v47 }
 0xa62   : > { %v2065_v49 = vpop.permute.xlu1 %2064 }
 0xa63   : > { %3381 = vpow2.f32 %v2272_v48  ;;  %v2353_v36 = vsel %vm2305_vm10, %v2065_v49, 0 }
 0xa64   : > { %3383 = vpow2.f32 %v2274_v31  ;;  %3242 = vmatpush3.bf16.msra.mxu0 %v2353_v36 }
 0xa65   : > { %3253 = vmatprep.subr.bf16.mxu0 %v3425_v2 }
 0xa66   : > { %v2265_v15 = vpop.xlane.xlu0 %2264 }
 0xa67   : > { %v2269_v50 = vsub.f32 %v2248_v34, %v2265_v15  ;;  %v2510_v15 = vrot.slane %v3958_v42, %v916_v13  ;;  %v3347_v13 = vld [vmem:[%s4131_s14 + $0x8] sm:$0xff]  }
 0xa69   : > { %v2276_v41 = vmul.f32 1.442695, %v2269_v50 }
 0xa6b   : > { %3385 = vpow2.f32 %v2276_v41 }
 0xa70   : > { %v3382_v51 = vpop.eup %3381 }
 0xa71   : > { %v3384_v52 = vpop.eup %3383  ;;  %v2281_v53 = vsel %vm747_vm2, %v3382_v51, 0.0 }
 0xa72   : > { %2282 = vadd.xlane.f32.xlu0 %v2281_v53  ;;  %v2284_v54 = vsel %vm747_vm2, %v3384_v52, 0.0 }
 0xa73   : > { %2285 = vadd.xlane.f32.xlu1 %v2284_v54 }
 0xa78   : > { %v3386_v55 = vpop.eup %3385 }
 0xa79   : > { %v2287_v57 = vsel %vm747_vm2, %v3386_v55, 0.0 }
 0xa7a   : > { %2288 = vadd.xlane.f32.xlu0 %v2287_v57 }
 0xa84   : > { %2068 = vrot.lane.b32.xlu1 %v3987_v0, %s3429_s22  ;;  %s646_s22 = scalar_lea.vmem %s4135_s18, %s4151_s1 }
 0xa90   : > { %2066 = vrot.lane.b32.xlu0 %v3987_v0, %s3428_s21 }
 0xa93   : > { %v2280_v58 = vpop.xlane.xlu1 %2279 }
 0xa94   : > { %3387 = vrcp.f32 %v2280_v58 }
 0xaa1   : > { %v3388_v59 = vpop.eup %3387 }
 0xaa2   : > { %v2294_v60 = vmul.f32 %v3388_v59, %v3380_v43 }
 0xaa4   : > { %v2298_v61 = vpack.c.bf16 %v2294_v60, %v2294_v60 }
 0xaa6   : > { %3238 = vmatmul.mubr.msk.bf16.vlgmr.msra.gmra.mxu1 %vm747_vm2, %v2298_v61 }
 0xaa7   : > { %3249 = vmatprep.mubr.msk.bf16.mxu1 %vm3426_vm1, %v3425_v2 }
 0xafb   : > { %v2283_v62 = vpop.xlane.xlu0 %2282 }
 0xafc   : > { %v2286_v63 = vpop.xlane.xlu1 %2285  ;;  %3389 = vrcp.f32 %v2283_v62  ;;  %v3349_v62 = vld [vmem:[%s4133_s16 + $0x18] sm:$0xff]  }
 0xafd   : > { %3391 = vrcp.f32 %v2286_v63  ;;  %v3350_v63 = vld [vmem:[%s4133_s16 + $0x10] sm:$0xff]  }
 0xb00   : > { %v2069_v7 = vpop.permute.xlu1 %2068 }
 0xb01   : > { %v2445_v19 = vsel %vm2305_vm10, %v2069_v7, 0 }
 0xb03   : > { %v2289_v1 = vpop.xlane.xlu0 %2288 }
 0xb04   : > { %3393 = vrcp.f32 %v2289_v1 }
 0xb07   : > { %v2067_v3 = vpop.permute.xlu0 %2066 }
 0xb08   : > { %v2399_v16 = vsel %vm2305_vm10, %v2067_v3, 0 }
 0xb09   : > { %v3390_v0 = vpop.eup %3389  ;;  %3248 = vmatpush3.bf16.msra.mxu1 %v2399_v16 }
 0xb0a   : > { %v3392_v4 = vpop.eup %3391  ;;  %v2295_v5 = vmul.f32 %v3390_v0, %v3382_v51  ;;  %3259 = vmatprep.subr.bf16.mxu1 %v3425_v2  ;;  %v2583_v0 = vrot.slane %v3958_v42, %v1651_v38  ;;  %v3352_v38 = vld [vmem:[%s4133_s16] sm:$0xff]  }
 0xb0b   : > { %v2296_v11 = vmul.f32 %v3392_v4, %v3384_v52 }
 0xb0c   : > { %v2299_v12 = vpack.c.bf16 %v2295_v5, %v2295_v5  ;;  %v2588_v5 = vrot.slane %v3958_v42, %v1829_v56  ;;  %v2923_v56 = vld [vmem:[%s4132_s15] ss:$0 sm:$0xff] }
 0xb0d   : > { %v2300_v18 = vpack.c.bf16 %v2296_v11, %v2296_v11 }
 0xb0e   : > { %3244 = vmatmul.mubr.msk.bf16.vlgmr.msra.gmra.mxu0 %vm747_vm2, %v2299_v12 }
 0xb0f   : > { %3250 = vmatmul.mubr.msk.bf16.vlgmr.msra.gmra.mxu1 %vm747_vm2, %v2300_v18  ;;  %3254 = vmatpush3.bf16.msra.mxu0 %v2445_v19  ;;  %v3351_v19 = vld [vmem:[%s4133_s16 + $0x8] sm:$0xff]  }
 0xb10   : > { %3255 = vmatprep.mubr.msk.bf16.mxu0 %vm3426_vm1, %v3425_v2  ;;  %3263 = vmatprep.mubr.msk.bf16.mxu1 %vm3426_vm1, %v3425_v2 }
 0xb11   : > { %v3394_v20 = vpop.eup %3393  ;;  %3267 = vmatprep.subr.bf16.mxu0 %v3425_v2  ;;  %3260 = vmatpush3.bf16.msra.mxu1 %v3345_v30 }
 0xb12   : > { %v2297_v21 = vmul.f32 %v3394_v20, %v3386_v55  ;;  %3261 = vmatprep.subr.bf16.mxu1 %v3425_v2 }
 0xb14   : > { %v2301_v23 = vpack.c.bf16 %v2297_v21, %v2297_v21 }
 0xb15   : > { %3262 = vmatpush3.bf16.msra.mxu1 %v3346_v32 }
 0xb16   : > { %3256 = vmatmul.mubr.msk.bf16.vlgmr.msra.gmra.mxu0 %vm747_vm2, %v2301_v23  ;;  %3275 = vmatprep.subr.bf16.mxu1 %v3425_v2 }
 0xb17   : > { %3271 = vmatprep.mubr.msk.bf16.mxu0 %vm3426_vm1, %v3425_v2  ;;  %3268 = vmatpush3.bf16.msra.mxu0 %v3347_v13 }
 0xb18   : > { %3269 = vmatprep.subr.bf16.mxu0 %v3425_v2 }
 0xb66   : > { %v2343_v24 = vpop.f32.mrf.mxu1 }
 0xb68   : > { %v3239_v25 = vpop.f32.mrf.mxu1 }
 0xb6a   : > { %v2346_v28 = vpop.f32.mrf.mxu1 }
 0xb6c   : > { %v3240_v29 = vpop.f32.mrf.mxu1 }
 0xbce   : > { %v2389_v33 = vpop.f32.mrf.mxu0 }
 0xbcf   : > { %v2435_v34 = vpop.f32.mrf.mxu1  ;;  %2488 = vrot.lane.b32.xlu1 %v2389_v33, %s4148_s24 }
 0xbd0   : > { %2492 = vrot.lane.b32.xlu0 %v2435_v34, %s4149_s0  ;;  %v3245_v35 = vpop.f32.mrf.mxu0 }
 0xbd1   : > { %v3251_v37 = vpop.f32.mrf.mxu1 }
 0xbd2   : > { %v2392_v39 = vpop.f32.mrf.mxu0 }
 0xbd3   : > { %v2438_v17 = vpop.f32.mrf.mxu1 }
 0xbd4   : > { %v3246_v40 = vpop.f32.mrf.mxu0 }
 0xbd5   : > { %v3252_v8 = vpop.f32.mrf.mxu1 }
 0xbd6   : > { %v2481_v10 = vpop.f32.mrf.mxu0 }
 0xbd7   : > { %2496 = vrot.lane.b32.xlu1 %v2481_v10, %s4150_s23 }
 0xbd8   : > { %v3257_v43 = vpop.f32.mrf.mxu0 }
 0xbda   : > { %v2484_v44 = vpop.f32.mrf.mxu0 }
 0xbdc   : > { %v3258_v9 = vpop.f32.mrf.mxu0 }
 0xc41   : > { %v2489_v45 = vpop.permute.xlu1 %2488 }
 0xc42   : > { %v2499_v46 = vsel %vm747_vm2, %v2343_v24, %v2489_v45  ;;  %v2493_v47 = vpop.permute.xlu0 %2492  ;;  %v2755_v45 = vrot.slane %v3958_v42, %v1854_v27 }
 0xc43   : > { %v2500_v48 = vsel %vm1640_vm8, %v2499_v46, %v2493_v47  ;;  %v2760_v47 = vrot.slane %v3958_v42, %v1865_v6 }
 0xc49   : > { %v2497_v31 = vpop.permute.xlu1 %2496 }
 0xc4a   : > { %v2501_v49 = vsel %vm1642_vm9, %v2500_v48, %v2497_v31 }
 0xc4b   : > { %v2502_v36 = vpack.c.bf16 %v2501_v49, %v2501_v49 }
 0xc4d   : > { %3264 = vmatmul.mubr.msk.bf16.vlgmr.msra.gmra.mxu1 %vm678_vm0, %v2502_v36 }
 0xc4e   : > { %3283 = vmatprep.mubr.msk.bf16.mxu1 %vm3426_vm1, %v3425_v2  ;;  %3276 = vmatpush3.bf16.msra.mxu1 %v3349_v62 }
 0xc4f   : > { %3277 = vmatprep.subr.bf16.mxu1 %v3425_v2 }
 0xc52   : > { %3278 = vmatpush3.bf16.msra.mxu1 %v3350_v63 }
 0xc53   : > { %3279 = vmatprep.subr.bf16.mxu1 %v3425_v2 }
 0xc56   : > { %3280 = vmatpush3.bf16.msra.mxu1 %v3351_v19 }
 0xc57   : > { %3281 = vmatprep.subr.bf16.mxu1 %v3425_v2  ;;  %v2670_v2 = vrot.slane %v3958_v42, %v1849_v26 }
 0xc5a   : > { %3282 = vmatpush3.bf16.msra.mxu1 %v3352_v38 }
 0xd0d   : > { %v2560_v50 = vpop.f32.mrf.mxu1 }
 0xd0e   : > { %v2561_v41 = vadd.f32 %v2560_v50, %v2510_v15 }
 0xd0f   : > { %v3265_v51 = vpop.f32.mrf.mxu1 }
 0xd10   : > { %v2566_v52 = vadd.f32 %v2561_v41, %v3933_v22  ;;  %v3348_v22 = vld [vmem:[%s4131_s14] sm:$0xff]  }
 0xd11   : > { %v2563_v53 = vpop.f32.mrf.mxu1  ;;  %3270 = vmatpush3.bf16.msra.mxu0 %v3348_v22 }
 0xd12   : > { %v2567_v54 = vsel %vm678_vm0, %v2566_v52, 0.0 }
 0xd13   : > { %2568 = vadd.xlane.f32.xlu0 %v2567_v54  ;;  %v3266_v55 = vpop.f32.mrf.mxu1 }
 0xd9c   : > { %v2569_v57 = vpop.xlane.xlu0 %2568 }
 0xd9d   : > { %v2570_v58 = vmul.f32 0.03125, %v2569_v57 }
 0xd9f   : > { %v2571_v59 = vsub.f32 %v2566_v52, %v2570_v58 }
 0xda1   : > { %v2572_v60 = vmul.f32 %v2571_v59, %v2571_v59 }
 0xda3   : > { %v2573_v61 = vsel %vm678_vm0, %v2572_v60, 0.0 }
 0xda4   : > { %2574 = vadd.xlane.f32.xlu1 %v2573_v61 }
 0xe2d   : > { %v2575_v1 = vpop.xlane.xlu1 %2574 }
 0xe2e   : > { %v2576_v3 = vmul.f32 0.03125, %v2575_v1 }
 0xe30   : > { %v2577_v16 = vadd.f32 1e-05, %v2576_v3 }
 0xe32   : > { %3395 = vrsqrt.f32 %v2577_v16 }
 0xe3f   : > { %v3396_v4 = vpop.eup %3395 }
 0xe40   : > { %v2579_v7 = vmul.f32 %v3396_v4, %v2571_v59 }
 0xe42   : > { %v2584_v11 = vmul.f32 %v2583_v0, %v2579_v7 }
 0xe44   : > { %v2589_v12 = vadd.f32 %v2588_v5, %v2584_v11 }
 0xe46   : > { %v2590_v18 = vpack.c.bf16 %v2589_v12, %v2589_v12 }
 0xe48   : > { %3272 = vmatmul.mubr.msk.bf16.vlgmr.msra.gmra.mxu0 %vm678_vm0, %v2590_v18 }
 0xf08   : > { %v2651_v20 = vpop.f32.mrf.mxu0 }
 0xf09   : > { %v2652_v21 = vadd.f32 %v2923_v56, %v2651_v20 }
 0xf0a   : > { %v3273_v23 = vpop.f32.mrf.mxu0 }
 0xf0b   : > { %v2657_v24 = vmax.f32 %v2652_v21, 0.0 }
 0xf0c   : > { %v2654_v25 = vpop.f32.mrf.mxu0 }
 0xf0d   : > { %v2658_v28 = vpack.c.bf16 %v2657_v24, %v2657_v24 }
 0xf0e   : > { %v3274_v29 = vpop.f32.mrf.mxu0 }
 0xf0f   : > { %3284 = vmatmul.mubr.msk.bf16.vlgmr.msra.gmra.mxu1 %vm1279_vm7, %v2658_v28 }
 0xfcf   : > { %v2732_v30 = vpop.f32.mrf.mxu1 }
 0xfd0   : > { %v2733_v32 = vadd.f32 %v2732_v30, %v2670_v2 }
 0xfd1   : > { %v3285_v33 = vpop.f32.mrf.mxu1 }
 0xfd2   : > { %v2738_v34 = vadd.f32 %v2733_v32, %v2589_v12 }
 0xfd3   : > { %v2735_v35 = vpop.f32.mrf.mxu1 }
 0xfd4   : > { %v2739_v37 = vsel %vm678_vm0, %v2738_v34, 0.0 }
 0xfd5   : > { %2740 = vadd.xlane.f32.xlu0 %v2739_v37  ;;  %v3286_v39 = vpop.f32.mrf.mxu1 }
0x105e   : > { %v2741_v17 = vpop.xlane.xlu0 %2740 }
0x105f   : > { %v2742_v40 = vmul.f32 0.03125, %v2741_v17 }
0x1061   : > { %v2743_v8 = vsub.f32 %v2738_v34, %v2742_v40 }
0x1063   : > { %v2744_v10 = vmul.f32 %v2743_v8, %v2743_v8 }
0x1065   : > { %v2745_v43 = vsel %vm678_vm0, %v2744_v10, 0.0 }
0x1066   : > { %2746 = vadd.xlane.f32.xlu0 %v2745_v43 }
0x10ef   : > { %v2747_v44 = vpop.xlane.xlu0 %2746 }
0x10f0   : > { %v2748_v9 = vmul.f32 0.03125, %v2747_v44 }
0x10f2   : > { %v2749_v26 = vadd.f32 1e-05, %v2748_v9 }
0x10f4   : > { %3397 = vrsqrt.f32 %v2749_v26 }
0x1101   : > { %v3398_v46 = vpop.eup %3397 }
0x1102   : > { %v2751_v48 = vmul.f32 %v3398_v46, %v2743_v8 }
0x1104   : > { %v2756_v31 = vmul.f32 %v2755_v45, %v2751_v48 }
0x1106   : > { %v2761_v49 = vadd.f32 %v2760_v47, %v2756_v31 }
0x1108   : > { %2762 = vst.msk [vmem:[%s646_s22] sm:$0xff] %vm678_vm0, %v2761_v49 }
0x1109 PF: > { %s28_s29 = sadd.s32 1, %s3423_s29   ;;  %s4152_s27 = smov %s3419_s28 }
0x110a   : > { %p25_p5 = scmp.ge.s32.totalorder %s28_s29, 4   ;;  %s4153_s28 = smov %s4155_s30 }
0x110c   :  { %27 = sbr.rel (!%p25_p5) target bundleno = 4 (0x4), region = 136 }

// kernel: decoder_forward.31
= control target key start
LH: loop header
LB: loop body
LE: loop exit
PB: predicated region body
PF: predicated region fallthrough
CT: control target
= control target key end

     0   :  { %s438_s9 = smov 0   ;;  %s440_s10 = smov 0   ;;  %s474_s0 = inlined_call_operand.vmem [shape: bf16[2,8,32], index: 0, kind: input, shape index: {}]   ;;  %s475_s1 = inlined_call_operand.vmem [shape: bf16[2,32,64], index: 1, kind: input, shape index: {}]   ;;  %s476_s2 = inlined_call_operand.vmem [shape: f32[2,8,64], index: 2, kind: output, shape index: {}]  }
   0x1   :  { %s442_s11 = smov 0  }
   0x2 LB: > { %s24_s12 = sadd.s32 1, %s415_s10  ;;  %p347_p0 = scmp.ge.s32.totalorder %s419_s11, 1  ;;  %s419_s11 = sphi %s442_s11, %s12_s11   ;;  %s415_s10 = sphi %s440_s10, %s478_s10   ;;  %s411_s9 = sphi %s438_s9, %s477_s9  }
   0x3   : > { %p26_p1 = scmp.ge.s32.totalorder %s24_s12, 2  ;;  %p140_p2 = scmp.lt.s32.totalorder %s419_s11, 3 }
   0x5   : > { %s480_s12 = smov (%p26_p1, %s24_s12), 0  ;;  %p141_p3 = pnand %p347_p0, %p140_p2 }
   0x6   : > { %p171_p4 = scmp.lt.s32.totalorder (!%p141_p3), %s411_s9, 1 }
   0x7   : > { %144 = sbr.rel (%p141_p3) target bundleno = 222 (0xde), region = 28 }
   0xc   : > { %v421_v0 = vmov 0.0   ;;  %vm422_vm0 = vmmov 0   ;;  %s482_s9 = smov (!%p171_p4, %s411_s9), 1  ;;  %vm208_vm1 = vcmask 261120   ;;  %vm252_vm2 = vcmask 523264  }
   0xd   : > { %361 = vmatprep.subr.bf16.mxu0 %v421_v0  ;;  %365 = vmatprep.mubr.msk.bf16.mxu0 %vm422_vm0, %v421_v0  ;;  %s357_s13 = sshll.u32 %s482_s9, 4  ;;  %s348_s17 = sshll.u32 %s482_s9, 2 }
   0xe   : > { %s182_s16 = scalar_lea.vmem %s475_s1, %s357_s13  ;;  %s174_s20 = scalar_lea.vmem %s474_s0, %s348_s17 }
   0xf   : > { %v395_v1 = vld [vmem:[%s182_s16 + $0x8] sm:$0xff]   ;;  %v396_v2 = vld [vmem:[%s182_s16] sm:$0xff]   ;;  %s351_s21 = sshll.u32 %s482_s9, 3 }
  0x10   : > { %362 = vmatpush3.bf16.msra.mxu0 %v395_v1  ;;  %v191_v3 = vld [vmem:[%s174_s20] sm:$0xf]  ;;  %s189_s24 = scalar_lea.vmem %s476_s2, %s351_s21 }
  0x11   : > { %363 = vmatprep.subr.bf16.mxu0 %v421_v0 }
  0x14   : > { %364 = vmatpush3.bf16.msra.mxu0 %v396_v2 }
  0x17   : > { %366 = vmatmul.mubr.msk.bf16.vlgmr.msra.gmra.mxu0 %vm208_vm1, %v191_v3 }
  0xd7   : > { %v246_v4 = vpop.f32.mrf.mxu0 }
  0xd8   : > { %253 = vst.msk [vmem:[%s189_s24] sm:$0xff] %vm252_vm2, %v246_v4 }
  0xd9   : > { %v367_v5 = vpop.f32.mrf.mxu0 }
  0xdb   : > { %v249_v6 = vpop.f32.mrf.mxu0 }
  0xdd   : > { %v368_v7 = vpop.f32.mrf.mxu0 }
  0xde PF: > { %s12_s11 = sadd.s32 1, %s419_s11   ;;  %s477_s9 = smov %s415_s10 }
  0xdf   : > { %p9_p5 = scmp.ge.s32.totalorder %s12_s11, 4   ;;  %s478_s10 = smov %s480_s12 }
  0xe1   :  { %11 = sbr.rel (!%p9_p5) target bundleno = 2 (0x2), region = 61 }

// kernel: decoder_forward.35
= control target key start
LH: loop header
LB: loop body
LE: loop exit
PB: predicated region body
PF: predicated region fallthrough
CT: control target
= control target key end

     0   :  { %s462_s9 = smov 0   ;;  %s464_s10 = smov 0   ;;  %s498_s0 = inlined_call_operand.vmem [shape: bf16[2,8,32], index: 0, kind: input, shape index: {}]   ;;  %s499_s1 = inlined_call_operand.vmem [shape: bf16[2,32,256], index: 1, kind: input, shape index: {}]   ;;  %s500_s2 = inlined_call_operand.vmem [shape: f32[2,8,256], index: 2, kind: output, shape index: {}]  }
   0x1   :  { %s466_s11 = smov 0  }
   0x2 LB: > { %s24_s12 = sadd.s32 1, %s440_s10  ;;  %p376_p0 = scmp.ge.s32.totalorder %s444_s11, 1  ;;  %s444_s11 = sphi %s466_s11, %s12_s11   ;;  %s440_s10 = sphi %s464_s10, %s502_s10   ;;  %s436_s9 = sphi %s462_s9, %s501_s9  }
   0x3   : > { %p26_p1 = scmp.ge.s32.totalorder %s24_s12, 2  ;;  %p142_p2 = scmp.lt.s32.totalorder %s444_s11, 3 }
   0x5   : > { %s504_s12 = smov (%p26_p1, %s24_s12), 0  ;;  %p143_p3 = pnand %p376_p0, %p142_p2 }
   0x6   : > { %p176_p4 = scmp.lt.s32.totalorder (!%p143_p3), %s436_s9, 1 }
   0x7   : > { %146 = sbr.rel (%p143_p3) target bundleno = 223 (0xdf), region = 28 }
   0xc   : > { %v446_v0 = vmov 0   ;;  %s506_s9 = smov (!%p176_p4, %s436_s9), 1  ;;  %vm226_vm0 = vcmask 261120  }
   0xd   : > { %262 = vmatprep.mubr.bf16.mxu0 %v446_v0  ;;  %s389_s13 = sshll.u32 %s506_s9, 5  ;;  %s377_s17 = sshll.u32 %s506_s9, 2 }
   0xe   : > { %s188_s16 = scalar_lea.vmem %s499_s1, %s389_s13  ;;  %s179_s20 = scalar_lea.vmem %s498_s0, %s377_s17 }
   0xf   : > { %v416_v1 = vld [vmem:[%s188_s16 + $0x14] ss:$8 sps:$4 sm:$0xff]   ;;  %v418_v2 = vld [vmem:[%s188_s16 + $0x10] ss:$8 sps:$4 sm:$0xff]   ;;  %v419_v3 = vld [vmem:[%s188_s16 + $0x4] ss:$8 sps:$4 sm:$0xff]  }
  0x10   : > { %242 = vmatprep.subr.bf16.mxu0 %v416_v1  ;;  %v421_v4 = vld [vmem:[%s188_s16] ss:$8 sps:$4 sm:$0xff]   ;;  %s390_s21 = sshll.u32 %s506_s9, 4 }
  0x11   : > { %243 = vmatpush1.bf16.msra.mxu0 %v418_v2  ;;  %v201_v5 = vld [vmem:[%s179_s20] sm:$0xf]  ;;  %s198_s24 = scalar_lea.vmem %s500_s2, %s390_s21 }
  0x12   : > { %244 = vmatprep.subr.bf16.mxu0 %v419_v3 }
  0x15   : > { %245 = vmatpush1.bf16.msra.mxu0 %v421_v4 }
  0x18   : > { %386 = vmatmul.mubr.msk.bf16.vlgmr.msra.gmra.mxu0 %vm226_vm0, %v201_v5 }
  0xd8   : > { %v264_v6 = vpop.f32.mrf.mxu0 }
  0xd9   : > { %271 = vst [vmem:[%s198_s24] sm:$0xff] %v264_v6 }
  0xda   : > { %v266_v7 = vpop.f32.mrf.mxu0 }
  0xdb   : > { %272 = vst [vmem:[%s198_s24 + $0x8] sm:$0xff] %v266_v7 }
  0xdc   : > { %v268_v8 = vpop.f32.mrf.mxu0 }
  0xde   : > { %v269_v9 = vpop.f32.mrf.mxu0 }
  0xdf PF: > { %s12_s11 = sadd.s32 1, %s444_s11   ;;  %s501_s9 = smov %s440_s10 }
  0xe0   : > { %p9_p5 = scmp.ge.s32.totalorder %s12_s11, 4   ;;  %s502_s10 = smov %s504_s12 }
  0xe2   :  { %11 = sbr.rel (!%p9_p5) target bundleno = 2 (0x2), region = 61 }

// kernel: decoder_forward.23
= control target key start
LH: loop header
LB: loop body
LE: loop exit
PB: predicated region body
PF: predicated region fallthrough
CT: control target
= control target key end

     0   :  { %s438_s9 = smov 0   ;;  %s440_s10 = smov 0   ;;  %s474_s0 = inlined_call_operand.vmem [shape: bf16[2,8,32], index: 0, kind: input, shape index: {}]   ;;  %s475_s1 = inlined_call_operand.vmem [shape: bf16[2,32,16], index: 1, kind: input, shape index: {}]   ;;  %s476_s2 = inlined_call_operand.vmem [shape: f32[2,8,16], index: 2, kind: output, shape index: {}]  }
   0x1   :  { %s442_s11 = smov 0  }
   0x2 LB: > { %s24_s12 = sadd.s32 1, %s415_s10  ;;  %p347_p0 = scmp.ge.s32.totalorder %s419_s11, 1  ;;  %s419_s11 = sphi %s442_s11, %s12_s11   ;;  %s415_s10 = sphi %s440_s10, %s478_s10   ;;  %s411_s9 = sphi %s438_s9, %s477_s9  }
   0x3   : > { %p26_p1 = scmp.ge.s32.totalorder %s24_s12, 2  ;;  %p140_p2 = scmp.lt.s32.totalorder %s419_s11, 3 }
   0x5   : > { %s480_s12 = smov (%p26_p1, %s24_s12), 0  ;;  %p141_p3 = pnand %p347_p0, %p140_p2 }
   0x6   : > { %p171_p4 = scmp.lt.s32.totalorder (!%p141_p3), %s411_s9, 1 }
   0x7   : > { %144 = sbr.rel (%p141_p3) target bundleno = 222 (0xde), region = 28 }
   0xc   : > { %v421_v0 = vmov 0.0   ;;  %vm422_vm0 = vmmov 0   ;;  %s482_s9 = smov (!%p171_p4, %s411_s9), 1  ;;  %vm208_vm1 = vcmask 261120   ;;  %vm252_vm2 = vcmask 130048  }
   0xd   : > { %361 = vmatprep.subr.bf16.mxu0 %v421_v0  ;;  %365 = vmatprep.mubr.msk.bf16.mxu0 %vm422_vm0, %v421_v0  ;;  %s357_s13 = sshll.u32 %s482_s9, 4  ;;  %s348_s17 = sshll.u32 %s482_s9, 2 }
   0xe   : > { %s182_s16 = scalar_lea.vmem %s475_s1, %s357_s13  ;;  %s174_s20 = scalar_lea.vmem %s474_s0, %s348_s17 }
   0xf   : > { %v395_v1 = vld [vmem:[%s182_s16 + $0x8] sm:$0xff]   ;;  %v396_v2 = vld [vmem:[%s182_s16] sm:$0xff]   ;;  %s351_s21 = sshll.u32 %s482_s9, 3 }
  0x10   : > { %362 = vmatpush3.bf16.msra.mxu0 %v395_v1  ;;  %v191_v3 = vld [vmem:[%s174_s20] sm:$0xf]  ;;  %s189_s24 = scalar_lea.vmem %s476_s2, %s351_s21 }
  0x11   : > { %363 = vmatprep.subr.bf16.mxu0 %v421_v0 }
  0x14   : > { %364 = vmatpush3.bf16.msra.mxu0 %v396_v2 }
  0x17   : > { %366 = vmatmul.mubr.msk.bf16.vlgmr.msra.gmra.mxu0 %vm208_vm1, %v191_v3 }
  0xd7   : > { %v246_v4 = vpop.f32.mrf.mxu0 }
  0xd8   : > { %253 = vst.msk [vmem:[%s189_s24] sm:$0xff] %vm252_vm2, %v246_v4 }
  0xd9   : > { %v367_v5 = vpop.f32.mrf.mxu0 }
  0xdb   : > { %v249_v6 = vpop.f32.mrf.mxu0 }
  0xdd   : > { %v368_v7 = vpop.f32.mrf.mxu0 }
  0xde PF: > { %s12_s11 = sadd.s32 1, %s419_s11   ;;  %s477_s9 = smov %s415_s10 }
  0xdf   : > { %p9_p5 = scmp.ge.s32.totalorder %s12_s11, 4   ;;  %s478_s10 = smov %s480_s12 }
  0xe1   :  { %11 = sbr.rel (!%p9_p5) target bundleno = 2 (0x2), region = 61 }

// kernel: decoder_forward.32
= control target key start
LH: loop header
LB: loop body
LE: loop exit
PB: predicated region body
PF: predicated region fallthrough
CT: control target
= control target key end

     0   :  { %s3937_s27 = smov 0   ;;  %s3939_s28 = smov 0   ;;  %s4642_s0 = inlined_call_operand.vmem [shape: f32[2,8,32], index: 0, kind: input, shape index: {}]   ;;  %s4643_s1 = inlined_call_operand.vmem [shape: bf16[2,256,32], index: 1, kind: input, shape index: {}]   ;;  %s4644_s2 = inlined_call_operand.vmem [shape: f32[8,32], index: 2, kind: input, shape index: {}]   ;;  %s4645_s3 = inlined_call_operand.vmem [shape: s8[2,8,256], index: 3, kind: input, shape index: {}]   ;;  %s4646_s4 = inlined_call_operand.vmem [shape: bf16[32,32], index: 4, kind: input, shape index: {}]   ;;  %s4647_s5 = inlined_call_operand.vmem [shape: bf16[32,32], index: 5, kind: input, shape index: {}]   ;;  %s4648_s6 = inlined_call_operand.vmem [shape: bf16[32,32], index: 6, kind: input, shape index: {}]   ;;  %s4649_s7 = inlined_call_operand.vmem [shape: bf16[32,32], index: 7, kind: input, shape index: {}]   ;;  %s4650_s8 = inlined_call_operand.vmem [shape: bf16[32,32], index: 8, kind: input, shape index: {}]   ;;  %s4651_s9 = inlined_call_operand.vmem [shape: bf16[32,32], index: 9, kind: input, shape index: {}]   ;;  %s4652_s10 = inlined_call_operand.vmem [shape: bf16[32,32], index: 10, kind: input, shape index: {}]   ;;  %s4653_s11 = inlined_call_operand.vmem [shape: bf16[32,32], index: 11, kind: input, shape index: {}]   ;;  %s4654_s12 = inlined_call_operand.vmem [shape: bf16[32,32], index: 12, kind: input, shape index: {}]   ;;  %s4655_s13 = inlined_call_operand.vmem [shape: bf16[32,32], index: 13, kind: input, shape index: {}]   ;;  %s4656_s14 = inlined_call_operand.vmem [shape: bf16[32,64], index: 14, kind: input, shape index: {}]   ;;  %s4657_s15 = inlined_call_operand.vmem [shape: f32[1,64], index: 15, kind: input, shape index: {}]   ;;  %s4658_s16 = inlined_call_operand.vmem [shape: bf16[64,32], index: 16, kind: input, shape index: {}]   ;;  %s4659_s17 = inlined_call_operand.vmem [shape: f32[16,32], index: 17, kind: input, shape index: {}]   ;;  %s4660_s18 = inlined_call_operand.vmem [shape: f32[2,8,32], index: 18, kind: output, shape index: {}]  }
   0x1   :  { %4670 = sst [smem:[#allocation11_spill]] %s4642_s0  ;;  %s3941_s29 = smov 0  }
   0x2   :  { %4671 = sst [smem:[#allocation12_spill]] %s4643_s1  ;;  %s3943_s30 = smov 0  }
   0x3   :  { %4672 = sst [smem:[#allocation13_spill]] %s4644_s2  ;;  %s3945_s0 = smov 0  }
   0x4   :  { %4673 = sst [smem:[#allocation14_spill]] %s4652_s10 }
   0x5   :  { %4674 = sst [smem:[#allocation15_spill]] %s4653_s11 }
   0x6   :  { %4675 = sst [smem:[#allocation16_spill]] %s4654_s12 }
   0x7   :  { %4676 = sst [smem:[#allocation17_spill]] %s4655_s13 }
   0x8   :  { %4677 = sst [smem:[#allocation18_spill]] %s4656_s14 }
   0x9   :  { %4678 = sst [smem:[#allocation19_spill]] %s4657_s15 }
   0xa   :  { %4679 = sst [smem:[#allocation20_spill]] %s4658_s16 }
   0xb   :  { %4680 = sst [smem:[#allocation21_spill]] %s4659_s17 }
   0xc LB: > { %4681 = sst [smem:[#allocation6_spill]] %s3811_s29  ;;  %s37_s19 = sadd.s32 1, %s3811_s29  ;;  %s3819_s0 = sphi %s3945_s0, %s28_s0   ;;  %s3815_s30 = sphi %s3943_s30, %s4706_s30   ;;  %s3811_s29 = sphi %s3941_s29, %s4705_s29   ;;  %s3807_s28 = sphi %s3939_s28, %s4704_s28   ;;  %s3803_s27 = sphi %s3937_s27, %s4703_s27  }
   0xd   : > { %4682 = sst [smem:[#allocation7_spill]] %s3815_s30  ;;  %s40_s1 = sadd.s32 1, %s3815_s30 }
   0xe   : > { %4683 = sst [smem:[#allocation8_spill]] %s3819_s0  ;;  %p38_p0 = scmp.ge.s32.totalorder %s37_s19, 2 }
   0xf   : > { %p3079_p1 = scmp.ge.s32.totalorder %s3819_s0, 1  ;;  %p555_p2 = scmp.lt.s32.totalorder %s3819_s0, 5 }
  0x10   : > { %s4708_s19 = smov (%p38_p0, %s37_s19), 0  ;;  %s4710_s1 = smov (!%p38_p0, %s40_s1), %s3815_s30 }
  0x11   : > { %4684 = sst [smem:[#allocation9_spill]] %s4708_s19  ;;  %p556_p3 = pnand %p3079_p1, %p555_p2 }
  0x12   : > { %p42_p4 = scmp.ge.s32.totalorder %s4710_s1, 2  ;;  %p624_p5 = scmp.lt.s32.totalorder (!%p556_p3), %s3807_s28, 1 }
  0x13   : > { %559 = sbr.rel (%p556_p3) target bundleno = 4898 (0x1322), region = 92  ;;  %s3081_s20 = sshll.u32 (!%p556_p3), %s3803_s27, 4 }
  0x14   : > { %s4712_s1 = smov (%p42_p4, %s4710_s1), 0  ;;  %s4686_s17 = sld [smem:[#allocation21_spill]] (!%p556_p3) }
  0x15   : > { %4685 = sst [smem:[#allocation10_spill]] %s4712_s1  ;;  %p631_p6 = scmp.lt.s32.totalorder (!%p556_p3), %s3081_s20, 31 }
  0x16   : > { %p640_p7 = scmp.lt.s32.totalorder (!%p556_p3), %s3803_s27, 1  ;;  %s4687_s19 = sld [smem:[#allocation11_spill]] (!%p556_p3) }
  0x17   : > { %s4688_s16 = sld [smem:[#allocation12_spill]] (!%p556_p3)  ;;  %p3087_p8 = scmp.ne.s32.totalorder (!%p556_p3), %s3803_s27, 0 }
  0x18   : > { %s4714_s28 = smov (!%p624_p5, %s3807_s28), 1  ;;  %s4716_s20 = smov (!%p631_p6, %s3081_s20), 31 }
  0x19   : > { %s3080_s24 = sshll.u32 %s4714_s28, 3  ;;  %s3082_s25 = sshll.u32 %s4714_s28, 5 }
  0x1a   : > { %v3973_v0 = vld [vmem:[%s4686_s17] sm:$0xff]  ;;  %v3978_v1 = vld [vmem:[%s4686_s17 + $0x8] sm:$0xff]  ;;  %s634_s29 = sadd.s32 %s3082_s25, %s4716_s20  ;;  %s3084_s22 = sshll.u32 %s4714_s28, 1 }
  0x1b   : > { %s3083_s21 = sshll.u32 %s634_s29, 2  ;;  %s3994_s14 = scalar_lea.vmem %s4660_s18, %s3080_s24 }
  0x1c   : > { %s3984_s30 = scalar_lea.vmem %s4687_s19, %s3080_s24  ;;  %s3826_s17 = smov (!%p3087_p8), 112  }
  0x1d   : > { %s3989_s2 = scalar_lea.vmem %s4688_s16, %s3083_s21 }
  0x1e   : > { %s641_s13 = scalar_select %p640_p7, %s3803_s27, 1 }
  0x1f   : > { %658 = sbr.rel (%p3087_p8) target bundleno = 362 (0x16a), region = 96 }
  0x20   : > { %s643_s12 = sadd.s32 %s3084_s22, %s641_s13  ;;  %s3825_s13 = smov (!%p3087_p8), 120  }
  0x21   : > { %s3085_s11 = sshll.u32 %s643_s12, 1  ;;  %s3824_s12 = smov (!%p3087_p8), 104  }
  0x22   : > { %s4000_s19 = scalar_lea.vmem %s4645_s3, %s3085_s11 }
  0x24   : > { %vm741_vm0 = vcmask 7168   ;;  %vm750_vm1 = vcmask 64512   ;;  %v3697_v2 = vld [vmem:[%s4646_s4 + $0x8] sm:$0xff]   ;;  %v3821_v3 = vmov 0.0   ;;  %v3822_v4 = vmov -1e+30  }
  0x25   : > { %3304 = vmatprep.subr.bf16.mxu0 %v3821_v3  ;;  %742 = vst.msk [vmem:[#allocation3] sm:$0xff] %vm741_vm0, %v3822_v4  ;;  %743 = vst.msk [vmem:[#allocation3 + $0x8] sm:$0xff] %vm741_vm0, %v3822_v4  ;;  %v3698_v5 = vld [vmem:[%s4646_s4] sm:$0xff]   ;;  %vm3823_vm2 = vmmov 0   ;;  %vm681_vm3 = vcmask 261120   ;;  %v665_v8 = vlaneseq  ;;  %vm736_vm4 = vcmask 60416  }
  0x26   : > { %744 = vst.msk [vmem:[#allocation3 + $0x10] sm:$0xff] %vm741_vm0, %v3822_v4  ;;  %745 = vst.msk [vmem:[#allocation3 + $0x18] sm:$0xff] %vm741_vm0, %v3822_v4  ;;  %3305 = vmatpush3.bf16.msra.mxu0 %v3697_v2  ;;  %v659_v6 = vld [vmem:[%s3984_s30] sm:$0xff]  ;;  %3308 = vmatprep.mubr.msk.bf16.mxu0 %vm3823_vm2, %v3821_v3 }
  0x27   : > { %746 = vst.msk [vmem:[#allocation4] sm:$0xff] %vm741_vm0, %v3821_v3  ;;  %747 = vst.msk [vmem:[#allocation4 + $0x8] sm:$0xff] %vm741_vm0, %v3821_v3  ;;  %3306 = vmatprep.subr.bf16.mxu0 %v3821_v3  ;;  %v660_v7 = vpack.c.bf16 %v659_v6, %v659_v6  ;;  %v666_v9 = vshrl.u32 %v665_v8, 7 }
  0x28   : > { %748 = vst.msk [vmem:[#allocation4 + $0x10] sm:$0xff] %vm741_vm0, %v3821_v3  ;;  %749 = vst.msk [vmem:[#allocation4 + $0x18] sm:$0xff] %vm741_vm0, %v3821_v3 }
  0x29   : > { %751 = vst.msk [vmem:[#allocation5] sm:$0xff] %vm750_vm1, %v3821_v3  ;;  %752 = vst.msk [vmem:[#allocation5 + $0x8] sm:$0xff] %vm750_vm1, %v3821_v3  ;;  %v667_v10 = vsub.s32 0, %v666_v9 }
  0x2a   : > { %753 = vst.msk [vmem:[#allocation5 + $0x10] sm:$0xff] %vm750_vm1, %v3821_v3  ;;  %754 = vst.msk [vmem:[#allocation5 + $0x18] sm:$0xff] %vm750_vm1, %v3821_v3  ;;  %3307 = vmatpush3.bf16.msra.mxu0 %v3698_v5 }
  0x2b   : > { %v668_v11 = vrot.slane %v3973_v0, %v667_v10 }
  0x2d   : > { %3309 = vmatmul.mubr.msk.bf16.vlgmr.msra.gmra.mxu0 %vm681_vm3, %v660_v7 }
  0xed   : > { %v719_v12 = vpop.f32.mrf.mxu0 }
  0xee   : > { %v720_v13 = vadd.f32 %v719_v12, %v668_v11 }
  0xef   : > { %v3310_v14 = vpop.f32.mrf.mxu0 }
  0xf0   : > { %v725_v15 = vpack.c.bf16 %v720_v13, %v720_v13 }
  0xf1   : > { %v722_v16 = vpop.f32.mrf.mxu0 }
  0xf2   : > { %733 = vrot.lane.b32.xlu1 %v725_v15, %s3824_s12  ;;  %727 = vrot.lane.b32.xlu0 %v725_v15, %s3825_s13  ;;  %737 = vst.msk [vmem:[#allocation2] sm:$0xf] %vm736_vm4, %v725_v15 }
  0xf3   : > { %v3311_v17 = vpop.f32.mrf.mxu0 }
  0xf6   : > { %730 = vrot.lane.b32.xlu0 %v725_v15, %s3826_s17 }
 0x164   : > { %v734_v18 = vpop.permute.xlu1 %733  ;;  %v728_v19 = vpop.permute.xlu0 %727 }
 0x165   : > { %740 = vst.msk [vmem:[#allocation2 + $0xc] sm:$0xf] %vm736_vm4, %v734_v18  ;;  %738 = vst.msk [vmem:[#allocation2 + $0x4] sm:$0xf] %vm736_vm4, %v728_v19 }
 0x168   : > { %v731_v20 = vpop.permute.xlu0 %730 }
 0x169   : > { %739 = vst.msk [vmem:[#allocation2 + $0x8] sm:$0xf] %vm736_vm4, %v731_v20 }
 0x16a PF: > { %v3701_v21 = vld [vmem:[%s4647_s5 + $0x8] sm:$0xff]   ;;  %v3702_v22 = vld [vmem:[%s4647_s5] sm:$0xff]   ;;  %vm831_vm5 = vcmask 261120   ;;  %v3705_v25 = vld [vmem:[%s3989_s2 + $0x10] sm:$0xff]   ;;  %v3827_v31 = vmov 0.0   ;;  %vm3828_vm6 = vmmov 0   ;;  %v775_v38 = vlaneseq }
 0x16b   : > { %3312 = vmatprep.subr.bf16.mxu0 %v3701_v21  ;;  %v3703_v23 = vld [vmem:[%s3989_s2] sm:$0xff]   ;;  %v3704_v24 = vld [vmem:[%s3989_s2 + $0x8] sm:$0xff]   ;;  %v3706_v26 = vld [vmem:[%s3989_s2 + $0x18] sm:$0xff]   ;;  %s3829_s22 = smov 120   ;;  %vm1226_vm7 = vcmask 64512   ;;  %s3831_s23 = smov 112  }
 0x16c   : > { %3313 = vmatpush3.bf16.msra.mxu0 %v3701_v21  ;;  %3316 = vmatprep.mubr.msk.bf16.mxu0 %vm831_vm5, %v3703_v23  ;;  %v3707_v27 = vld [vmem:[%s3989_s2 + $0x20] sm:$0xff]   ;;  %v3708_v28 = vld [vmem:[%s3989_s2 + $0x28] sm:$0xff]   ;;  %v3709_v29 = vld [vmem:[%s3989_s2 + $0x30] sm:$0xff]   ;;  %v4061_v41 = vshrl.u32 %v775_v38, 7  ;;  %vm1586_vm10 = vcmask 7168   ;;  %p3123_p9 = scmp.ne.s32.totalorder %s3803_s27, 1 }
 0x16d   : > { %3314 = vmatprep.subr.bf16.mxu0 %v3702_v22  ;;  %3336 = vmatprep.mubr.msk.bf16.mxu1 %vm831_vm5, %v3703_v23  ;;  %v3710_v30 = vld [vmem:[%s3989_s2 + $0x38] sm:$0xff]   ;;  %v3711_v32 = vld [vmem:[%s4648_s6 + $0x8] sm:$0xff]   ;;  %v3712_v33 = vld [vmem:[%s4648_s6] sm:$0xff]   ;;  %s3830_s2 = smov 104   ;;  %s3836_s16 = smov (!%p3123_p9), 8  }
 0x16e   : > { %3332 = vmatprep.subr.bf16.mxu1 %v3711_v32  ;;  %v777_v44 = vsub.s32 1, %v4061_v41  ;;  %s3837_s12 = smov (!%p3123_p9), 16   ;;  %s3838_s13 = smov (!%p3123_p9), 24  }
 0x16f   : > { %3333 = vmatpush3.bf16.msra.mxu1 %v3711_v32  ;;  %s4691_s26 = sld [smem:[#allocation14_spill]] (!%p3123_p9)  ;;  %s3840_s25 = smov (!%p3123_p9), 120  }
 0x170   : > { %3315 = vmatpush3.bf16.msra.mxu0 %v3702_v22  ;;  %3334 = vmatprep.subr.bf16.mxu1 %v3712_v33  ;;  %v778_v47 = vrot.slane %v3973_v0, %v777_v44  ;;  %s4693_s11 = sld [smem:[#allocation13_spill]] (!%p3123_p9)  ;;  %s3841_s21 = smov (!%p3123_p9), 104  }
 0x171   : > { %3352 = vmatprep.subr.bf16.mxu0 %v3827_v31  ;;  %s4694_s29 = sld [smem:[#allocation16_spill]] (!%p3123_p9) }
 0x172   : > { %s4696_s27 = sld [smem:[#allocation17_spill]] (!%p3123_p9) }
 0x173   : > { %3317 = vmatmul.mubr.msk.bf16.vlgmr.msra.gmra.mxu0 %vm831_vm5, %v3704_v24  ;;  %3335 = vmatpush3.bf16.msra.mxu1 %v3712_v33  ;;  %s4701_s15 = sld [smem:[#allocation19_spill]] (!%p3123_p9) }
 0x174   : > { %3320 = vmatprep.mubr.msk.bf16.mxu0 %vm831_vm5, %v3705_v25  ;;  %3372 = vmatprep.subr.bf16.mxu1 %v3827_v31 }
 0x176   : > { %3337 = vmatmul.mubr.msk.bf16.vlgmr.msra.gmra.mxu1 %vm831_vm5, %v3704_v24  ;;  %v1222_v24 = vld [vmem:[#allocation2] sm:$0xf] }
 0x177   : > { %3340 = vmatprep.mubr.msk.bf16.mxu1 %vm831_vm5, %v3705_v25  ;;  %s4695_s20 = smov (!%p3123_p9), %s4694_s29 }
 0x178   : > { %s4697_s1 = smov (!%p3123_p9), %s4696_s27 }
 0x17b   : > { %3321 = vmatmul.mubr.msk.bf16.gmra.mxu0 %vm831_vm5, %v3706_v26 }
 0x17c   : > { %3324 = vmatprep.mubr.msk.bf16.mxu0 %vm831_vm5, %v3707_v27 }
 0x17e   : > { %3341 = vmatmul.mubr.msk.bf16.gmra.mxu1 %vm831_vm5, %v3706_v26 }
 0x17f   : > { %3344 = vmatprep.mubr.msk.bf16.mxu1 %vm831_vm5, %v3707_v27 }
 0x183   : > { %3325 = vmatmul.mubr.msk.bf16.gmra.mxu0 %vm831_vm5, %v3708_v28 }
 0x184   : > { %3328 = vmatprep.mubr.msk.bf16.mxu0 %vm831_vm5, %v3709_v29 }
 0x186   : > { %3345 = vmatmul.mubr.msk.bf16.gmra.mxu1 %vm831_vm5, %v3708_v28 }
 0x187   : > { %3348 = vmatprep.mubr.msk.bf16.mxu1 %vm831_vm5, %v3709_v29 }
 0x18b   : > { %3329 = vmatmul.mubr.msk.bf16.gmra.mxu0 %vm831_vm5, %v3710_v30 }
 0x18c   : > { %3368 = vmatprep.mubr.msk.bf16.mxu0 %vm3828_vm6, %v3827_v31 }
 0x18e   : > { %3349 = vmatmul.mubr.msk.bf16.gmra.mxu1 %vm831_vm5, %v3710_v30  ;;  %v3832_v30 = vmov 0  }
 0x18f   : > { %3388 = vmatprep.mubr.msk.bf16.mxu1 %vm3828_vm6, %v3827_v31  ;;  %3699 = vset.pattern.permute.xlu1 %v3832_v30 }
 0x190   : > { %3700 = vset.pattern.permute.xlu0 %v3832_v30 }
 0x233   : > { %v3318_v34 = vpop.f32.mrf.mxu0 }
 0x234   : > { %v899_v15 = vadd.f32 %v3318_v34, %v778_v47 }
 0x235   : > { %v890_v35 = vpop.f32.mrf.mxu0 }
 0x236   : > { %v891_v6 = vadd.f32 %v890_v35, %v778_v47  ;;  %v4116_v34 = vpop.f32.mrf.mxu1 }
 0x237   : > { %v3319_v36 = vpop.f32.mrf.mxu0 }
 0x238   : > { %v902_v13 = vadd.f32 %v3319_v36, %v778_v47  ;;  %v4122_v38 = vpop.f32.mrf.mxu1 }
 0x239   : > { %v893_v37 = vpop.f32.mrf.mxu0 }
 0x23a   : > { %v894_v2 = vadd.f32 %v893_v37, %v778_v47  ;;  %v954_v17 = vpack.c.bf16 %v902_v13, %v899_v15  ;;  %v1023_v13 = vsub.s32 2, %v4061_v41 }
 0x23b   : > { %v3322_v39 = vpop.f32.mrf.mxu0 }
 0x23c   : > { %v953_v9 = vpack.c.bf16 %v894_v2, %v891_v6  ;;  %v915_v12 = vadd.f32 %v3322_v39, %v778_v47  ;;  %v1234_v22 = vsel %vm1226_vm7, %v954_v17, 0 }
 0x23d   : > { %v906_v40 = vpop.f32.mrf.mxu0 }
 0x23e   : > { %v907_v60 = vadd.f32 %v906_v40, %v778_v47  ;;  %v1231_v23 = vsel %vm1226_vm7, %v953_v9, 0 }
 0x23f   : > { %v3323_v42 = vpop.f32.mrf.mxu0 }
 0x240   : > { %v918_v10 = vadd.f32 %v3323_v42, %v778_v47  ;;  %v4124_v42 = vpop.f32.mrf.mxu1 }
 0x241   : > { %v909_v43 = vpop.f32.mrf.mxu0 }
 0x242   : > { %v910_v57 = vadd.f32 %v909_v43, %v778_v47  ;;  %v956_v14 = vpack.c.bf16 %v918_v10, %v915_v12 }
 0x243   : > { %v3326_v45 = vpop.f32.mrf.mxu0 }
 0x244   : > { %v931_v49 = vadd.f32 %v3326_v45, %v778_v47  ;;  %v955_v3 = vpack.c.bf16 %v910_v57, %v907_v60  ;;  %v1240_v20 = vsel %vm1226_vm7, %v956_v14, 0 }
 0x245   : > { %v922_v46 = vpop.f32.mrf.mxu0 }
 0x246   : > { %v923_v55 = vadd.f32 %v922_v46, %v778_v47  ;;  %v1237_v21 = vsel %vm1226_vm7, %v955_v3, 0  ;;  %v4130_v46 = vpop.f32.mrf.mxu1 }
 0x247   : > { %v3327_v48 = vpop.f32.mrf.mxu0 }
 0x248   : > { %v934_v50 = vadd.f32 %v3327_v48, %v778_v47  ;;  %v4132_v48 = vpop.f32.mrf.mxu1 }
 0x249   : > { %v925_v51 = vpop.f32.mrf.mxu0 }
 0x24a   : > { %v958_v52 = vpack.c.bf16 %v934_v50, %v931_v49  ;;  %v926_v53 = vadd.f32 %v925_v51, %v778_v47  ;;  %v4138_v51 = vpop.f32.mrf.mxu1 }
 0x24b   : > { %v3330_v54 = vpop.f32.mrf.mxu0 }
 0x24c   : > { %979 = vrot.lane.b32.xlu1 %v958_v52, %s3829_s22  ;;  %v957_v58 = vpack.c.bf16 %v926_v53, %v923_v55  ;;  %v947_v61 = vadd.f32 %v3330_v54, %v778_v47  ;;  %v1246_v18 = vsel %vm1226_vm7, %v958_v52, 0  ;;  %v4140_v54 = vpop.f32.mrf.mxu1 }
 0x24d   : > { %v938_v56 = vpop.f32.mrf.mxu0 }
 0x24e   : > { %v939_v7 = vadd.f32 %v938_v56, %v778_v47  ;;  %v1243_v19 = vsel %vm1226_vm7, %v957_v58, 0  ;;  %v4146_v57 = vpop.f32.mrf.mxu1 }
 0x24f   : > { %v3331_v59 = vpop.f32.mrf.mxu0 }
 0x250   : > { %v950_v62 = vadd.f32 %v3331_v59, %v778_v47  ;;  %977 = vrot.lane.b32.xlu1 %v957_v58, %s3829_s22  ;;  %v3346_v59 = vpop.f32.mrf.mxu1 }
 0x251   : > { %v941_v63 = vpop.f32.mrf.mxu0 }
 0x252   : > { %v960_v4 = vpack.c.bf16 %v950_v62, %v947_v61  ;;  %v942_v5 = vadd.f32 %v941_v63, %v778_v47  ;;  %v1103_v62 = vpop.f32.mrf.mxu1 }
 0x254   : > { %983 = vrot.lane.b32.xlu0 %v960_v4, %s3829_s22  ;;  %973 = vrot.lane.b32.xlu1 %v955_v3, %s3829_s22  ;;  %v1252_v8 = vsel %vm1226_vm7, %v960_v4, 0  ;;  %v959_v11 = vpack.c.bf16 %v942_v5, %v939_v7 }
 0x255   : > { %3353 = vmatpush3.bf16.xpose.msra.mxu0 %v1252_v8 }
 0x256   : > { %3354 = vmatprep.subr.bf16.mxu0 %v3827_v31  ;;  %v1249_v16 = vsel %vm1226_vm7, %v959_v11, 0 }
 0x258   : > { %981 = vrot.lane.b32.xlu0 %v959_v11, %s3829_s22  ;;  %969 = vrot.lane.b32.xlu1 %v953_v9, %s3829_s22 }
 0x25c   : > { %975 = vrot.lane.b32.xlu0 %v956_v14, %s3829_s22  ;;  %1015 = vrot.lane.b32.xlu1 %v960_v4, %s3830_s2 }
 0x25d   : > { %3355 = vmatpush3.bf16.xpose.msra.mxu0 %v1249_v16 }
 0x25e   : > { %3356 = vmatprep.subr.bf16.mxu0 %v3827_v31 }
 0x260   : > { %971 = vrot.lane.b32.xlu0 %v954_v17, %s3829_s22  ;;  %1013 = vrot.lane.b32.xlu1 %v959_v11, %s3830_s2 }
 0x264   : > { %999 = vrot.lane.b32.xlu0 %v960_v4, %s3831_s23  ;;  %1011 = vrot.lane.b32.xlu1 %v958_v52, %s3830_s2 }
 0x265   : > { %3357 = vmatpush3.bf16.xpose.msra.mxu0 %v1246_v18 }
 0x266   : > { %3358 = vmatprep.subr.bf16.mxu0 %v3827_v31 }
 0x268   : > { %997 = vrot.lane.b32.xlu0 %v959_v11, %s3831_s23  ;;  %1009 = vrot.lane.b32.xlu1 %v957_v58, %s3830_s2 }
 0x26c   : > { %995 = vrot.lane.b32.xlu0 %v958_v52, %s3831_s23  ;;  %1007 = vrot.lane.b32.xlu1 %v956_v14, %s3830_s2 }
 0x26d   : > { %3359 = vmatpush3.bf16.xpose.msra.mxu0 %v1243_v19 }
 0x26e   : > { %3360 = vmatprep.subr.bf16.mxu0 %v3827_v31 }
 0x270   : > { %993 = vrot.lane.b32.xlu0 %v957_v58, %s3831_s23  ;;  %1005 = vrot.lane.b32.xlu1 %v955_v3, %s3830_s2 }
 0x274   : > { %991 = vrot.lane.b32.xlu0 %v956_v14, %s3831_s23  ;;  %1003 = vrot.lane.b32.xlu1 %v954_v17, %s3830_s2 }
 0x275   : > { %3361 = vmatpush3.bf16.xpose.msra.mxu0 %v1240_v20 }
 0x276   : > { %3362 = vmatprep.subr.bf16.mxu0 %v3827_v31 }
 0x278   : > { %989 = vrot.lane.b32.xlu0 %v955_v3, %s3831_s23  ;;  %1001 = vrot.lane.b32.xlu1 %v953_v9, %s3830_s2  ;;  %v3347_v3 = vpop.f32.mrf.mxu1 }
 0x27a   : > { %v1106_v6 = vpop.f32.mrf.mxu1 }
 0x27c   : > { %987 = vrot.lane.b32.xlu0 %v954_v17, %s3831_s23  ;;  %v3350_v10 = vpop.f32.mrf.mxu1  ;;  %v1024_v17 = vrot.slane %v3973_v0, %v1023_v13 }
 0x27d   : > { %3363 = vmatpush3.bf16.xpose.msra.mxu0 %v1237_v21 }
 0x27e   : > { %3364 = vmatprep.subr.bf16.mxu0 %v3827_v31  ;;  %v1119_v14 = vpop.f32.mrf.mxu1  ;;  %v1128_v21 = vadd.f32 %v3350_v10, %v1024_v17 }
 0x280   : > { %985 = vrot.lane.b32.xlu0 %v953_v9, %s3831_s23  ;;  %v1223_v9 = vld [vmem:[#allocation2 + $0x4] sm:$0xf]  ;;  %v3351_v18 = vpop.f32.mrf.mxu1 }
 0x285   : > { %3365 = vmatpush3.bf16.xpose.msra.mxu0 %v1234_v22  ;;  %v1131_v22 = vadd.f32 %v3351_v18, %v1024_v17 }
 0x286   : > { %3366 = vmatprep.subr.bf16.mxu0 %v3827_v31 }
 0x28d   : > { %3367 = vmatpush3.bf16.xpose.msra.mxu0 %v1231_v23  ;;  %v1122_v23 = vpop.f32.mrf.mxu1 }
 0x28e   : > { %3392 = vmatprep.subr.bf16.mxu0 %v3827_v31 }
 0x294   : > { %3369 = vmatmul.mubr.msk.bf16.vlgmr.msra.gmra.mxu0 %vm1226_vm7, %v1222_v24 }
 0x295   : > { %3408 = vmatprep.mubr.msk.bf16.mxu0 %vm3828_vm6, %v3827_v31 }
 0x2be   : > { %v980_v33 = vpop.permute.xlu1 %979 }
 0x2bf   : > { %v1313_v36 = vsel %vm1226_vm7, %v980_v33, 0  ;;  %v1115_v33 = vadd.f32 %v3347_v3, %v1024_v17 }
 0x2c2   : > { %v978_v39 = vpop.permute.xlu1 %977 }
 0x2c3   : > { %v1310_v43 = vsel %vm1226_vm7, %v978_v39, 0 }
 0x2c6   : > { %v984_v25 = vpop.permute.xlu0 %983  ;;  %v974_v52 = vpop.permute.xlu1 %973 }
 0x2c7   : > { %v1319_v26 = vsel %vm1226_vm7, %v984_v25, 0  ;;  %v1304_v55 = vsel %vm1226_vm7, %v974_v52, 0  ;;  %v1224_v25 = vld [vmem:[#allocation2 + $0x8] sm:$0xf]  ;;  %v1088_v52 = vadd.f32 %v4138_v51, %v1024_v17 }
 0x2c8   : > { %3373 = vmatpush3.bf16.xpose.msra.mxu1 %v1319_v26  ;;  %v1120_v26 = vadd.f32 %v1119_v14, %v1024_v17 }
 0x2c9   : > { %3374 = vmatprep.subr.bf16.mxu1 %v3827_v31 }
 0x2ca   : > { %v982_v27 = vpop.permute.xlu0 %981  ;;  %v970_v63 = vpop.permute.xlu1 %969 }
 0x2cb   : > { %v1316_v29 = vsel %vm1226_vm7, %v982_v27, 0  ;;  %v1298_v4 = vsel %vm1226_vm7, %v970_v63, 0  ;;  %v4171_v27 = vpack.c.bf16 %v1131_v22, %v1128_v21  ;;  %v1225_v63 = vld [vmem:[#allocation2 + $0xc] sm:$0xf] }
 0x2ce   : > { %v976_v28 = vpop.permute.xlu0 %975  ;;  %v1016_v7 = vpop.permute.xlu1 %1015 }
 0x2cf   : > { %v1307_v49 = vsel %vm1226_vm7, %v976_v28, 0  ;;  %v1453_v11 = vsel %vm1226_vm7, %v1016_v7, 0  ;;  %v1123_v28 = vadd.f32 %v1122_v23, %v1024_v17 }
 0x2d0   : > { %3375 = vmatpush3.bf16.xpose.msra.mxu1 %v1316_v29 }
 0x2d1   : > { %3376 = vmatprep.subr.bf16.mxu1 %v3827_v31 }
 0x2d2   : > { %v972_v32 = vpop.permute.xlu0 %971  ;;  %v1014_v15 = vpop.permute.xlu1 %1013 }
 0x2d3   : > { %v1301_v60 = vsel %vm1226_vm7, %v972_v32, 0  ;;  %v1450_v19 = vsel %vm1226_vm7, %v1014_v15, 0  ;;  %v1112_v32 = vadd.f32 %v3346_v59, %v1024_v17 }
 0x2d5   : > { %v4182_v39 = vpack.c.bf16 %v1115_v33, %v1112_v32  ;;  %v4267_v33 = vld [vmem:[#allocation3 + $0x8] sm:$0xff] }
 0x2d6   : > { %v1000_v35 = vpop.permute.xlu0 %999  ;;  %v1012_v24 = vpop.permute.xlu1 %1011 }
 0x2d7   : > { %v1386_v37 = vsel %vm1226_vm7, %v1000_v35, 0  ;;  %v1447_v29 = vsel %vm1226_vm7, %v1012_v24, 0  ;;  %v4175_v35 = vpack.c.bf16 %v1123_v28, %v1120_v26 }
 0x2d8   : > { %3377 = vmatpush3.bf16.xpose.msra.mxu1 %v1313_v36  ;;  %3393 = vmatpush3.bf16.xpose.msra.mxu0 %v1386_v37  ;;  %v1104_v37 = vadd.f32 %v1103_v62, %v1024_v17 }
 0x2d9   : > { %3378 = vmatprep.subr.bf16.mxu1 %v3827_v31  ;;  %3394 = vmatprep.subr.bf16.mxu0 %v3827_v31 }
 0x2da   : > { %v998_v40 = vpop.permute.xlu0 %997  ;;  %v1010_v36 = vpop.permute.xlu1 %1009 }
 0x2db   : > { %v1383_v45 = vsel %vm1226_vm7, %v998_v40, 0  ;;  %v1107_v40 = vadd.f32 %v1106_v6, %v1024_v17 }
 0x2de   : > { %v996_v47 = vpop.permute.xlu0 %995 }
 0x2df   : > { %v1380_v50 = vsel %vm1226_vm7, %v996_v47, 0  ;;  %v1099_v47 = vadd.f32 %v4140_v54, %v1024_v17  ;;  %v1080_v54 = vadd.f32 %v4116_v34, %v1024_v17 }
 0x2e0   : > { %3379 = vmatpush3.bf16.xpose.msra.mxu1 %v1310_v43  ;;  %3395 = vmatpush3.bf16.xpose.msra.mxu0 %v1383_v45  ;;  %v1444_v43 = vsel %vm1226_vm7, %v1010_v36, 0  ;;  %v1096_v45 = vadd.f32 %v4132_v48, %v1024_v17 }
 0x2e1   : > { %3380 = vmatprep.subr.bf16.mxu1 %v3827_v31  ;;  %3396 = vmatprep.subr.bf16.mxu0 %v3827_v31 }
 0x2e2   : > { %v994_v53 = vpop.permute.xlu0 %993 }
 0x2e3   : > { %v1377_v56 = vsel %vm1226_vm7, %v994_v53, 0  ;;  %v4195_v53 = vpack.c.bf16 %v1099_v47, %v1096_v45 }
 0x2e6   : > { %v992_v58 = vpop.permute.xlu0 %991 }
 0x2e7   : > { %v1374_v61 = vsel %vm1226_vm7, %v992_v58, 0 }
 0x2e8   : > { %3381 = vmatpush3.bf16.xpose.msra.mxu1 %v1307_v49  ;;  %3397 = vmatpush3.bf16.xpose.msra.mxu0 %v1380_v50  ;;  %v4189_v49 = vpack.c.bf16 %v1107_v40, %v1104_v37  ;;  %v1008_v50 = vpop.permute.xlu1 %1007 }
 0x2e9   : > { %3382 = vmatprep.subr.bf16.mxu1 %v3827_v31  ;;  %3398 = vmatprep.subr.bf16.mxu0 %v3827_v31  ;;  %v1441_v48 = vsel %vm1226_vm7, %v1008_v50, 0 }
 0x2ea   : > { %v990_v2 = vpop.permute.xlu0 %989 }
 0x2eb   : > { %v1371_v5 = vsel %vm1226_vm7, %v990_v2, 0  ;;  %v1495_v2 = vld [vmem:[%s4000_s19] sm:$0x3] }
 0x2ec   : > { %v1006_v51 = vpop.permute.xlu1 %1005  ;;  %vm1496_vm8 = vnez %v1495_v2 }
 0x2ed   : > { %v1438_v34 = vsel %vm1226_vm7, %v1006_v51, 0  ;;  %v1497_v3 = vsel %vm1496_vm8, 16843009, %v3832_v30 }
 0x2ee   : > { %v988_v8 = vpop.permute.xlu0 %987 }
 0x2ef   : > { %v1368_v12 = vsel %vm1226_vm7, %v988_v8, 0 }
 0x2f0   : > { %3383 = vmatpush3.bf16.xpose.msra.mxu1 %v1304_v55  ;;  %3399 = vmatpush3.bf16.xpose.msra.mxu0 %v1377_v56  ;;  %v1091_v55 = vadd.f32 %v4146_v57, %v1024_v17  ;;  %v1083_v56 = vadd.f32 %v4124_v42, %v1024_v17  ;;  %v1072_v57 = vadd.f32 %v4122_v38, %v1024_v17  ;;  %v1004_v38 = vpop.permute.xlu1 %1003 }
 0x2f1   : > { %3384 = vmatprep.subr.bf16.mxu1 %v3827_v31  ;;  %3400 = vmatprep.subr.bf16.mxu0 %v3827_v31 }
 0x2f2   : > { %v986_v16 = vpop.permute.xlu0 %985  ;;  %v4203_v58 = vpack.c.bf16 %v1091_v55, %v1088_v52  ;;  %v4209_v59 = vpack.c.bf16 %v1083_v56, %v1080_v54  ;;  %v4277_v52 = vld [vmem:[#allocation3 + $0x10] sm:$0xff] }
 0x2f3   : > { %v1365_v20 = vsel %vm1226_vm7, %v986_v16, 0 }
 0x2f8   : > { %3385 = vmatpush3.bf16.xpose.msra.mxu1 %v1301_v60  ;;  %3401 = vmatpush3.bf16.xpose.msra.mxu0 %v1374_v61  ;;  %v1075_v60 = vadd.f32 %v4130_v46, %v1024_v17  ;;  %v1435_v46 = vsel %vm1226_vm7, %v1004_v38, 0  ;;  %v1002_v61 = vpop.permute.xlu1 %1001 }
 0x2f9   : > { %3386 = vmatprep.subr.bf16.mxu1 %v3827_v31  ;;  %3402 = vmatprep.subr.bf16.mxu0 %v3827_v31  ;;  %v1432_v62 = vsel %vm1226_vm7, %v1002_v61, 0 }
 0x2fa   : > { %v4215_v42 = vpack.c.bf16 %v1075_v60, %v1072_v57 }
 0x300   : > { %3387 = vmatpush3.bf16.xpose.msra.mxu1 %v1298_v4  ;;  %3403 = vmatpush3.bf16.xpose.msra.mxu0 %v1371_v5  ;;  %v1498_v4 = vunpack.c.0.s8 %v1497_v3 }
 0x301   : > { %3404 = vmatprep.subr.bf16.mxu0 %v3827_v31  ;;  %3412 = vmatprep.subr.bf16.mxu1 %v3827_v31 }
 0x302   : > { %vm4231_vm9 = vcmp.ne.s32.totalorder %v1498_v4, 0 }
 0x307   : > { %3389 = vmatmul.mubr.msk.bf16.vlgmr.msra.gmra.mxu1 %vm1226_vm7, %v1223_v9 }
 0x308   : > { %3405 = vmatpush3.bf16.xpose.msra.mxu0 %v1368_v12  ;;  %3413 = vmatpush3.bf16.xpose.msra.mxu1 %v1453_v11 }
 0x309   : > { %3406 = vmatprep.subr.bf16.mxu0 %v3827_v31  ;;  %3414 = vmatprep.subr.bf16.mxu1 %v3827_v31 }
 0x30a   : > { %3428 = vmatprep.mubr.msk.bf16.mxu1 %vm3828_vm6, %v3827_v31 }
 0x310   : > { %3407 = vmatpush3.bf16.xpose.msra.mxu0 %v1365_v20  ;;  %3415 = vmatpush3.bf16.xpose.msra.mxu1 %v1450_v19  ;;  %v1506_v20 = vld [vmem:[#allocation3] sm:$0xff] }
 0x311   : > { %3416 = vmatprep.subr.bf16.mxu1 %v3827_v31  ;;  %3432 = vmatprep.subr.bf16.mxu0 %v3827_v31 }
 0x317   : > { %3409 = vmatmul.mubr.msk.bf16.vlgmr.msra.gmra.mxu0 %vm1226_vm7, %v1224_v25 }
 0x318   : > { %3417 = vmatpush3.bf16.xpose.msra.mxu1 %v1447_v29  ;;  %3433 = vmatpush3.bf16.msra.mxu0 %v4171_v27 }
 0x319   : > { %3418 = vmatprep.subr.bf16.mxu1 %v3827_v31  ;;  %3434 = vmatprep.subr.bf16.mxu0 %v3827_v31 }
 0x31a   : > { %3448 = vmatprep.mubr.msk.bf16.mxu0 %vm3828_vm6, %v3827_v31 }
 0x31c   : > { %3435 = vmatpush3.bf16.msra.mxu0 %v4175_v35 }
 0x31d   : > { %3436 = vmatprep.subr.bf16.mxu0 %v3827_v31 }
 0x320   : > { %3419 = vmatpush3.bf16.xpose.msra.mxu1 %v1444_v43  ;;  %3437 = vmatpush3.bf16.msra.mxu0 %v4182_v39 }
 0x321   : > { %3420 = vmatprep.subr.bf16.mxu1 %v3827_v31  ;;  %3438 = vmatprep.subr.bf16.mxu0 %v3827_v31 }
 0x324   : > { %3439 = vmatpush3.bf16.msra.mxu0 %v4189_v49 }
 0x325   : > { %3440 = vmatprep.subr.bf16.mxu0 %v3827_v31 }
 0x328   : > { %3421 = vmatpush3.bf16.xpose.msra.mxu1 %v1441_v48  ;;  %3441 = vmatpush3.bf16.msra.mxu0 %v4195_v53 }
 0x329   : > { %3422 = vmatprep.subr.bf16.mxu1 %v3827_v31  ;;  %3442 = vmatprep.subr.bf16.mxu0 %v3827_v31 }
 0x32c   : > { %3443 = vmatpush3.bf16.msra.mxu0 %v4203_v58 }
 0x32d   : > { %3444 = vmatprep.subr.bf16.mxu0 %v3827_v31 }
 0x330   : > { %3423 = vmatpush3.bf16.xpose.msra.mxu1 %v1438_v34  ;;  %3445 = vmatpush3.bf16.msra.mxu0 %v4209_v59 }
 0x331   : > { %3424 = vmatprep.subr.bf16.mxu1 %v3827_v31  ;;  %3446 = vmatprep.subr.bf16.mxu0 %v3827_v31 }
 0x334   : > { %3447 = vmatpush3.bf16.msra.mxu0 %v4215_v42 }
 0x335   : > { %3472 = vmatprep.subr.bf16.mxu0 %v3827_v31 }
 0x338   : > { %3425 = vmatpush3.bf16.xpose.msra.mxu1 %v1435_v46 }
 0x339   : > { %3426 = vmatprep.subr.bf16.mxu1 %v3827_v31 }
 0x340   : > { %3427 = vmatpush3.bf16.xpose.msra.mxu1 %v1432_v62 }
 0x341   : > { %3452 = vmatprep.subr.bf16.mxu1 %v3827_v31 }
 0x347   : > { %3429 = vmatmul.mubr.msk.bf16.vlgmr.msra.gmra.mxu1 %vm1226_vm7, %v1225_v63 }
 0x348   : > { %3468 = vmatprep.mubr.msk.bf16.mxu1 %vm3828_vm6, %v3827_v31 }
 0x354   : > { %v1288_v6 = vpop.f32.mrf.mxu0 }
 0x355   : > { %v1502_v7 = vsel %vm4231_vm9, -1e+30, %v1288_v6 }
 0x356   : > { %1510 = vmax.xlane.f32.xlu0 %v1502_v7  ;;  %v3370_v8 = vpop.f32.mrf.mxu0 }
 0x358   : > { %v1291_v9 = vpop.f32.mrf.mxu0 }
 0x35a   : > { %v3371_v10 = vpop.f32.mrf.mxu0 }
 0x3c7   : > { %v1355_v11 = vpop.f32.mrf.mxu1 }
 0x3c8   : > { %v4239_v12 = vsel %vm4231_vm9, -1e+30, %v1355_v11 }
 0x3c9   : > { %1512 = vmax.xlane.f32.xlu1 %v4239_v12  ;;  %v3390_v30 = vpop.f32.mrf.mxu1 }
 0x3cb   : > { %v1358_v14 = vpop.f32.mrf.mxu1 }
 0x3cd   : > { %v3391_v15 = vpop.f32.mrf.mxu1 }
 0x3d7   : > { %v1422_v16 = vpop.f32.mrf.mxu0 }
 0x3d8   : > { %v4244_v17 = vsel %vm4231_vm9, -1e+30, %v1422_v16 }
 0x3d9   : > { %1514 = vmax.xlane.f32.xlu0 %v4244_v17  ;;  %v3410_v18 = vpop.f32.mrf.mxu0 }
 0x3da   : > { %1164 = vrot.lane.b32.xlu1 %v4171_v27, %s3829_s22 }
 0x3db   : > { %v1425_v19 = vpop.f32.mrf.mxu0 }
 0x3dd   : > { %v3411_v21 = vpop.f32.mrf.mxu0 }
 0x3df   : > { %v1511_v22 = vpop.xlane.xlu0 %1510 }
 0x3e0   : > { %v1518_v23 = vmax.f32 %v1506_v20, %v1511_v22 }
 0x3e2   : > { %v1522_v24 = vsub.f32 %v1506_v20, %v1518_v23  ;;  %1791 = vst.msk [vmem:[#allocation3] sm:$0xff] %vm1586_vm10, %v1518_v23  ;;  %1536 = vperm.xlu1 %3699, %v1518_v23  }
 0x3e4   : > { %v1526_v51 = vmul.f32 1.442695, %v1522_v24 }
 0x407   : > { %v1489_v25 = vpop.f32.mrf.mxu1 }
 0x408   : > { %v4252_v26 = vsel %vm4231_vm9, -1e+30, %v1489_v25 }
 0x409   : > { %v3430_v28 = vpop.f32.mrf.mxu1  ;;  %1516 = vmax.xlane.f32.xlu0 %v4252_v26 }
 0x40b   : > { %v1492_v29 = vpop.f32.mrf.mxu1 }
 0x40d   : > { %v3431_v32 = vpop.f32.mrf.mxu1 }
 0x41f   : > { %1162 = vrot.lane.b32.xlu0 %v4175_v35, %s3829_s22 }
 0x423   : > { %1160 = vrot.lane.b32.xlu0 %v4182_v39, %s3829_s22 }
 0x427   : > { %1156 = vrot.lane.b32.xlu0 %v4195_v53, %s3829_s22 }
 0x42b   : > { %1152 = vrot.lane.b32.xlu0 %v4209_v59, %s3829_s22 }
 0x42f   : > { %1188 = vrot.lane.b32.xlu0 %v4171_v27, %s3831_s23 }
 0x433   : > { %1186 = vrot.lane.b32.xlu0 %v4175_v35, %s3831_s23 }
 0x452   : > { %v1513_v36 = vpop.xlane.xlu1 %1512 }
 0x453   : > { %v1519_v37 = vmax.f32 %v4267_v33, %v1513_v36 }
 0x455   : > { %v1523_v40 = vsub.f32 %v4267_v33, %v1519_v37  ;;  %1792 = vst.msk [vmem:[#allocation3 + $0x8] sm:$0xff] %vm1586_vm10, %v1519_v37  ;;  %1541 = vperm.xlu1 %3699, %v1519_v37  }
 0x456   : > { %v1165_v43 = vpop.permute.xlu1 %1164 }
 0x457   : > { %3453 = vmatpush3.bf16.msra.mxu1 %v1165_v43 }
 0x458   : > { %3454 = vmatprep.subr.bf16.mxu1 %v3827_v31 }
 0x459   : > { %1158 = vrot.lane.b32.xlu1 %v4189_v49, %s3829_s22 }
 0x45d   : > { %1154 = vrot.lane.b32.xlu1 %v4203_v58, %s3829_s22  ;;  %v1537_v45 = vpop.permute.xlu1 %1536 }
 0x45e   : > { %v1554_v47 = vsub.f32 %v1502_v7, %v1537_v45  ;;  %v1591_v45 = vld [vmem:[#allocation5] sm:$0xff] }
 0x460   : > { %v1558_v50 = vmul.f32 1.442695, %v1554_v47 }
 0x461   : > { %1150 = vrot.lane.b32.xlu1 %v4215_v42, %s3829_s22 }
 0x462   : > { %3713 = vpow2.f32 %v1558_v50  ;;  %v1515_v55 = vpop.xlane.xlu0 %1514 }
 0x463   : > { %v4282_v48 = vmax.f32 %v4277_v52, %v1515_v55  ;;  %3715 = vpow2.f32 %v1526_v51 }
 0x465   : > { %v1524_v54 = vsub.f32 %v4277_v52, %v4282_v48  ;;  %1793 = vst.msk [vmem:[#allocation3 + $0x10] sm:$0xff] %vm1586_vm10, %v4282_v48  ;;  %1212 = vrot.lane.b32.xlu1 %v4171_v27, %s3830_s2  ;;  %1546 = vperm.xlu0 %3700, %v4282_v48  }
 0x469   : > { %1210 = vrot.lane.b32.xlu1 %v4175_v35, %s3830_s2  ;;  %1208 = vrot.lane.b32.xlu0 %v4182_v39, %s3830_s2  ;;  %v4310_v35 = vld [vmem:[#allocation3 + $0x18] sm:$0xff] }
 0x46d   : > { %1206 = vrot.lane.b32.xlu0 %v4189_v49, %s3830_s2 }
 0x46f   : > { %v3714_v56 = vpop.eup %3713 }
 0x470   : > { %v1619_v57 = vpack.c.bf16 %v3714_v56, %v3714_v56  ;;  %v4307_v27 = vpop.eup %3715 }
 0x471   : > { %1204 = vrot.lane.b32.xlu0 %v4195_v53, %s3830_s2 }
 0x472   : > { %3449 = vmatmul.mubr.bf16.vlgmr.msra.gmra.mxu0 %v1619_v57  ;;  %v1566_v57 = vld [vmem:[#allocation4] sm:$0xff] }
 0x473   : > { %3488 = vmatprep.mubr.msk.bf16.mxu0 %vm3828_vm6, %v3827_v31 }
 0x475   : > { %1202 = vrot.lane.b32.xlu0 %v4203_v58, %s3830_s2 }
 0x479   : > { %1200 = vrot.lane.b32.xlu0 %v4209_v59, %s3830_s2 }
 0x47d   : > { %1198 = vrot.lane.b32.xlu0 %v4215_v42, %s3830_s2  ;;  %s4692_s2 = sld [smem:[#allocation15_spill]] (!%p3123_p9) }
 0x481   : > { %1597 = vperm.xlu0 %3700, %v4307_v27  }
 0x492   : > { %v1517_v60 = vpop.xlane.xlu0 %1516 }
 0x493   : > { %v4313_v34 = vmax.f32 %v4310_v35, %v1517_v60 }
 0x495   : > { %v1525_v38 = vsub.f32 %v4310_v35, %v4313_v34  ;;  %1794 = vst.msk [vmem:[#allocation3 + $0x18] sm:$0xff] %vm1586_vm10, %v4313_v34  ;;  %1551 = vperm.xlu1 %3699, %v4313_v34   ;;  %v1570_v35 = vmul.f32 %v4307_v27, %v1566_v57  ;;  %v1567_v34 = vld [vmem:[#allocation4 + $0x8] sm:$0xff] }
 0x496   : > { %v1163_v46 = vpop.permute.xlu0 %1162 }
 0x497   : > { %3455 = vmatpush3.bf16.msra.mxu1 %v1163_v46 }
 0x498   : > { %3456 = vmatprep.subr.bf16.mxu1 %v3827_v31 }
 0x499   : > { %1184 = vrot.lane.b32.xlu1 %v4182_v39, %s3831_s23 }
 0x49a   : > { %v1161_v61 = vpop.permute.xlu0 %1160 }
 0x49b   : > { %3457 = vmatpush3.bf16.msra.mxu1 %v1161_v61 }
 0x49c   : > { %3458 = vmatprep.subr.bf16.mxu1 %v3827_v31 }
 0x49d   : > { %1182 = vrot.lane.b32.xlu1 %v4189_v49, %s3831_s23  ;;  %v1528_v49 = vmul.f32 1.442695, %v1523_v40 }
 0x49e   : > { %v1157_v62 = vpop.permute.xlu0 %1156 }
 0x49f   : > { %3717 = vpow2.f32 %v1528_v49  ;;  %v1592_v49 = vld [vmem:[#allocation5 + $0x8] sm:$0xff] }
 0x4a1   : > { %1180 = vrot.lane.b32.xlu1 %v4195_v53, %s3831_s23 }
 0x4a2   : > { %v1153_v63 = vpop.permute.xlu0 %1152 }
 0x4a5   : > { %1178 = vrot.lane.b32.xlu1 %v4203_v58, %s3831_s23 }
 0x4a6   : > { %v1189_v2 = vpop.permute.xlu0 %1188 }
 0x4a7   : > { %3473 = vmatpush3.bf16.msra.mxu0 %v1189_v2 }
 0x4a8   : > { %3474 = vmatprep.subr.bf16.mxu0 %v3827_v31 }
 0x4a9   : > { %1176 = vrot.lane.b32.xlu1 %v4209_v59, %s3831_s23 }
 0x4aa   : > { %v1187_v39 = vpop.permute.xlu0 %1186 }
 0x4ab   : > { %3475 = vmatpush3.bf16.msra.mxu0 %v1187_v39 }
 0x4ac   : > { %3476 = vmatprep.subr.bf16.mxu0 %v3827_v31  ;;  %v4340_v6 = vpop.eup %3717 }
 0x4ad   : > { %1174 = vrot.lane.b32.xlu1 %v4215_v42, %s3831_s23 }
 0x4d0   : > { %v1542_v53 = vpop.permute.xlu1 %1541 }
 0x4d1   : > { %v1555_v3 = vsub.f32 %v4239_v12, %v1542_v53  ;;  %1574 = vadd.xlane.f32.xlu1 %v3714_v56 }
 0x4d3   : > { %v1560_v58 = vmul.f32 1.442695, %v1555_v3 }
 0x4d4   : > { %v1159_v4 = vpop.permute.xlu1 %1158 }
 0x4d5   : > { %3719 = vpow2.f32 %v1560_v58  ;;  %3459 = vmatpush3.bf16.msra.mxu1 %v1159_v4  ;;  %v1569_v58 = vld [vmem:[#allocation4 + $0x18] sm:$0xff] }
 0x4d6   : > { %3460 = vmatprep.subr.bf16.mxu1 %v3827_v31 }
 0x4d8   : > { %v1155_v59 = vpop.permute.xlu1 %1154 }
 0x4d9   : > { %3461 = vmatpush3.bf16.msra.mxu1 %v1157_v62  ;;  %v1568_v62 = vld [vmem:[#allocation4 + $0x10] sm:$0xff] }
 0x4da   : > { %3462 = vmatprep.subr.bf16.mxu1 %v3827_v31 }
 0x4dc   : > { %v1151_v42 = vpop.permute.xlu1 %1150 }
 0x4dd   : > { %3463 = vmatpush3.bf16.msra.mxu1 %v1155_v59 }
 0x4de   : > { %3464 = vmatprep.subr.bf16.mxu1 %v3827_v31 }
 0x4e0   : > { %v1547_v5 = vpop.permute.xlu0 %1546  ;;  %v1213_v10 = vpop.permute.xlu1 %1212 }
 0x4e1   : > { %v1556_v7 = vsub.f32 %v4244_v17, %v1547_v5  ;;  %3465 = vmatpush3.bf16.msra.mxu1 %v1153_v63  ;;  %v1532_v17 = vmul.f32 1.442695, %v1525_v38  ;;  %v1571_v38 = vmul.f32 %v4340_v6, %v1567_v34 }
 0x4e2   : > { %v3720_v8 = vpop.eup %3719  ;;  %1602 = vperm.xlu1 %3699, %v4340_v6   ;;  %3466 = vmatprep.subr.bf16.mxu1 %v3827_v31 }
 0x4e3   : > { %v1562_v9 = vmul.f32 1.442695, %v1556_v7  ;;  %1576 = vadd.xlane.f32.xlu0 %v3720_v8  ;;  %v1620_v12 = vpack.c.bf16 %v3720_v8, %v3720_v8 }
 0x4e4   : > { %v1209_v11 = vpop.permute.xlu0 %1208  ;;  %v1211_v30 = vpop.permute.xlu1 %1210 }
 0x4e5   : > { %3721 = vpow2.f32 %v1562_v9  ;;  %3467 = vmatpush3.bf16.msra.mxu1 %v1151_v42  ;;  %v1594_v9 = vld [vmem:[#allocation5 + $0x18] sm:$0xff] }
 0x4e6   : > { %3492 = vmatprep.subr.bf16.mxu1 %v3827_v31  ;;  %3723 = vpow2.f32 %v1532_v17 }
 0x4e8   : > { %3469 = vmatmul.mubr.bf16.vlgmr.msra.gmra.mxu1 %v1620_v12  ;;  %v1207_v14 = vpop.permute.xlu0 %1206 }
 0x4e9   : > { %3493 = vmatpush3.bf16.msra.mxu1 %v1213_v10  ;;  %3508 = vmatprep.mubr.msk.bf16.mxu1 %vm3828_vm6, %v3827_v31 }
 0x4ea   : > { %3494 = vmatprep.subr.bf16.mxu1 %v3827_v31 }
 0x4ec   : > { %v1205_v16 = vpop.permute.xlu0 %1204 }
 0x4ed   : > { %3495 = vmatpush3.bf16.msra.mxu1 %v1211_v30 }
 0x4ee   : > { %3496 = vmatprep.subr.bf16.mxu1 %v3827_v31 }
 0x4f0   : > { %v1203_v18 = vpop.permute.xlu0 %1202 }
 0x4f1   : > { %3497 = vmatpush3.bf16.msra.mxu1 %v1209_v11 }
 0x4f2   : > { %v3722_v15 = vpop.eup %3721  ;;  %3498 = vmatprep.subr.bf16.mxu1 %v3827_v31 }
 0x4f3   : > { %1578 = vadd.xlane.f32.xlu0 %v3722_v15  ;;  %v4358_v21 = vpop.eup %3723  ;;  %v1621_v43 = vpack.c.bf16 %v3722_v15, %v3722_v15  ;;  %v1593_v15 = vld [vmem:[#allocation5 + $0x10] sm:$0xff] }
 0x4f4   : > { %v1201_v19 = vpop.permute.xlu0 %1200  ;;  %v1573_v42 = vmul.f32 %v4358_v21, %v1569_v58 }
 0x4f5   : > { %3499 = vmatpush3.bf16.msra.mxu1 %v1207_v14 }
 0x4f6   : > { %3500 = vmatprep.subr.bf16.mxu1 %v3827_v31 }
 0x4f8   : > { %v1199_v20 = vpop.permute.xlu0 %1198 }
 0x4f9   : > { %3501 = vmatpush3.bf16.msra.mxu1 %v1205_v16 }
 0x4fa   : > { %3502 = vmatprep.subr.bf16.mxu1 %v3827_v31 }
 0x4fc   : > { %v1598_v47 = vpop.permute.xlu0 %1597 }
 0x4fd   : > { %3503 = vmatpush3.bf16.msra.mxu1 %v1203_v18  ;;  %v1615_v50 = vmul.f32 %v1598_v47, %v1591_v45 }
 0x4fe   : > { %3504 = vmatprep.subr.bf16.mxu1 %v3827_v31 }
 0x501   : > { %3505 = vmatpush3.bf16.msra.mxu1 %v1201_v19 }
 0x502   : > { %3506 = vmatprep.subr.bf16.mxu1 %v3827_v31 }
 0x505   : > { %3507 = vmatpush3.bf16.msra.mxu1 %v1199_v20 }
 0x509   : > { %1612 = vperm.xlu0 %3700, %v4358_v21  }
 0x510   : > { %v1552_v22 = vpop.permute.xlu1 %1551 }
 0x511   : > { %v1557_v23 = vsub.f32 %v4252_v26, %v1552_v22  ;;  %v1530_v26 = vmul.f32 1.442695, %v1524_v54 }
 0x513   : > { %v1564_v24 = vmul.f32 1.442695, %v1557_v23 }
 0x514   : > { %v1185_v25 = vpop.permute.xlu1 %1184 }
 0x515   : > { %3725 = vpow2.f32 %v1564_v24  ;;  %3477 = vmatpush3.bf16.msra.mxu0 %v1185_v25 }
 0x516   : > { %3478 = vmatprep.subr.bf16.mxu0 %v3827_v31  ;;  %3727 = vpow2.f32 %v1530_v26 }
 0x518   : > { %v1183_v28 = vpop.permute.xlu1 %1182 }
 0x519   : > { %3479 = vmatpush3.bf16.msra.mxu0 %v1183_v28 }
 0x51a   : > { %3480 = vmatprep.subr.bf16.mxu0 %v3827_v31 }
 0x51c   : > { %v1181_v29 = vpop.permute.xlu1 %1180 }
 0x51d   : > { %3481 = vmatpush3.bf16.msra.mxu0 %v1181_v29 }
 0x51e   : > { %3482 = vmatprep.subr.bf16.mxu0 %v3827_v31 }
 0x520   : > { %v1179_v32 = vpop.permute.xlu1 %1178 }
 0x521   : > { %3483 = vmatpush3.bf16.msra.mxu0 %v1179_v32 }
 0x522   : > { %v3726_v33 = vpop.eup %3725  ;;  %3484 = vmatprep.subr.bf16.mxu0 %v3827_v31 }
 0x523   : > { %1580 = vadd.xlane.f32.xlu1 %v3726_v33  ;;  %v1622_v36 = vpack.c.bf16 %v3726_v33, %v3726_v33  ;;  %v3728_v52 = vpop.eup %3727 }
 0x524   : > { %v1177_v37 = vpop.permute.xlu1 %1176  ;;  %v1572_v63 = vmul.f32 %v3728_v52, %v1568_v62 }
 0x525   : > { %3485 = vmatpush3.bf16.msra.mxu0 %v1177_v37  ;;  %3509 = vmatmul.mubr.bf16.vlgmr.msra.gmra.mxu1 %v1622_v36 }
 0x526   : > { %3486 = vmatprep.subr.bf16.mxu0 %v3827_v31 }
 0x528   : > { %v1175_v40 = vpop.permute.xlu1 %1174 }
 0x529   : > { %3487 = vmatpush3.bf16.msra.mxu0 %v1175_v40 }
 0x52c   : > { %3489 = vmatmul.mubr.bf16.vlgmr.msra.gmra.mxu0 %v1621_v43 }
 0x532   : > { %v1657_v55 = vpop.f32.mrf.mxu0 }
 0x533   : > { %v1783_v48 = vadd.f32 %v1657_v55, %v1615_v50 }
 0x534   : > { %1607 = vperm.xlu1 %3699, %v3728_v52   ;;  %v3450_v54 = vpop.f32.mrf.mxu0 }
 0x535   : > { %1787 = vst.msk [vmem:[#allocation5] sm:$0xff] %vm1226_vm7, %v1783_v48 }
 0x536   : > { %v1660_v56 = vpop.f32.mrf.mxu0 }
 0x538   : > { %v3451_v51 = vpop.f32.mrf.mxu0 }
 0x55a   : > { %v1575_v31 = vpop.xlane.xlu1 %1574 }
 0x55b   : > { %v1582_v60 = vadd.f32 %v1575_v31, %v1570_v35 }
 0x55d   : > { %1587 = vst.msk [vmem:[#allocation4] sm:$0xff] %vm1586_vm10, %v1582_v60 }
 0x55e   : > { %v1603_v53 = vpop.permute.xlu1 %1602 }
 0x55f   : > { %v1616_v27 = vmul.f32 %v1603_v53, %v1592_v49 }
 0x56c   : > { %v1577_v46 = vpop.xlane.xlu0 %1576 }
 0x56d   : > { %v1583_v61 = vadd.f32 %v1577_v46, %v1571_v38 }
 0x56f   : > { %1588 = vst.msk [vmem:[#allocation4 + $0x8] sm:$0xff] %vm1586_vm10, %v1583_v61 }
 0x57c   : > { %v1579_v2 = vpop.xlane.xlu0 %1578 }
 0x57d   : > { %v1584_v39 = vadd.f32 %v1579_v2, %v1572_v63 }
 0x57f   : > { %1589 = vst.msk [vmem:[#allocation4 + $0x10] sm:$0xff] %vm1586_vm10, %v1584_v39 }
 0x584   : > { %v1613_v10 = vpop.permute.xlu0 %1612 }
 0x585   : > { %v1618_v11 = vmul.f32 %v1613_v10, %v1594_v9 }
 0x5a8   : > { %v1697_v3 = vpop.f32.mrf.mxu1 }
 0x5a9   : > { %v1784_v4 = vadd.f32 %v1697_v3, %v1616_v27 }
 0x5aa   : > { %v3470_v59 = vpop.f32.mrf.mxu1 }
 0x5ab   : > { %1788 = vst.msk [vmem:[#allocation5 + $0x8] sm:$0xff] %vm1226_vm7, %v1784_v4 }
 0x5ac   : > { %v1581_v5 = vpop.xlane.xlu1 %1580  ;;  %v1700_v6 = vpop.f32.mrf.mxu1 }
 0x5ad   : > { %v1585_v7 = vadd.f32 %v1581_v5, %v1573_v42 }
 0x5ae   : > { %v3471_v8 = vpop.f32.mrf.mxu1 }
 0x5af   : > { %1590 = vst.msk [vmem:[#allocation4 + $0x18] sm:$0xff] %vm1586_vm10, %v1585_v7 }
 0x5b0   : > { %v1608_v16 = vpop.permute.xlu1 %1607 }
 0x5b1   : > { %v1617_v18 = vmul.f32 %v1608_v16, %v1593_v15 }
 0x5e5   : > { %v1777_v12 = vpop.f32.mrf.mxu1 }
 0x5e6   : > { %v1786_v30 = vadd.f32 %v1777_v12, %v1618_v11 }
 0x5e7   : > { %v3510_v14 = vpop.f32.mrf.mxu1 }
 0x5e8   : > { %1790 = vst.msk [vmem:[#allocation5 + $0x18] sm:$0xff] %vm1226_vm7, %v1786_v30 }
 0x5e9   : > { %v1780_v17 = vpop.f32.mrf.mxu1 }
 0x5eb   : > { %v3511_v19 = vpop.f32.mrf.mxu1 }
 0x5ec   : > { %v1737_v20 = vpop.f32.mrf.mxu0 }
 0x5ed   : > { %v1785_v21 = vadd.f32 %v1737_v20, %v1617_v18 }
 0x5ee   : > { %v3490_v22 = vpop.f32.mrf.mxu0  ;;  %1798 = sbr.rel (%p3123_p9) target bundleno = 4898 (0x1322), region = 100 }
 0x5ef   : > { %1789 = vst.msk [vmem:[#allocation5 + $0x10] sm:$0xff] %vm1226_vm7, %v1785_v21 }
 0x5f0   : > { %v1740_v23 = vpop.f32.mrf.mxu0 }
 0x5f2   : > { %v3491_v24 = vpop.f32.mrf.mxu0 }
 0x5f3   : > { %v1807_v25 = vld [vmem:[#allocation4 + $0x8] sm:$0xff]  ;;  %v1809_v28 = vld [vmem:[#allocation4 + $0x18] sm:$0xff]  ;;  %v1808_v29 = vld [vmem:[#allocation4 + $0x10] sm:$0xff]  ;;  %v3833_v32 = vmov 0   ;;  %v3834_v45 = vmov 0.0   ;;  %vm3835_vm11 = vmmov 0  }
 0x5f4   : > { %3729 = vset.pattern.permute.xlu0 %v3833_v32  ;;  %3730 = vset.pattern.permute.xlu1 %v3833_v32  ;;  %3751 = vrcp.f32 %v1807_v25  ;;  %v1806_v33 = vld [vmem:[#allocation4] sm:$0xff]  ;;  %v3731_v43 = vld [vmem:[%s4649_s7 + $0x8] sm:$0xff]   ;;  %v3732_v47 = vld [vmem:[%s4649_s7] sm:$0xff]   ;;  %vm1851_vm12 = vcmask 130048   ;;  %vm1853_vm13 = vcmask 195584   ;;  %v1862_v59 = vsub.s32 3, %v4061_v41 }
 0x5f5   : > { %3753 = vrcp.f32 %v1809_v28  ;;  %3512 = vmatprep.subr.bf16.mxu1 %v3834_v45  ;;  %3528 = vmatprep.subr.bf16.mxu0 %v3834_v45  ;;  %v1803_v50 = vld [vmem:[#allocation5 + $0x8] sm:$0xff]  ;;  %v1805_v52 = vld [vmem:[#allocation5 + $0x18] sm:$0xff]  ;;  %v1802_v34 = vld [vmem:[#allocation5] sm:$0xff]  ;;  %v2040_v15 = vsub.s32 4, %v4061_v41  ;;  %vm2516_vm14 = vcmask 1043456   ;;  %vm2906_vm15 = vcmask 523264  }
 0x5f6   : > { %3755 = vrcp.f32 %v1808_v29  ;;  %3513 = vmatpush3.bf16.msra.mxu1 %v3731_v43  ;;  %3516 = vmatprep.mubr.msk.bf16.mxu1 %vm3835_vm11, %v3834_v45  ;;  %v1804_v56 = vld [vmem:[#allocation5 + $0x10] sm:$0xff]  ;;  %v3735_v57 = vld [vmem:[%s4650_s8 + $0x8] sm:$0xff]   ;;  %v1863_v42 = vrot.slane %v3973_v0, %v1862_v59 }
 0x5f7   : > { %3757 = vrcp.f32 %v1806_v33  ;;  %3514 = vmatprep.subr.bf16.mxu1 %v3834_v45  ;;  %3532 = vmatprep.mubr.msk.bf16.mxu0 %vm3835_vm11, %v3834_v45  ;;  %v3733_v49 = vld [vmem:[%s4651_s9 + $0x8] sm:$0xff]   ;;  %v3734_v27 = vld [vmem:[%s4651_s9] sm:$0xff]   ;;  %v2041_v16 = vrot.slane %v3973_v0, %v2040_v15 }
 0x5f8   : > { %3529 = vmatpush3.bf16.msra.mxu0 %v3735_v57  ;;  %v1799_v3 = vld [vmem:[%s3984_s30] sm:$0xff]  ;;  %s3839_s30 = smov 112  }
 0x5f9   : > { %3530 = vmatprep.subr.bf16.mxu0 %v3834_v45  ;;  %v1800_v58 = vpack.c.bf16 %v1799_v3, %v1799_v3  ;;  %v3736_v4 = vld [vmem:[%s4650_s8] sm:$0xff]  }
 0x5fa   : > { %3515 = vmatpush3.bf16.msra.mxu1 %v3732_v47 }
 0x5fb   : > { %3520 = vmatprep.subr.bf16.mxu1 %v3834_v45 }
 0x5fc   : > { %3531 = vmatpush3.bf16.msra.mxu0 %v3736_v4 }
 0x5fd   : > { %3544 = vmatprep.subr.bf16.mxu0 %v3834_v45 }
 0x601   : > { %v3752_v26 = vpop.eup %3751 }
 0x602   : > { %v3754_v36 = vpop.eup %3753  ;;  %1821 = vperm.xlu0 %3729, %v3752_v26   ;;  %v3737_v26 = vld [vmem:[%s4691_s26 + $0x8] sm:$0xff]  }
 0x603   : > { %v3756_v37 = vpop.eup %3755  ;;  %1831 = vperm.xlu1 %3730, %v3754_v36   ;;  %v3738_v36 = vld [vmem:[%s4692_s2 + $0x8] sm:$0xff]  }
 0x604   : > { %v3758_v40 = vpop.eup %3757 }
 0x606   : > { %1826 = vperm.xlu0 %3729, %v3756_v37   ;;  %v3739_v37 = vld [vmem:[%s4691_s26] sm:$0xff]  }
 0x607   : > { %1816 = vperm.xlu1 %3730, %v3758_v40   ;;  %v3740_v40 = vld [vmem:[%s4692_s2] sm:$0xff]  }
 0x67d   : > { %v1822_v55 = vpop.permute.xlu0 %1821 }
 0x67e   : > { %v1835_v48 = vmul.f32 %v1822_v55, %v1803_v50  ;;  %v1832_v54 = vpop.permute.xlu1 %1831  ;;  %v2060_v55 = vsub.s32 5, %v4061_v41 }
 0x67f   : > { %v1837_v51 = vmul.f32 %v1832_v54, %v1805_v52  ;;  %v2065_v52 = vsub.s32 6, %v4061_v41 }
 0x680   : > { %1839 = vrot.lane.b32.xlu0 %v1835_v48, %s3836_s16  ;;  %v2061_v48 = vrot.slane %v3973_v0, %v2060_v55 }
 0x681   : > { %v1827_v35 = vpop.permute.xlu0 %1826 }
 0x682   : > { %v1836_v31 = vmul.f32 %v1827_v35, %v1804_v56  ;;  %v1817_v60 = vpop.permute.xlu1 %1816  ;;  %v1801_v35 = vld [vmem:[%s4693_s11] sm:$0xff] }
 0x683   : > { %v1834_v46 = vmul.f32 %v1817_v60, %v1802_v34  ;;  %v3741_v34 = vld [vmem:[%s4694_s29 + $0x8] sm:$0xff]   ;;  %s4699_s29 = sld [smem:[#allocation20_spill]] }
 0x684   : > { %1843 = vrot.lane.b32.xlu1 %v1836_v31, %s3837_s12  ;;  %1847 = vrot.lane.b32.xlu0 %v1837_v51, %s3838_s13  ;;  %v2066_v51 = vrot.slane %v3973_v0, %v2065_v52 }
 0x689   : > { %s4700_s24 = smov %s4699_s29 }
 0x6f2   : > { %v1840_v38 = vpop.permute.xlu0 %1839 }
 0x6f3   : > { %v1850_v61 = vsel %vm1226_vm7, %v1834_v46, %v1840_v38  ;;  %v3742_v46 = vld [vmem:[%s4695_s20] sm:$0xff]  }
 0x6f6   : > { %v1844_v62 = vpop.permute.xlu1 %1843  ;;  %v1848_v63 = vpop.permute.xlu0 %1847 }
 0x6f7   : > { %v1852_v2 = vsel %vm1851_vm12, %v1850_v61, %v1844_v62  ;;  %v2147_v62 = vsub.s32 0, %v4061_v41 }
 0x6f8   : > { %v1854_v39 = vsel %vm1853_vm13, %v1852_v2, %v1848_v63  ;;  %v2076_v63 = vsub.s32 7, %v4061_v41 }
 0x6f9   : > { %v1855_v53 = vpack.c.bf16 %v1854_v39, %v1854_v39  ;;  %v2148_v2 = vrot.slane %v3978_v1, %v2147_v62 }
 0x6fa   : > { %v2077_v39 = vrot.slane %v3973_v0, %v2076_v63 }
 0x6fb   : > { %3517 = vmatmul.mubr.msk.bf16.vlgmr.msra.gmra.mxu1 %vm831_vm5, %v1855_v53 }
 0x6fc   : > { %3521 = vmatpush3.bf16.msra.mxu1 %v3733_v49  ;;  %3524 = vmatprep.mubr.msk.bf16.mxu1 %vm3835_vm11, %v3834_v45 }
 0x6fd   : > { %3522 = vmatprep.subr.bf16.mxu1 %v3834_v45 }
 0x700   : > { %3523 = vmatpush3.bf16.msra.mxu1 %v3734_v27 }
 0x701   : > { %3536 = vmatprep.subr.bf16.mxu1 %v3834_v45 }
 0x703   : > { %3525 = vmatmul.mubr.msk.bf16.vlgmr.msra.gmra.mxu1 %vm831_vm5, %v1800_v58 }
 0x704   : > { %3540 = vmatprep.mubr.msk.bf16.mxu1 %vm3835_vm11, %v3834_v45  ;;  %3537 = vmatpush3.bf16.msra.mxu1 %v3737_v26 }
 0x705   : > { %3538 = vmatprep.subr.bf16.mxu1 %v3834_v45 }
 0x708   : > { %3539 = vmatpush3.bf16.msra.mxu1 %v3739_v37 }
 0x709   : > { %3552 = vmatprep.subr.bf16.mxu1 %v3834_v45 }
 0x7bb   : > { %v1913_v5 = vpop.f32.mrf.mxu1 }
 0x7bc   : > { %v1914_v6 = vadd.f32 %v1913_v5, %v1863_v42 }
 0x7bd   : > { %v3518_v7 = vpop.f32.mrf.mxu1 }
 0x7be   : > { %v1919_v8 = vpack.c.bf16 %v1914_v6, %v1914_v6 }
 0x7bf   : > { %v1916_v9 = vpop.f32.mrf.mxu1 }
 0x7c0   : > { %3533 = vmatmul.mubr.msk.bf16.vlgmr.msra.gmra.mxu0 %vm831_vm5, %v1919_v8 }
 0x7c1   : > { %v3519_v10 = vpop.f32.mrf.mxu1  ;;  %3548 = vmatprep.mubr.msk.bf16.mxu0 %vm3835_vm11, %v3834_v45  ;;  %3545 = vmatpush3.bf16.msra.mxu0 %v3738_v36 }
 0x7c2   : > { %3546 = vmatprep.subr.bf16.mxu0 %v3834_v45 }
 0x7c3   : > { %v1977_v11 = vpop.f32.mrf.mxu1 }
 0x7c5   : > { %v3526_v12 = vpop.f32.mrf.mxu1  ;;  %3547 = vmatpush3.bf16.msra.mxu0 %v3740_v40 }
 0x7c6   : > { %3560 = vmatprep.subr.bf16.mxu0 %v3834_v45 }
 0x7c7   : > { %v1980_v30 = vpop.f32.mrf.mxu1 }
 0x7c9   : > { %v3527_v14 = vpop.f32.mrf.mxu1 }
 0x7ca   : > { %v2217_v14 = vrot.slane %v3978_v1, %v777_v44 }
 0x880   : > { %v2032_v17 = vpop.f32.mrf.mxu0 }
 0x881   : > { %v2033_v18 = vadd.f32 %v2032_v17, %v1977_v11 }
 0x882   : > { %v3534_v19 = vpop.f32.mrf.mxu0 }
 0x883   : > { %v2042_v20 = vadd.f32 %v2041_v16, %v2033_v18 }
 0x884   : > { %v2035_v21 = vpop.f32.mrf.mxu0 }
 0x885   : > { %v2043_v22 = vadd.f32 %v2042_v20, %v1799_v3 }
 0x886   : > { %v3535_v23 = vpop.f32.mrf.mxu0 }
 0x887   : > { %v2044_v24 = vsel %vm831_vm5, %v2043_v22, 0.0 }
 0x888   : > { %2045 = vadd.xlane.f32.xlu1 %v2044_v24 }
 0x911   : > { %v2046_v25 = vpop.xlane.xlu1 %2045 }
 0x912   : > { %v2048_v28 = vmul.f32 0.03125, %v2046_v25 }
 0x914   : > { %v2049_v29 = vsub.f32 %v2043_v22, %v2048_v28 }
 0x916   : > { %v2050_v32 = vmul.f32 %v2049_v29, %v2049_v29 }
 0x918   : > { %v2051_v33 = vsel %vm831_vm5, %v2050_v32, 0.0 }
 0x919   : > { %2052 = vadd.xlane.f32.xlu0 %v2051_v33 }
 0x9a2   : > { %v2053_v43 = vpop.xlane.xlu0 %2052 }
 0x9a3   : > { %v2054_v47 = vmul.f32 0.03125, %v2053_v43 }
 0x9a5   : > { %v2055_v50 = vadd.f32 1e-05, %v2054_v47 }
 0x9a7   : > { %3759 = vrsqrt.f32 %v2055_v50 }
 0x9b4   : > { %v3760_v54 = vpop.eup %3759 }
 0x9b5   : > { %v2057_v56 = vmul.f32 %v3760_v54, %v2049_v29 }
 0x9b7   : > { %v2062_v57 = vmul.f32 %v2061_v48, %v2057_v56 }
 0x9b9   : > { %v4465_v31 = vadd.f32 %v2066_v51, %v2062_v57 }
 0x9bb   : > { %v2068_v60 = vadd.f32 %v4465_v31, %v1801_v35  ;;  %v2209_v61 = vpack.c.bf16 %v4465_v31, %v4465_v31 }
 0x9bd   : > { %v2069_v38 = vpack.c.bf16 %v2068_v60, %v2068_v60 }
 0x9bf   : > { %3541 = vmatmul.mubr.msk.bf16.vlgmr.msra.gmra.mxu1 %vm831_vm5, %v2069_v38  ;;  %3549 = vmatmul.mubr.msk.bf16.vlgmr.msra.gmra.mxu0 %vm831_vm5, %v2069_v38 }
 0x9c0   : > { %3553 = vmatpush3.bf16.msra.mxu1 %v3741_v34  ;;  %3556 = vmatprep.mubr.msk.bf16.mxu1 %vm3835_vm11, %v3834_v45 }
 0x9c1   : > { %3554 = vmatprep.subr.bf16.mxu1 %v3834_v45  ;;  %3562 = vmatprep.mubr.msk.bf16.mxu0 %vm3835_vm11, %v3834_v45 }
 0x9c4   : > { %3555 = vmatpush3.bf16.msra.mxu1 %v3742_v46 }
 0x9c5   : > { %3566 = vmatprep.subr.bf16.mxu1 %v3834_v45 }
 0x9c7   : > { %3557 = vmatmul.mubr.msk.bf16.vlgmr.msra.gmra.mxu1 %vm831_vm5, %v2209_v61 }
 0x9c8   : > { %3568 = vmatprep.mubr.msk.bf16.mxu1 %vm3835_vm11, %v3834_v45 }
 0xa7f   : > { %v2127_v49 = vpop.f32.mrf.mxu1  ;;  %v2195_v53 = vpop.f32.mrf.mxu0 }
 0xa80   : > { %v2196_v27 = vadd.f32 %v2195_v53, %v2148_v2  ;;  %v2128_v4 = vadd.f32 %v2127_v49, %v2077_v39 }
 0xa81   : > { %v3542_v3 = vpop.f32.mrf.mxu1  ;;  %v3550_v58 = vpop.f32.mrf.mxu0 }
 0xa82   : > { %v2201_v42 = vpack.c.bf16 %v2196_v27, %v2196_v27  ;;  %v2133_v0 = vpack.c.bf16 %v2128_v4, %v2128_v4 }
 0xa83   : > { %v2130_v5 = vpop.f32.mrf.mxu1  ;;  %v2198_v6 = vpop.f32.mrf.mxu0 }
 0xa84   : > { %2205 = vrot.lane.b32.xlu1 %v2201_v42, %s3839_s30  ;;  %2203 = vrot.lane.b32.xlu0 %v2201_v42, %s3840_s25  ;;  %v2285_v7 = vsel %vm1226_vm7, %v2201_v42, 0 }
 0xa85   : > { %v3543_v8 = vpop.f32.mrf.mxu1  ;;  %v3551_v9 = vpop.f32.mrf.mxu0  ;;  %3561 = vmatpush3.bf16.xpose.msra.mxu0 %v2285_v7 }
 0xa86   : > { %3572 = vmatprep.subr.bf16.mxu0 %v3834_v45 }
 0xa87   : > { %v2267_v10 = vpop.f32.mrf.mxu1 }
 0xa88   : > { %2207 = vrot.lane.b32.xlu0 %v2201_v42, %s3841_s21  ;;  %2135 = vrot.lane.b32.xlu1 %v2133_v0, %s3840_s25  ;;  %v2268_v18 = vadd.f32 %v2267_v10, %v2217_v14 }
 0xa89   : > { %v3558_v11 = vpop.f32.mrf.mxu1 }
 0xa8a   : > { %v4511_v22 = vpack.c.bf16 %v2268_v18, %v2268_v18 }
 0xa8b   : > { %v2270_v12 = vpop.f32.mrf.mxu1 }
 0xa8c   : > { %2139 = vrot.lane.b32.xlu0 %v2133_v0, %s3841_s21  ;;  %2137 = vrot.lane.b32.xlu1 %v2133_v0, %s3839_s30  ;;  %v2518_v25 = vsel %vm2516_vm14, %v4511_v22, 0 }
 0xa8d   : > { %3563 = vmatmul.mubr.msk.bf16.vlgmr.msra.gmra.mxu0 %vm1226_vm7, %v2133_v0  ;;  %v3559_v30 = vpop.f32.mrf.mxu1 }
 0xa8e   : > { %3574 = vmatprep.mubr.msk.bf16.mxu0 %vm3835_vm11, %v3834_v45 }
 0xaf6   : > { %v2206_v16 = vpop.permute.xlu1 %2205  ;;  %v2204_v17 = vpop.permute.xlu0 %2203 }
 0xaf7   : > { %v2377_v19 = vsel %vm1226_vm7, %v2206_v16, 0  ;;  %v2331_v20 = vsel %vm1226_vm7, %v2204_v17, 0 }
 0xaf8   : > { %3567 = vmatpush3.bf16.xpose.msra.mxu1 %v2331_v20  ;;  %3573 = vmatpush3.bf16.xpose.msra.mxu0 %v2377_v19 }
 0xaf9   : > { %3578 = vmatprep.subr.bf16.mxu1 %v3834_v45  ;;  %3584 = vmatprep.subr.bf16.mxu0 %v3834_v45 }
 0xafa   : > { %v2136_v21 = vpop.permute.xlu1 %2135  ;;  %v2208_v23 = vpop.permute.xlu0 %2207 }
 0xafb   : > { %v2423_v44 = vsel %vm1226_vm7, %v2208_v23, 0 }
 0xafe   : > { %v2138_v24 = vpop.permute.xlu1 %2137  ;;  %v2140_v28 = vpop.permute.xlu0 %2139 }
 0xaff   : > { %3569 = vmatmul.mubr.msk.bf16.vlgmr.msra.gmra.mxu1 %vm1226_vm7, %v2136_v21  ;;  %3575 = vmatmul.mubr.msk.bf16.vlgmr.msra.gmra.mxu0 %vm1226_vm7, %v2138_v24 }
 0xb00   : > { %3579 = vmatpush3.bf16.xpose.msra.mxu1 %v2423_v44  ;;  %3585 = vmatpush3.bf16.msra.mxu0 %v2518_v25 }
 0xb01   : > { %3580 = vmatprep.mubr.msk.bf16.mxu1 %vm3835_vm11, %v3834_v45  ;;  %3586 = vmatprep.mubr.msk.bf16.mxu0 %vm3835_vm11, %v3834_v45 }
 0xb02   : > { %3596 = vmatprep.subr.bf16.mxu0 %v3834_v45  ;;  %3590 = vmatprep.subr.bf16.mxu1 %v3834_v45 }
 0xb07   : > { %3581 = vmatmul.mubr.msk.bf16.vlgmr.msra.gmra.mxu1 %vm1226_vm7, %v2140_v28 }
 0xb08   : > { %3592 = vmatprep.mubr.msk.bf16.mxu1 %vm3835_vm11, %v3834_v45 }
 0xb4d   : > { %v2321_v29 = vpop.f32.mrf.mxu0 }
 0xb4e   : > { %v2465_v32 = vsel %vm1226_vm7, %v2321_v29, -inf }
 0xb4f   : > { %2466 = vmax.xlane.f32.xlu1 %v2465_v32  ;;  %v3564_v33 = vpop.f32.mrf.mxu0 }
 0xb51   : > { %v2324_v26 = vpop.f32.mrf.mxu0 }
 0xb53   : > { %v3565_v36 = vpop.f32.mrf.mxu0 }
 0xbbf   : > { %v2367_v37 = vpop.f32.mrf.mxu1  ;;  %v2413_v40 = vpop.f32.mrf.mxu0 }
 0xbc0   : > { %v2468_v43 = vsel %vm1226_vm7, %v2367_v37, -inf  ;;  %v2471_v56 = vsel %vm1226_vm7, %v2413_v40, -inf }
 0xbc1   : > { %v3576_v47 = vpop.f32.mrf.mxu0  ;;  %2469 = vmax.xlane.f32.xlu0 %v2468_v43  ;;  %v3570_v50 = vpop.f32.mrf.mxu1 }
 0xbc3   : > { %v2370_v48 = vpop.f32.mrf.mxu1  ;;  %v2416_v54 = vpop.f32.mrf.mxu0 }
 0xbc5   : > { %v3577_v51 = vpop.f32.mrf.mxu0  ;;  %2472 = vmax.xlane.f32.xlu0 %v2471_v56  ;;  %v3571_v57 = vpop.f32.mrf.mxu1  ;;  %v3743_v56 = vld [vmem:[%s4696_s27 + $0x8] sm:$0xff]  }
 0xbc7   : > { %v2459_v35 = vpop.f32.mrf.mxu1 }
 0xbc8   : > { %v2474_v60 = vsel %vm1226_vm7, %v2459_v35, -inf }
 0xbc9   : > { %2475 = vmax.xlane.f32.xlu1 %v2474_v60  ;;  %v3582_v34 = vpop.f32.mrf.mxu1 }
 0xbcb   : > { %v2462_v38 = vpop.f32.mrf.mxu1 }
 0xbcd   : > { %v3583_v46 = vpop.f32.mrf.mxu1 }
 0xbd8   : > { %v2467_v61 = vpop.xlane.xlu1 %2466 }
 0xbd9   : > { %v2477_v62 = vsub.f32 %v2321_v29, %v2467_v61 }
 0xbdb   : > { %v2481_v2 = vmul.f32 1.442695, %v2477_v62  ;;  %v3744_v62 = vld [vmem:[%s4697_s1] sm:$0xff]  }
 0xbdd   : > { %3761 = vpow2.f32 %v2481_v2 }
 0xbea   : > { %v3762_v39 = vpop.eup %3761 }
 0xbeb   : > { %v2489_v49 = vsel %vm1226_vm7, %v3762_v39, 0.0 }
 0xbec   : > { %2490 = vadd.xlane.f32.xlu0 %v2489_v49 }
 0xc4a   : > { %v2470_v53 = vpop.xlane.xlu0 %2469 }
 0xc4b   : > { %v2478_v27 = vsub.f32 %v2367_v37, %v2470_v53 }
 0xc4d   : > { %v2483_v3 = vmul.f32 1.442695, %v2478_v27 }
 0xc4e   : > { %v2473_v58 = vpop.xlane.xlu0 %2472 }
 0xc4f   : > { %3763 = vpow2.f32 %v2483_v3  ;;  %v2479_v4 = vsub.f32 %v2413_v40, %v2473_v58 }
 0xc51   : > { %v2485_v42 = vmul.f32 1.442695, %v2479_v4 }
 0xc52   : > { %v2476_v0 = vpop.xlane.xlu1 %2475 }
 0xc53   : > { %3765 = vpow2.f32 %v2485_v42  ;;  %v2480_v10 = vsub.f32 %v2459_v35, %v2476_v0 }
 0xc55   : > { %v2487_v11 = vmul.f32 1.442695, %v2480_v10 }
 0xc5c   : > { %v3764_v5 = vpop.eup %3763 }
 0xc5d   : > { %v2492_v6 = vsel %vm1226_vm7, %v3764_v5, 0.0 }
 0xc5e   : > { %2493 = vadd.xlane.f32.xlu1 %v2492_v6 }
 0xc60   : > { %v3766_v7 = vpop.eup %3765 }
 0xc61   : > { %v2495_v8 = vsel %vm1226_vm7, %v3766_v7, 0.0 }
 0xc62   : > { %2496 = vadd.xlane.f32.xlu0 %v2495_v8 }
 0xc6f   : > { %2277 = vrot.lane.b32.xlu1 %v4511_v22, %s3839_s30 }
 0xc75   : > { %v2491_v9 = vpop.xlane.xlu0 %2490 }
 0xc76   : > { %3767 = vrcp.f32 %v2491_v9 }
 0xc77   : > { %3769 = vpow2.f32 %v2487_v11 }
 0xc78   : > { %2275 = vrot.lane.b32.xlu0 %v4511_v22, %s3840_s25 }
 0xc83   : > { %v3768_v12 = vpop.eup %3767 }
 0xc84   : > { %v2505_v30 = vmul.f32 %v3768_v12, %v3762_v39  ;;  %v3770_v16 = vpop.eup %3769 }
 0xc85   : > { %v2498_v17 = vsel %vm1226_vm7, %v3770_v16, 0.0 }
 0xc86   : > { %v2509_v14 = vpack.c.bf16 %v2505_v30, %v2505_v30 }
 0xc88   : > { %3587 = vmatmul.mubr.msk.bf16.vlgmr.msra.gmra.mxu0 %vm1226_vm7, %v2509_v14 }
 0xc89   : > { %3598 = vmatprep.mubr.msk.bf16.mxu0 %vm3835_vm11, %v3834_v45 }
 0xc93   : > { %2499 = vadd.xlane.f32.xlu1 %v2498_v17 }
 0xca4   : > { %2279 = vrot.lane.b32.xlu1 %v4511_v22, %s3841_s21 }
 0xce7   : > { %v2494_v18 = vpop.xlane.xlu1 %2493 }
 0xce8   : > { %3771 = vrcp.f32 %v2494_v18 }
 0xceb   : > { %v2497_v19 = vpop.xlane.xlu0 %2496  ;;  %v2278_v20 = vpop.permute.xlu1 %2277 }
 0xcec   : > { %3773 = vrcp.f32 %v2497_v19  ;;  %v2610_v21 = vsel %vm2516_vm14, %v2278_v20, 0  ;;  %v3747_v20 = vld [vmem:[%s4699_s29 + $0x18] sm:$0xff]  }
 0xced   : > { %3597 = vmatpush3.bf16.msra.mxu0 %v2610_v21  ;;  %v3748_v21 = vld [vmem:[%s4700_s24 + $0x10] sm:$0xff]  }
 0xcee   : > { %3608 = vmatprep.subr.bf16.mxu0 %v3834_v45 }
 0xcef   : > { %v2276_v23 = vpop.permute.xlu0 %2275 }
 0xcf0   : > { %v2564_v24 = vsel %vm2516_vm14, %v2276_v23, 0 }
 0xcf1   : > { %3591 = vmatpush3.bf16.msra.mxu1 %v2564_v24 }
 0xcf2   : > { %3602 = vmatprep.subr.bf16.mxu1 %v3834_v45 }
 0xcf5   : > { %v3772_v44 = vpop.eup %3771 }
 0xcf6   : > { %v2506_v25 = vmul.f32 %v3772_v44, %v3764_v5 }
 0xcf8   : > { %v2510_v28 = vpack.c.bf16 %v2506_v25, %v2506_v25  ;;  %v2794_v25 = vrot.slane %v3978_v1, %v1862_v59  ;;  %v3750_v59 = vld [vmem:[%s4700_s24] sm:$0xff]  }
 0xcf9   : > { %v3774_v22 = vpop.eup %3773 }
 0xcfa   : > { %3593 = vmatmul.mubr.msk.bf16.vlgmr.msra.gmra.mxu1 %vm1226_vm7, %v2510_v28  ;;  %v2507_v29 = vmul.f32 %v3774_v22, %v3766_v7  ;;  %v2721_v7 = vrot.slane %v3978_v1, %v1023_v13  ;;  %v2799_v22 = vrot.slane %v3978_v1, %v2040_v15  ;;  %v3153_v15 = vld [vmem:[%s4701_s15] ss:$0 sm:$0xff] }
 0xcfb   : > { %3604 = vmatprep.mubr.msk.bf16.mxu1 %vm3835_vm11, %v3834_v45 }
 0xcfc   : > { %v2511_v32 = vpack.c.bf16 %v2507_v29, %v2507_v29 }
 0xcfe   : > { %3599 = vmatmul.mubr.msk.bf16.vlgmr.msra.gmra.mxu0 %vm1226_vm7, %v2511_v32 }
 0xcff   : > { %3612 = vmatprep.mubr.msk.bf16.mxu0 %vm3835_vm11, %v3834_v45  ;;  %3609 = vmatpush3.bf16.msra.mxu0 %v3743_v56 }
 0xd00   : > { %3610 = vmatprep.subr.bf16.mxu0 %v3834_v45 }
 0xd03   : > { %3611 = vmatpush3.bf16.msra.mxu0 %v3744_v62 }
 0xd04   : > { %3624 = vmatprep.subr.bf16.mxu0 %v3834_v45 }
 0xd1c   : > { %v2500_v33 = vpop.xlane.xlu1 %2499 }
 0xd1d   : > { %3775 = vrcp.f32 %v2500_v33 }
 0xd20   : > { %v2280_v26 = vpop.permute.xlu1 %2279 }
 0xd21   : > { %v2656_v36 = vsel %vm2516_vm14, %v2280_v26, 0 }
 0xd22   : > { %3603 = vmatpush3.bf16.msra.mxu1 %v2656_v36  ;;  %v3749_v36 = vld [vmem:[%s4700_s24 + $0x8] sm:$0xff]  }
 0xd23   : > { %3616 = vmatprep.subr.bf16.mxu1 %v3834_v45 }
 0xd2a   : > { %v3776_v37 = vpop.eup %3775 }
 0xd2b   : > { %v2508_v40 = vmul.f32 %v3776_v37, %v3770_v16 }
 0xd2d   : > { %v2512_v43 = vpack.c.bf16 %v2508_v40, %v2508_v40 }
 0xd2f   : > { %3605 = vmatmul.mubr.msk.bf16.vlgmr.msra.gmra.mxu1 %vm1226_vm7, %v2512_v43 }
 0xd30   : > { %3620 = vmatprep.mubr.msk.bf16.mxu1 %vm3835_vm11, %v3834_v45 }
 0xd48   : > { %v2554_v47 = vpop.f32.mrf.mxu0 }
 0xd4a   : > { %v3588_v50 = vpop.f32.mrf.mxu0 }
 0xd4c   : > { %v2557_v48 = vpop.f32.mrf.mxu0 }
 0xd4e   : > { %v3589_v54 = vpop.f32.mrf.mxu0 }
 0xdba   : > { %v2600_v51 = vpop.f32.mrf.mxu1 }
 0xdbb   : > { %2699 = vrot.lane.b32.xlu0 %v2600_v51, %s3836_s16 }
 0xdbc   : > { %v3594_v57 = vpop.f32.mrf.mxu1 }
 0xdbe   : > { %v2603_v35 = vpop.f32.mrf.mxu1  ;;  %v2646_v60 = vpop.f32.mrf.mxu0 }
 0xdbf   : > { %2703 = vrot.lane.b32.xlu1 %v2646_v60, %s3837_s12 }
 0xdc0   : > { %v3595_v34 = vpop.f32.mrf.mxu1  ;;  %v3600_v38 = vpop.f32.mrf.mxu0 }
 0xdc2   : > { %v2649_v46 = vpop.f32.mrf.mxu0 }
 0xdc4   : > { %v3601_v61 = vpop.f32.mrf.mxu0 }
 0xdef   : > { %v2692_v2 = vpop.f32.mrf.mxu1 }
 0xdf0   : > { %2707 = vrot.lane.b32.xlu0 %v2692_v2, %s3838_s13  ;;  %s4698_s13 = sld [smem:[#allocation18_spill]] }
 0xdf1   : > { %v3606_v39 = vpop.f32.mrf.mxu1 }
 0xdf3   : > { %v2695_v49 = vpop.f32.mrf.mxu1 }
 0xdf5   : > { %v3607_v53 = vpop.f32.mrf.mxu1 }
 0xdf6   : > { %v3745_v13 = vld [vmem:[%s4698_s13 + $0x8] sm:$0xff]  }
 0xdf7   : > { %3617 = vmatpush3.bf16.msra.mxu1 %v3745_v13 }
 0xdf8   : > { %3618 = vmatprep.subr.bf16.mxu1 %v3834_v45 }
 0xe2d   : > { %v2700_v27 = vpop.permute.xlu0 %2699 }
 0xe2e   : > { %v2710_v58 = vsel %vm1226_vm7, %v2554_v47, %v2700_v27  ;;  %v2967_v27 = vrot.slane %v3978_v1, %v2065_v52 }
 0xe31   : > { %v2704_v3 = vpop.permute.xlu1 %2703 }
 0xe32   : > { %v2711_v4 = vsel %vm1851_vm12, %v2710_v58, %v2704_v3  ;;  %v2972_v58 = vrot.slane %v3978_v1, %v2076_v63 }
 0xe62   : > { %v2708_v42 = vpop.permute.xlu0 %2707 }
 0xe63   : > { %v2712_v5 = vsel %vm1853_vm13, %v2711_v4, %v2708_v42 }
 0xe64   : > { %v2713_v6 = vpack.c.bf16 %v2712_v5, %v2712_v5 }
 0xe66   : > { %3613 = vmatmul.mubr.msk.bf16.vlgmr.msra.gmra.mxu0 %vm831_vm5, %v2713_v6 }
 0xe67   : > { %3632 = vmatprep.mubr.msk.bf16.mxu0 %vm3835_vm11, %v3834_v45  ;;  %3625 = vmatpush3.bf16.msra.mxu0 %v3747_v20 }
 0xe68   : > { %3626 = vmatprep.subr.bf16.mxu0 %v3834_v45 }
 0xe6b   : > { %3627 = vmatpush3.bf16.msra.mxu0 %v3748_v21 }
 0xe6c   : > { %3628 = vmatprep.subr.bf16.mxu0 %v3834_v45 }
 0xe6f   : > { %3629 = vmatpush3.bf16.msra.mxu0 %v3749_v36 }
 0xe70   : > { %3630 = vmatprep.subr.bf16.mxu0 %v3834_v45  ;;  %v2881_v45 = vrot.slane %v3978_v1, %v2060_v55 }
 0xe73   : > { %3631 = vmatpush3.bf16.msra.mxu0 %v3750_v59 }
 0xf26   : > { %v2771_v8 = vpop.f32.mrf.mxu0 }
 0xf27   : > { %v2772_v9 = vadd.f32 %v2771_v8, %v2721_v7 }
 0xf28   : > { %v3614_v0 = vpop.f32.mrf.mxu0 }
 0xf29   : > { %v2777_v10 = vadd.f32 %v2772_v9, %v4465_v31  ;;  %v3746_v31 = vld [vmem:[%s4698_s13] sm:$0xff]  }
 0xf2a   : > { %v2774_v11 = vpop.f32.mrf.mxu0  ;;  %3619 = vmatpush3.bf16.msra.mxu1 %v3746_v31 }
 0xf2b   : > { %v2778_v12 = vsel %vm831_vm5, %v2777_v10, 0.0 }
 0xf2c   : > { %2779 = vadd.xlane.f32.xlu1 %v2778_v12  ;;  %v3615_v30 = vpop.f32.mrf.mxu0 }
 0xfb5   : > { %v2780_v14 = vpop.xlane.xlu1 %2779 }
 0xfb6   : > { %v2781_v16 = vmul.f32 0.03125, %v2780_v14 }
 0xfb8   : > { %v2782_v17 = vsub.f32 %v2777_v10, %v2781_v16 }
 0xfba   : > { %v2783_v18 = vmul.f32 %v2782_v17, %v2782_v17 }
 0xfbc   : > { %v2784_v19 = vsel %vm831_vm5, %v2783_v18, 0.0 }
 0xfbd   : > { %2785 = vadd.xlane.f32.xlu0 %v2784_v19 }
0x1046   : > { %v2786_v23 = vpop.xlane.xlu0 %2785 }
0x1047   : > { %v2787_v24 = vmul.f32 0.03125, %v2786_v23 }
0x1049   : > { %v2788_v44 = vadd.f32 1e-05, %v2787_v24 }
0x104b   : > { %3777 = vrsqrt.f32 %v2788_v44 }
0x1058   : > { %v3778_v28 = vpop.eup %3777 }
0x1059   : > { %v2790_v29 = vmul.f32 %v3778_v28, %v2782_v17 }
0x105b   : > { %v2795_v32 = vmul.f32 %v2794_v25, %v2790_v29 }
0x105d   : > { %v2800_v33 = vadd.f32 %v2799_v22, %v2795_v32 }
0x105f   : > { %v2801_v26 = vpack.c.bf16 %v2800_v33, %v2800_v33 }
0x1061   : > { %3621 = vmatmul.mubr.msk.bf16.vlgmr.msra.gmra.mxu1 %vm831_vm5, %v2801_v26 }
0x1121   : > { %v2862_v37 = vpop.f32.mrf.mxu1 }
0x1122   : > { %v2863_v40 = vadd.f32 %v3153_v15, %v2862_v37 }
0x1123   : > { %v3622_v43 = vpop.f32.mrf.mxu1 }
0x1124   : > { %v2868_v47 = vmax.f32 %v2863_v40, 0.0 }
0x1125   : > { %v2865_v50 = vpop.f32.mrf.mxu1 }
0x1126   : > { %v2869_v48 = vpack.c.bf16 %v2868_v47, %v2868_v47 }
0x1127   : > { %v3623_v54 = vpop.f32.mrf.mxu1 }
0x1128   : > { %3633 = vmatmul.mubr.msk.bf16.vlgmr.msra.gmra.mxu0 %vm2906_vm15, %v2869_v48 }
0x11e8   : > { %v2944_v56 = vpop.f32.mrf.mxu0 }
0x11e9   : > { %v2945_v51 = vadd.f32 %v2944_v56, %v2881_v45 }
0x11ea   : > { %v3634_v57 = vpop.f32.mrf.mxu0 }
0x11eb   : > { %v2950_v35 = vadd.f32 %v2945_v51, %v2800_v33 }
0x11ec   : > { %v2947_v60 = vpop.f32.mrf.mxu0 }
0x11ed   : > { %v2951_v34 = vsel %vm831_vm5, %v2950_v35, 0.0 }
0x11ee   : > { %2952 = vadd.xlane.f32.xlu0 %v2951_v34  ;;  %v3635_v38 = vpop.f32.mrf.mxu0 }
0x1277   : > { %v2953_v46 = vpop.xlane.xlu0 %2952 }
0x1278   : > { %v2954_v61 = vmul.f32 0.03125, %v2953_v46 }
0x127a   : > { %v2955_v62 = vsub.f32 %v2950_v35, %v2954_v61 }
0x127c   : > { %v2956_v2 = vmul.f32 %v2955_v62, %v2955_v62 }
0x127e   : > { %v2957_v39 = vsel %vm831_vm5, %v2956_v2, 0.0 }
0x127f   : > { %2958 = vadd.xlane.f32.xlu1 %v2957_v39 }
0x1308   : > { %v2959_v49 = vpop.xlane.xlu1 %2958 }
0x1309   : > { %v2960_v53 = vmul.f32 0.03125, %v2959_v49 }
0x130b   : > { %v2961_v55 = vadd.f32 1e-05, %v2960_v53 }
0x130d   : > { %3779 = vrsqrt.f32 %v2961_v55 }
0x131a   : > { %v3780_v3 = vpop.eup %3779 }
0x131b   : > { %v2963_v4 = vmul.f32 %v3780_v3, %v2955_v62 }
0x131d   : > { %v2968_v42 = vmul.f32 %v2967_v27, %v2963_v4 }
0x131f   : > { %v2973_v5 = vadd.f32 %v2972_v58, %v2968_v42 }
0x1321   : > { %2974 = vst.msk [vmem:[%s3994_s14] sm:$0xff] %vm831_vm5, %v2973_v5 }
0x1322 PF: > { %s4702_s16 = sld [smem:[#allocation8_spill]] }
0x1323   : > { %s4703_s27 = sld [smem:[#allocation6_spill]] }
0x1324   : > { %s4704_s28 = sld [smem:[#allocation7_spill]] }
0x1325   : > { %s4705_s29 = sld [smem:[#allocation9_spill]] }
0x1326   : > { %s4706_s30 = sld [smem:[#allocation10_spill]] }
0x1328   : > { %s28_s0 = sadd.s32 1, %s4702_s16  }
0x1329   : > { %p25_p10 = scmp.ge.s32.totalorder %s28_s0, 6  }
0x132b   :  { %27 = sbr.rel (!%p25_p10) target bundleno = 12 (0xc), region = 136 }

</bundles_post_ra>
